<compile_context>
chip_gen: v7x
topology: tpu7x:2x2x1
jax: 0.10.0
libtpu: 0.0.40
codegen_flags: <defaults>
</compile_context>

<pallas_src>
import jax
import jax.numpy as jnp
import numpy as np
from jax.experimental import pallas as pl
from jax.experimental.pallas import tpu as pltpu  # noqa: F401  (kept per template)

# ---- small config (scaled down from 1024 / 512 / length 128) ----
B = 2      # batch
L = 8      # max_total_length (sequence)
H = 32     # bert hidden = mmoe hidden = 2 * Hh
Hh = 16    # LSTM hidden per direction
E = 8      # num_experts
T = 6      # num_task
AGG = 6    # agg_num
OP = 4     # op_num
WN = 5     # where_column_num + 1
NEG = 1e6

EH = E * Hh                 # stacked per-direction hidden width (=128 lanes)
G4 = 4 * EH                 # stacked gate width, gate-major blocks i|f|g|o
XW = 2 * EH                 # stacked bi-LSTM feature width [fwd experts | bwd experts]
DIRECT = 2 + AGG + OP + WN  # packed width of the 5 "direct" heads
HEADW = DIRECT + 2 * H      # direct heads + start/end weights, fused
OUTW = 128                  # lane-dense packed kernel output width
assert L % 8 == 0 and EH % 128 == 0 and DIRECT + 2 * L <= OUTW


# ------------------------- numerically-safe helpers -------------------------
def _softmax(x, axis):
    m = jnp.max(x, axis=axis, keepdims=True)
    e = jnp.exp(x - m)
    return e / jnp.sum(e, axis=axis, keepdims=True)


def _log_softmax(x, axis):
    m = jnp.max(x, axis=axis, keepdims=True)
    s = x - m
    return s - jnp.log(jnp.sum(jnp.exp(s), axis=axis, keepdims=True))


def _log_sigmoid(x):
    z = -x
    return -(jnp.maximum(z, 0.0) + jnp.log(1.0 + jnp.exp(-jnp.abs(z))))


# --------------------------------- kernel -----------------------------------
def hydranet_kernel(bert_ref, pooled_ref, segt_ref, vmask_ref,
                    wall_ref, ball_ref, whhf_ref, whhb_ref,
                    fc1w_ref, fc1b_ref, attw_ref, poolx_ref, sel_ref,
                    pa_ref, pb_ref, bc_ref, whead_ref, bhead_ref,
                    out_ref):
    f32 = jnp.float32
    bf16 = jnp.bfloat16
    bert = bert_ref[...]                                    # (B, L, H) f32
    pooled = pooled_ref[...]                                # (B, H)    f32

    # --- ONE fused MXU pass: both LSTM input projections + task-gate logits.
    #     Rows = [bert rows (b*L+t) | pooled rows], lanes = [wihf | wihb | wg].
    #     Weights streamed as bf16, accumulation in f32.
    x_all = jnp.concatenate([bert.reshape(B * L, H), pooled], axis=0)
    gall = (jnp.dot(x_all.astype(bf16), wall_ref[...], preferred_element_type=f32)
            + ball_ref[...])                                # (B*L+B, 2*G4+2T)
    gif3 = gall[:B * L, 0:G4].reshape(B, L, G4)             # fwd gate pre-acts
    gib3 = gall[:B * L, G4:2 * G4].reshape(B, L, G4)        # bwd gate pre-acts
    glog = gall[B * L:B * L + B, 2 * G4:2 * G4 + 2 * T]     # (B, 2T) gate logits

    whhf = whhf_ref[...]                                    # (EH, G4) bf16, block-diag
    whhb = whhb_ref[...]

    def sig(x):  # sigmoid(x) = 0.5*(tanh(x/2)+1): one EUP op instead of exp+div
        return 0.5 * (jnp.tanh(0.5 * x) + 1.0)

    def lstm_step(h, c, gin, whh):
        g = gin + jnp.dot(h.astype(bf16), whh, preferred_element_type=f32)  # (B, G4)
        i = sig(g[:, 0 * EH:1 * EH])      # each gate slice = full 128-lane block
        f = sig(g[:, 1 * EH:2 * EH])
        gg = jnp.tanh(g[:, 2 * EH:3 * EH])
        o = sig(g[:, 3 * EH:4 * EH])
        c = f * c + i * gg
        return o * jnp.tanh(c), c

    # Recurrence fully unrolled (L small & static); only the small bf16 recurrent
    # matmul + gate nonlinearities sit on the serial chain.  The independent fwd
    # and bwd chains are interleaved; per-step h stays in registers (no scratch,
    # no masked per-step stores).
    hf = jnp.zeros((B, EH), f32); cf = jnp.zeros((B, EH), f32)
    hb = jnp.zeros((B, EH), f32); cb = jnp.zeros((B, EH), f32)
    hs_f = [None] * L
    hs_b = [None] * L
    for s in range(L):
        hf, cf = lstm_step(hf, cf, gif3[:, s, :], whhf)
        hs_f[s] = hf
        hb, cb = lstm_step(hb, cb, gib3[:, L - 1 - s, :], whhb)
        hs_b[L - 1 - s] = hb

    # t-major hidden sequence (row = t*B + b), built with two lane-aligned concats
    xl2 = jnp.concatenate([jnp.concatenate(hs_f, axis=0),
                           jnp.concatenate(hs_b, axis=0)], axis=-1)   # (L*B, XW)

    # --- attention + masked softmax pooling, batched over all (t, b) rows and
    #     all experts at once (block-diagonal packed fc1 / attention weights) ---
    att = jnp.tanh(jnp.dot(xl2.astype(bf16), fc1w_ref[...],
                           preferred_element_type=f32) + fc1b_ref[...])  # (L*B, XW)
    sc = jnp.dot(att, attw_ref[...], preferred_element_type=f32)         # (L*B, E)
    seg = segt_ref[...]                                                  # (L*B, 1)
    p = _softmax((sc * seg - NEG * (1.0 - seg)).reshape(L, B, E),
                 axis=0).reshape(L * B, E)
    pw = jnp.dot(p, poolx_ref[...], preferred_element_type=f32)          # (L*B, XW)
    # pooled_x = sum_t p * xl, done as a selection-matrix matmul (no reshape/reduce)
    pooled_x = jnp.dot(sel_ref[...], pw * xl2, preferred_element_type=f32)  # (B, XW)

    # --- task gates: vectorised pair-softmax, then gate-broadcast / expert-pick
    #     matmuls instead of per-task slice+concat shuffles ---
    g0l, g1l = glog[:, :T], glog[:, T:2 * T]
    gm = jnp.maximum(g0l, g1l)
    e0, e1 = jnp.exp(g0l - gm), jnp.exp(g1l - gm)
    inv = 1.0 / (e0 + e1)
    gA = jnp.dot(e0 * inv, bc_ref[...], preferred_element_type=f32)      # (B, T*H)
    gB = jnp.dot(e1 * inv, bc_ref[...], preferred_element_type=f32)
    eA = jnp.dot(pooled_x, pa_ref[...], preferred_element_type=f32)      # (B, T*H)
    eB = jnp.dot(pooled_x, pb_ref[...], preferred_element_type=f32)
    s_big = eA * gA + eB * gB                                            # (B, T*H)

    # all 5 direct heads + start/end head fused into one block matmul
    heads = (jnp.dot(s_big, whead_ref[...], preferred_element_type=f32)
             + bhead_ref[...])                                           # (B, HEADW)
    direct = heads[:, :DIRECT]
    se_r = heads[:, DIRECT:DIRECT + 2 * H].reshape(B, 2, H)              # [sw | ew]

    # --- span logits on the MXU (batched dot_general), masked + log_softmax ---
    vm = vmask_ref[...][:, None, :]                                      # (B, 1, L)
    span = jnp.einsum('bkh,blh->bkl', se_r, bert, preferred_element_type=f32)
    span = span * vm - NEG * (1.0 - vm)                                  # (B, 2, L)
    span_ls = _log_softmax(span, axis=2).reshape(B, 2 * L)               # start|end

    # --- output transforms + one lane-dense packed store ---
    # (per-slice log_softmax kept: slices are <=6 lanes of a 2-row tensor)
    pad = jnp.zeros((B, OUTW - (DIRECT + 2 * L)), f32)
    out_ref[...] = jnp.concatenate([
        _log_sigmoid(direct[:, 0:1]),                               # column_funcs
        _log_sigmoid(direct[:, 1:2]),                               # column_funcw
        _log_softmax(direct[:, 2:2 + AGG], axis=1),                 # agg
        _log_softmax(direct[:, 2 + AGG:2 + AGG + OP], axis=1),      # op
        _log_softmax(direct[:, 2 + AGG + OP:DIRECT], axis=1),       # where_num
        span_ls,                                                    # value_start|end
        pad], axis=-1)


# --------------------------------- wrapper ----------------------------------
_SLOTS = (("column_funcs", 1), ("column_funcw", 1), ("agg", AGG), ("op", OP),
          ("where_num", WN), ("value_start", L), ("value_end", L))


@jax.jit
def hydranet_forward(packed, bert_output, pooled_output, input_mask, segment_ids):
    # dropout (inference) -> identity; loss branch (select=None) -> None
    seg_t = segment_ids.astype(jnp.float32).T.reshape(L * B, 1)   # t-major mask
    vmask = input_mask.astype(jnp.float32)                        # (B, L)

    packed_out = pl.pallas_call(
        hydranet_kernel,
        out_shape=jax.ShapeDtypeStruct((B, OUTW), jnp.float32),
    )(bert_output, pooled_output, seg_t, vmask,
      packed["wall"], packed["ball"], packed["whhf"], packed["whhb"],
      packed["fc1w"], packed["fc1b"], packed["attw"], packed["poolx"],
      packed["sel"], packed["pa"], packed["pb"], packed["bc"],
      packed["whead"], packed["bhead"])

    res = {"loss": None, "output": pooled_output, "boutput": bert_output}
    c = 0
    for name, w in _SLOTS:
        res[name] = packed_out[:, c:c + w]
        c += w
    return res


# ------------------------------- parameters ---------------------------------
def init_raw_params(key):
    """Parameters in the PyTorch module's per-expert layout (our own init)."""
    ks = jax.random.split(key, 24)

    def rnd(k, shape, scale=0.1):
        return scale * jax.random.normal(k, shape, dtype=jnp.float32)

    p = {}
    p["wih_f"] = rnd(ks[0], (E, H, 4 * Hh))
    p["whh_f"] = rnd(ks[1], (E, Hh, 4 * Hh))
    p["b_f"] = rnd(ks[2], (E, 4 * Hh))
    p["wih_b"] = rnd(ks[3], (E, H, 4 * Hh))
    p["whh_b"] = rnd(ks[4], (E, Hh, 4 * Hh))
    p["b_b"] = rnd(ks[5], (E, 4 * Hh))
    p["fc1_w"] = rnd(ks[6], (E, H, H))
    p["fc1_b"] = rnd(ks[7], (E, H))
    p["att_w"] = jax.random.uniform(ks[8], (E, H, 1), dtype=jnp.float32)
    p["w_gates"] = jax.random.normal(ks[9], (T, H, 2), dtype=jnp.float32)
    heads = (("cs", 1), ("cw", 1), ("agg", AGG), ("op", OP),
             ("wn", WN), ("st", H), ("en", H))
    i = 10
    for name, od in heads:
        p[name + "_w"] = rnd(ks[i], (H, od)); i += 1
        p[name + "_b"] = rnd(ks[i], (od,)); i += 1
    return p


def pack_params(raw):
    """Repack per-expert params into the stacked / block-diagonal kernel layout.
    MXU-streamed weights (wall, whh, fc1) are stored in bf16; everything that is
    0/1 (permutations / broadcast matrices) or tiny stays f32."""
    r = {k: np.asarray(v, dtype=np.float32) for k, v in raw.items()}

    wihf = np.zeros((H, G4), np.float32); wihb = np.zeros((H, G4), np.float32)
    whhf = np.zeros((EH, G4), np.float32); whhb = np.zeros((EH, G4), np.float32)
    bf = np.zeros((G4,), np.float32); bb = np.zeros((G4,), np.float32)
    for e in range(E):
        for k in range(4):                                  # gate order i, f, g, o
            dst = slice(k * EH + e * Hh, k * EH + (e + 1) * Hh)
            src = slice(k * Hh, (k + 1) * Hh)
            wihf[:, dst] = r["wih_f"][e][:, src]
            wihb[:, dst] = r["wih_b"][e][:, src]
            whhf[e * Hh:(e + 1) * Hh, dst] = r["whh_f"][e][:, src]
            whhb[e * Hh:(e + 1) * Hh, dst] = r["whh_b"][e][:, src]
            bf[dst] = r["b_f"][e][src]
            bb[dst] = r["b_b"][e][src]

    # fused input-projection + gate-logit weight: [wihf | wihb | wg], bias [bf|bb|0]
    wg = np.zeros((H, 2 * T), np.float32)
    for k in range(T):
        wg[:, k] = r["w_gates"][k][:, 0]
        wg[:, T + k] = r["w_gates"][k][:, 1]
    wall = np.concatenate([wihf, wihb, wg], axis=1)                  # (H, 2*G4+2T)
    ball = np.concatenate([bf, bb, np.zeros(2 * T, np.float32)])[None, :]

    # fc1 / attention weights: block-diagonal over experts.
    # input rows follow the hidden-sequence lane layout [fwd e0..e7 | bwd e0..e7],
    # output cols are expert-major (e*H + j).
    fc1w = np.zeros((XW, XW), np.float32)
    fc1b = np.zeros((1, XW), np.float32)
    attw = np.zeros((XW, E), np.float32)
    poolx = np.zeros((E, XW), np.float32)
    for e in range(E):
        w = r["fc1_w"][e]                                   # rows: fwd(Hh) then bwd(Hh)
        fc1w[e * Hh:(e + 1) * Hh, e * H:(e + 1) * H] = w[:Hh, :]
        fc1w[EH + e * Hh:EH + (e + 1) * Hh, e * H:(e + 1) * H] = w[Hh:, :]
        fc1b[0, e * H:(e + 1) * H] = r["fc1_b"][e]
        attw[e * H:(e + 1) * H, e] = r["att_w"][e][:, 0]
        poolx[e, e * Hh:(e + 1) * Hh] = 1.0
        poolx[e, EH + e * Hh:EH + (e + 1) * Hh] = 1.0

    # selection matrix for the pooling time-sum over t-major rows (row = t*B + b)
    sel = np.zeros((B, L * B), np.float32)
    for b in range(B):
        sel[b, b::B] = 1.0

    # gate mixing without lane shuffles:
    #   eA = pooled_x @ PA, eB = pooled_x @ PB  (expert picks, torch feature order)
    #   gA = g0 @ BC, gB = g1 @ BC               (gate broadcast over task blocks)
    #   s_big = eA*gA + eB*gB; heads = s_big @ whead + bhead
    TASK_A = [0, 0, 0, 0, 0, 6]
    TASK_B = [1, 2, 3, 4, 5, 0]
    PA = np.zeros((XW, T * H), np.float32)
    PB = np.zeros((XW, T * H), np.float32)
    BC = np.zeros((T, T * H), np.float32)
    for k in range(T):
        BC[k, k * H:(k + 1) * H] = 1.0
        ea, eb = TASK_A[k], TASK_B[k]
        for f in range(Hh):
            PA[ea * Hh + f, k * H + f] = 1.0
            PA[EH + ea * Hh + f, k * H + Hh + f] = 1.0
            PB[eb * Hh + f, k * H + f] = 1.0
            PB[EH + eb * Hh + f, k * H + Hh + f] = 1.0

    # all heads fused: rows = task-stacked mixed features, cols = [direct | sw | ew]
    whead = np.zeros((T * H, HEADW), np.float32)
    bhead = np.zeros((1, HEADW), np.float32)
    spans = (("cs", 0, 1), ("cw", 1, 2), ("agg", 2, 2 + AGG),
             ("op", 2 + AGG, 2 + AGG + OP), ("wn", 2 + AGG + OP, DIRECT))
    for k, (name, c0, c1) in enumerate(spans):
        whead[k * H:(k + 1) * H, c0:c1] = r[name + "_w"]
        bhead[0, c0:c1] = r[name + "_b"]
    whead[5 * H:6 * H, DIRECT:DIRECT + H] = r["st_w"]
    whead[5 * H:6 * H, DIRECT + H:DIRECT + 2 * H] = r["en_w"]
    bhead[0, DIRECT:DIRECT + H] = r["st_b"]
    bhead[0, DIRECT + H:DIRECT + 2 * H] = r["en_b"]

    bf16_keys = {"wall": wall, "whhf": whhf, "whhb": whhb, "fc1w": fc1w}
    f32_keys = dict(ball=ball, fc1b=fc1b, attw=attw, poolx=poolx, sel=sel,
                    pa=PA, pb=PB, bc=BC, whead=whead, bhead=bhead)
    out = {k: jnp.asarray(v, dtype=jnp.bfloat16) for k, v in bf16_keys.items()}
    out.update({k: jnp.asarray(v, dtype=jnp.float32) for k, v in f32_keys.items()})
    return out


# ------------------------- plain-JAX reference check ------------------------
def _lstm_dir_ref(x, wih, whh, b, reverse):
    h = jnp.zeros((B, Hh), jnp.float32)
    c = jnp.zeros((B, Hh), jnp.float32)
    hs = [None] * L
    order = range(L - 1, -1, -1) if reverse else range(L)
    for t in order:
        g = x[:, t, :] @ wih + h @ whh + b
        i = jax.nn.sigmoid(g[:, :Hh])
        f = jax.nn.sigmoid(g[:, Hh:2 * Hh])
        gg = jnp.tanh(g[:, 2 * Hh:3 * Hh])
        o = jax.nn.sigmoid(g[:, 3 * Hh:])
        c = f * c + i * gg
        h = o * jnp.tanh(c)
        hs[t] = h
    return jnp.stack(hs, axis=1)                            # (B, L, Hh)


@jax.jit
def reference_forward(raw, bert, pooled, input_mask, segment_ids):
    """Faithful plain-JAX (all-f32) port of HydraNetsw.forward (labels=None)."""
    seg = segment_ids.astype(jnp.float32)
    experts_o = []
    for e in range(E):
        hf = _lstm_dir_ref(bert, raw["wih_f"][e], raw["whh_f"][e], raw["b_f"][e], False)
        hb = _lstm_dir_ref(bert, raw["wih_b"][e], raw["whh_b"][e], raw["b_b"][e], True)
        xl = jnp.concatenate([hf, hb], axis=-1)             # (B, L, H)
        atten = jnp.tanh(xl @ raw["fc1_w"][e] + raw["fc1_b"][e])
        outs = []
        for bi in range(B):
            s = atten[bi] @ raw["att_w"][e]                 # (L, 1)
            m = seg[bi][:, None]
            p = jax.nn.softmax(s * m - NEG * (1.0 - m), axis=0)
            outs.append((xl[bi].T @ p)[:, 0])               # (H,)
        experts_o.append(jnp.stack(outs, axis=0))           # (B, H)
    gates = [jax.nn.softmax(pooled @ raw["w_gates"][k], axis=1) for k in range(T)]

    def lin(x, name):
        return x @ raw[name + "_w"] + raw[name + "_b"]

    def mixed(a, b2, k):
        return experts_o[a] * gates[k][:, 0:1] + experts_o[b2] * gates[k][:, 1:2]

    cs = lin(mixed(0, 1, 0), "cs")
    cw = lin(mixed(0, 2, 1), "cw")
    agg = lin(mixed(0, 3, 2), "agg")
    op = lin(mixed(0, 4, 3), "op")
    wn = lin(mixed(0, 5, 4), "wn")
    m5 = mixed(6, 0, 5)
    swt = lin(m5, "st")
    ewt = lin(m5, "en")
    vm = input_mask.astype(jnp.float32)
    start = jnp.einsum('blh,bh->bl', bert, swt) * vm - NEG * (1.0 - vm)
    end = jnp.einsum('blh,bh->bl', bert, ewt) * vm - NEG * (1.0 - vm)
    return {"column_funcs": jax.nn.log_sigmoid(cs),
            "column_funcw": jax.nn.log_sigmoid(cw),
            "agg": jax.nn.log_softmax(agg, axis=1),
            "op": jax.nn.log_softmax(op, axis=1),
            "where_num": jax.nn.log_softmax(wn, axis=1),
            "value_start": jax.nn.log_softmax(start, axis=1),
            "value_end": jax.nn.log_softmax(end, axis=1)}


if __name__ == "__main__":
    key = jax.random.PRNGKey(0)
    kp, kb, kpo = jax.random.split(key, 3)
    raw = init_raw_params(kp)
    packed = pack_params(raw)

    # synthesized base_model outputs (see TODO(synk) above)
    bert_output = jax.random.normal(kb, (B, L, H), dtype=jnp.float32)
    pooled_output = jax.random.normal(kpo, (B, H), dtype=jnp.float32)
    input_mask = jnp.ones((B, L), dtype=jnp.int32).at[1, L - 2:].set(0)
    segment_ids = jnp.broadcast_to((jnp.arange(L) >= 3).astype(jnp.int32), (B, L))

    out = hydranet_forward(packed, bert_output, pooled_output,
                           input_mask, segment_ids)
    jax.block_until_ready(out)

    ref = reference_forward(raw, bert_output, pooled_output,
                            input_mask, segment_ids)
    # Tolerance deliberately re-loosened for bf16 MXU operands (f32 accumulation);
    # the reference path is all-f32.
    for name, _ in _SLOTS:
        np.testing.assert_allclose(np.asarray(out[name]), np.asarray(ref[name]),
                                   rtol=5e-2, atol=5e-2)
    print("KERNEL_OK")
</pallas_src>

<mosaic_0001>
module attributes {stable_mosaic.version = 11 : i64} {
  func.func @hydranet_kernel(%arg0: memref<2x8x32xf32, #tpu.memory_space<vmem>>, %arg1: memref<2x32xf32, #tpu.memory_space<vmem>>, %arg2: memref<16x1xf32, #tpu.memory_space<vmem>>, %arg3: memref<2x8xf32, #tpu.memory_space<vmem>>, %arg4: memref<32x1036xbf16, #tpu.memory_space<vmem>>, %arg5: memref<1x1036xf32, #tpu.memory_space<vmem>>, %arg6: memref<128x512xbf16, #tpu.memory_space<vmem>>, %arg7: memref<128x512xbf16, #tpu.memory_space<vmem>>, %arg8: memref<256x256xbf16, #tpu.memory_space<vmem>>, %arg9: memref<1x256xf32, #tpu.memory_space<vmem>>, %arg10: memref<256x8xf32, #tpu.memory_space<vmem>>, %arg11: memref<8x256xf32, #tpu.memory_space<vmem>>, %arg12: memref<2x16xf32, #tpu.memory_space<vmem>>, %arg13: memref<256x192xf32, #tpu.memory_space<vmem>>, %arg14: memref<256x192xf32, #tpu.memory_space<vmem>>, %arg15: memref<6x192xf32, #tpu.memory_space<vmem>>, %arg16: memref<192x81xf32, #tpu.memory_space<vmem>>, %arg17: memref<1x81xf32, #tpu.memory_space<vmem>>, %arg18: memref<2x128xf32, #tpu.memory_space<vmem>>) attributes {dimension_semantics = [], scalar_prefetch = 0 : i64, scratch_operands = 0 : i64, tpu.core_type = #tpu.core_type<tc>} {
    %c0 = arith.constant 0 : index
    %c0_0 = arith.constant 0 : index
    %c0_1 = arith.constant 0 : index
    %0 = vector.load %arg0[%c0, %c0_0, %c0_1] : memref<2x8x32xf32, #tpu.memory_space<vmem>>, vector<2x8x32xf32>
    %c0_2 = arith.constant 0 : index
    %c0_3 = arith.constant 0 : index
    %1 = vector.load %arg1[%c0_2, %c0_3] : memref<2x32xf32, #tpu.memory_space<vmem>>, vector<2x32xf32>
    %2 = vector.shape_cast %0 : vector<2x8x32xf32> to vector<16x32xf32>
    %3 = tpu.concatenate %2, %1 in 0 : vector<16x32xf32>, vector<2x32xf32> -> vector<18x32xf32>
    %4 = arith.truncf %3 : vector<18x32xf32> to vector<18x32xbf16>
    %c0_4 = arith.constant 0 : index
    %c0_5 = arith.constant 0 : index
    %5 = vector.load %arg4[%c0_4, %c0_5] : memref<32x1036xbf16, #tpu.memory_space<vmem>>, vector<32x1036xbf16>
    %cst = arith.constant dense<0.000000e+00> : vector<18x1036xf32>
    %6 = tpu.matmul %4, %5, %cst {dimension_numbers = #tpu.dot_dimension_numbers<[1], [0], [0], [1], [0, 0, 1, 1], [], []>} : vector<18x32xbf16>, vector<32x1036xbf16>, vector<18x1036xf32> -> vector<18x1036xf32>
    %c0_6 = arith.constant 0 : index
    %c0_7 = arith.constant 0 : index
    %7 = vector.load %arg5[%c0_6, %c0_7] : memref<1x1036xf32, #tpu.memory_space<vmem>>, vector<1x1036xf32>
    %8 = vector.broadcast %7 : vector<1x1036xf32> to vector<18x1036xf32>
    %9 = arith.addf %6, %8 : vector<18x1036xf32>
    %10 = vector.extract_strided_slice %9 {offsets = [0, 0], sizes = [16, 512], strides = [1, 1]} : vector<18x1036xf32> to vector<16x512xf32>
    %11 = vector.shape_cast %10 : vector<16x512xf32> to vector<2x8x512xf32>
    %12 = vector.extract_strided_slice %9 {offsets = [0, 512], sizes = [16, 512], strides = [1, 1]} : vector<18x1036xf32> to vector<16x512xf32>
    %13 = vector.shape_cast %12 : vector<16x512xf32> to vector<2x8x512xf32>
    %14 = vector.extract_strided_slice %9 {offsets = [16, 1024], sizes = [2, 12], strides = [1, 1]} : vector<18x1036xf32> to vector<2x12xf32>
    %c0_8 = arith.constant 0 : index
    %c0_9 = arith.constant 0 : index
    %15 = vector.load %arg6[%c0_8, %c0_9] : memref<128x512xbf16, #tpu.memory_space<vmem>>, vector<128x512xbf16>
    %c0_10 = arith.constant 0 : index
    %c0_11 = arith.constant 0 : index
    %16 = vector.load %arg7[%c0_10, %c0_11] : memref<128x512xbf16, #tpu.memory_space<vmem>>, vector<128x512xbf16>
    %cst_12 = arith.constant 0.000000e+00 : f32
    %17 = vector.broadcast %cst_12 : f32 to vector<2x128xf32>
    %cst_13 = arith.constant 0.000000e+00 : f32
    %18 = vector.broadcast %cst_13 : f32 to vector<2x128xf32>
    %cst_14 = arith.constant 0.000000e+00 : f32
    %19 = vector.broadcast %cst_14 : f32 to vector<2x128xf32>
    %cst_15 = arith.constant 0.000000e+00 : f32
    %20 = vector.broadcast %cst_15 : f32 to vector<2x128xf32>
    %21 = vector.extract_strided_slice %11 {offsets = [0, 0, 0], sizes = [2, 1, 512], strides = [1, 1, 1]} : vector<2x8x512xf32> to vector<2x1x512xf32>
    %22 = vector.shape_cast %21 : vector<2x1x512xf32> to vector<2x512xf32>
    %23 = arith.truncf %17 : vector<2x128xf32> to vector<2x128xbf16>
    %cst_16 = arith.constant dense<0.000000e+00> : vector<2x512xf32>
    %24 = tpu.matmul %23, %15, %cst_16 {dimension_numbers = #tpu.dot_dimension_numbers<[1], [0], [0], [1], [0, 0, 1, 1], [], []>} : vector<2x128xbf16>, vector<128x512xbf16>, vector<2x512xf32> -> vector<2x512xf32>
    %25 = arith.addf %22, %24 : vector<2x512xf32>
    %26 = vector.extract_strided_slice %25 {offsets = [0, 0], sizes = [2, 128], strides = [1, 1]} : vector<2x512xf32> to vector<2x128xf32>
    %cst_17 = arith.constant 5.000000e-01 : f32
    %27 = vector.broadcast %cst_17 : f32 to vector<2x128xf32>
    %28 = arith.mulf %27, %26 : vector<2x128xf32>
    %29 = math.tanh %28 : vector<2x128xf32>
    %cst_18 = arith.constant 1.000000e+00 : f32
    %30 = vector.broadcast %cst_18 : f32 to vector<2x128xf32>
    %31 = arith.addf %29, %30 : vector<2x128xf32>
    %cst_19 = arith.constant 5.000000e-01 : f32
    %32 = vector.broadcast %cst_19 : f32 to vector<2x128xf32>
    %33 = arith.mulf %32, %31 : vector<2x128xf32>
    %34 = vector.extract_strided_slice %25 {offsets = [0, 128], sizes = [2, 128], strides = [1, 1]} : vector<2x512xf32> to vector<2x128xf32>
    %cst_20 = arith.constant 5.000000e-01 : f32
    %35 = vector.broadcast %cst_20 : f32 to vector<2x128xf32>
    %36 = arith.mulf %35, %34 : vector<2x128xf32>
    %37 = math.tanh %36 : vector<2x128xf32>
    %cst_21 = arith.constant 1.000000e+00 : f32
    %38 = vector.broadcast %cst_21 : f32 to vector<2x128xf32>
    %39 = arith.addf %37, %38 : vector<2x128xf32>
    %cst_22 = arith.constant 5.000000e-01 : f32
    %40 = vector.broadcast %cst_22 : f32 to vector<2x128xf32>
    %41 = arith.mulf %40, %39 : vector<2x128xf32>
    %42 = vector.extract_strided_slice %25 {offsets = [0, 256], sizes = [2, 128], strides = [1, 1]} : vector<2x512xf32> to vector<2x128xf32>
    %43 = math.tanh %42 : vector<2x128xf32>
    %44 = vector.extract_strided_slice %25 {offsets = [0, 384], sizes = [2, 128], strides = [1, 1]} : vector<2x512xf32> to vector<2x128xf32>
    %cst_23 = arith.constant 5.000000e-01 : f32
    %45 = vector.broadcast %cst_23 : f32 to vector<2x128xf32>
    %46 = arith.mulf %45, %44 : vector<2x128xf32>
    %47 = math.tanh %46 : vector<2x128xf32>
    %cst_24 = arith.constant 1.000000e+00 : f32
    %48 = vector.broadcast %cst_24 : f32 to vector<2x128xf32>
    %49 = arith.addf %47, %48 : vector<2x128xf32>
    %cst_25 = arith.constant 5.000000e-01 : f32
    %50 = vector.broadcast %cst_25 : f32 to vector<2x128xf32>
    %51 = arith.mulf %50, %49 : vector<2x128xf32>
    %52 = arith.mulf %41, %18 : vector<2x128xf32>
    %53 = arith.mulf %33, %43 : vector<2x128xf32>
    %54 = arith.addf %52, %53 : vector<2x128xf32>
    %55 = math.tanh %54 : vector<2x128xf32>
    %56 = arith.mulf %51, %55 : vector<2x128xf32>
    %57 = vector.extract_strided_slice %13 {offsets = [0, 7, 0], sizes = [2, 1, 512], strides = [1, 1, 1]} : vector<2x8x512xf32> to vector<2x1x512xf32>
    %58 = vector.shape_cast %57 : vector<2x1x512xf32> to vector<2x512xf32>
    %59 = arith.truncf %19 : vector<2x128xf32> to vector<2x128xbf16>
    %cst_26 = arith.constant dense<0.000000e+00> : vector<2x512xf32>
    %60 = tpu.matmul %59, %16, %cst_26 {dimension_numbers = #tpu.dot_dimension_numbers<[1], [0], [0], [1], [0, 0, 1, 1], [], []>} : vector<2x128xbf16>, vector<128x512xbf16>, vector<2x512xf32> -> vector<2x512xf32>
    %61 = arith.addf %58, %60 : vector<2x512xf32>
    %62 = vector.extract_strided_slice %61 {offsets = [0, 0], sizes = [2, 128], strides = [1, 1]} : vector<2x512xf32> to vector<2x128xf32>
    %cst_27 = arith.constant 5.000000e-01 : f32
    %63 = vector.broadcast %cst_27 : f32 to vector<2x128xf32>
    %64 = arith.mulf %63, %62 : vector<2x128xf32>
    %65 = math.tanh %64 : vector<2x128xf32>
    %cst_28 = arith.constant 1.000000e+00 : f32
    %66 = vector.broadcast %cst_28 : f32 to vector<2x128xf32>
    %67 = arith.addf %65, %66 : vector<2x128xf32>
    %cst_29 = arith.constant 5.000000e-01 : f32
    %68 = vector.broadcast %cst_29 : f32 to vector<2x128xf32>
    %69 = arith.mulf %68, %67 : vector<2x128xf32>
    %70 = vector.extract_strided_slice %61 {offsets = [0, 128], sizes = [2, 128], strides = [1, 1]} : vector<2x512xf32> to vector<2x128xf32>
    %cst_30 = arith.constant 5.000000e-01 : f32
    %71 = vector.broadcast %cst_30 : f32 to vector<2x128xf32>
    %72 = arith.mulf %71, %70 : vector<2x128xf32>
    %73 = math.tanh %72 : vector<2x128xf32>
    %cst_31 = arith.constant 1.000000e+00 : f32
    %74 = vector.broadcast %cst_31 : f32 to vector<2x128xf32>
    %75 = arith.addf %73, %74 : vector<2x128xf32>
    %cst_32 = arith.constant 5.000000e-01 : f32
    %76 = vector.broadcast %cst_32 : f32 to vector<2x128xf32>
    %77 = arith.mulf %76, %75 : vector<2x128xf32>
    %78 = vector.extract_strided_slice %61 {offsets = [0, 256], sizes = [2, 128], strides = [1, 1]} : vector<2x512xf32> to vector<2x128xf32>
    %79 = math.tanh %78 : vector<2x128xf32>
    %80 = vector.extract_strided_slice %61 {offsets = [0, 384], sizes = [2, 128], strides = [1, 1]} : vector<2x512xf32> to vector<2x128xf32>
    %cst_33 = arith.constant 5.000000e-01 : f32
    %81 = vector.broadcast %cst_33 : f32 to vector<2x128xf32>
    %82 = arith.mulf %81, %80 : vector<2x128xf32>
    %83 = math.tanh %82 : vector<2x128xf32>
    %cst_34 = arith.constant 1.000000e+00 : f32
    %84 = vector.broadcast %cst_34 : f32 to vector<2x128xf32>
    %85 = arith.addf %83, %84 : vector<2x128xf32>
    %cst_35 = arith.constant 5.000000e-01 : f32
    %86 = vector.broadcast %cst_35 : f32 to vector<2x128xf32>
    %87 = arith.mulf %86, %85 : vector<2x128xf32>
    %88 = arith.mulf %77, %20 : vector<2x128xf32>
    %89 = arith.mulf %69, %79 : vector<2x128xf32>
    %90 = arith.addf %88, %89 : vector<2x128xf32>
    %91 = math.tanh %90 : vector<2x128xf32>
    %92 = arith.mulf %87, %91 : vector<2x128xf32>
    %93 = vector.extract_strided_slice %11 {offsets = [0, 1, 0], sizes = [2, 1, 512], strides = [1, 1, 1]} : vector<2x8x512xf32> to vector<2x1x512xf32>
    %94 = vector.shape_cast %93 : vector<2x1x512xf32> to vector<2x512xf32>
    %95 = arith.truncf %56 : vector<2x128xf32> to vector<2x128xbf16>
    %cst_36 = arith.constant dense<0.000000e+00> : vector<2x512xf32>
    %96 = tpu.matmul %95, %15, %cst_36 {dimension_numbers = #tpu.dot_dimension_numbers<[1], [0], [0], [1], [0, 0, 1, 1], [], []>} : vector<2x128xbf16>, vector<128x512xbf16>, vector<2x512xf32> -> vector<2x512xf32>
    %97 = arith.addf %94, %96 : vector<2x512xf32>
    %98 = vector.extract_strided_slice %97 {offsets = [0, 0], sizes = [2, 128], strides = [1, 1]} : vector<2x512xf32> to vector<2x128xf32>
    %cst_37 = arith.constant 5.000000e-01 : f32
    %99 = vector.broadcast %cst_37 : f32 to vector<2x128xf32>
    %100 = arith.mulf %99, %98 : vector<2x128xf32>
    %101 = math.tanh %100 : vector<2x128xf32>
    %cst_38 = arith.constant 1.000000e+00 : f32
    %102 = vector.broadcast %cst_38 : f32 to vector<2x128xf32>
    %103 = arith.addf %101, %102 : vector<2x128xf32>
    %cst_39 = arith.constant 5.000000e-01 : f32
    %104 = vector.broadcast %cst_39 : f32 to vector<2x128xf32>
    %105 = arith.mulf %104, %103 : vector<2x128xf32>
    %106 = vector.extract_strided_slice %97 {offsets = [0, 128], sizes = [2, 128], strides = [1, 1]} : vector<2x512xf32> to vector<2x128xf32>
    %cst_40 = arith.constant 5.000000e-01 : f32
    %107 = vector.broadcast %cst_40 : f32 to vector<2x128xf32>
    %108 = arith.mulf %107, %106 : vector<2x128xf32>
    %109 = math.tanh %108 : vector<2x128xf32>
    %cst_41 = arith.constant 1.000000e+00 : f32
    %110 = vector.broadcast %cst_41 : f32 to vector<2x128xf32>
    %111 = arith.addf %109, %110 : vector<2x128xf32>
    %cst_42 = arith.constant 5.000000e-01 : f32
    %112 = vector.broadcast %cst_42 : f32 to vector<2x128xf32>
    %113 = arith.mulf %112, %111 : vector<2x128xf32>
    %114 = vector.extract_strided_slice %97 {offsets = [0, 256], sizes = [2, 128], strides = [1, 1]} : vector<2x512xf32> to vector<2x128xf32>
    %115 = math.tanh %114 : vector<2x128xf32>
    %116 = vector.extract_strided_slice %97 {offsets = [0, 384], sizes = [2, 128], strides = [1, 1]} : vector<2x512xf32> to vector<2x128xf32>
    %cst_43 = arith.constant 5.000000e-01 : f32
    %117 = vector.broadcast %cst_43 : f32 to vector<2x128xf32>
    %118 = arith.mulf %117, %116 : vector<2x128xf32>
    %119 = math.tanh %118 : vector<2x128xf32>
    %cst_44 = arith.constant 1.000000e+00 : f32
    %120 = vector.broadcast %cst_44 : f32 to vector<2x128xf32>
    %121 = arith.addf %119, %120 : vector<2x128xf32>
    %cst_45 = arith.constant 5.000000e-01 : f32
    %122 = vector.broadcast %cst_45 : f32 to vector<2x128xf32>
    %123 = arith.mulf %122, %121 : vector<2x128xf32>
    %124 = arith.mulf %113, %54 : vector<2x128xf32>
    %125 = arith.mulf %105, %115 : vector<2x128xf32>
    %126 = arith.addf %124, %125 : vector<2x128xf32>
    %127 = math.tanh %126 : vector<2x128xf32>
    %128 = arith.mulf %123, %127 : vector<2x128xf32>
    %129 = vector.extract_strided_slice %13 {offsets = [0, 6, 0], sizes = [2, 1, 512], strides = [1, 1, 1]} : vector<2x8x512xf32> to vector<2x1x512xf32>
    %130 = vector.shape_cast %129 : vector<2x1x512xf32> to vector<2x512xf32>
    %131 = arith.truncf %92 : vector<2x128xf32> to vector<2x128xbf16>
    %cst_46 = arith.constant dense<0.000000e+00> : vector<2x512xf32>
    %132 = tpu.matmul %131, %16, %cst_46 {dimension_numbers = #tpu.dot_dimension_numbers<[1], [0], [0], [1], [0, 0, 1, 1], [], []>} : vector<2x128xbf16>, vector<128x512xbf16>, vector<2x512xf32> -> vector<2x512xf32>
    %133 = arith.addf %130, %132 : vector<2x512xf32>
    %134 = vector.extract_strided_slice %133 {offsets = [0, 0], sizes = [2, 128], strides = [1, 1]} : vector<2x512xf32> to vector<2x128xf32>
    %cst_47 = arith.constant 5.000000e-01 : f32
    %135 = vector.broadcast %cst_47 : f32 to vector<2x128xf32>
    %136 = arith.mulf %135, %134 : vector<2x128xf32>
    %137 = math.tanh %136 : vector<2x128xf32>
    %cst_48 = arith.constant 1.000000e+00 : f32
    %138 = vector.broadcast %cst_48 : f32 to vector<2x128xf32>
    %139 = arith.addf %137, %138 : vector<2x128xf32>
    %cst_49 = arith.constant 5.000000e-01 : f32
    %140 = vector.broadcast %cst_49 : f32 to vector<2x128xf32>
    %141 = arith.mulf %140, %139 : vector<2x128xf32>
    %142 = vector.extract_strided_slice %133 {offsets = [0, 128], sizes = [2, 128], strides = [1, 1]} : vector<2x512xf32> to vector<2x128xf32>
    %cst_50 = arith.constant 5.000000e-01 : f32
    %143 = vector.broadcast %cst_50 : f32 to vector<2x128xf32>
    %144 = arith.mulf %143, %142 : vector<2x128xf32>
    %145 = math.tanh %144 : vector<2x128xf32>
    %cst_51 = arith.constant 1.000000e+00 : f32
    %146 = vector.broadcast %cst_51 : f32 to vector<2x128xf32>
    %147 = arith.addf %145, %146 : vector<2x128xf32>
    %cst_52 = arith.constant 5.000000e-01 : f32
    %148 = vector.broadcast %cst_52 : f32 to vector<2x128xf32>
    %149 = arith.mulf %148, %147 : vector<2x128xf32>
    %150 = vector.extract_strided_slice %133 {offsets = [0, 256], sizes = [2, 128], strides = [1, 1]} : vector<2x512xf32> to vector<2x128xf32>
    %151 = math.tanh %150 : vector<2x128xf32>
    %152 = vector.extract_strided_slice %133 {offsets = [0, 384], sizes = [2, 128], strides = [1, 1]} : vector<2x512xf32> to vector<2x128xf32>
    %cst_53 = arith.constant 5.000000e-01 : f32
    %153 = vector.broadcast %cst_53 : f32 to vector<2x128xf32>
    %154 = arith.mulf %153, %152 : vector<2x128xf32>
    %155 = math.tanh %154 : vector<2x128xf32>
    %cst_54 = arith.constant 1.000000e+00 : f32
    %156 = vector.broadcast %cst_54 : f32 to vector<2x128xf32>
    %157 = arith.addf %155, %156 : vector<2x128xf32>
    %cst_55 = arith.constant 5.000000e-01 : f32
    %158 = vector.broadcast %cst_55 : f32 to vector<2x128xf32>
    %159 = arith.mulf %158, %157 : vector<2x128xf32>
    %160 = arith.mulf %149, %90 : vector<2x128xf32>
    %161 = arith.mulf %141, %151 : vector<2x128xf32>
    %162 = arith.addf %160, %161 : vector<2x128xf32>
    %163 = math.tanh %162 : vector<2x128xf32>
    %164 = arith.mulf %159, %163 : vector<2x128xf32>
    %165 = vector.extract_strided_slice %11 {offsets = [0, 2, 0], sizes = [2, 1, 512], strides = [1, 1, 1]} : vector<2x8x512xf32> to vector<2x1x512xf32>
    %166 = vector.shape_cast %165 : vector<2x1x512xf32> to vector<2x512xf32>
    %167 = arith.truncf %128 : vector<2x128xf32> to vector<2x128xbf16>
    %cst_56 = arith.constant dense<0.000000e+00> : vector<2x512xf32>
    %168 = tpu.matmul %167, %15, %cst_56 {dimension_numbers = #tpu.dot_dimension_numbers<[1], [0], [0], [1], [0, 0, 1, 1], [], []>} : vector<2x128xbf16>, vector<128x512xbf16>, vector<2x512xf32> -> vector<2x512xf32>
    %169 = arith.addf %166, %168 : vector<2x512xf32>
    %170 = vector.extract_strided_slice %169 {offsets = [0, 0], sizes = [2, 128], strides = [1, 1]} : vector<2x512xf32> to vector<2x128xf32>
    %cst_57 = arith.constant 5.000000e-01 : f32
    %171 = vector.broadcast %cst_57 : f32 to vector<2x128xf32>
    %172 = arith.mulf %171, %170 : vector<2x128xf32>
    %173 = math.tanh %172 : vector<2x128xf32>
    %cst_58 = arith.constant 1.000000e+00 : f32
    %174 = vector.broadcast %cst_58 : f32 to vector<2x128xf32>
    %175 = arith.addf %173, %174 : vector<2x128xf32>
    %cst_59 = arith.constant 5.000000e-01 : f32
    %176 = vector.broadcast %cst_59 : f32 to vector<2x128xf32>
    %177 = arith.mulf %176, %175 : vector<2x128xf32>
    %178 = vector.extract_strided_slice %169 {offsets = [0, 128], sizes = [2, 128], strides = [1, 1]} : vector<2x512xf32> to vector<2x128xf32>
    %cst_60 = arith.constant 5.000000e-01 : f32
    %179 = vector.broadcast %cst_60 : f32 to vector<2x128xf32>
    %180 = arith.mulf %179, %178 : vector<2x128xf32>
    %181 = math.tanh %180 : vector<2x128xf32>
    %cst_61 = arith.constant 1.000000e+00 : f32
    %182 = vector.broadcast %cst_61 : f32 to vector<2x128xf32>
    %183 = arith.addf %181, %182 : vector<2x128xf32>
    %cst_62 = arith.constant 5.000000e-01 : f32
    %184 = vector.broadcast %cst_62 : f32 to vector<2x128xf32>
    %185 = arith.mulf %184, %183 : vector<2x128xf32>
    %186 = vector.extract_strided_slice %169 {offsets = [0, 256], sizes = [2, 128], strides = [1, 1]} : vector<2x512xf32> to vector<2x128xf32>
    %187 = math.tanh %186 : vector<2x128xf32>
    %188 = vector.extract_strided_slice %169 {offsets = [0, 384], sizes = [2, 128], strides = [1, 1]} : vector<2x512xf32> to vector<2x128xf32>
    %cst_63 = arith.constant 5.000000e-01 : f32
    %189 = vector.broadcast %cst_63 : f32 to vector<2x128xf32>
    %190 = arith.mulf %189, %188 : vector<2x128xf32>
    %191 = math.tanh %190 : vector<2x128xf32>
    %cst_64 = arith.constant 1.000000e+00 : f32
    %192 = vector.broadcast %cst_64 : f32 to vector<2x128xf32>
    %193 = arith.addf %191, %192 : vector<2x128xf32>
    %cst_65 = arith.constant 5.000000e-01 : f32
    %194 = vector.broadcast %cst_65 : f32 to vector<2x128xf32>
    %195 = arith.mulf %194, %193 : vector<2x128xf32>
    %196 = arith.mulf %185, %126 : vector<2x128xf32>
    %197 = arith.mulf %177, %187 : vector<2x128xf32>
    %198 = arith.addf %196, %197 : vector<2x128xf32>
    %199 = math.tanh %198 : vector<2x128xf32>
    %200 = arith.mulf %195, %199 : vector<2x128xf32>
    %201 = vector.extract_strided_slice %13 {offsets = [0, 5, 0], sizes = [2, 1, 512], strides = [1, 1, 1]} : vector<2x8x512xf32> to vector<2x1x512xf32>
    %202 = vector.shape_cast %201 : vector<2x1x512xf32> to vector<2x512xf32>
    %203 = arith.truncf %164 : vector<2x128xf32> to vector<2x128xbf16>
    %cst_66 = arith.constant dense<0.000000e+00> : vector<2x512xf32>
    %204 = tpu.matmul %203, %16, %cst_66 {dimension_numbers = #tpu.dot_dimension_numbers<[1], [0], [0], [1], [0, 0, 1, 1], [], []>} : vector<2x128xbf16>, vector<128x512xbf16>, vector<2x512xf32> -> vector<2x512xf32>
    %205 = arith.addf %202, %204 : vector<2x512xf32>
    %206 = vector.extract_strided_slice %205 {offsets = [0, 0], sizes = [2, 128], strides = [1, 1]} : vector<2x512xf32> to vector<2x128xf32>
    %cst_67 = arith.constant 5.000000e-01 : f32
    %207 = vector.broadcast %cst_67 : f32 to vector<2x128xf32>
    %208 = arith.mulf %207, %206 : vector<2x128xf32>
    %209 = math.tanh %208 : vector<2x128xf32>
    %cst_68 = arith.constant 1.000000e+00 : f32
    %210 = vector.broadcast %cst_68 : f32 to vector<2x128xf32>
    %211 = arith.addf %209, %210 : vector<2x128xf32>
    %cst_69 = arith.constant 5.000000e-01 : f32
    %212 = vector.broadcast %cst_69 : f32 to vector<2x128xf32>
    %213 = arith.mulf %212, %211 : vector<2x128xf32>
    %214 = vector.extract_strided_slice %205 {offsets = [0, 128], sizes = [2, 128], strides = [1, 1]} : vector<2x512xf32> to vector<2x128xf32>
    %cst_70 = arith.constant 5.000000e-01 : f32
    %215 = vector.broadcast %cst_70 : f32 to vector<2x128xf32>
    %216 = arith.mulf %215, %214 : vector<2x128xf32>
    %217 = math.tanh %216 : vector<2x128xf32>
    %cst_71 = arith.constant 1.000000e+00 : f32
    %218 = vector.broadcast %cst_71 : f32 to vector<2x128xf32>
    %219 = arith.addf %217, %218 : vector<2x128xf32>
    %cst_72 = arith.constant 5.000000e-01 : f32
    %220 = vector.broadcast %cst_72 : f32 to vector<2x128xf32>
    %221 = arith.mulf %220, %219 : vector<2x128xf32>
    %222 = vector.extract_strided_slice %205 {offsets = [0, 256], sizes = [2, 128], strides = [1, 1]} : vector<2x512xf32> to vector<2x128xf32>
    %223 = math.tanh %222 : vector<2x128xf32>
    %224 = vector.extract_strided_slice %205 {offsets = [0, 384], sizes = [2, 128], strides = [1, 1]} : vector<2x512xf32> to vector<2x128xf32>
    %cst_73 = arith.constant 5.000000e-01 : f32
    %225 = vector.broadcast %cst_73 : f32 to vector<2x128xf32>
    %226 = arith.mulf %225, %224 : vector<2x128xf32>
    %227 = math.tanh %226 : vector<2x128xf32>
    %cst_74 = arith.constant 1.000000e+00 : f32
    %228 = vector.broadcast %cst_74 : f32 to vector<2x128xf32>
    %229 = arith.addf %227, %228 : vector<2x128xf32>
    %cst_75 = arith.constant 5.000000e-01 : f32
    %230 = vector.broadcast %cst_75 : f32 to vector<2x128xf32>
    %231 = arith.mulf %230, %229 : vector<2x128xf32>
    %232 = arith.mulf %221, %162 : vector<2x128xf32>
    %233 = arith.mulf %213, %223 : vector<2x128xf32>
    %234 = arith.addf %232, %233 : vector<2x128xf32>
    %235 = math.tanh %234 : vector<2x128xf32>
    %236 = arith.mulf %231, %235 : vector<2x128xf32>
    %237 = vector.extract_strided_slice %11 {offsets = [0, 3, 0], sizes = [2, 1, 512], strides = [1, 1, 1]} : vector<2x8x512xf32> to vector<2x1x512xf32>
    %238 = vector.shape_cast %237 : vector<2x1x512xf32> to vector<2x512xf32>
    %239 = arith.truncf %200 : vector<2x128xf32> to vector<2x128xbf16>
    %cst_76 = arith.constant dense<0.000000e+00> : vector<2x512xf32>
    %240 = tpu.matmul %239, %15, %cst_76 {dimension_numbers = #tpu.dot_dimension_numbers<[1], [0], [0], [1], [0, 0, 1, 1], [], []>} : vector<2x128xbf16>, vector<128x512xbf16>, vector<2x512xf32> -> vector<2x512xf32>
    %241 = arith.addf %238, %240 : vector<2x512xf32>
    %242 = vector.extract_strided_slice %241 {offsets = [0, 0], sizes = [2, 128], strides = [1, 1]} : vector<2x512xf32> to vector<2x128xf32>
    %cst_77 = arith.constant 5.000000e-01 : f32
    %243 = vector.broadcast %cst_77 : f32 to vector<2x128xf32>
    %244 = arith.mulf %243, %242 : vector<2x128xf32>
    %245 = math.tanh %244 : vector<2x128xf32>
    %cst_78 = arith.constant 1.000000e+00 : f32
    %246 = vector.broadcast %cst_78 : f32 to vector<2x128xf32>
    %247 = arith.addf %245, %246 : vector<2x128xf32>
    %cst_79 = arith.constant 5.000000e-01 : f32
    %248 = vector.broadcast %cst_79 : f32 to vector<2x128xf32>
    %249 = arith.mulf %248, %247 : vector<2x128xf32>
    %250 = vector.extract_strided_slice %241 {offsets = [0, 128], sizes = [2, 128], strides = [1, 1]} : vector<2x512xf32> to vector<2x128xf32>
    %cst_80 = arith.constant 5.000000e-01 : f32
    %251 = vector.broadcast %cst_80 : f32 to vector<2x128xf32>
    %252 = arith.mulf %251, %250 : vector<2x128xf32>
    %253 = math.tanh %252 : vector<2x128xf32>
    %cst_81 = arith.constant 1.000000e+00 : f32
    %254 = vector.broadcast %cst_81 : f32 to vector<2x128xf32>
    %255 = arith.addf %253, %254 : vector<2x128xf32>
    %cst_82 = arith.constant 5.000000e-01 : f32
    %256 = vector.broadcast %cst_82 : f32 to vector<2x128xf32>
    %257 = arith.mulf %256, %255 : vector<2x128xf32>
    %258 = vector.extract_strided_slice %241 {offsets = [0, 256], sizes = [2, 128], strides = [1, 1]} : vector<2x512xf32> to vector<2x128xf32>
    %259 = math.tanh %258 : vector<2x128xf32>
    %260 = vector.extract_strided_slice %241 {offsets = [0, 384], sizes = [2, 128], strides = [1, 1]} : vector<2x512xf32> to vector<2x128xf32>
    %cst_83 = arith.constant 5.000000e-01 : f32
    %261 = vector.broadcast %cst_83 : f32 to vector<2x128xf32>
    %262 = arith.mulf %261, %260 : vector<2x128xf32>
    %263 = math.tanh %262 : vector<2x128xf32>
    %cst_84 = arith.constant 1.000000e+00 : f32
    %264 = vector.broadcast %cst_84 : f32 to vector<2x128xf32>
    %265 = arith.addf %263, %264 : vector<2x128xf32>
    %cst_85 = arith.constant 5.000000e-01 : f32
    %266 = vector.broadcast %cst_85 : f32 to vector<2x128xf32>
    %267 = arith.mulf %266, %265 : vector<2x128xf32>
    %268 = arith.mulf %257, %198 : vector<2x128xf32>
    %269 = arith.mulf %249, %259 : vector<2x128xf32>
    %270 = arith.addf %268, %269 : vector<2x128xf32>
    %271 = math.tanh %270 : vector<2x128xf32>
    %272 = arith.mulf %267, %271 : vector<2x128xf32>
    %273 = vector.extract_strided_slice %13 {offsets = [0, 4, 0], sizes = [2, 1, 512], strides = [1, 1, 1]} : vector<2x8x512xf32> to vector<2x1x512xf32>
    %274 = vector.shape_cast %273 : vector<2x1x512xf32> to vector<2x512xf32>
    %275 = arith.truncf %236 : vector<2x128xf32> to vector<2x128xbf16>
    %cst_86 = arith.constant dense<0.000000e+00> : vector<2x512xf32>
    %276 = tpu.matmul %275, %16, %cst_86 {dimension_numbers = #tpu.dot_dimension_numbers<[1], [0], [0], [1], [0, 0, 1, 1], [], []>} : vector<2x128xbf16>, vector<128x512xbf16>, vector<2x512xf32> -> vector<2x512xf32>
    %277 = arith.addf %274, %276 : vector<2x512xf32>
    %278 = vector.extract_strided_slice %277 {offsets = [0, 0], sizes = [2, 128], strides = [1, 1]} : vector<2x512xf32> to vector<2x128xf32>
    %cst_87 = arith.constant 5.000000e-01 : f32
    %279 = vector.broadcast %cst_87 : f32 to vector<2x128xf32>
    %280 = arith.mulf %279, %278 : vector<2x128xf32>
    %281 = math.tanh %280 : vector<2x128xf32>
    %cst_88 = arith.constant 1.000000e+00 : f32
    %282 = vector.broadcast %cst_88 : f32 to vector<2x128xf32>
    %283 = arith.addf %281, %282 : vector<2x128xf32>
    %cst_89 = arith.constant 5.000000e-01 : f32
    %284 = vector.broadcast %cst_89 : f32 to vector<2x128xf32>
    %285 = arith.mulf %284, %283 : vector<2x128xf32>
    %286 = vector.extract_strided_slice %277 {offsets = [0, 128], sizes = [2, 128], strides = [1, 1]} : vector<2x512xf32> to vector<2x128xf32>
    %cst_90 = arith.constant 5.000000e-01 : f32
    %287 = vector.broadcast %cst_90 : f32 to vector<2x128xf32>
    %288 = arith.mulf %287, %286 : vector<2x128xf32>
    %289 = math.tanh %288 : vector<2x128xf32>
    %cst_91 = arith.constant 1.000000e+00 : f32
    %290 = vector.broadcast %cst_91 : f32 to vector<2x128xf32>
    %291 = arith.addf %289, %290 : vector<2x128xf32>
    %cst_92 = arith.constant 5.000000e-01 : f32
    %292 = vector.broadcast %cst_92 : f32 to vector<2x128xf32>
    %293 = arith.mulf %292, %291 : vector<2x128xf32>
    %294 = vector.extract_strided_slice %277 {offsets = [0, 256], sizes = [2, 128], strides = [1, 1]} : vector<2x512xf32> to vector<2x128xf32>
    %295 = math.tanh %294 : vector<2x128xf32>
    %296 = vector.extract_strided_slice %277 {offsets = [0, 384], sizes = [2, 128], strides = [1, 1]} : vector<2x512xf32> to vector<2x128xf32>
    %cst_93 = arith.constant 5.000000e-01 : f32
    %297 = vector.broadcast %cst_93 : f32 to vector<2x128xf32>
    %298 = arith.mulf %297, %296 : vector<2x128xf32>
    %299 = math.tanh %298 : vector<2x128xf32>
    %cst_94 = arith.constant 1.000000e+00 : f32
    %300 = vector.broadcast %cst_94 : f32 to vector<2x128xf32>
    %301 = arith.addf %299, %300 : vector<2x128xf32>
    %cst_95 = arith.constant 5.000000e-01 : f32
    %302 = vector.broadcast %cst_95 : f32 to vector<2x128xf32>
    %303 = arith.mulf %302, %301 : vector<2x128xf32>
    %304 = arith.mulf %293, %234 : vector<2x128xf32>
    %305 = arith.mulf %285, %295 : vector<2x128xf32>
    %306 = arith.addf %304, %305 : vector<2x128xf32>
    %307 = math.tanh %306 : vector<2x128xf32>
    %308 = arith.mulf %303, %307 : vector<2x128xf32>
    %309 = vector.extract_strided_slice %11 {offsets = [0, 4, 0], sizes = [2, 1, 512], strides = [1, 1, 1]} : vector<2x8x512xf32> to vector<2x1x512xf32>
    %310 = vector.shape_cast %309 : vector<2x1x512xf32> to vector<2x512xf32>
    %311 = arith.truncf %272 : vector<2x128xf32> to vector<2x128xbf16>
    %cst_96 = arith.constant dense<0.000000e+00> : vector<2x512xf32>
    %312 = tpu.matmul %311, %15, %cst_96 {dimension_numbers = #tpu.dot_dimension_numbers<[1], [0], [0], [1], [0, 0, 1, 1], [], []>} : vector<2x128xbf16>, vector<128x512xbf16>, vector<2x512xf32> -> vector<2x512xf32>
    %313 = arith.addf %310, %312 : vector<2x512xf32>
    %314 = vector.extract_strided_slice %313 {offsets = [0, 0], sizes = [2, 128], strides = [1, 1]} : vector<2x512xf32> to vector<2x128xf32>
    %cst_97 = arith.constant 5.000000e-01 : f32
    %315 = vector.broadcast %cst_97 : f32 to vector<2x128xf32>
    %316 = arith.mulf %315, %314 : vector<2x128xf32>
    %317 = math.tanh %316 : vector<2x128xf32>
    %cst_98 = arith.constant 1.000000e+00 : f32
    %318 = vector.broadcast %cst_98 : f32 to vector<2x128xf32>
    %319 = arith.addf %317, %318 : vector<2x128xf32>
    %cst_99 = arith.constant 5.000000e-01 : f32
    %320 = vector.broadcast %cst_99 : f32 to vector<2x128xf32>
    %321 = arith.mulf %320, %319 : vector<2x128xf32>
    %322 = vector.extract_strided_slice %313 {offsets = [0, 128], sizes = [2, 128], strides = [1, 1]} : vector<2x512xf32> to vector<2x128xf32>
    %cst_100 = arith.constant 5.000000e-01 : f32
    %323 = vector.broadcast %cst_100 : f32 to vector<2x128xf32>
    %324 = arith.mulf %323, %322 : vector<2x128xf32>
    %325 = math.tanh %324 : vector<2x128xf32>
    %cst_101 = arith.constant 1.000000e+00 : f32
    %326 = vector.broadcast %cst_101 : f32 to vector<2x128xf32>
    %327 = arith.addf %325, %326 : vector<2x128xf32>
    %cst_102 = arith.constant 5.000000e-01 : f32
    %328 = vector.broadcast %cst_102 : f32 to vector<2x128xf32>
    %329 = arith.mulf %328, %327 : vector<2x128xf32>
    %330 = vector.extract_strided_slice %313 {offsets = [0, 256], sizes = [2, 128], strides = [1, 1]} : vector<2x512xf32> to vector<2x128xf32>
    %331 = math.tanh %330 : vector<2x128xf32>
    %332 = vector.extract_strided_slice %313 {offsets = [0, 384], sizes = [2, 128], strides = [1, 1]} : vector<2x512xf32> to vector<2x128xf32>
    %cst_103 = arith.constant 5.000000e-01 : f32
    %333 = vector.broadcast %cst_103 : f32 to vector<2x128xf32>
    %334 = arith.mulf %333, %332 : vector<2x128xf32>
    %335 = math.tanh %334 : vector<2x128xf32>
    %cst_104 = arith.constant 1.000000e+00 : f32
    %336 = vector.broadcast %cst_104 : f32 to vector<2x128xf32>
    %337 = arith.addf %335, %336 : vector<2x128xf32>
    %cst_105 = arith.constant 5.000000e-01 : f32
    %338 = vector.broadcast %cst_105 : f32 to vector<2x128xf32>
    %339 = arith.mulf %338, %337 : vector<2x128xf32>
    %340 = arith.mulf %329, %270 : vector<2x128xf32>
    %341 = arith.mulf %321, %331 : vector<2x128xf32>
    %342 = arith.addf %340, %341 : vector<2x128xf32>
    %343 = math.tanh %342 : vector<2x128xf32>
    %344 = arith.mulf %339, %343 : vector<2x128xf32>
    %345 = vector.extract_strided_slice %13 {offsets = [0, 3, 0], sizes = [2, 1, 512], strides = [1, 1, 1]} : vector<2x8x512xf32> to vector<2x1x512xf32>
    %346 = vector.shape_cast %345 : vector<2x1x512xf32> to vector<2x512xf32>
    %347 = arith.truncf %308 : vector<2x128xf32> to vector<2x128xbf16>
    %cst_106 = arith.constant dense<0.000000e+00> : vector<2x512xf32>
    %348 = tpu.matmul %347, %16, %cst_106 {dimension_numbers = #tpu.dot_dimension_numbers<[1], [0], [0], [1], [0, 0, 1, 1], [], []>} : vector<2x128xbf16>, vector<128x512xbf16>, vector<2x512xf32> -> vector<2x512xf32>
    %349 = arith.addf %346, %348 : vector<2x512xf32>
    %350 = vector.extract_strided_slice %349 {offsets = [0, 0], sizes = [2, 128], strides = [1, 1]} : vector<2x512xf32> to vector<2x128xf32>
    %cst_107 = arith.constant 5.000000e-01 : f32
    %351 = vector.broadcast %cst_107 : f32 to vector<2x128xf32>
    %352 = arith.mulf %351, %350 : vector<2x128xf32>
    %353 = math.tanh %352 : vector<2x128xf32>
    %cst_108 = arith.constant 1.000000e+00 : f32
    %354 = vector.broadcast %cst_108 : f32 to vector<2x128xf32>
    %355 = arith.addf %353, %354 : vector<2x128xf32>
    %cst_109 = arith.constant 5.000000e-01 : f32
    %356 = vector.broadcast %cst_109 : f32 to vector<2x128xf32>
    %357 = arith.mulf %356, %355 : vector<2x128xf32>
    %358 = vector.extract_strided_slice %349 {offsets = [0, 128], sizes = [2, 128], strides = [1, 1]} : vector<2x512xf32> to vector<2x128xf32>
    %cst_110 = arith.constant 5.000000e-01 : f32
    %359 = vector.broadcast %cst_110 : f32 to vector<2x128xf32>
    %360 = arith.mulf %359, %358 : vector<2x128xf32>
    %361 = math.tanh %360 : vector<2x128xf32>
    %cst_111 = arith.constant 1.000000e+00 : f32
    %362 = vector.broadcast %cst_111 : f32 to vector<2x128xf32>
    %363 = arith.addf %361, %362 : vector<2x128xf32>
    %cst_112 = arith.constant 5.000000e-01 : f32
    %364 = vector.broadcast %cst_112 : f32 to vector<2x128xf32>
    %365 = arith.mulf %364, %363 : vector<2x128xf32>
    %366 = vector.extract_strided_slice %349 {offsets = [0, 256], sizes = [2, 128], strides = [1, 1]} : vector<2x512xf32> to vector<2x128xf32>
    %367 = math.tanh %366 : vector<2x128xf32>
    %368 = vector.extract_strided_slice %349 {offsets = [0, 384], sizes = [2, 128], strides = [1, 1]} : vector<2x512xf32> to vector<2x128xf32>
    %cst_113 = arith.constant 5.000000e-01 : f32
    %369 = vector.broadcast %cst_113 : f32 to vector<2x128xf32>
    %370 = arith.mulf %369, %368 : vector<2x128xf32>
    %371 = math.tanh %370 : vector<2x128xf32>
    %cst_114 = arith.constant 1.000000e+00 : f32
    %372 = vector.broadcast %cst_114 : f32 to vector<2x128xf32>
    %373 = arith.addf %371, %372 : vector<2x128xf32>
    %cst_115 = arith.constant 5.000000e-01 : f32
    %374 = vector.broadcast %cst_115 : f32 to vector<2x128xf32>
    %375 = arith.mulf %374, %373 : vector<2x128xf32>
    %376 = arith.mulf %365, %306 : vector<2x128xf32>
    %377 = arith.mulf %357, %367 : vector<2x128xf32>
    %378 = arith.addf %376, %377 : vector<2x128xf32>
    %379 = math.tanh %378 : vector<2x128xf32>
    %380 = arith.mulf %375, %379 : vector<2x128xf32>
    %381 = vector.extract_strided_slice %11 {offsets = [0, 5, 0], sizes = [2, 1, 512], strides = [1, 1, 1]} : vector<2x8x512xf32> to vector<2x1x512xf32>
    %382 = vector.shape_cast %381 : vector<2x1x512xf32> to vector<2x512xf32>
    %383 = arith.truncf %344 : vector<2x128xf32> to vector<2x128xbf16>
    %cst_116 = arith.constant dense<0.000000e+00> : vector<2x512xf32>
    %384 = tpu.matmul %383, %15, %cst_116 {dimension_numbers = #tpu.dot_dimension_numbers<[1], [0], [0], [1], [0, 0, 1, 1], [], []>} : vector<2x128xbf16>, vector<128x512xbf16>, vector<2x512xf32> -> vector<2x512xf32>
    %385 = arith.addf %382, %384 : vector<2x512xf32>
    %386 = vector.extract_strided_slice %385 {offsets = [0, 0], sizes = [2, 128], strides = [1, 1]} : vector<2x512xf32> to vector<2x128xf32>
    %cst_117 = arith.constant 5.000000e-01 : f32
    %387 = vector.broadcast %cst_117 : f32 to vector<2x128xf32>
    %388 = arith.mulf %387, %386 : vector<2x128xf32>
    %389 = math.tanh %388 : vector<2x128xf32>
    %cst_118 = arith.constant 1.000000e+00 : f32
    %390 = vector.broadcast %cst_118 : f32 to vector<2x128xf32>
    %391 = arith.addf %389, %390 : vector<2x128xf32>
    %cst_119 = arith.constant 5.000000e-01 : f32
    %392 = vector.broadcast %cst_119 : f32 to vector<2x128xf32>
    %393 = arith.mulf %392, %391 : vector<2x128xf32>
    %394 = vector.extract_strided_slice %385 {offsets = [0, 128], sizes = [2, 128], strides = [1, 1]} : vector<2x512xf32> to vector<2x128xf32>
    %cst_120 = arith.constant 5.000000e-01 : f32
    %395 = vector.broadcast %cst_120 : f32 to vector<2x128xf32>
    %396 = arith.mulf %395, %394 : vector<2x128xf32>
    %397 = math.tanh %396 : vector<2x128xf32>
    %cst_121 = arith.constant 1.000000e+00 : f32
    %398 = vector.broadcast %cst_121 : f32 to vector<2x128xf32>
    %399 = arith.addf %397, %398 : vector<2x128xf32>
    %cst_122 = arith.constant 5.000000e-01 : f32
    %400 = vector.broadcast %cst_122 : f32 to vector<2x128xf32>
    %401 = arith.mulf %400, %399 : vector<2x128xf32>
    %402 = vector.extract_strided_slice %385 {offsets = [0, 256], sizes = [2, 128], strides = [1, 1]} : vector<2x512xf32> to vector<2x128xf32>
    %403 = math.tanh %402 : vector<2x128xf32>
    %404 = vector.extract_strided_slice %385 {offsets = [0, 384], sizes = [2, 128], strides = [1, 1]} : vector<2x512xf32> to vector<2x128xf32>
    %cst_123 = arith.constant 5.000000e-01 : f32
    %405 = vector.broadcast %cst_123 : f32 to vector<2x128xf32>
    %406 = arith.mulf %405, %404 : vector<2x128xf32>
    %407 = math.tanh %406 : vector<2x128xf32>
    %cst_124 = arith.constant 1.000000e+00 : f32
    %408 = vector.broadcast %cst_124 : f32 to vector<2x128xf32>
    %409 = arith.addf %407, %408 : vector<2x128xf32>
    %cst_125 = arith.constant 5.000000e-01 : f32
    %410 = vector.broadcast %cst_125 : f32 to vector<2x128xf32>
    %411 = arith.mulf %410, %409 : vector<2x128xf32>
    %412 = arith.mulf %401, %342 : vector<2x128xf32>
    %413 = arith.mulf %393, %403 : vector<2x128xf32>
    %414 = arith.addf %412, %413 : vector<2x128xf32>
    %415 = math.tanh %414 : vector<2x128xf32>
    %416 = arith.mulf %411, %415 : vector<2x128xf32>
    %417 = vector.extract_strided_slice %13 {offsets = [0, 2, 0], sizes = [2, 1, 512], strides = [1, 1, 1]} : vector<2x8x512xf32> to vector<2x1x512xf32>
    %418 = vector.shape_cast %417 : vector<2x1x512xf32> to vector<2x512xf32>
    %419 = arith.truncf %380 : vector<2x128xf32> to vector<2x128xbf16>
    %cst_126 = arith.constant dense<0.000000e+00> : vector<2x512xf32>
    %420 = tpu.matmul %419, %16, %cst_126 {dimension_numbers = #tpu.dot_dimension_numbers<[1], [0], [0], [1], [0, 0, 1, 1], [], []>} : vector<2x128xbf16>, vector<128x512xbf16>, vector<2x512xf32> -> vector<2x512xf32>
    %421 = arith.addf %418, %420 : vector<2x512xf32>
    %422 = vector.extract_strided_slice %421 {offsets = [0, 0], sizes = [2, 128], strides = [1, 1]} : vector<2x512xf32> to vector<2x128xf32>
    %cst_127 = arith.constant 5.000000e-01 : f32
    %423 = vector.broadcast %cst_127 : f32 to vector<2x128xf32>
    %424 = arith.mulf %423, %422 : vector<2x128xf32>
    %425 = math.tanh %424 : vector<2x128xf32>
    %cst_128 = arith.constant 1.000000e+00 : f32
    %426 = vector.broadcast %cst_128 : f32 to vector<2x128xf32>
    %427 = arith.addf %425, %426 : vector<2x128xf32>
    %cst_129 = arith.constant 5.000000e-01 : f32
    %428 = vector.broadcast %cst_129 : f32 to vector<2x128xf32>
    %429 = arith.mulf %428, %427 : vector<2x128xf32>
    %430 = vector.extract_strided_slice %421 {offsets = [0, 128], sizes = [2, 128], strides = [1, 1]} : vector<2x512xf32> to vector<2x128xf32>
    %cst_130 = arith.constant 5.000000e-01 : f32
    %431 = vector.broadcast %cst_130 : f32 to vector<2x128xf32>
    %432 = arith.mulf %431, %430 : vector<2x128xf32>
    %433 = math.tanh %432 : vector<2x128xf32>
    %cst_131 = arith.constant 1.000000e+00 : f32
    %434 = vector.broadcast %cst_131 : f32 to vector<2x128xf32>
    %435 = arith.addf %433, %434 : vector<2x128xf32>
    %cst_132 = arith.constant 5.000000e-01 : f32
    %436 = vector.broadcast %cst_132 : f32 to vector<2x128xf32>
    %437 = arith.mulf %436, %435 : vector<2x128xf32>
    %438 = vector.extract_strided_slice %421 {offsets = [0, 256], sizes = [2, 128], strides = [1, 1]} : vector<2x512xf32> to vector<2x128xf32>
    %439 = math.tanh %438 : vector<2x128xf32>
    %440 = vector.extract_strided_slice %421 {offsets = [0, 384], sizes = [2, 128], strides = [1, 1]} : vector<2x512xf32> to vector<2x128xf32>
    %cst_133 = arith.constant 5.000000e-01 : f32
    %441 = vector.broadcast %cst_133 : f32 to vector<2x128xf32>
    %442 = arith.mulf %441, %440 : vector<2x128xf32>
    %443 = math.tanh %442 : vector<2x128xf32>
    %cst_134 = arith.constant 1.000000e+00 : f32
    %444 = vector.broadcast %cst_134 : f32 to vector<2x128xf32>
    %445 = arith.addf %443, %444 : vector<2x128xf32>
    %cst_135 = arith.constant 5.000000e-01 : f32
    %446 = vector.broadcast %cst_135 : f32 to vector<2x128xf32>
    %447 = arith.mulf %446, %445 : vector<2x128xf32>
    %448 = arith.mulf %437, %378 : vector<2x128xf32>
    %449 = arith.mulf %429, %439 : vector<2x128xf32>
    %450 = arith.addf %448, %449 : vector<2x128xf32>
    %451 = math.tanh %450 : vector<2x128xf32>
    %452 = arith.mulf %447, %451 : vector<2x128xf32>
    %453 = vector.extract_strided_slice %11 {offsets = [0, 6, 0], sizes = [2, 1, 512], strides = [1, 1, 1]} : vector<2x8x512xf32> to vector<2x1x512xf32>
    %454 = vector.shape_cast %453 : vector<2x1x512xf32> to vector<2x512xf32>
    %455 = arith.truncf %416 : vector<2x128xf32> to vector<2x128xbf16>
    %cst_136 = arith.constant dense<0.000000e+00> : vector<2x512xf32>
    %456 = tpu.matmul %455, %15, %cst_136 {dimension_numbers = #tpu.dot_dimension_numbers<[1], [0], [0], [1], [0, 0, 1, 1], [], []>} : vector<2x128xbf16>, vector<128x512xbf16>, vector<2x512xf32> -> vector<2x512xf32>
    %457 = arith.addf %454, %456 : vector<2x512xf32>
    %458 = vector.extract_strided_slice %457 {offsets = [0, 0], sizes = [2, 128], strides = [1, 1]} : vector<2x512xf32> to vector<2x128xf32>
    %cst_137 = arith.constant 5.000000e-01 : f32
    %459 = vector.broadcast %cst_137 : f32 to vector<2x128xf32>
    %460 = arith.mulf %459, %458 : vector<2x128xf32>
    %461 = math.tanh %460 : vector<2x128xf32>
    %cst_138 = arith.constant 1.000000e+00 : f32
    %462 = vector.broadcast %cst_138 : f32 to vector<2x128xf32>
    %463 = arith.addf %461, %462 : vector<2x128xf32>
    %cst_139 = arith.constant 5.000000e-01 : f32
    %464 = vector.broadcast %cst_139 : f32 to vector<2x128xf32>
    %465 = arith.mulf %464, %463 : vector<2x128xf32>
    %466 = vector.extract_strided_slice %457 {offsets = [0, 128], sizes = [2, 128], strides = [1, 1]} : vector<2x512xf32> to vector<2x128xf32>
    %cst_140 = arith.constant 5.000000e-01 : f32
    %467 = vector.broadcast %cst_140 : f32 to vector<2x128xf32>
    %468 = arith.mulf %467, %466 : vector<2x128xf32>
    %469 = math.tanh %468 : vector<2x128xf32>
    %cst_141 = arith.constant 1.000000e+00 : f32
    %470 = vector.broadcast %cst_141 : f32 to vector<2x128xf32>
    %471 = arith.addf %469, %470 : vector<2x128xf32>
    %cst_142 = arith.constant 5.000000e-01 : f32
    %472 = vector.broadcast %cst_142 : f32 to vector<2x128xf32>
    %473 = arith.mulf %472, %471 : vector<2x128xf32>
    %474 = vector.extract_strided_slice %457 {offsets = [0, 256], sizes = [2, 128], strides = [1, 1]} : vector<2x512xf32> to vector<2x128xf32>
    %475 = math.tanh %474 : vector<2x128xf32>
    %476 = vector.extract_strided_slice %457 {offsets = [0, 384], sizes = [2, 128], strides = [1, 1]} : vector<2x512xf32> to vector<2x128xf32>
    %cst_143 = arith.constant 5.000000e-01 : f32
    %477 = vector.broadcast %cst_143 : f32 to vector<2x128xf32>
    %478 = arith.mulf %477, %476 : vector<2x128xf32>
    %479 = math.tanh %478 : vector<2x128xf32>
    %cst_144 = arith.constant 1.000000e+00 : f32
    %480 = vector.broadcast %cst_144 : f32 to vector<2x128xf32>
    %481 = arith.addf %479, %480 : vector<2x128xf32>
    %cst_145 = arith.constant 5.000000e-01 : f32
    %482 = vector.broadcast %cst_145 : f32 to vector<2x128xf32>
    %483 = arith.mulf %482, %481 : vector<2x128xf32>
    %484 = arith.mulf %473, %414 : vector<2x128xf32>
    %485 = arith.mulf %465, %475 : vector<2x128xf32>
    %486 = arith.addf %484, %485 : vector<2x128xf32>
    %487 = math.tanh %486 : vector<2x128xf32>
    %488 = arith.mulf %483, %487 : vector<2x128xf32>
    %489 = vector.extract_strided_slice %13 {offsets = [0, 1, 0], sizes = [2, 1, 512], strides = [1, 1, 1]} : vector<2x8x512xf32> to vector<2x1x512xf32>
    %490 = vector.shape_cast %489 : vector<2x1x512xf32> to vector<2x512xf32>
    %491 = arith.truncf %452 : vector<2x128xf32> to vector<2x128xbf16>
    %cst_146 = arith.constant dense<0.000000e+00> : vector<2x512xf32>
    %492 = tpu.matmul %491, %16, %cst_146 {dimension_numbers = #tpu.dot_dimension_numbers<[1], [0], [0], [1], [0, 0, 1, 1], [], []>} : vector<2x128xbf16>, vector<128x512xbf16>, vector<2x512xf32> -> vector<2x512xf32>
    %493 = arith.addf %490, %492 : vector<2x512xf32>
    %494 = vector.extract_strided_slice %493 {offsets = [0, 0], sizes = [2, 128], strides = [1, 1]} : vector<2x512xf32> to vector<2x128xf32>
    %cst_147 = arith.constant 5.000000e-01 : f32
    %495 = vector.broadcast %cst_147 : f32 to vector<2x128xf32>
    %496 = arith.mulf %495, %494 : vector<2x128xf32>
    %497 = math.tanh %496 : vector<2x128xf32>
    %cst_148 = arith.constant 1.000000e+00 : f32
    %498 = vector.broadcast %cst_148 : f32 to vector<2x128xf32>
    %499 = arith.addf %497, %498 : vector<2x128xf32>
    %cst_149 = arith.constant 5.000000e-01 : f32
    %500 = vector.broadcast %cst_149 : f32 to vector<2x128xf32>
    %501 = arith.mulf %500, %499 : vector<2x128xf32>
    %502 = vector.extract_strided_slice %493 {offsets = [0, 128], sizes = [2, 128], strides = [1, 1]} : vector<2x512xf32> to vector<2x128xf32>
    %cst_150 = arith.constant 5.000000e-01 : f32
    %503 = vector.broadcast %cst_150 : f32 to vector<2x128xf32>
    %504 = arith.mulf %503, %502 : vector<2x128xf32>
    %505 = math.tanh %504 : vector<2x128xf32>
    %cst_151 = arith.constant 1.000000e+00 : f32
    %506 = vector.broadcast %cst_151 : f32 to vector<2x128xf32>
    %507 = arith.addf %505, %506 : vector<2x128xf32>
    %cst_152 = arith.constant 5.000000e-01 : f32
    %508 = vector.broadcast %cst_152 : f32 to vector<2x128xf32>
    %509 = arith.mulf %508, %507 : vector<2x128xf32>
    %510 = vector.extract_strided_slice %493 {offsets = [0, 256], sizes = [2, 128], strides = [1, 1]} : vector<2x512xf32> to vector<2x128xf32>
    %511 = math.tanh %510 : vector<2x128xf32>
    %512 = vector.extract_strided_slice %493 {offsets = [0, 384], sizes = [2, 128], strides = [1, 1]} : vector<2x512xf32> to vector<2x128xf32>
    %cst_153 = arith.constant 5.000000e-01 : f32
    %513 = vector.broadcast %cst_153 : f32 to vector<2x128xf32>
    %514 = arith.mulf %513, %512 : vector<2x128xf32>
    %515 = math.tanh %514 : vector<2x128xf32>
    %cst_154 = arith.constant 1.000000e+00 : f32
    %516 = vector.broadcast %cst_154 : f32 to vector<2x128xf32>
    %517 = arith.addf %515, %516 : vector<2x128xf32>
    %cst_155 = arith.constant 5.000000e-01 : f32
    %518 = vector.broadcast %cst_155 : f32 to vector<2x128xf32>
    %519 = arith.mulf %518, %517 : vector<2x128xf32>
    %520 = arith.mulf %509, %450 : vector<2x128xf32>
    %521 = arith.mulf %501, %511 : vector<2x128xf32>
    %522 = arith.addf %520, %521 : vector<2x128xf32>
    %523 = math.tanh %522 : vector<2x128xf32>
    %524 = arith.mulf %519, %523 : vector<2x128xf32>
    %525 = vector.extract_strided_slice %11 {offsets = [0, 7, 0], sizes = [2, 1, 512], strides = [1, 1, 1]} : vector<2x8x512xf32> to vector<2x1x512xf32>
    %526 = vector.shape_cast %525 : vector<2x1x512xf32> to vector<2x512xf32>
    %527 = arith.truncf %488 : vector<2x128xf32> to vector<2x128xbf16>
    %cst_156 = arith.constant dense<0.000000e+00> : vector<2x512xf32>
    %528 = tpu.matmul %527, %15, %cst_156 {dimension_numbers = #tpu.dot_dimension_numbers<[1], [0], [0], [1], [0, 0, 1, 1], [], []>} : vector<2x128xbf16>, vector<128x512xbf16>, vector<2x512xf32> -> vector<2x512xf32>
    %529 = arith.addf %526, %528 : vector<2x512xf32>
    %530 = vector.extract_strided_slice %529 {offsets = [0, 0], sizes = [2, 128], strides = [1, 1]} : vector<2x512xf32> to vector<2x128xf32>
    %cst_157 = arith.constant 5.000000e-01 : f32
    %531 = vector.broadcast %cst_157 : f32 to vector<2x128xf32>
    %532 = arith.mulf %531, %530 : vector<2x128xf32>
    %533 = math.tanh %532 : vector<2x128xf32>
    %cst_158 = arith.constant 1.000000e+00 : f32
    %534 = vector.broadcast %cst_158 : f32 to vector<2x128xf32>
    %535 = arith.addf %533, %534 : vector<2x128xf32>
    %cst_159 = arith.constant 5.000000e-01 : f32
    %536 = vector.broadcast %cst_159 : f32 to vector<2x128xf32>
    %537 = arith.mulf %536, %535 : vector<2x128xf32>
    %538 = vector.extract_strided_slice %529 {offsets = [0, 128], sizes = [2, 128], strides = [1, 1]} : vector<2x512xf32> to vector<2x128xf32>
    %cst_160 = arith.constant 5.000000e-01 : f32
    %539 = vector.broadcast %cst_160 : f32 to vector<2x128xf32>
    %540 = arith.mulf %539, %538 : vector<2x128xf32>
    %541 = math.tanh %540 : vector<2x128xf32>
    %cst_161 = arith.constant 1.000000e+00 : f32
    %542 = vector.broadcast %cst_161 : f32 to vector<2x128xf32>
    %543 = arith.addf %541, %542 : vector<2x128xf32>
    %cst_162 = arith.constant 5.000000e-01 : f32
    %544 = vector.broadcast %cst_162 : f32 to vector<2x128xf32>
    %545 = arith.mulf %544, %543 : vector<2x128xf32>
    %546 = vector.extract_strided_slice %529 {offsets = [0, 256], sizes = [2, 128], strides = [1, 1]} : vector<2x512xf32> to vector<2x128xf32>
    %547 = math.tanh %546 : vector<2x128xf32>
    %548 = vector.extract_strided_slice %529 {offsets = [0, 384], sizes = [2, 128], strides = [1, 1]} : vector<2x512xf32> to vector<2x128xf32>
    %cst_163 = arith.constant 5.000000e-01 : f32
    %549 = vector.broadcast %cst_163 : f32 to vector<2x128xf32>
    %550 = arith.mulf %549, %548 : vector<2x128xf32>
    %551 = math.tanh %550 : vector<2x128xf32>
    %cst_164 = arith.constant 1.000000e+00 : f32
    %552 = vector.broadcast %cst_164 : f32 to vector<2x128xf32>
    %553 = arith.addf %551, %552 : vector<2x128xf32>
    %cst_165 = arith.constant 5.000000e-01 : f32
    %554 = vector.broadcast %cst_165 : f32 to vector<2x128xf32>
    %555 = arith.mulf %554, %553 : vector<2x128xf32>
    %556 = arith.mulf %545, %486 : vector<2x128xf32>
    %557 = arith.mulf %537, %547 : vector<2x128xf32>
    %558 = arith.addf %556, %557 : vector<2x128xf32>
    %559 = math.tanh %558 : vector<2x128xf32>
    %560 = arith.mulf %555, %559 : vector<2x128xf32>
    %561 = vector.extract_strided_slice %13 {offsets = [0, 0, 0], sizes = [2, 1, 512], strides = [1, 1, 1]} : vector<2x8x512xf32> to vector<2x1x512xf32>
    %562 = vector.shape_cast %561 : vector<2x1x512xf32> to vector<2x512xf32>
    %563 = arith.truncf %524 : vector<2x128xf32> to vector<2x128xbf16>
    %cst_166 = arith.constant dense<0.000000e+00> : vector<2x512xf32>
    %564 = tpu.matmul %563, %16, %cst_166 {dimension_numbers = #tpu.dot_dimension_numbers<[1], [0], [0], [1], [0, 0, 1, 1], [], []>} : vector<2x128xbf16>, vector<128x512xbf16>, vector<2x512xf32> -> vector<2x512xf32>
    %565 = arith.addf %562, %564 : vector<2x512xf32>
    %566 = vector.extract_strided_slice %565 {offsets = [0, 0], sizes = [2, 128], strides = [1, 1]} : vector<2x512xf32> to vector<2x128xf32>
    %cst_167 = arith.constant 5.000000e-01 : f32
    %567 = vector.broadcast %cst_167 : f32 to vector<2x128xf32>
    %568 = arith.mulf %567, %566 : vector<2x128xf32>
    %569 = math.tanh %568 : vector<2x128xf32>
    %cst_168 = arith.constant 1.000000e+00 : f32
    %570 = vector.broadcast %cst_168 : f32 to vector<2x128xf32>
    %571 = arith.addf %569, %570 : vector<2x128xf32>
    %cst_169 = arith.constant 5.000000e-01 : f32
    %572 = vector.broadcast %cst_169 : f32 to vector<2x128xf32>
    %573 = arith.mulf %572, %571 : vector<2x128xf32>
    %574 = vector.extract_strided_slice %565 {offsets = [0, 128], sizes = [2, 128], strides = [1, 1]} : vector<2x512xf32> to vector<2x128xf32>
    %cst_170 = arith.constant 5.000000e-01 : f32
    %575 = vector.broadcast %cst_170 : f32 to vector<2x128xf32>
    %576 = arith.mulf %575, %574 : vector<2x128xf32>
    %577 = math.tanh %576 : vector<2x128xf32>
    %cst_171 = arith.constant 1.000000e+00 : f32
    %578 = vector.broadcast %cst_171 : f32 to vector<2x128xf32>
    %579 = arith.addf %577, %578 : vector<2x128xf32>
    %cst_172 = arith.constant 5.000000e-01 : f32
    %580 = vector.broadcast %cst_172 : f32 to vector<2x128xf32>
    %581 = arith.mulf %580, %579 : vector<2x128xf32>
    %582 = vector.extract_strided_slice %565 {offsets = [0, 256], sizes = [2, 128], strides = [1, 1]} : vector<2x512xf32> to vector<2x128xf32>
    %583 = math.tanh %582 : vector<2x128xf32>
    %584 = vector.extract_strided_slice %565 {offsets = [0, 384], sizes = [2, 128], strides = [1, 1]} : vector<2x512xf32> to vector<2x128xf32>
    %cst_173 = arith.constant 5.000000e-01 : f32
    %585 = vector.broadcast %cst_173 : f32 to vector<2x128xf32>
    %586 = arith.mulf %585, %584 : vector<2x128xf32>
    %587 = math.tanh %586 : vector<2x128xf32>
    %cst_174 = arith.constant 1.000000e+00 : f32
    %588 = vector.broadcast %cst_174 : f32 to vector<2x128xf32>
    %589 = arith.addf %587, %588 : vector<2x128xf32>
    %cst_175 = arith.constant 5.000000e-01 : f32
    %590 = vector.broadcast %cst_175 : f32 to vector<2x128xf32>
    %591 = arith.mulf %590, %589 : vector<2x128xf32>
    %592 = arith.mulf %581, %522 : vector<2x128xf32>
    %593 = arith.mulf %573, %583 : vector<2x128xf32>
    %594 = arith.addf %592, %593 : vector<2x128xf32>
    %595 = math.tanh %594 : vector<2x128xf32>
    %596 = arith.mulf %591, %595 : vector<2x128xf32>
    %597 = tpu.concatenate %56, %128, %200, %272, %344, %416, %488, %560 in 0 : vector<2x128xf32>, vector<2x128xf32>, vector<2x128xf32>, vector<2x128xf32>, vector<2x128xf32>, vector<2x128xf32>, vector<2x128xf32>, vector<2x128xf32> -> vector<16x128xf32>
    %598 = tpu.concatenate %596, %524, %452, %380, %308, %236, %164, %92 in 0 : vector<2x128xf32>, vector<2x128xf32>, vector<2x128xf32>, vector<2x128xf32>, vector<2x128xf32>, vector<2x128xf32>, vector<2x128xf32>, vector<2x128xf32> -> vector<16x128xf32>
    %599 = tpu.concatenate %597, %598 in 1 : vector<16x128xf32>, vector<16x128xf32> -> vector<16x256xf32>
    %600 = arith.truncf %599 : vector<16x256xf32> to vector<16x256xbf16>
    %c0_176 = arith.constant 0 : index
    %c0_177 = arith.constant 0 : index
    %601 = vector.load %arg8[%c0_176, %c0_177] : memref<256x256xbf16, #tpu.memory_space<vmem>>, vector<256x256xbf16>
    %cst_178 = arith.constant dense<0.000000e+00> : vector<16x256xf32>
    %602 = tpu.matmul %600, %601, %cst_178 {dimension_numbers = #tpu.dot_dimension_numbers<[1], [0], [0], [1], [0, 0, 1, 1], [], []>} : vector<16x256xbf16>, vector<256x256xbf16>, vector<16x256xf32> -> vector<16x256xf32>
    %c0_179 = arith.constant 0 : index
    %c0_180 = arith.constant 0 : index
    %603 = vector.load %arg9[%c0_179, %c0_180] : memref<1x256xf32, #tpu.memory_space<vmem>>, vector<1x256xf32>
    %604 = vector.broadcast %603 : vector<1x256xf32> to vector<16x256xf32>
    %605 = arith.addf %602, %604 : vector<16x256xf32>
    %606 = math.tanh %605 : vector<16x256xf32>
    %c0_181 = arith.constant 0 : index
    %c0_182 = arith.constant 0 : index
    %607 = vector.load %arg10[%c0_181, %c0_182] : memref<256x8xf32, #tpu.memory_space<vmem>>, vector<256x8xf32>
    %cst_183 = arith.constant dense<0.000000e+00> : vector<16x8xf32>
    %608 = tpu.matmul %606, %607, %cst_183 {dimension_numbers = #tpu.dot_dimension_numbers<[1], [0], [0], [1], [0, 0, 1, 1], [], []>} : vector<16x256xf32>, vector<256x8xf32>, vector<16x8xf32> -> vector<16x8xf32>
    %c0_184 = arith.constant 0 : index
    %c0_185 = arith.constant 0 : index
    %609 = vector.load %arg2[%c0_184, %c0_185] : memref<16x1xf32, #tpu.memory_space<vmem>>, vector<16x1xf32>
    %610 = vector.broadcast %609 : vector<16x1xf32> to vector<16x8xf32>
    %611 = arith.mulf %608, %610 : vector<16x8xf32>
    %cst_186 = arith.constant 1.000000e+00 : f32
    %612 = vector.broadcast %cst_186 : f32 to vector<16x1xf32>
    %613 = arith.subf %612, %609 : vector<16x1xf32>
    %cst_187 = arith.constant 1.000000e+06 : f32
    %614 = vector.broadcast %cst_187 : f32 to vector<16x1xf32>
    %615 = arith.mulf %614, %613 : vector<16x1xf32>
    %616 = vector.broadcast %615 : vector<16x1xf32> to vector<16x8xf32>
    %617 = arith.subf %611, %616 : vector<16x8xf32>
    %618 = vector.shape_cast %617 : vector<16x8xf32> to vector<8x2x8xf32>
    %cst_188 = arith.constant dense<0xFF800000> : vector<2x8xf32>
    %619 = vector.multi_reduction <maximumf>, %618, %cst_188 [0] : vector<8x2x8xf32> to vector<2x8xf32>
    %620 = vector.shape_cast %619 : vector<2x8xf32> to vector<1x2x8xf32>
    %621 = vector.broadcast %620 : vector<1x2x8xf32> to vector<8x2x8xf32>
    %622 = arith.subf %618, %621 : vector<8x2x8xf32>
    %623 = math.exp %622 : vector<8x2x8xf32>
    %cst_189 = arith.constant dense<0.000000e+00> : vector<2x8xf32>
    %624 = vector.multi_reduction <add>, %623, %cst_189 [0] : vector<8x2x8xf32> to vector<2x8xf32>
    %625 = vector.shape_cast %624 : vector<2x8xf32> to vector<1x2x8xf32>
    %626 = vector.broadcast %625 : vector<1x2x8xf32> to vector<8x2x8xf32>
    %627 = arith.divf %623, %626 : vector<8x2x8xf32>
    %628 = vector.shape_cast %627 : vector<8x2x8xf32> to vector<16x8xf32>
    %c0_190 = arith.constant 0 : index
    %c0_191 = arith.constant 0 : index
    %629 = vector.load %arg11[%c0_190, %c0_191] : memref<8x256xf32, #tpu.memory_space<vmem>>, vector<8x256xf32>
    %cst_192 = arith.constant dense<0.000000e+00> : vector<16x256xf32>
    %630 = tpu.matmul %628, %629, %cst_192 {dimension_numbers = #tpu.dot_dimension_numbers<[1], [0], [0], [1], [0, 0, 1, 1], [], []>} : vector<16x8xf32>, vector<8x256xf32>, vector<16x256xf32> -> vector<16x256xf32>
    %c0_193 = arith.constant 0 : index
    %c0_194 = arith.constant 0 : index
    %631 = vector.load %arg12[%c0_193, %c0_194] : memref<2x16xf32, #tpu.memory_space<vmem>>, vector<2x16xf32>
    %632 = arith.mulf %630, %599 : vector<16x256xf32>
    %cst_195 = arith.constant dense<0.000000e+00> : vector<2x256xf32>
    %633 = tpu.matmul %631, %632, %cst_195 {dimension_numbers = #tpu.dot_dimension_numbers<[1], [0], [0], [1], [0, 0, 1, 1], [], []>} : vector<2x16xf32>, vector<16x256xf32>, vector<2x256xf32> -> vector<2x256xf32>
    %634 = vector.extract_strided_slice %14 {offsets = [0, 0], sizes = [2, 6], strides = [1, 1]} : vector<2x12xf32> to vector<2x6xf32>
    %635 = vector.extract_strided_slice %14 {offsets = [0, 6], sizes = [2, 6], strides = [1, 1]} : vector<2x12xf32> to vector<2x6xf32>
    %636 = arith.maximumf %634, %635 : vector<2x6xf32>
    %637 = arith.subf %634, %636 : vector<2x6xf32>
    %638 = math.exp %637 : vector<2x6xf32>
    %639 = arith.subf %635, %636 : vector<2x6xf32>
    %640 = math.exp %639 : vector<2x6xf32>
    %641 = arith.addf %638, %640 : vector<2x6xf32>
    %cst_196 = arith.constant 1.000000e+00 : f32
    %642 = vector.broadcast %cst_196 : f32 to vector<2x6xf32>
    %643 = arith.divf %642, %641 : vector<2x6xf32>
    %644 = arith.mulf %638, %643 : vector<2x6xf32>
    %c0_197 = arith.constant 0 : index
    %c0_198 = arith.constant 0 : index
    %645 = vector.load %arg15[%c0_197, %c0_198] : memref<6x192xf32, #tpu.memory_space<vmem>>, vector<6x192xf32>
    %cst_199 = arith.constant dense<0.000000e+00> : vector<2x192xf32>
    %646 = tpu.matmul %644, %645, %cst_199 {dimension_numbers = #tpu.dot_dimension_numbers<[1], [0], [0], [1], [0, 0, 1, 1], [], []>} : vector<2x6xf32>, vector<6x192xf32>, vector<2x192xf32> -> vector<2x192xf32>
    %647 = arith.mulf %640, %643 : vector<2x6xf32>
    %c0_200 = arith.constant 0 : index
    %c0_201 = arith.constant 0 : index
    %648 = vector.load %arg15[%c0_200, %c0_201] : memref<6x192xf32, #tpu.memory_space<vmem>>, vector<6x192xf32>
    %cst_202 = arith.constant dense<0.000000e+00> : vector<2x192xf32>
    %649 = tpu.matmul %647, %648, %cst_202 {dimension_numbers = #tpu.dot_dimension_numbers<[1], [0], [0], [1], [0, 0, 1, 1], [], []>} : vector<2x6xf32>, vector<6x192xf32>, vector<2x192xf32> -> vector<2x192xf32>
    %c0_203 = arith.constant 0 : index
    %c0_204 = arith.constant 0 : index
    %650 = vector.load %arg13[%c0_203, %c0_204] : memref<256x192xf32, #tpu.memory_space<vmem>>, vector<256x192xf32>
    %cst_205 = arith.constant dense<0.000000e+00> : vector<2x192xf32>
    %651 = tpu.matmul %633, %650, %cst_205 {dimension_numbers = #tpu.dot_dimension_numbers<[1], [0], [0], [1], [0, 0, 1, 1], [], []>} : vector<2x256xf32>, vector<256x192xf32>, vector<2x192xf32> -> vector<2x192xf32>
    %c0_206 = arith.constant 0 : index
    %c0_207 = arith.constant 0 : index
    %652 = vector.load %arg14[%c0_206, %c0_207] : memref<256x192xf32, #tpu.memory_space<vmem>>, vector<256x192xf32>
    %cst_208 = arith.constant dense<0.000000e+00> : vector<2x192xf32>
    %653 = tpu.matmul %633, %652, %cst_208 {dimension_numbers = #tpu.dot_dimension_numbers<[1], [0], [0], [1], [0, 0, 1, 1], [], []>} : vector<2x256xf32>, vector<256x192xf32>, vector<2x192xf32> -> vector<2x192xf32>
    %654 = arith.mulf %651, %646 : vector<2x192xf32>
    %655 = arith.mulf %653, %649 : vector<2x192xf32>
    %656 = arith.addf %654, %655 : vector<2x192xf32>
    %c0_209 = arith.constant 0 : index
    %c0_210 = arith.constant 0 : index
    %657 = vector.load %arg16[%c0_209, %c0_210] : memref<192x81xf32, #tpu.memory_space<vmem>>, vector<192x81xf32>
    %cst_211 = arith.constant dense<0.000000e+00> : vector<2x81xf32>
    %658 = tpu.matmul %656, %657, %cst_211 {dimension_numbers = #tpu.dot_dimension_numbers<[1], [0], [0], [1], [0, 0, 1, 1], [], []>} : vector<2x192xf32>, vector<192x81xf32>, vector<2x81xf32> -> vector<2x81xf32>
    %c0_212 = arith.constant 0 : index
    %c0_213 = arith.constant 0 : index
    %659 = vector.load %arg17[%c0_212, %c0_213] : memref<1x81xf32, #tpu.memory_space<vmem>>, vector<1x81xf32>
    %660 = vector.broadcast %659 : vector<1x81xf32> to vector<2x81xf32>
    %661 = arith.addf %658, %660 : vector<2x81xf32>
    %662 = vector.extract_strided_slice %661 {offsets = [0, 0], sizes = [2, 17], strides = [1, 1]} : vector<2x81xf32> to vector<2x17xf32>
    %663 = vector.extract_strided_slice %661 {offsets = [0, 17], sizes = [2, 64], strides = [1, 1]} : vector<2x81xf32> to vector<2x64xf32>
    %664 = vector.shape_cast %663 : vector<2x64xf32> to vector<2x2x32xf32>
    %c0_214 = arith.constant 0 : index
    %c0_215 = arith.constant 0 : index
    %665 = vector.load %arg3[%c0_214, %c0_215] : memref<2x8xf32, #tpu.memory_space<vmem>>, vector<2x8xf32>
    %666 = vector.shape_cast %665 : vector<2x8xf32> to vector<2x1x8xf32>
    "tpu.trace_start"() <{level = 10 : i32, message = "bkh,blh->bkl"}> : () -> ()
    %cst_216 = arith.constant dense<0.000000e+00> : vector<2x2x8xf32>
    %667 = tpu.matmul %664, %0, %cst_216 {dimension_numbers = #tpu.dot_dimension_numbers<[2], [2], [1], [1], [0, 0, 0, 1, 1, 1], [0], [0]>} : vector<2x2x32xf32>, vector<2x8x32xf32>, vector<2x2x8xf32> -> vector<2x2x8xf32>
    "tpu.trace_stop"() : () -> ()
    %668 = vector.broadcast %666 : vector<2x1x8xf32> to vector<2x2x8xf32>
    %669 = arith.mulf %667, %668 : vector<2x2x8xf32>
    %cst_217 = arith.constant 1.000000e+00 : f32
    %670 = vector.broadcast %cst_217 : f32 to vector<2x1x8xf32>
    %671 = arith.subf %670, %666 : vector<2x1x8xf32>
    %cst_218 = arith.constant 1.000000e+06 : f32
    %672 = vector.broadcast %cst_218 : f32 to vector<2x1x8xf32>
    %673 = arith.mulf %672, %671 : vector<2x1x8xf32>
    %674 = vector.broadcast %673 : vector<2x1x8xf32> to vector<2x2x8xf32>
    %675 = arith.subf %669, %674 : vector<2x2x8xf32>
    %cst_219 = arith.constant dense<0xFF800000> : vector<2x2xf32>
    %676 = vector.multi_reduction <maximumf>, %675, %cst_219 [2] : vector<2x2x8xf32> to vector<2x2xf32>
    %677 = vector.shape_cast %676 : vector<2x2xf32> to vector<2x2x1xf32>
    %678 = vector.broadcast %677 : vector<2x2x1xf32> to vector<2x2x8xf32>
    %679 = arith.subf %675, %678 : vector<2x2x8xf32>
    %680 = math.exp %679 : vector<2x2x8xf32>
    %cst_220 = arith.constant dense<0.000000e+00> : vector<2x2xf32>
    %681 = vector.multi_reduction <add>, %680, %cst_220 [2] : vector<2x2x8xf32> to vector<2x2xf32>
    %682 = vector.shape_cast %681 : vector<2x2xf32> to vector<2x2x1xf32>
    %683 = math.log %682 : vector<2x2x1xf32>
    %684 = vector.broadcast %683 : vector<2x2x1xf32> to vector<2x2x8xf32>
    %685 = arith.subf %679, %684 : vector<2x2x8xf32>
    %686 = vector.shape_cast %685 : vector<2x2x8xf32> to vector<2x16xf32>
    %cst_221 = arith.constant 0.000000e+00 : f32
    %687 = vector.broadcast %cst_221 : f32 to vector<2x95xf32>
    %688 = vector.extract_strided_slice %662 {offsets = [0, 0], sizes = [2, 1], strides = [1, 1]} : vector<2x17xf32> to vector<2x1xf32>
    %cst_222 = arith.constant 0.000000e+00 : f32
    %689 = vector.broadcast %cst_222 : f32 to vector<2x1xf32>
    %690 = arith.subf %689, %688 : vector<2x1xf32>
    %cst_223 = arith.constant 0.000000e+00 : f32
    %691 = vector.broadcast %cst_223 : f32 to vector<2x1xf32>
    %692 = arith.maximumf %690, %691 : vector<2x1xf32>
    %693 = math.absf %690 : vector<2x1xf32>
    %cst_224 = arith.constant 0.000000e+00 : f32
    %694 = vector.broadcast %cst_224 : f32 to vector<2x1xf32>
    %695 = arith.subf %694, %693 : vector<2x1xf32>
    %696 = math.exp %695 : vector<2x1xf32>
    %cst_225 = arith.constant 1.000000e+00 : f32
    %697 = vector.broadcast %cst_225 : f32 to vector<2x1xf32>
    %698 = arith.addf %697, %696 : vector<2x1xf32>
    %699 = math.log %698 : vector<2x1xf32>
    %700 = arith.addf %692, %699 : vector<2x1xf32>
    %cst_226 = arith.constant 0.000000e+00 : f32
    %701 = vector.broadcast %cst_226 : f32 to vector<2x1xf32>
    %702 = arith.subf %701, %700 : vector<2x1xf32>
    %703 = vector.extract_strided_slice %662 {offsets = [0, 1], sizes = [2, 1], strides = [1, 1]} : vector<2x17xf32> to vector<2x1xf32>
    %cst_227 = arith.constant 0.000000e+00 : f32
    %704 = vector.broadcast %cst_227 : f32 to vector<2x1xf32>
    %705 = arith.subf %704, %703 : vector<2x1xf32>
    %cst_228 = arith.constant 0.000000e+00 : f32
    %706 = vector.broadcast %cst_228 : f32 to vector<2x1xf32>
    %707 = arith.maximumf %705, %706 : vector<2x1xf32>
    %708 = math.absf %705 : vector<2x1xf32>
    %cst_229 = arith.constant 0.000000e+00 : f32
    %709 = vector.broadcast %cst_229 : f32 to vector<2x1xf32>
    %710 = arith.subf %709, %708 : vector<2x1xf32>
    %711 = math.exp %710 : vector<2x1xf32>
    %cst_230 = arith.constant 1.000000e+00 : f32
    %712 = vector.broadcast %cst_230 : f32 to vector<2x1xf32>
    %713 = arith.addf %712, %711 : vector<2x1xf32>
    %714 = math.log %713 : vector<2x1xf32>
    %715 = arith.addf %707, %714 : vector<2x1xf32>
    %cst_231 = arith.constant 0.000000e+00 : f32
    %716 = vector.broadcast %cst_231 : f32 to vector<2x1xf32>
    %717 = arith.subf %716, %715 : vector<2x1xf32>
    %718 = vector.extract_strided_slice %662 {offsets = [0, 2], sizes = [2, 6], strides = [1, 1]} : vector<2x17xf32> to vector<2x6xf32>
    %cst_232 = arith.constant dense<0xFF800000> : vector<2xf32>
    %719 = vector.multi_reduction <maximumf>, %718, %cst_232 [1] : vector<2x6xf32> to vector<2xf32>
    %720 = vector.shape_cast %719 : vector<2xf32> to vector<2x1xf32>
    %721 = vector.broadcast %720 : vector<2x1xf32> to vector<2x6xf32>
    %722 = arith.subf %718, %721 : vector<2x6xf32>
    %723 = math.exp %722 : vector<2x6xf32>
    %cst_233 = arith.constant dense<0.000000e+00> : vector<2xf32>
    %724 = vector.multi_reduction <add>, %723, %cst_233 [1] : vector<2x6xf32> to vector<2xf32>
    %725 = vector.shape_cast %724 : vector<2xf32> to vector<2x1xf32>
    %726 = math.log %725 : vector<2x1xf32>
    %727 = vector.broadcast %726 : vector<2x1xf32> to vector<2x6xf32>
    %728 = arith.subf %722, %727 : vector<2x6xf32>
    %729 = vector.extract_strided_slice %662 {offsets = [0, 8], sizes = [2, 4], strides = [1, 1]} : vector<2x17xf32> to vector<2x4xf32>
    %cst_234 = arith.constant dense<0xFF800000> : vector<2xf32>
    %730 = vector.multi_reduction <maximumf>, %729, %cst_234 [1] : vector<2x4xf32> to vector<2xf32>
    %731 = vector.shape_cast %730 : vector<2xf32> to vector<2x1xf32>
    %732 = vector.broadcast %731 : vector<2x1xf32> to vector<2x4xf32>
    %733 = arith.subf %729, %732 : vector<2x4xf32>
    %734 = math.exp %733 : vector<2x4xf32>
    %cst_235 = arith.constant dense<0.000000e+00> : vector<2xf32>
    %735 = vector.multi_reduction <add>, %734, %cst_235 [1] : vector<2x4xf32> to vector<2xf32>
    %736 = vector.shape_cast %735 : vector<2xf32> to vector<2x1xf32>
    %737 = math.log %736 : vector<2x1xf32>
    %738 = vector.broadcast %737 : vector<2x1xf32> to vector<2x4xf32>
    %739 = arith.subf %733, %738 : vector<2x4xf32>
    %740 = vector.extract_strided_slice %662 {offsets = [0, 12], sizes = [2, 5], strides = [1, 1]} : vector<2x17xf32> to vector<2x5xf32>
    %cst_236 = arith.constant dense<0xFF800000> : vector<2xf32>
    %741 = vector.multi_reduction <maximumf>, %740, %cst_236 [1] : vector<2x5xf32> to vector<2xf32>
    %742 = vector.shape_cast %741 : vector<2xf32> to vector<2x1xf32>
    %743 = vector.broadcast %742 : vector<2x1xf32> to vector<2x5xf32>
    %744 = arith.subf %740, %743 : vector<2x5xf32>
    %745 = math.exp %744 : vector<2x5xf32>
    %cst_237 = arith.constant dense<0.000000e+00> : vector<2xf32>
    %746 = vector.multi_reduction <add>, %745, %cst_237 [1] : vector<2x5xf32> to vector<2xf32>
    %747 = vector.shape_cast %746 : vector<2xf32> to vector<2x1xf32>
    %748 = math.log %747 : vector<2x1xf32>
    %749 = vector.broadcast %748 : vector<2x1xf32> to vector<2x5xf32>
    %750 = arith.subf %744, %749 : vector<2x5xf32>
    %751 = tpu.concatenate %702, %717, %728, %739, %750, %686, %687 in 1 : vector<2x1xf32>, vector<2x1xf32>, vector<2x6xf32>, vector<2x4xf32>, vector<2x5xf32>, vector<2x16xf32>, vector<2x95xf32> -> vector<2x128xf32>
    %c0_238 = arith.constant 0 : index
    %c0_239 = arith.constant 0 : index
    %752 = vector.load %arg18[%c0_238, %c0_239] : memref<2x128xf32, #tpu.memory_space<vmem>>, vector<2x128xf32>
    tpu.vector_store %arg18[%c0_238, %c0_239], %751 {strides = array<i32>} : memref<2x128xf32, #tpu.memory_space<vmem>>, vector<2x128xf32>,
    return
  }
}

</mosaic_0001>

<bundles_post_ra>
// kernel: hydranet_forward.1
= control target key start
LH: loop header
LB: loop body
LE: loop exit
PB: predicated region body
PF: predicated region fallthrough
CT: control target
= control target key end

     0   :  { %v9253_v1 = vmov 0   ;;  %vm226_vm0 = vcmask 261120   ;;  %s6244_s27 = smov 122   ;;  %vm1154_vm1 = vcmask 1041409   ;;  %vm3438_vm2 = vcmask 1047559   ;;  %s6249_s20 = smov 111   ;;  %s9231_s4 = inlined_call_operand.vmem [shape: bf16[32,1036], index: 4, kind: input, shape index: {}]   ;;  %s9232_s0 = inlined_call_operand.vmem [shape: f32[2,8,32], index: 0, kind: input, shape index: {}]   ;;  %s9233_s6 = inlined_call_operand.vmem [shape: bf16[128,512], index: 6, kind: input, shape index: {}]   ;;  %s9234_s1 = inlined_call_operand.vmem [shape: f32[2,32], index: 1, kind: input, shape index: {}]   ;;  %s9235_s7 = inlined_call_operand.vmem [shape: bf16[128,512], index: 7, kind: input, shape index: {}]   ;;  %s9236_s2 = inlined_call_operand.vmem [shape: f32[16,1], index: 2, kind: input, shape index: {}]   ;;  %s9237_s5 = inlined_call_operand.vmem [shape: f32[1,1036], index: 5, kind: input, shape index: {}]   ;;  %s9238_s8 = inlined_call_operand.vmem [shape: bf16[256,256], index: 8, kind: input, shape index: {}]   ;;  %s9239_s10 = inlined_call_operand.vmem [shape: f32[256,8], index: 10, kind: input, shape index: {}]   ;;  %s9240_s9 = inlined_call_operand.vmem [shape: f32[1,256], index: 9, kind: input, shape index: {}]   ;;  %s9241_s11 = inlined_call_operand.vmem [shape: f32[8,256], index: 11, kind: input, shape index: {}]   ;;  %s9242_s13 = inlined_call_operand.vmem [shape: f32[256,192], index: 13, kind: input, shape index: {}]   ;;  %s9243_s15 = inlined_call_operand.vmem [shape: f32[6,192], index: 15, kind: input, shape index: {}]   ;;  %s9244_s12 = inlined_call_operand.vmem [shape: f32[2,16], index: 12, kind: input, shape index: {}]   ;;  %s9245_s14 = inlined_call_operand.vmem [shape: f32[256,192], index: 14, kind: input, shape index: {}]   ;;  %s9246_s16 = inlined_call_operand.vmem [shape: f32[192,81], index: 16, kind: input, shape index: {}]   ;;  %s9247_s17 = inlined_call_operand.vmem [shape: f32[1,81], index: 17, kind: input, shape index: {}]   ;;  %s9248_s3 = inlined_call_operand.vmem [shape: f32[2,8], index: 3, kind: input, shape index: {}]   ;;  %s9249_s18 = inlined_call_operand.vmem [shape: f32[2,128], index: 18, kind: output, shape index: {}]  }
   0x1   :  { %9460 = sst [smem:[#allocation71_spill]] %s9231_s4  ;;  %265 = vmatprep.mubr.bf16.mxu0 %v9253_v1  ;;  %412 = vmatprep.mubr.bf16.mxu1 %v9253_v1  ;;  %v62_v18 = vld [vmem:[%s9234_s1] sm:$0x3]  ;;  %v6538_v39 = vld [vmem:[%s9235_s7 + $0x4] ss:$16 sps:$4 sm:$0xff]   ;;  %s6245_s1 = smov 6  }
   0x2   :  { %9461 = sst [smem:[#allocation72_spill]] %s9232_s0  ;;  %s9463_s29 = sld [smem:[#allocation71_spill]]  ;;  %5565 = vset.pattern.permute.xlu0 %v9253_v1  ;;  %5566 = vset.pattern.permute.xlu1 %v9253_v1  ;;  %v6439_v22 = vpack.c.bf16 %v62_v18, %v62_v18  ;;  %9469 = vst [vmem:[#allocation5_spill] sm:$0xff] %v6538_v39  ;;  %v6544_v40 = vld [vmem:[%s9235_s7] ss:$16 sps:$4 sm:$0xff]   ;;  %vm3424_vm3 = vcmask 1043459  }
   0x3   :  { %9462 = sst [smem:[#allocation73_spill]] %s9233_s6  ;;  %s9464_s19 = sld [smem:[#allocation72_spill]]  ;;  %v6550_v41 = vld [vmem:[%s9235_s7 + $0x24] ss:$16 sps:$4 sm:$0xff]   ;;  %v6562_v43 = vld [vmem:[%s9235_s7 + $0x20] ss:$16 sps:$4 sm:$0xff]  }
   0x4   :  { %s9465_s6 = sld [smem:[#allocation73_spill]]  ;;  %v6569_v44 = vld [vmem:[%s9235_s7 + $0x44] ss:$16 sps:$4 sm:$0xff]   ;;  %v6581_v46 = vld [vmem:[%s9235_s7 + $0x40] ss:$16 sps:$4 sm:$0xff]   ;;  %vm3464_vm4 = vcmask 1041408  }
   0x5   :  { %v6587_v47 = vld [vmem:[%s9235_s7 + $0x64] ss:$16 sps:$4 sm:$0xff]   ;;  %v6596_v48 = vld [vmem:[%s9235_s7 + $0x60] ss:$16 sps:$4 sm:$0xff]   ;;  %v6818_v18 = vld [vmem:[%s9235_s7 + $0x88] ss:$16 sps:$4 sm:$0xff]  }
   0x6   :  { %v6604_v49 = vld [vmem:[%s9235_s7 + $0x84] ss:$16 sps:$4 sm:$0xff]   ;;  %v6615_v51 = vld [vmem:[%s9235_s7 + $0x80] ss:$16 sps:$4 sm:$0xff]   ;;  %vm3431_vm5 = vcmask 1045509   ;;  %vm3466_vm6 = vcmask 1043456  }
   0x7   :  { %v6626_v53 = vld [vmem:[%s9235_s7 + $0xa4] ss:$16 sps:$4 sm:$0xff]   ;;  %v6640_v55 = vld [vmem:[%s9235_s7 + $0xa0] ss:$16 sps:$4 sm:$0xff]   ;;  %vm3468_vm7 = vcmask 1045504   ;;  %vm3959_vm8 = vcmask 58368  }
   0x8   :  { %v5567_v0 = vld [vmem:[%s9463_s29 + $0x4] ss:$36 sps:$4 sm:$0xff]   ;;  %v5569_v2 = vld [vmem:[%s9463_s29 + $0x1c] ss:$36 sps:$4 sm:$0xff]   ;;  %v5573_v5 = vld [vmem:[%s9463_s29 + $0x4c] ss:$36 sps:$4 sm:$0xff]  }
   0x9   :  { %233 = vmatprep.subr.bf16.mxu0 %v5567_v0  ;;  %v5571_v3 = vld [vmem:[%s9463_s29] ss:$36 sps:$4 sm:$0xff]   ;;  %v5572_v4 = vld [vmem:[%s9463_s29 + $0x18] ss:$36 sps:$4 sm:$0xff]   ;;  %380 = vmatprep.subr.bf16.mxu1 %v5569_v2  ;;  %v5577_v7 = vld [vmem:[%s9463_s29 + $0x48] ss:$36 sps:$4 sm:$0xff]  }
   0xa   :  { %234 = vmatpush1.bf16.msra.mxu0 %v5571_v3  ;;  %381 = vmatpush1.bf16.msra.mxu1 %v5572_v4  ;;  %v5575_v6 = vld [vmem:[%s9463_s29 + $0x64] ss:$36 sps:$4 sm:$0xff]   ;;  %v6398_v13 = vld [vmem:[%s9465_s6] ss:$16 sps:$4 sm:$0xff]   ;;  %v5593_v20 = vld [vmem:[%s9463_s29 + $0x54] ss:$36 sps:$4 sm:$0xff]  }
   0xb   :  { %235 = vmatprep.subr.bf16.mxu0 %v5573_v5  ;;  %v5578_v8 = vld [vmem:[%s9463_s29 + $0x60] ss:$36 sps:$4 sm:$0xff]   ;;  %v61_v10 = vld [vmem:[%s9464_s19 + $0x8] sm:$0xff]  ;;  %382 = vmatprep.subr.bf16.mxu1 %v5575_v6  ;;  %v5591_v19 = vld [vmem:[%s9463_s29 + $0x50] ss:$36 sps:$4 sm:$0xff]   ;;  %vm4067_vm9 = vcmask 64512  }
   0xc   :  { %v60_v9 = vld [vmem:[%s9464_s19] sm:$0xff]  ;;  %v5582_v14 = vld [vmem:[%s9463_s29 + $0x8] ss:$36 sps:$4 sm:$0xff]   ;;  %v5602_v24 = vld [vmem:[%s9463_s29 + $0x14] ss:$36 sps:$4 sm:$0xff]   ;;  %vm4154_vm10 = vcmask 130048  }
   0xd   :  { %v6391_v11 = vld [vmem:[%s9465_s6 + $0x4] ss:$16 sps:$4 sm:$0xff]   ;;  %v6393_v12 = vpack.c.bf16 %v61_v10, %v60_v9  ;;  %v5584_v15 = vld [vmem:[%s9463_s29 + $0xc] ss:$36 sps:$4 sm:$0xff]   ;;  %v5611_v31 = vld [vmem:[%s9463_s29 + $0x5c] ss:$36 sps:$4 sm:$0xff]  }
   0xe   :  { %236 = vmatpush1.bf16.msra.mxu0 %v5577_v7  ;;  %383 = vmatpush1.bf16.msra.mxu1 %v5578_v8  ;;  %v6410_v16 = vld [vmem:[%s9465_s6 + $0x24] ss:$16 sps:$4 sm:$0xff]   ;;  %v6419_v17 = vld [vmem:[%s9465_s6 + $0x20] ss:$16 sps:$4 sm:$0xff]   ;;  %v5609_v33 = vld [vmem:[%s9463_s29 + $0x58] ss:$36 sps:$4 sm:$0xff]  }
   0xf   :  { %699 = vmatprep.subr.bf16.mxu1 %v6391_v11  ;;  %282 = vmatprep.subr.bf16.mxu0 %v5584_v15  ;;  %v6436_v21 = vld [vmem:[%s9465_s6 + $0x44] ss:$16 sps:$4 sm:$0xff]   ;;  %v6445_v23 = vld [vmem:[%s9465_s6 + $0x40] ss:$16 sps:$4 sm:$0xff]   ;;  %v5625_v42 = vld [vmem:[%s9463_s29 + $0x68] ss:$36 sps:$4 sm:$0xff]  }
  0x10   :  { %v6454_v25 = vld [vmem:[%s9465_s6 + $0x64] ss:$16 sps:$4 sm:$0xff]   ;;  %v6464_v26 = vld [vmem:[%s9465_s6 + $0x60] ss:$16 sps:$4 sm:$0xff]   ;;  %v6574_v45 = vld [vmem:[%s9465_s6 + $0xc] ss:$16 sps:$4 sm:$0xff]  }
  0x11   :  { %5163 = vmatmul.mubr.msk.bf16.vlgmr.msra.gmra.mrb[0].mxu0 %vm226_vm0, %v6393_v12  ;;  %5169 = vmatmul.mubr.msk.bf16.vlgmr.msra.gmra.mrb[0].mxu1 %vm226_vm0, %v6393_v12  ;;  %v6471_v27 = vld [vmem:[%s9465_s6 + $0x84] ss:$16 sps:$4 sm:$0xff]   ;;  %v6477_v28 = vld [vmem:[%s9465_s6 + $0x80] ss:$16 sps:$4 sm:$0xff]   ;;  %9470 = vst [vmem:[#allocation6_spill] sm:$0xff] %v6574_v45  ;;  %vm4254_vm11 = vcmask 48128  }
  0x12   :  { %700 = vmatpush1.bf16.msra.mxu1 %v6398_v13  ;;  %283 = vmatpush1.bf16.msra.mxu0 %v5582_v14  ;;  %v5600_v29 = vld [vmem:[%s9463_s29 + $0x10] ss:$36 sps:$4 sm:$0xff]   ;;  %v5618_v35 = vld [vmem:[%s9463_s29 + $0x20] ss:$36 sps:$4 sm:$0xff]   ;;  %v6610_v50 = vld [vmem:[%s9465_s6 + $0x8] ss:$16 sps:$4 sm:$0xff]  }
  0x13   :  { %701 = vmatprep.subr.bf16.mxu1 %v6410_v16  ;;  %275 = vmatprep.mubr.bf16.mxu0 %v9253_v1  ;;  %v6487_v30 = vld [vmem:[%s9465_s6 + $0xa4] ss:$16 sps:$4 sm:$0xff]   ;;  %v6497_v32 = vld [vmem:[%s9465_s6 + $0xa0] ss:$16 sps:$4 sm:$0xff]   ;;  %9471 = vst [vmem:[#allocation7_spill] sm:$0xff] %v6610_v50  ;;  %vm4723_vm12 = vcmask 523264  }
  0x14   :  { %284 = vmatprep.subr.bf16.mxu0 %v5593_v20  ;;  %422 = vmatprep.mubr.bf16.mxu1 %v9253_v1  ;;  %v6508_v34 = vld [vmem:[%s9465_s6 + $0xc4] ss:$16 sps:$4 sm:$0xff]   ;;  %v6517_v36 = vld [vmem:[%s9465_s6 + $0xc0] ss:$16 sps:$4 sm:$0xff]   ;;  %v6621_v52 = vld [vmem:[%s9465_s6 + $0x2c] ss:$16 sps:$4 sm:$0xff]  }
  0x15   :  { %9466 = vst [vmem:[#allocation2_spill] sm:$0xff] %v6517_v36  ;;  %v6523_v37 = vld [vmem:[%s9465_s6 + $0xe4] ss:$16 sps:$4 sm:$0xff]   ;;  %v6531_v38 = vld [vmem:[%s9465_s6 + $0xe0] ss:$16 sps:$4 sm:$0xff]   ;;  %9472 = vst [vmem:[#allocation8_spill] sm:$0xff] %v6621_v52 }
  0x16   :  { %702 = vmatpush1.bf16.msra.mxu1 %v6419_v17  ;;  %285 = vmatpush1.bf16.msra.mxu0 %v5591_v19  ;;  %9467 = vst [vmem:[#allocation3_spill] sm:$0xff] %v6523_v37  ;;  %9468 = vst [vmem:[#allocation4_spill] sm:$0xff] %v6531_v38  ;;  %v6635_v54 = vld [vmem:[%s9465_s6 + $0x28] ss:$16 sps:$4 sm:$0xff]   ;;  %v6647_v56 = vld [vmem:[%s9465_s6 + $0x4c] ss:$16 sps:$4 sm:$0xff]  }
  0x17   :  { %703 = vmatprep.subr.bf16.mxu1 %v6436_v21  ;;  %331 = vmatprep.subr.bf16.mxu0 %v5602_v24  ;;  %9473 = vst [vmem:[#allocation9_spill] sm:$0xff] %v6635_v54  ;;  %9474 = vst [vmem:[#allocation10_spill] sm:$0xff] %v6647_v56  ;;  %v6652_v57 = vld [vmem:[%s9235_s7 + $0xc4] ss:$16 sps:$4 sm:$0xff]   ;;  %v6660_v58 = vld [vmem:[%s9465_s6 + $0x48] ss:$16 sps:$4 sm:$0xff]  }
  0x18   :  { %9475 = vst [vmem:[#allocation11_spill] sm:$0xff] %v6660_v58  ;;  %v6665_v59 = vld [vmem:[%s9235_s7 + $0xc0] ss:$16 sps:$4 sm:$0xff]   ;;  %v6672_v60 = vld [vmem:[%s9465_s6 + $0x6c] ss:$16 sps:$4 sm:$0xff]   ;;  %s6250_s29 = smov 96  }
  0x19   :  { %5164 = vmatmul.mubr.msk.bf16.gmra.mrb[4].mxu0 %vm226_vm0, %v6439_v22  ;;  %5170 = vmatmul.mubr.msk.bf16.gmra.mrb[4].mxu1 %vm226_vm0, %v6439_v22  ;;  %9476 = vst [vmem:[#allocation12_spill] sm:$0xff] %v6672_v60  ;;  %v6677_v61 = vld [vmem:[%s9235_s7 + $0xe4] ss:$16 sps:$4 sm:$0xff]   ;;  %v6684_v62 = vld [vmem:[%s9465_s6 + $0x68] ss:$16 sps:$4 sm:$0xff]   ;;  %vm6251_vm13 = vmmov 0  }
  0x1a   :  { %704 = vmatpush1.bf16.msra.mxu1 %v6445_v23  ;;  %314 = vmatprep.mubr.bf16.mxu0 %v9253_v1  ;;  %9477 = vst [vmem:[#allocation13_spill] sm:$0xff] %v6684_v62  ;;  %v6689_v63 = vld [vmem:[%s9235_s7 + $0xe0] ss:$16 sps:$4 sm:$0xff]   ;;  %v6696_v0 = vld [vmem:[%s9465_s6 + $0x8c] ss:$16 sps:$4 sm:$0xff]   ;;  %vm5072_vm14 = vcmask 58384  }
  0x1b   :  { %705 = vmatprep.subr.bf16.mxu1 %v6454_v25  ;;  %731 = vmatprep.mubr.bf16.mxu1 %v9253_v1  ;;  %9478 = vst [vmem:[#allocation14_spill] sm:$0xff] %v6689_v63  ;;  %9479 = vst [vmem:[#allocation15_spill] sm:$0xff] %v6696_v0  ;;  %v6703_v2 = vld [vmem:[%s9465_s6 + $0x88] ss:$16 sps:$4 sm:$0xff]   ;;  %v6709_v3 = vld [vmem:[%s9465_s6 + $0xac] ss:$16 sps:$4 sm:$0xff]  }
  0x1c   :  { %9480 = vst [vmem:[#allocation16_spill] sm:$0xff] %v6703_v2  ;;  %9481 = vst [vmem:[#allocation17_spill] sm:$0xff] %v6709_v3  ;;  %v6717_v4 = vld [vmem:[%s9465_s6 + $0xa8] ss:$16 sps:$4 sm:$0xff]   ;;  %v6724_v5 = vld [vmem:[%s9465_s6 + $0xcc] ss:$16 sps:$4 sm:$0xff]  }
  0x1d   :  { %9482 = vst [vmem:[#allocation18_spill] sm:$0xff] %v6717_v4  ;;  %9483 = vst [vmem:[#allocation19_spill] sm:$0xff] %v6724_v5  ;;  %v6732_v6 = vld [vmem:[%s9465_s6 + $0xc8] ss:$16 sps:$4 sm:$0xff]   ;;  %v6739_v7 = vld [vmem:[%s9465_s6 + $0xec] ss:$16 sps:$4 sm:$0xff]  }
  0x1e   :  { %706 = vmatpush1.bf16.msra.mxu1 %v6464_v26  ;;  %9484 = vst [vmem:[#allocation20_spill] sm:$0xff] %v6732_v6  ;;  %9485 = vst [vmem:[#allocation21_spill] sm:$0xff] %v6739_v7  ;;  %v6746_v8 = vld [vmem:[%s9465_s6 + $0xe8] ss:$16 sps:$4 sm:$0xff]   ;;  %v6753_v9 = vld [vmem:[%s9235_s7 + $0xc] ss:$16 sps:$4 sm:$0xff]  }
  0x1f   :  { %707 = vmatprep.subr.bf16.mxu1 %v6471_v27  ;;  %9486 = vst [vmem:[#allocation22_spill] sm:$0xff] %v6746_v8  ;;  %9487 = vst [vmem:[#allocation23_spill] sm:$0xff] %v6753_v9  ;;  %v6760_v10 = vld [vmem:[%s9235_s7 + $0x8] ss:$16 sps:$4 sm:$0xff]   ;;  %v6796_v15 = vld [vmem:[%s9235_s7 + $0x6c] ss:$16 sps:$4 sm:$0xff]  }
  0x20   :  { %v6790_v14 = vld [vmem:[%s9235_s7 + $0x48] ss:$16 sps:$4 sm:$0xff]   ;;  %v6824_v19 = vld [vmem:[%s9235_s7 + $0xac] ss:$16 sps:$4 sm:$0xff]   ;;  %vm5108_vm15 = vcmask 132192   ;;  %s6257_s23 = smov 8  }
  0x21   :  { %5165 = vmatmul.mubr.msk.bf16.vlgmr.msra.gmra.mrb[8].mxu0 %vm226_vm0, %v6393_v12  ;;  %v6832_v20 = vld [vmem:[%s9235_s7 + $0xa8] ss:$16 sps:$4 sm:$0xff]   ;;  %s6258_s24 = smov 17  }
  0x22   :  { %708 = vmatpush1.bf16.msra.mxu1 %v6477_v28  ;;  %332 = vmatpush1.bf16.msra.mxu0 %v5600_v29  ;;  %v6856_v24 = vld [vmem:[%s9235_s7 + $0xe8] ss:$16 sps:$4 sm:$0xff]  }
  0x23   :  { %709 = vmatprep.subr.bf16.mxu1 %v6487_v30  ;;  %324 = vmatprep.mubr.bf16.mxu0 %v9253_v1  ;;  %9488 = vst [vmem:[#allocation24_spill] sm:$0xff] %v6856_v24 }
  0x24   :  { %333 = vmatprep.subr.bf16.mxu0 %v5611_v31 }
  0x26   :  { %710 = vmatpush1.bf16.msra.mxu1 %v6497_v32  ;;  %334 = vmatpush1.bf16.msra.mxu0 %v5609_v33 }
  0x27   :  { %711 = vmatprep.subr.bf16.mxu1 %v6508_v34  ;;  %5331 = vmatprep.subr.bf16.mxu0 %v5618_v35 }
  0x29   :  { %5166 = vmatmul.mubr.msk.bf16.gmra.mrb[12].mxu0 %vm226_vm0, %v6439_v22 }
  0x2a   :  { %712 = vmatpush1.bf16.msra.mxu1 %v6517_v36  ;;  %363 = vmatprep.mubr.bf16.mxu0 %v9253_v1 }
  0x2b   :  { %713 = vmatprep.subr.bf16.mxu1 %v6523_v37 }
  0x2e   :  { %714 = vmatpush1.bf16.msra.mxu1 %v6531_v38 }
  0x2f   :  { %1001 = vmatprep.subr.bf16.mxu1 %v6538_v39 }
  0x31   :  { %5167 = vmatmul.mubr.msk.bf16.vlgmr.msra.gmra.mrb[16].mxu0 %vm226_vm0, %v6393_v12  ;;  %732 = vmatmul.mubr.bf16.vlgmr.msra.gmra.mrb[8].mxu1 %v9253_v1 }
  0x32   :  { %1002 = vmatpush1.bf16.msra.mxu1 %v6544_v40  ;;  %5332 = vmatpush3.bf16.msra.mxu0 %v5618_v35 }
  0x33   :  { %1003 = vmatprep.subr.bf16.mxu1 %v6550_v41  ;;  %373 = vmatprep.mubr.bf16.mxu0 %v9253_v1 }
  0x34   :  { %5333 = vmatprep.subr.bf16.mxu0 %v5625_v42  ;;  %1033 = vmatprep.mubr.bf16.mxu1 %v9253_v1 }
  0x36   :  { %1004 = vmatpush1.bf16.msra.mxu1 %v6562_v43  ;;  %5334 = vmatpush3.bf16.msra.mxu0 %v5625_v42 }
  0x37   :  { %1005 = vmatprep.subr.bf16.mxu1 %v6569_v44  ;;  %740 = vmatprep.subr.bf16.mxu0 %v6574_v45 }
  0x39   :  { %5168 = vmatmul.mubr.msk.bf16.gmra.mrb[20].mxu0 %vm226_vm0, %v6439_v22 }
  0x3a   :  { %1006 = vmatpush1.bf16.msra.mxu1 %v6581_v46  ;;  %5335 = vmatprep.mubr.msk.bf16.mxu0 %vm226_vm0, %v6393_v12  ;;  %v6775_v12 = vld [vmem:[%s9235_s7 + $0x28] ss:$16 sps:$4 sm:$0xff]  }
  0x3b   :  { %1007 = vmatprep.subr.bf16.mxu1 %v6587_v47 }
  0x3e   :  { %1008 = vmatpush1.bf16.msra.mxu1 %v6596_v48 }
  0x3f   :  { %1009 = vmatprep.subr.bf16.mxu1 %v6604_v49 }
  0x41   :  { %5336 = vmatmul.mubr.msk.bf16.vlgmr.msra.gmra.mrb[24].mxu0 %vm226_vm0, %v6439_v22  ;;  %v6844_v22 = vld [vmem:[%s9235_s7 + $0xc8] ss:$16 sps:$4 sm:$0xff]  }
  0x42   :  { %741 = vmatpush1.bf16.msra.mxu0 %v6610_v50  ;;  %1010 = vmatpush1.bf16.msra.mxu1 %v6615_v51 }
  0x43   :  { %742 = vmatprep.subr.bf16.mxu0 %v6621_v52  ;;  %1011 = vmatprep.subr.bf16.mxu1 %v6626_v53 }
  0x44   :  { %772 = vmatprep.mubr.bf16.mxu0 %v9253_v1 }
  0x46   :  { %743 = vmatpush1.bf16.msra.mxu0 %v6635_v54  ;;  %1012 = vmatpush1.bf16.msra.mxu1 %v6640_v55 }
  0x47   :  { %744 = vmatprep.subr.bf16.mxu0 %v6647_v56  ;;  %1013 = vmatprep.subr.bf16.mxu1 %v6652_v57 }
  0x4a   :  { %745 = vmatpush1.bf16.msra.mxu0 %v6660_v58  ;;  %1014 = vmatpush1.bf16.msra.mxu1 %v6665_v59 }
  0x4b   :  { %746 = vmatprep.subr.bf16.mxu0 %v6672_v60  ;;  %1015 = vmatprep.subr.bf16.mxu1 %v6677_v61 }
  0x4e   :  { %747 = vmatpush1.bf16.msra.mxu0 %v6684_v62  ;;  %1016 = vmatpush1.bf16.msra.mxu1 %v6689_v63 }
  0x4f   :  { %748 = vmatprep.subr.bf16.mxu0 %v6696_v0  ;;  %1158 = vmatprep.subr.bf16.mxu1 %v6391_v11  ;;  %v6767_v11 = vld [vmem:[%s9235_s7 + $0x2c] ss:$16 sps:$4 sm:$0xff]  }
  0x51   :  { %1034 = vmatmul.mubr.bf16.vlgmr.msra.gmra.mrb[12].mxu1 %v9253_v1 }
  0x52   :  { %749 = vmatpush1.bf16.msra.mxu0 %v6703_v2  ;;  %1159 = vmatpush1.bf16.msra.mxu1 %v6398_v13  ;;  %v6782_v13 = vld [vmem:[%s9235_s7 + $0x4c] ss:$16 sps:$4 sm:$0xff]  }
  0x53   :  { %750 = vmatprep.subr.bf16.mxu0 %v6709_v3  ;;  %1160 = vmatprep.subr.bf16.mxu1 %v6410_v16  ;;  %v6804_v16 = vld [vmem:[%s9235_s7 + $0x68] ss:$16 sps:$4 sm:$0xff]  }
  0x54   :  { %1190 = vmatprep.mubr.bf16.mxu1 %v9253_v1 }
  0x56   :  { %751 = vmatpush1.bf16.msra.mxu0 %v6717_v4  ;;  %1161 = vmatpush1.bf16.msra.mxu1 %v6419_v17  ;;  %v6810_v17 = vld [vmem:[%s9235_s7 + $0x8c] ss:$16 sps:$4 sm:$0xff]  }
  0x57   :  { %752 = vmatprep.subr.bf16.mxu0 %v6724_v5  ;;  %1162 = vmatprep.subr.bf16.mxu1 %v6436_v21  ;;  %v6838_v21 = vld [vmem:[%s9235_s7 + $0xcc] ss:$16 sps:$4 sm:$0xff]  }
  0x5a   :  { %753 = vmatpush1.bf16.msra.mxu0 %v6732_v6  ;;  %1163 = vmatpush1.bf16.msra.mxu1 %v6445_v23  ;;  %v6850_v23 = vld [vmem:[%s9235_s7 + $0xec] ss:$16 sps:$4 sm:$0xff]  }
  0x5b   :  { %754 = vmatprep.subr.bf16.mxu0 %v6739_v7  ;;  %1164 = vmatprep.subr.bf16.mxu1 %v6454_v25  ;;  %v3885_v25 = vld [vmem:[%s9236_s2] sm:$0xff] }
  0x5c   :  { %3889 = vperm.xlu0 %5565, %v3885_v25  }
  0x5e   :  { %755 = vmatpush1.bf16.msra.mxu0 %v6746_v8  ;;  %1165 = vmatpush1.bf16.msra.mxu1 %v6464_v26  ;;  %v3886_v26 = vld [vmem:[%s9236_s2 + $0x8] sm:$0xff] }
  0x5f   :  { %1042 = vmatprep.subr.bf16.mxu0 %v6753_v9  ;;  %1166 = vmatprep.subr.bf16.mxu1 %v6471_v27 }
  0x60   :  { %3894 = vperm.xlu0 %5565, %v3886_v26  }
  0x61   :  { %773 = vmatmul.mubr.bf16.vlgmr.msra.gmra.mrb[28].mxu0 %v9253_v1 }
  0x62   :  { %1043 = vmatpush1.bf16.msra.mxu0 %v6760_v10  ;;  %1074 = vmatprep.mubr.bf16.mxu0 %v9253_v1 }
  0x63   :  { %1044 = vmatprep.subr.bf16.mxu0 %v6767_v11  ;;  %1167 = vmatpush1.bf16.msra.mxu1 %v6477_v28 }
  0x64   :  { %1168 = vmatprep.subr.bf16.mxu1 %v6487_v30 }
  0x66   :  { %1045 = vmatpush1.bf16.msra.mxu0 %v6775_v12 }
  0x67   :  { %1046 = vmatprep.subr.bf16.mxu0 %v6782_v13  ;;  %1169 = vmatpush1.bf16.msra.mxu1 %v6497_v32 }
  0x68   :  { %1170 = vmatprep.subr.bf16.mxu1 %v6508_v34 }
  0x6a   :  { %1047 = vmatpush1.bf16.msra.mxu0 %v6790_v14 }
  0x6b   :  { %1048 = vmatprep.subr.bf16.mxu0 %v6796_v15  ;;  %1171 = vmatpush1.bf16.msra.mxu1 %v6517_v36 }
  0x6c   :  { %1172 = vmatprep.subr.bf16.mxu1 %v6523_v37  ;;  %v3899_v37 = vsub.f32 1.0, %v3885_v25 }
  0x6e   :  { %1049 = vmatpush1.bf16.msra.mxu0 %v6804_v16 }
  0x6f   :  { %1050 = vmatprep.subr.bf16.mxu0 %v6810_v17  ;;  %1173 = vmatpush1.bf16.msra.mxu1 %v6531_v38 }
  0x70   :  { %1317 = vmatprep.subr.bf16.mxu1 %v6538_v39 }
  0x72   :  { %1051 = vmatpush1.bf16.msra.mxu0 %v6818_v18 }
  0x73   :  { %1052 = vmatprep.subr.bf16.mxu0 %v6824_v19 }
  0x76   :  { %1053 = vmatpush1.bf16.msra.mxu0 %v6832_v20 }
  0x77   :  { %1054 = vmatprep.subr.bf16.mxu0 %v6838_v21 }
  0x7a   :  { %1055 = vmatpush1.bf16.msra.mxu0 %v6844_v22 }
  0x7b   :  { %1056 = vmatprep.subr.bf16.mxu0 %v6850_v23 }
  0x7e   :  { %1057 = vmatpush1.bf16.msra.mxu0 %v6856_v24 }
  0x7f   :  { %1199 = vmatprep.subr.bf16.mxu0 %v6574_v45 }
  0x81   :  { %1075 = vmatmul.mubr.bf16.vlgmr.msra.gmra.mrb[32].mxu0 %v9253_v1 }
  0x82   :  { %1200 = vmatpush1.bf16.msra.mxu0 %v6610_v50  ;;  %1231 = vmatprep.mubr.bf16.mxu0 %v9253_v1 }
  0x83   :  { %1201 = vmatprep.subr.bf16.mxu0 %v6621_v52 }
  0x86   :  { %1202 = vmatpush1.bf16.msra.mxu0 %v6635_v54 }
  0x87   :  { %1203 = vmatprep.subr.bf16.mxu0 %v6647_v56 }
  0x8a   :  { %1204 = vmatpush1.bf16.msra.mxu0 %v6660_v58 }
  0x8b   :  { %1205 = vmatprep.subr.bf16.mxu0 %v6672_v60 }
  0x8e   :  { %1206 = vmatpush1.bf16.msra.mxu0 %v6684_v62 }
  0x8f   :  { %1207 = vmatprep.subr.bf16.mxu0 %v6696_v0 }
  0x92   :  { %1208 = vmatpush1.bf16.msra.mxu0 %v6703_v2  ;;  %v3901_v2 = vmul.f32 1000000.0, %v3899_v37 }
  0x93   :  { %1209 = vmatprep.subr.bf16.mxu0 %v6709_v3 }
  0x94   :  { %3905 = vperm.xlu1 %5566, %v3901_v2  }
  0x96   :  { %1210 = vmatpush1.bf16.msra.mxu0 %v6717_v4 }
  0x97   :  { %1211 = vmatprep.subr.bf16.mxu0 %v6724_v5  ;;  %v3900_v5 = vsub.f32 1.0, %v3886_v26 }
  0x99   :  { %v3902_v0 = vmul.f32 1000000.0, %v3900_v5 }
  0x9a   :  { %1212 = vmatpush1.bf16.msra.mxu0 %v6732_v6 }
  0x9b   :  { %1213 = vmatprep.subr.bf16.mxu0 %v6739_v7  ;;  %3910 = vperm.xlu1 %5566, %v3902_v0   ;;  %v5144_v0 = vld [vmem:[%s9237_s5 + $0x8] ss:$0 sm:$0xff] }
  0x9e   :  { %1214 = vmatpush1.bf16.msra.mxu0 %v6746_v8 }
  0x9f   :  { %1358 = vmatprep.subr.bf16.mxu0 %v6753_v9 }
  0xe4   :  { %v267_v27 = vpop.f32.mrb[0].mxu0  ;;  %v6885_v28 = vpop.f32.mrb[0].mxu1 }
  0xe5   :  { %v269_v29 = vpop.f32.mrb[1].mxu0  ;;  %v6887_v30 = vpop.f32.mrb[1].mxu1 }
  0xe6   :  { %v6889_v31 = vpop.f32.mrb[2].mxu0  ;;  %v6891_v32 = vpop.f32.mrb[2].mxu1 }
  0xe7   :  { %v273_v33 = vpop.f32.mrb[3].mxu0  ;;  %v6893_v34 = vpop.f32.mrb[3].mxu1 }
  0xec   :  { %v277_v35 = vpop.f32.mrb[4].mxu0  ;;  %v424_v42 = vpop.f32.mrb[4].mxu1 }
  0xed   :  { %v278_v1 = vpop.f32.mrb[5].mxu0  ;;  %v425_v39 = vpop.f32.mrb[5].mxu1 }
  0xee   :  { %v279_v8 = vpop.f32.mrb[6].mxu0  ;;  %v426_v38 = vpop.f32.mrb[6].mxu1 }
  0xef   :  { %v280_v9 = vpop.f32.mrb[7].mxu0  ;;  %v427_v7 = vpop.f32.mrb[7].mxu1 }
  0xf4   :  { %v6895_v6 = vpop.f32.mrb[8].mxu0 }
  0xf5   :  { %v6897_v36 = vpop.f32.mrb[9].mxu0 }
  0xf6   :  { %v6899_v4 = vpop.f32.mrb[10].mxu0 }
  0xf7   :  { %v6901_v3 = vpop.f32.mrb[11].mxu0 }
  0xfc   :  { %v326_v35 = vpop.f32.mrb[12].mxu0 }
  0xfd   :  { %v327_v1 = vpop.f32.mrb[13].mxu0 }
  0xfe   :  { %v328_v39 = vpop.f32.mrb[14].mxu0  ;;  %v89_v1 = vlaneseq }
  0xff   :  { %v329_v38 = vpop.f32.mrb[15].mxu0 }
 0x100   :  { %v6916_v54 = vshrl.u32 %v89_v1, 7 }
 0x102   :  { %9490 = vst [vmem:[#allocation26_spill] sm:$0xff] %v6916_v54 }
 0x104   :  { %v6903_v8 = vpop.f32.mrb[16].mxu0  ;;  %v733_v7 = vpop.f32.mrb[8].mxu1 }
 0x105   :  { %v6905_v9 = vpop.f32.mrb[17].mxu0  ;;  %v735_v25 = vpop.f32.mrb[9].mxu1 }
 0x106   :  { %v6907_v42 = vpop.f32.mrb[18].mxu0  ;;  %v737_v26 = vpop.f32.mrb[10].mxu1 }
 0x107   :  { %v6909_v62 = vpop.f32.mrb[19].mxu0  ;;  %v738_v60 = vpop.f32.mrb[11].mxu1  ;;  %v9277_v26 = vsub.s32 1, %v6916_v54 }
 0x10c   :  { %v375_v37 = vpop.f32.mrb[20].mxu0 }
 0x10d   :  { %v376_v5 = vpop.f32.mrb[21].mxu0  ;;  %v6924_v37 = vld [vmem:[%s9237_s5] sm:$0xff] }
 0x10e   :  { %v377_v2 = vpop.f32.mrb[22].mxu0  ;;  %v6927_v5 = vsub.s32 0, %v6916_v54 }
 0x10f   :  { %v378_v35 = vpop.f32.mrb[23].mxu0 }
 0x110   :  { %9491 = vst [vmem:[#allocation27_spill] sm:$0xff] %v6927_v5  ;;  %v786_v35 = vrot.slane %v735_v25, 1 }
 0x114   :  { %v5337_v39 = vpop.f32.mrb[24].mxu0 }
 0x115   :  { %v6914_v38 = vadd.f32 %v5337_v39, %v5144_v0  ;;  %v463_v58 = vpop.f32.mrb[25].mxu0 }
 0x116   :  { %v5338_v56 = vpop.f32.mrb[26].mxu0  ;;  %v92_v58 = vrot.slane %v6924_v37, %v6927_v5 }
 0x117   :  { %9489 = vst [vmem:[#allocation25_spill] sm:$0xff] %v6914_v38  ;;  %4230 = vrot.lane.b32.xlu0 %v6914_v38, %s6244_s27  ;;  %v465_v60 = vpop.f32.mrb[27].mxu0  ;;  %v96_v56 = vrot.slane %v6924_v37, %v9277_v26 }
 0x118   :  { %v6936_v0 = vadd.f32 %v267_v27, %v92_v58  ;;  %v785_v60 = vrot.slane %v733_v7, 1  ;;  %v6947_v45 = vadd.f32 %v6889_v31, %v92_v58 }
 0x119   :  { %v6934_v2 = vadd.f32 %v269_v29, %v96_v56  ;;  %v6940_v39 = vadd.f32 %v273_v33, %v96_v56  ;;  %v99_v33 = vsub.s32 2, %v6916_v54 }
 0x11a   :  { %9493 = vst [vmem:[#allocation29_spill] sm:$0xff] %v6936_v0  ;;  %v797_v50 = vadd.f32 %v733_v7, %v6936_v0  ;;  %9495 = vst [vmem:[#allocation31_spill] sm:$0xff] %v6947_v45  ;;  %v801_v27 = vadd.f32 %v785_v60, %v6947_v45  ;;  %v111_v0 = vsub.s32 5, %v6916_v54 }
 0x11b   :  { %9492 = vst [vmem:[#allocation28_spill] sm:$0xff] %v6934_v2  ;;  %9494 = vst [vmem:[#allocation30_spill] sm:$0xff] %v6940_v39  ;;  %v798_v38 = vadd.f32 %v735_v25, %v6934_v2  ;;  %v802_v29 = vadd.f32 %v786_v35, %v6940_v39  ;;  %v103_v25 = vsub.s32 3, %v6916_v54  ;;  %v100_v7 = vrot.slane %v6924_v37, %v99_v33 }
 0x11c   :  { %v805_v63 = vmul.f32 0.5, %v797_v50  ;;  %v806_v2 = vmul.f32 0.5, %v801_v27 }
 0x11d   :  { %v813_v24 = vmul.f32 0.5, %v798_v38  ;;  %v814_v56 = vmul.f32 0.5, %v802_v29  ;;  %v104_v31 = vrot.slane %v6924_v37, %v103_v25 }
 0x11f   :  { %5737 = vtanh.f32 %v813_v24  ;;  %v6959_v38 = vadd.f32 %v6897_v36, %v104_v31  ;;  %v6966_v35 = vadd.f32 %v6901_v3, %v104_v31 }
 0x120   :  { %5739 = vtanh.f32 %v805_v63 }
 0x121   :  { %5741 = vtanh.f32 %v814_v56  ;;  %9497 = vst [vmem:[#allocation33_spill] sm:$0xff] %v6959_v38  ;;  %9499 = vst [vmem:[#allocation35_spill] sm:$0xff] %v6966_v35 }
 0x122   :  { %5743 = vtanh.f32 %v806_v2 }
 0x124   :  { %v6938_v1 = vpop.f32.mrb[12].mxu1 }
 0x125   :  { %v6943_v52 = vpop.f32.mrb[13].mxu1 }
 0x126   :  { %v1039_v26 = vpop.f32.mrb[14].mxu1 }
 0x127   :  { %v1040_v5 = vpop.f32.mrb[15].mxu1  ;;  %v6956_v26 = vadd.f32 %v6895_v6, %v100_v7 }
 0x128   :  { %v6962_v5 = vadd.f32 %v6899_v4, %v100_v7 }
 0x129   :  { %9496 = vst [vmem:[#allocation32_spill] sm:$0xff] %v6956_v26  ;;  %v5738_v6 = vpop.eup %5737 }
 0x12a   :  { %9498 = vst [vmem:[#allocation34_spill] sm:$0xff] %v6962_v5  ;;  %v5740_v33 = vpop.eup %5739  ;;  %v817_v25 = vadd.f32 1.0, %v5738_v6 }
 0x12b   :  { %v5742_v56 = vpop.eup %5741 }
 0x12c   :  { %v818_v3 = vadd.f32 1.0, %v5742_v56 }
 0x134   :  { %v774_v50 = vpop.f32.mrb[28].mxu0 }
 0x135   :  { %v787_v58 = vrot.slane %v774_v50, 1  ;;  %v799_v24 = vadd.f32 %v774_v50, %v6956_v26  ;;  %v776_v63 = vpop.f32.mrb[29].mxu0  ;;  %v5744_v50 = vpop.eup %5743  ;;  %v809_v26 = vadd.f32 1.0, %v5740_v33 }
 0x136   :  { %v788_v60 = vrot.slane %v776_v63, 1  ;;  %v800_v2 = vadd.f32 %v776_v63, %v6959_v38  ;;  %v778_v29 = vpop.f32.mrb[30].mxu0  ;;  %v810_v63 = vadd.f32 1.0, %v5744_v50 }
 0x137   :  { %v803_v27 = vadd.f32 %v787_v58, %v6962_v5  ;;  %5745 = vtanh.f32 %v799_v24  ;;  %v779_v36 = vpop.f32.mrb[31].mxu0  ;;  %v819_v29 = vmul.f32 0.5, %v817_v25  ;;  %v107_v58 = vsub.s32 4, %v6916_v54 }
 0x138   :  { %v804_v4 = vadd.f32 %v788_v60, %v6966_v35  ;;  %v823_v7 = vmul.f32 0.5, %v800_v2  ;;  %v811_v24 = vmul.f32 0.5, %v809_v26  ;;  %v820_v36 = vmul.f32 0.5, %v818_v3 }
 0x139   :  { %5747 = vtanh.f32 %v803_v27  ;;  %v112_v60 = vrot.slane %v6924_v37, %v111_v0  ;;  %v812_v27 = vmul.f32 0.5, %v810_v63  ;;  %v831_v6 = vmul.f32 0.0, %v819_v29 }
 0x13a   :  { %v824_v31 = vmul.f32 0.5, %v804_v4  ;;  %5749 = vtanh.f32 %v823_v7  ;;  %v108_v33 = vrot.slane %v6924_v37, %v107_v58  ;;  %v1088_v4 = vrot.slane %v6943_v52, 1 }
 0x13b   :  { %v832_v56 = vmul.f32 0.0, %v820_v36  ;;  %v1092_v25 = vrot.slane %v6943_v52, 2  ;;  %v6980_v26 = vadd.f32 %v6905_v9, %v112_v60  ;;  %v1087_v3 = vrot.slane %v6938_v1, 1 }
 0x13c   :  { %5751 = vtanh.f32 %v824_v31  ;;  %v6984_v0 = vadd.f32 %v6909_v62, %v112_v60  ;;  %v6991_v63 = vadd.f32 %v6903_v8, %v108_v33  ;;  %v6995_v9 = vadd.f32 %v6907_v42, %v108_v33 }
 0x13d   :  { %v1104_v52 = vadd.f32 %v1088_v4, %v6980_v26  ;;  %v115_v8 = vsub.s32 6, %v6916_v54  ;;  %v119_v60 = vsub.s32 7, %v6916_v54 }
 0x13e   :  { %9500 = vst [vmem:[#allocation36_spill] sm:$0xff] %v6984_v0  ;;  %9501 = vst [vmem:[#allocation37_spill] sm:$0xff] %v6991_v63  ;;  %v1108_v29 = vadd.f32 %v1092_v25, %v6984_v0  ;;  %v1103_v62 = vadd.f32 %v1087_v3, %v6991_v63 }
 0x13f   :  { %9502 = vst [vmem:[#allocation38_spill] sm:$0xff] %v6995_v9  ;;  %v120_v25 = vrot.slane %v6924_v37, %v119_v60 }
 0x141   :  { %v5746_v38 = vpop.eup %5745 }
 0x142   :  { %v833_v2 = vmul.f32 %v5746_v38, %v811_v24  ;;  %v1091_v38 = vrot.slane %v6938_v1, 2  ;;  %v1119_v24 = vmul.f32 0.5, %v1104_v52 }
 0x143   :  { %v5748_v35 = vpop.eup %5747 }
 0x144   :  { %v834_v7 = vmul.f32 %v5748_v35, %v812_v27  ;;  %v6977_v50 = vadd.f32 %v833_v2, %v831_v6  ;;  %v5750_v35 = vpop.eup %5749  ;;  %v1107_v58 = vadd.f32 %v1091_v38, %v6995_v9  ;;  %v1120_v27 = vmul.f32 0.5, %v1108_v29 }
 0x145   :  { %v827_v36 = vadd.f32 1.0, %v5750_v35  ;;  %v1111_v6 = vmul.f32 0.5, %v1103_v62  ;;  %v7009_v29 = vadd.f32 %v6887_v30, %v120_v25 }
 0x146   :  { %v6987_v31 = vadd.f32 %v834_v7, %v832_v56  ;;  %5753 = vtanh.f32 %v6977_v50  ;;  %v5752_v1 = vpop.eup %5751  ;;  %v1112_v42 = vmul.f32 0.5, %v1107_v58  ;;  %v116_v56 = vrot.slane %v6924_v37, %v115_v8 }
 0x147   :  { %v828_v2 = vadd.f32 1.0, %v5752_v1  ;;  %v829_v33 = vmul.f32 0.5, %v827_v36 }
 0x148   :  { %5755 = vtanh.f32 %v6987_v31  ;;  %v7006_v35 = vadd.f32 %v6885_v28, %v116_v56  ;;  %v7012_v8 = vadd.f32 %v6891_v32, %v116_v56  ;;  %v7015_v28 = vadd.f32 %v6893_v34, %v120_v25 }
 0x149   :  { %5757 = vtanh.f32 %v1119_v24  ;;  %v830_v7 = vmul.f32 0.5, %v828_v2 }
 0x14a   :  { %5759 = vtanh.f32 %v1120_v27  ;;  %9503 = vst [vmem:[#allocation39_spill] sm:$0xff] %v7012_v8 }
 0x14b   :  { %5761 = vtanh.f32 %v1111_v6 }
 0x14c   :  { %5763 = vtanh.f32 %v1112_v42 }
 0x150   :  { %v5754_v4 = vpop.eup %5753 }
 0x151   :  { %v839_v3 = vmul.f32 %v5754_v4, %v829_v33 }
 0x152   :  { %v5756_v38 = vpop.eup %5755 }
 0x153   :  { %v840_v52 = vmul.f32 %v5756_v38, %v830_v7  ;;  %v1147_v1 = vpack.c.bf16 %v839_v3, %v839_v3  ;;  %v5758_v32 = vpop.eup %5757 }
 0x154   :  { %v1076_v62 = vpop.f32.mrb[32].mxu0 }
 0x155   :  { %v1148_v58 = vpack.c.bf16 %v840_v52, %v840_v52  ;;  %v3417_v24 = vrot.slane %v840_v52, 7  ;;  %v1089_v36 = vrot.slane %v1076_v62, 1  ;;  %v1078_v37 = vpop.f32.mrb[33].mxu0  ;;  %v1093_v60 = vrot.slane %v1076_v62, 2 }
 0x156   :  { %v1090_v27 = vrot.slane %v1078_v37, 1  ;;  %v1094_v6 = vrot.slane %v1078_v37, 2  ;;  %v1080_v2 = vpop.f32.mrb[34].mxu0  ;;  %v1151_v56 = vunpack.c.l.b16 %v1147_v1  ;;  %v5760_v37 = vpop.eup %5759 }
 0x157   :  { %v1152_v42 = vunpack.c.l.b16 %v1148_v58  ;;  %v7018_v30 = vsel %vm1154_vm1, %v3417_v24, %v839_v3  ;;  %v1105_v33 = vadd.f32 %v1089_v36, %v7006_v35  ;;  %v1081_v4 = vpop.f32.mrb[35].mxu0  ;;  %v1109_v7 = vadd.f32 %v1093_v60, %v7012_v8  ;;  %v5762_v34 = vpop.eup %5761 }
 0x158   :  { %v1106_v38 = vadd.f32 %v1090_v27, %v7009_v29  ;;  %v1110_v52 = vadd.f32 %v1094_v6, %v7015_v28  ;;  %v5764_v3 = vpop.eup %5763  ;;  %v1123_v58 = vadd.f32 1.0, %v5758_v32  ;;  %v1124_v2 = vadd.f32 1.0, %v5760_v37  ;;  %v7074_v37 = vpop.permute.xlu0 %3889 }
 0x159   :  { %5765 = vtanh.f32 %v1105_v33  ;;  %v1153_v62 = vrot.slane %v1152_v42, 7  ;;  %v1115_v60 = vadd.f32 1.0, %v5762_v34  ;;  %v1116_v27 = vadd.f32 1.0, %v5764_v3  ;;  %v9510_v34 = vld [vmem:[#allocation7_spill] sm:$0xff]  ;;  %v9512_v3 = vld [vmem:[#allocation8_spill] sm:$0xff] }
 0x15a   :  { %5767 = vtanh.f32 %v1109_v7  ;;  %v1129_v24 = vmul.f32 0.5, %v1106_v38  ;;  %v1130_v4 = vmul.f32 0.5, %v1110_v52  ;;  %v1125_v1 = vmul.f32 0.5, %v1123_v58 }
 0x15b   :  { %v1155_v25 = vsel %vm1154_vm1, %v1153_v62, %v1151_v56  ;;  %v1126_v6 = vmul.f32 0.5, %v1124_v2  ;;  %v9504_v42 = vmov 0   ;;  %v1117_v33 = vmul.f32 0.5, %v1115_v60  ;;  %v7104_v2 = vld [vmem:[%s9465_s6 + $0x44] ss:$16 sps:$4 sm:$0xff]  }
 0x15c   :  { %v1156_v36 = vpack.c.b16 %v1155_v25, %v1155_v25  ;;  %5769 = vtanh.f32 %v1129_v24  ;;  %v1118_v38 = vmul.f32 0.5, %v1116_v27  ;;  %v7086_v25 = vld [vmem:[%s9465_s6 + $0x24] ss:$16 sps:$4 sm:$0xff]   ;;  %v7092_v58 = vpop.permute.xlu0 %3894  ;;  %v7097_v24 = vld [vmem:[%s9465_s6 + $0x20] ss:$16 sps:$4 sm:$0xff]   ;;  %9516 = vst [vmem:[#allocation8_spill] sm:$0xff] %v7104_v2 }
 0x15d   :  { %5771 = vtanh.f32 %v1130_v4  ;;  %9514 = vst [vmem:[#allocation7_spill] sm:$0xff] %v7097_v24  ;;  %v9517_v4 = vld [vmem:[#allocation10_spill] sm:$0xff]  ;;  %v9519_v27 = vld [vmem:[#allocation11_spill] sm:$0xff] }
 0x15e   :  { %1191 = vmatmul.mubr.bf16.vlgmr.msra.gmra.mrb[16].mxu1 %v1156_v36  ;;  %1232 = vmatmul.mubr.bf16.vlgmr.msra.gmra.mrb[36].mxu0 %v1156_v36  ;;  %v9515_v36 = vld [vmem:[#allocation9_spill] sm:$0xff]  ;;  %v7111_v60 = vld [vmem:[%s9465_s6 + $0x40] ss:$16 sps:$4 sm:$0xff]  }
 0x15f   :  { %1318 = vmatpush1.bf16.msra.mxu1 %v6544_v40  ;;  %1359 = vmatpush1.bf16.msra.mxu0 %v6760_v10  ;;  %v1137_v10 = vmul.f32 0.0, %v1125_v1  ;;  %9518 = vst [vmem:[#allocation9_spill] sm:$0xff] %v7111_v60 }
 0x160   :  { %1319 = vmatprep.subr.bf16.mxu1 %v6550_v41  ;;  %1360 = vmatprep.subr.bf16.mxu0 %v6767_v11  ;;  %v1138_v41 = vmul.f32 0.0, %v1126_v6  ;;  %v7118_v6 = vld [vmem:[%s9465_s6 + $0x64] ss:$16 sps:$4 sm:$0xff]  }
 0x161   :  { %1349 = vmatprep.mubr.bf16.mxu1 %v9504_v42  ;;  %1390 = vmatprep.mubr.bf16.mxu0 %v9504_v42  ;;  %9520 = vst [vmem:[#allocation10_spill] sm:$0xff] %v7118_v6 }
 0x163   :  { %v5766_v7 = vpop.eup %5765  ;;  %1320 = vmatpush1.bf16.msra.mxu1 %v6562_v43  ;;  %1361 = vmatpush1.bf16.msra.mxu0 %v6775_v12 }
 0x164   :  { %v5768_v40 = vpop.eup %5767  ;;  %v1139_v32 = vmul.f32 %v5766_v7, %v1117_v33  ;;  %1321 = vmatprep.subr.bf16.mxu1 %v6569_v44  ;;  %1362 = vmatprep.subr.bf16.mxu0 %v6782_v13  ;;  %v9521_v33 = vld [vmem:[#allocation12_spill] sm:$0xff]  ;;  %v9522_v7 = vld [vmem:[#allocation25_spill] sm:$0xff] }
 0x165   :  { %v1140_v11 = vmul.f32 %v5768_v40, %v1118_v38  ;;  %v7130_v40 = vld [vmem:[%s9465_s6 + $0x60] ss:$16 sps:$4 sm:$0xff]  }
 0x166   :  { %v7035_v56 = vadd.f32 %v1139_v32, %v1137_v10  ;;  %v5770_v43 = vpop.eup %5769  ;;  %9523 = vst [vmem:[#allocation11_spill] sm:$0xff] %v7130_v40  ;;  %v9524_v10 = vld [vmem:[#allocation13_spill] sm:$0xff]  ;;  %v7137_v32 = vld [vmem:[%s9465_s6 + $0x84] ss:$16 sps:$4 sm:$0xff]  }
 0x167   :  { %v7037_v52 = vadd.f32 %v1140_v11, %v1138_v41  ;;  %1322 = vmatpush1.bf16.msra.mxu1 %v6581_v46  ;;  %1363 = vmatpush1.bf16.msra.mxu0 %v6790_v14  ;;  %v5772_v44 = vpop.eup %5771  ;;  %v1133_v46 = vadd.f32 1.0, %v5770_v43  ;;  %9525 = vst [vmem:[#allocation12_spill] sm:$0xff] %v7137_v32  ;;  %v9526_v41 = vld [vmem:[#allocation15_spill] sm:$0xff]  ;;  %v7144_v11 = vld [vmem:[%s9465_s6 + $0x80] ss:$16 sps:$4 sm:$0xff]  }
 0x168   :  { %5773 = vtanh.f32 %v7035_v56  ;;  %1323 = vmatprep.subr.bf16.mxu1 %v6587_v47  ;;  %1364 = vmatprep.subr.bf16.mxu0 %v6796_v15  ;;  %v1134_v12 = vadd.f32 1.0, %v5772_v44  ;;  %9527 = vst [vmem:[#allocation25_spill] sm:$0xff] %v7144_v11  ;;  %v9528_v43 = vld [vmem:[#allocation16_spill] sm:$0xff] }
 0x169   :  { %5775 = vtanh.f32 %v7037_v52  ;;  %v1135_v47 = vmul.f32 0.5, %v1133_v46  ;;  %v7151_v44 = vld [vmem:[%s9465_s6 + $0xa4] ss:$16 sps:$4 sm:$0xff]   ;;  %v9530_v46 = vld [vmem:[#allocation17_spill] sm:$0xff] }
 0x16a   :  { %v1136_v14 = vmul.f32 0.5, %v1134_v12  ;;  %9529 = vst [vmem:[#allocation13_spill] sm:$0xff] %v7151_v44  ;;  %v7158_v12 = vld [vmem:[%s9465_s6 + $0xa0] ss:$16 sps:$4 sm:$0xff]  }
 0x16b   :  { %1324 = vmatpush1.bf16.msra.mxu1 %v6596_v48  ;;  %1365 = vmatpush1.bf16.msra.mxu0 %v6804_v16  ;;  %9531 = vst [vmem:[#allocation15_spill] sm:$0xff] %v7158_v12 }
 0x16c   :  { %1325 = vmatprep.subr.bf16.mxu1 %v6604_v49  ;;  %1366 = vmatprep.subr.bf16.mxu0 %v6810_v17 }
 0x16f   :  { %1326 = vmatpush1.bf16.msra.mxu1 %v6615_v51  ;;  %1367 = vmatpush1.bf16.msra.mxu0 %v6818_v18 }
 0x170   :  { %1327 = vmatprep.subr.bf16.mxu1 %v6626_v53  ;;  %1368 = vmatprep.subr.bf16.mxu0 %v6824_v19 }
 0x172   :  { %v5774_v13 = vpop.eup %5773 }
 0x173   :  { %v5776_v48 = vpop.eup %5775  ;;  %v1145_v15 = vmul.f32 %v5774_v13, %v1135_v47  ;;  %1328 = vmatpush1.bf16.msra.mxu1 %v6640_v55  ;;  %1369 = vmatpush1.bf16.msra.mxu0 %v6832_v20  ;;  %v9506_v20 = vld [vmem:[#allocation14_spill] sm:$0xff] }
 0x174   :  { %v1146_v49 = vmul.f32 %v5776_v48, %v1136_v14  ;;  %1329 = vmatprep.subr.bf16.mxu1 %v6652_v57  ;;  %1370 = vmatprep.subr.bf16.mxu0 %v6838_v21  ;;  %v9507_v21 = vld [vmem:[#allocation24_spill] sm:$0xff]  ;;  %9509 = vst [vmem:[#allocation14_spill] sm:$0xff] %v7074_v37  ;;  %v9532_v47 = vld [vmem:[#allocation18_spill] sm:$0xff]  ;;  %v9534_v14 = vld [vmem:[#allocation19_spill] sm:$0xff] }
 0x175   :  { %v1306_v51 = vpack.c.bf16 %v1145_v15, %v1145_v15  ;;  %v3516_v16 = vrot.slane %v1145_v15, 1  ;;  %9511 = vst [vmem:[#allocation24_spill] sm:$0xff] %v7086_v25  ;;  %v7165_v13 = vld [vmem:[%s9465_s6 + $0xc4] ss:$16 sps:$4 sm:$0xff]  }
 0x176   :  { %v1307_v53 = vpack.c.bf16 %v1146_v49, %v1146_v49  ;;  %9533 = vst [vmem:[#allocation16_spill] sm:$0xff] %v7165_v13  ;;  %v9535_v48 = vld [vmem:[#allocation2_spill] sm:$0xff]  ;;  %v9536_v15 = vld [vmem:[#allocation20_spill] sm:$0xff] }
 0x177   :  { %v1310_v17 = vunpack.c.l.b16 %v1306_v51  ;;  %1330 = vmatpush1.bf16.msra.mxu1 %v6665_v59  ;;  %1371 = vmatpush1.bf16.msra.mxu0 %v6844_v22  ;;  %v7060_v18 = vsel %vm3438_vm2, %v1146_v49, %v3516_v16  ;;  %v7070_v59 = vld [vmem:[%s9465_s6 + $0x4] ss:$16 sps:$4 sm:$0xff]   ;;  %v9537_v49 = vld [vmem:[#allocation3_spill] sm:$0xff]  ;;  %v9538_v51 = vld [vmem:[#allocation21_spill] sm:$0xff] }
 0x178   :  { %9505 = vst [vmem:[#allocation40_spill] sm:$0xff] %v7060_v18  ;;  %v1311_v55 = vunpack.c.l.b16 %v1307_v53  ;;  %1331 = vmatprep.subr.bf16.mxu1 %v6677_v61  ;;  %1372 = vmatprep.subr.bf16.mxu0 %v6850_v23  ;;  %v9508_v22 = vld [vmem:[#allocation6_spill] sm:$0xff]  ;;  %v9539_v16 = vld [vmem:[#allocation4_spill] sm:$0xff] }
 0x179   :  { %v1312_v57 = vrot.slane %v1310_v17, 7  ;;  %v7079_v23 = vld [vmem:[%s9465_s6] ss:$16 sps:$4 sm:$0xff]   ;;  %9513 = vst [vmem:[#allocation6_spill] sm:$0xff] %v7092_v58  ;;  %v9541_v17 = vld [vmem:[#allocation5_spill] sm:$0xff] }
 0x17a   :  { %v1313_v19 = vrot.slane %v1311_v55, 6  ;;  %v9540_v53 = vld [vmem:[#allocation22_spill] sm:$0xff]  ;;  %v9542_v55 = vld [vmem:[#allocation23_spill] sm:$0xff] }
 0x17b   :  { %1332 = vmatpush1.bf16.msra.mxu1 %v9506_v20  ;;  %1373 = vmatpush1.bf16.msra.mxu0 %v9507_v21 }
 0x17c   :  { %v1314_v62 = vsel %vm1154_vm1, %v1313_v19, %v1312_v57  ;;  %1479 = vmatprep.subr.bf16.mxu1 %v7070_v59  ;;  %1520 = vmatprep.subr.bf16.mxu0 %v9508_v22  ;;  %v7177_v57 = vpop.permute.xlu1 %3905 }
 0x17d   :  { %v1315_v61 = vpack.c.b16 %v1314_v62, %v1314_v62  ;;  %9543 = vst [vmem:[#allocation17_spill] sm:$0xff] %v7177_v57 }
 0x17f   :  { %1350 = vmatmul.mubr.bf16.vlgmr.msra.gmra.mrb[20].mxu1 %v1315_v61  ;;  %1391 = vmatmul.mubr.bf16.vlgmr.msra.gmra.mrb[40].mxu0 %v1315_v61 }
 0x180   :  { %1480 = vmatpush1.bf16.msra.mxu1 %v7079_v23  ;;  %1521 = vmatpush1.bf16.msra.mxu0 %v9510_v34  ;;  %v7179_v19 = vpop.permute.xlu1 %3910 }
 0x181   :  { %1481 = vmatprep.subr.bf16.mxu1 %v7086_v25  ;;  %1522 = vmatprep.subr.bf16.mxu0 %v9512_v3  ;;  %9544 = vst [vmem:[#allocation18_spill] sm:$0xff] %v7179_v19 }
 0x182   :  { %1511 = vmatprep.mubr.bf16.mxu1 %v9504_v42  ;;  %1552 = vmatprep.mubr.bf16.mxu0 %v9504_v42 }
 0x184   :  { %1482 = vmatpush1.bf16.msra.mxu1 %v7097_v24  ;;  %1523 = vmatpush1.bf16.msra.mxu0 %v9515_v36 }
 0x185   :  { %1483 = vmatprep.subr.bf16.mxu1 %v7104_v2  ;;  %1524 = vmatprep.subr.bf16.mxu0 %v9517_v4 }
 0x188   :  { %1484 = vmatpush1.bf16.msra.mxu1 %v7111_v60  ;;  %1525 = vmatpush1.bf16.msra.mxu0 %v9519_v27 }
 0x189   :  { %v4231_v1 = vpop.permute.xlu0 %4230  ;;  %1485 = vmatprep.subr.bf16.mxu1 %v7118_v6  ;;  %1526 = vmatprep.subr.bf16.mxu0 %v9521_v33 }
 0x18a   :  { %v7123_v38 = vmax.f32 %v9522_v7, %v4231_v1 }
 0x18c   :  { %4238 = vrot.lane.b32.xlu1 %v7123_v38, %s6245_s1  ;;  %1486 = vmatpush1.bf16.msra.mxu1 %v7130_v40 }
 0x18d   :  { %1527 = vmatpush1.bf16.msra.mxu0 %v9524_v10  ;;  %1487 = vmatprep.subr.bf16.mxu1 %v7137_v32 }
 0x18e   :  { %1528 = vmatprep.subr.bf16.mxu0 %v9526_v41 }
 0x190   :  { %1488 = vmatpush1.bf16.msra.mxu1 %v7144_v11 }
 0x191   :  { %1529 = vmatpush1.bf16.msra.mxu0 %v9528_v43  ;;  %1489 = vmatprep.subr.bf16.mxu1 %v7151_v44 }
 0x192   :  { %1530 = vmatprep.subr.bf16.mxu0 %v9530_v46  ;;  %v9545_v46 = vld [vmem:[#allocation29_spill] sm:$0xff] }
 0x194   :  { %1490 = vmatpush1.bf16.msra.mxu1 %v7158_v12 }
 0x195   :  { %1531 = vmatpush1.bf16.msra.mxu0 %v9532_v47  ;;  %1491 = vmatprep.subr.bf16.mxu1 %v7165_v13 }
 0x196   :  { %1532 = vmatprep.subr.bf16.mxu0 %v9534_v14 }
 0x198   :  { %1492 = vmatpush1.bf16.msra.mxu1 %v9535_v48 }
 0x199   :  { %1533 = vmatpush1.bf16.msra.mxu0 %v9536_v15  ;;  %1493 = vmatprep.subr.bf16.mxu1 %v9537_v49 }
 0x19a   :  { %1534 = vmatprep.subr.bf16.mxu0 %v9538_v51  ;;  %v9546_v51 = vld [vmem:[#allocation28_spill] sm:$0xff] }
 0x19c   :  { %1494 = vmatpush1.bf16.msra.mxu1 %v9539_v16 }
 0x19d   :  { %1535 = vmatpush1.bf16.msra.mxu0 %v9540_v53  ;;  %1642 = vmatprep.subr.bf16.mxu1 %v9541_v17 }
 0x19e   :  { %1683 = vmatprep.subr.bf16.mxu0 %v9542_v55 }
 0x1fe   :  { %v4239_v20 = vpop.permute.xlu1 %4238 }
 0x1ff   :  { %v4241_v21 = vsub.f32 %v9522_v7, %v4239_v20  ;;  %v9547_v20 = vld [vmem:[#allocation32_spill] sm:$0xff] }
 0x201   :  { %v4242_v62 = vmul.f32 1.442695, %v4241_v21 }
 0x203   :  { %5777 = vpow2.f32 %v4242_v62 }
 0x20d   :  { %v7182_v22 = vpop.eup %5777 }
 0x20e   :  { %4245 = vrot.lane.b32.xlu0 %v7182_v22, %s6244_s27 }
 0x231   :  { %v1192_v61 = vpop.f32.mrb[16].mxu1  ;;  %v1233_v34 = vpop.f32.mrb[36].mxu0 }
 0x232   :  { %v1244_v3 = vrot.slane %v1192_v61, 7  ;;  %v1260_v36 = vadd.f32 %v1192_v61, %v6947_v45  ;;  %v1194_v4 = vpop.f32.mrb[17].mxu1  ;;  %v1235_v27 = vpop.f32.mrb[37].mxu0  ;;  %v1262_v1 = vadd.f32 %v1233_v34, %v6962_v5  ;;  %v1246_v48 = vrot.slane %v1233_v34, 7  ;;  %v9548_v61 = vld [vmem:[#allocation33_spill] sm:$0xff] }
 0x233   :  { %v1245_v33 = vrot.slane %v1194_v4, 7  ;;  %v1261_v10 = vadd.f32 %v1194_v4, %v6940_v39  ;;  %v1196_v41 = vpop.f32.mrb[18].mxu1  ;;  %v1237_v43 = vpop.f32.mrb[38].mxu0  ;;  %v1247_v62 = vrot.slane %v1235_v27, 7 }
 0x234   :  { %v1256_v47 = vadd.f32 %v1244_v3, %v9545_v46  ;;  %v1265_v14 = vmul.f32 0.5, %v1260_v36  ;;  %v1197_v15 = vpop.f32.mrb[19].mxu1  ;;  %v1238_v49 = vpop.f32.mrb[39].mxu0  ;;  %v1258_v21 = vadd.f32 %v1246_v48, %v9547_v20  ;;  %v9549_v36 = vld [vmem:[#allocation35_spill] sm:$0xff] }
 0x235   :  { %v1257_v16 = vadd.f32 %v1245_v33, %v9546_v51  ;;  %v1273_v17 = vmul.f32 0.5, %v1261_v10  ;;  %v1259_v3 = vadd.f32 %v1247_v62, %v9548_v61  ;;  %v1263_v34 = vadd.f32 %v1235_v27, %v9549_v36 }
 0x236   :  { %v1264_v53 = vmul.f32 0.5, %v1256_v47  ;;  %5779 = vtanh.f32 %v1265_v14  ;;  %v1292_v27 = vrot.slane %v6977_v50, 7 }
 0x237   :  { %5781 = vtanh.f32 %v1262_v1  ;;  %v1272_v55 = vmul.f32 0.5, %v1257_v16  ;;  %v1282_v41 = vmul.f32 0.5, %v1259_v3  ;;  %v1283_v47 = vmul.f32 0.5, %v1263_v34 }
 0x238   :  { %5783 = vtanh.f32 %v1264_v53  ;;  %v1293_v3 = vrot.slane %v6987_v31, 7 }
 0x239   :  { %5785 = vtanh.f32 %v1272_v55 }
 0x23a   :  { %5787 = vtanh.f32 %v1273_v17 }
 0x23b   :  { %5789 = vtanh.f32 %v1258_v21 }
 0x23c   :  { %5791 = vtanh.f32 %v1282_v41 }
 0x23d   :  { %5793 = vtanh.f32 %v1283_v47 }
 0x240   :  { %v5780_v4 = vpop.eup %5779 }
 0x241   :  { %v5782_v43 = vpop.eup %5781  ;;  %v1269_v33 = vadd.f32 1.0, %v5780_v4 }
 0x242   :  { %v5784_v14 = vpop.eup %5783 }
 0x243   :  { %v5786_v10 = vpop.eup %5785  ;;  %v1268_v1 = vadd.f32 1.0, %v5784_v14  ;;  %v1271_v15 = vmul.f32 0.5, %v1269_v33 }
 0x244   :  { %v5788_v49 = vpop.eup %5787  ;;  %v1276_v16 = vadd.f32 1.0, %v5786_v10 }
 0x245   :  { %v1270_v48 = vmul.f32 0.5, %v1268_v1  ;;  %v1277_v53 = vadd.f32 1.0, %v5788_v49  ;;  %v1299_v17 = vmul.f32 %v5782_v43, %v1271_v15  ;;  %v5790_v55 = vpop.eup %5789 }
 0x246   :  { %v1278_v21 = vmul.f32 0.5, %v1276_v16  ;;  %v5792_v41 = vpop.eup %5791 }
 0x247   :  { %v1279_v62 = vmul.f32 0.5, %v1277_v53  ;;  %v1298_v4 = vmul.f32 %v5790_v55, %v1270_v48  ;;  %v5794_v43 = vpop.eup %5793  ;;  %v1286_v47 = vadd.f32 1.0, %v5792_v41 }
 0x248   :  { %v1296_v34 = vmul.f32 %v1292_v27, %v1278_v21  ;;  %v1287_v14 = vadd.f32 1.0, %v5794_v43 }
 0x249   :  { %v1297_v19 = vmul.f32 %v1293_v3, %v1279_v62 }
 0x24a   :  { %v7196_v58 = vadd.f32 %v1298_v4, %v1296_v34  ;;  %v1289_v34 = vmul.f32 0.5, %v1287_v14 }
 0x24b   :  { %v7198_v33 = vadd.f32 %v1299_v17, %v1297_v19  ;;  %v1288_v17 = vmul.f32 0.5, %v1286_v47 }
 0x24c   :  { %5795 = vtanh.f32 %v7196_v58 }
 0x24d   :  { %5797 = vtanh.f32 %v7198_v33 }
 0x252   :  { %v1351_v10 = vpop.f32.mrb[20].mxu1  ;;  %v1392_v50 = vpop.f32.mrb[40].mxu0 }
 0x253   :  { %v1403_v1 = vrot.slane %v1351_v10, 2  ;;  %v1407_v15 = vrot.slane %v1351_v10, 3  ;;  %v1353_v31 = vpop.f32.mrb[21].mxu1  ;;  %v1394_v49 = vpop.f32.mrb[41].mxu0  ;;  %v1405_v27 = vrot.slane %v1392_v50, 2  ;;  %v1409_v41 = vrot.slane %v1392_v50, 3 }
 0x254   :  { %v1404_v16 = vrot.slane %v1353_v31, 2  ;;  %v1408_v48 = vrot.slane %v1353_v31, 3  ;;  %v1355_v53 = vpop.f32.mrb[22].mxu1  ;;  %v1396_v19 = vpop.f32.mrb[42].mxu0  ;;  %v1406_v54 = vrot.slane %v1394_v49, 2 }
 0x255   :  { %v1419_v55 = vadd.f32 %v1403_v1, %v6991_v63  ;;  %v1423_v21 = vadd.f32 %v1407_v15, %v6995_v9  ;;  %v1356_v62 = vpop.f32.mrb[23].mxu1  ;;  %v1397_v3 = vpop.f32.mrb[43].mxu0 }
 0x256   :  { %v5796_v4 = vpop.eup %5795  ;;  %v1420_v43 = vadd.f32 %v1404_v16, %v6980_v26  ;;  %v1424_v10 = vadd.f32 %v1408_v48, %v6984_v0  ;;  %v1421_v62 = vadd.f32 %v1405_v27, %v7006_v35  ;;  %v1425_v16 = vadd.f32 %v1409_v41, %v7012_v8 }
 0x257   :  { %v5798_v57 = vpop.eup %5797  ;;  %v1304_v37 = vmul.f32 %v5796_v4, %v1288_v17  ;;  %v1427_v31 = vmul.f32 0.5, %v1419_v55  ;;  %v1428_v53 = vmul.f32 0.5, %v1423_v21  ;;  %v1410_v17 = vrot.slane %v1394_v49, 3 }
 0x258   :  { %v1305_v47 = vmul.f32 %v5798_v57, %v1289_v34  ;;  %v1435_v19 = vmul.f32 0.5, %v1420_v43  ;;  %v1436_v1 = vmul.f32 0.5, %v1424_v10  ;;  %v1422_v27 = vadd.f32 %v1406_v54, %v7009_v29  ;;  %v7219_v43 = vld [vmem:[%s9235_s7] ss:$16 sps:$4 sm:$0xff]   ;;  %v7225_v54 = vld [vmem:[%s9235_s7 + $0x8] ss:$16 sps:$4 sm:$0xff]  }
 0x259   :  { %v1469_v15 = vpack.c.bf16 %v1304_v37, %v1304_v37  ;;  %v3422_v18 = vrot.slane %v1304_v37, 7  ;;  %5799 = vtanh.f32 %v1427_v31  ;;  %v1426_v3 = vadd.f32 %v1410_v17, %v7015_v28  ;;  %v7231_v31 = vld [vmem:[%s9235_s7 + $0x24] ss:$16 sps:$4 sm:$0xff]   ;;  %v7251_v17 = vld [vmem:[%s9235_s7 + $0x28] ss:$16 sps:$4 sm:$0xff]  }
 0x25a   :  { %v1470_v14 = vpack.c.bf16 %v1305_v47, %v1305_v47  ;;  %v3423_v50 = vrot.slane %v1305_v47, 6  ;;  %5801 = vtanh.f32 %v1428_v53  ;;  %v1445_v41 = vmul.f32 0.5, %v1422_v27  ;;  %v7237_v53 = vld [vmem:[%s9235_s7 + $0x2c] ss:$16 sps:$4 sm:$0xff]  }
 0x25b   :  { %v1473_v48 = vunpack.c.l.b16 %v1469_v15  ;;  %5803 = vtanh.f32 %v1435_v19  ;;  %v1446_v49 = vmul.f32 0.5, %v1426_v3  ;;  %v7258_v3 = vld [vmem:[%s9235_s7 + $0x44] ss:$16 sps:$4 sm:$0xff]  }
 0x25c   :  { %v3425_v55 = vsel %vm3424_vm3, %v3423_v50, %v3422_v18  ;;  %5805 = vtanh.f32 %v1436_v1  ;;  %v1474_v57 = vunpack.c.l.b16 %v1470_v14 }
 0x25d   :  { %5807 = vtanh.f32 %v1421_v62  ;;  %v1475_v21 = vrot.slane %v1473_v48, 1  ;;  %v7211_v37 = vsel %vm3464_vm4, %v7018_v30, %v3425_v55  ;;  %v7245_v48 = vld [vmem:[%s9235_s7 + $0x20] ss:$16 sps:$4 sm:$0xff]  }
 0x25e   :  { %5809 = vtanh.f32 %v1425_v16 }
 0x25f   :  { %v1476_v4 = vsel %vm1154_vm1, %v1474_v57, %v1475_v21  ;;  %5811 = vtanh.f32 %v1445_v41  ;;  %v1455_v21 = vrot.slane %v7035_v56, 1  ;;  %v1456_v41 = vrot.slane %v7037_v52, 1  ;;  %v7285_v52 = vld [vmem:[%s9235_s7 + $0x64] ss:$16 sps:$4 sm:$0xff]  }
 0x260   :  { %v1477_v34 = vpack.c.b16 %v1476_v4, %v1476_v4  ;;  %5813 = vtanh.f32 %v1446_v49  ;;  %v7264_v4 = vld [vmem:[%s9235_s7 + $0x4c] ss:$16 sps:$4 sm:$0xff]  }
 0x262   :  { %1512 = vmatmul.mubr.bf16.vlgmr.msra.gmra.mrb[24].mxu1 %v1477_v34  ;;  %1553 = vmatmul.mubr.bf16.vlgmr.msra.gmra.mrb[44].mxu0 %v1477_v34 }
 0x263   :  { %v5800_v18 = vpop.eup %5799  ;;  %1643 = vmatpush1.bf16.msra.mxu1 %v7219_v43  ;;  %1684 = vmatpush1.bf16.msra.mxu0 %v7225_v54 }
 0x264   :  { %v5802_v30 = vpop.eup %5801  ;;  %v1431_v10 = vadd.f32 1.0, %v5800_v18  ;;  %1644 = vmatprep.subr.bf16.mxu1 %v7231_v31  ;;  %1685 = vmatprep.subr.bf16.mxu0 %v7237_v53 }
 0x265   :  { %v5804_v47 = vpop.eup %5803  ;;  %v1432_v19 = vadd.f32 1.0, %v5802_v30  ;;  %1674 = vmatprep.mubr.bf16.mxu1 %v9504_v42  ;;  %1715 = vmatprep.mubr.bf16.mxu0 %v9504_v42  ;;  %v7271_v30 = vld [vmem:[%s9235_s7 + $0x40] ss:$16 sps:$4 sm:$0xff]  }
 0x266   :  { %v5806_v1 = vpop.eup %5805  ;;  %v1433_v15 = vmul.f32 0.5, %v1431_v10  ;;  %v1439_v62 = vadd.f32 1.0, %v5804_v47  ;;  %v7277_v10 = vld [vmem:[%s9235_s7 + $0x48] ss:$16 sps:$4 sm:$0xff]  }
 0x267   :  { %v5808_v14 = vpop.eup %5807  ;;  %v1434_v50 = vmul.f32 0.5, %v1432_v19  ;;  %v1440_v16 = vadd.f32 1.0, %v5806_v1  ;;  %1645 = vmatpush1.bf16.msra.mxu1 %v7245_v48  ;;  %1686 = vmatpush1.bf16.msra.mxu0 %v7251_v17  ;;  %v7291_v19 = vld [vmem:[%s9235_s7 + $0x6c] ss:$16 sps:$4 sm:$0xff]  }
 0x268   :  { %v5810_v55 = vpop.eup %5809  ;;  %v1441_v57 = vmul.f32 0.5, %v1439_v62  ;;  %v1461_v27 = vmul.f32 %v5808_v14, %v1433_v15  ;;  %1646 = vmatprep.subr.bf16.mxu1 %v7258_v3  ;;  %1687 = vmatprep.subr.bf16.mxu0 %v7264_v4  ;;  %v4234_v15 = vsub.f32 %v9522_v7, %v7123_v38  ;;  %v7303_v62 = vld [vmem:[%s9235_s7 + $0x60] ss:$16 sps:$4 sm:$0xff]   ;;  %v7309_v14 = vld [vmem:[%s9235_s7 + $0x68] ss:$16 sps:$4 sm:$0xff]  }
 0x269   :  { %v1442_v34 = vmul.f32 0.5, %v1440_v16  ;;  %v1462_v18 = vmul.f32 %v5810_v55, %v1434_v50  ;;  %v5812_v50 = vpop.eup %5811  ;;  %v7315_v7 = vld [vmem:[%s9235_s7 + $0x84] ss:$16 sps:$4 sm:$0xff]   ;;  %v7321_v38 = vld [vmem:[%s9235_s7 + $0x8c] ss:$16 sps:$4 sm:$0xff]  }
 0x26a   :  { %v1459_v56 = vmul.f32 %v1455_v21, %v1441_v57  ;;  %v5814_v16 = vpop.eup %5813  ;;  %v4235_v55 = vmul.f32 1.442695, %v4234_v15  ;;  %v1449_v57 = vadd.f32 1.0, %v5812_v50  ;;  %v7327_v21 = vld [vmem:[%s9235_s7 + $0x80] ss:$16 sps:$4 sm:$0xff]  }
 0x26b   :  { %v1460_v49 = vmul.f32 %v1456_v41, %v1442_v34  ;;  %1647 = vmatpush1.bf16.msra.mxu1 %v7271_v30  ;;  %1688 = vmatpush1.bf16.msra.mxu0 %v7277_v10  ;;  %v1450_v34 = vadd.f32 1.0, %v5814_v16  ;;  %v7339_v41 = vld [vmem:[%s9235_s7 + $0xa4] ss:$16 sps:$4 sm:$0xff]   ;;  %v7357_v15 = vld [vmem:[%s9235_s7 + $0xa8] ss:$16 sps:$4 sm:$0xff]  }
 0x26c   :  { %v7280_v47 = vadd.f32 %v1461_v27, %v1459_v56  ;;  %1648 = vmatprep.subr.bf16.mxu1 %v7285_v52  ;;  %1689 = vmatprep.subr.bf16.mxu0 %v7291_v19  ;;  %v7333_v27 = vld [vmem:[%s9235_s7 + $0x88] ss:$16 sps:$4 sm:$0xff]   ;;  %9551 = vst [vmem:[#allocation2_spill] sm:$0xff] %v7339_v41  ;;  %v1451_v56 = vmul.f32 0.5, %v1449_v57  ;;  %9554 = vst [vmem:[#allocation21_spill] sm:$0xff] %v7357_v15 }
 0x26d   :  { %v7294_v1 = vadd.f32 %v1462_v18, %v1460_v49  ;;  %9550 = vst [vmem:[#allocation19_spill] sm:$0xff] %v7333_v27  ;;  %v7345_v18 = vld [vmem:[%s9235_s7 + $0xac] ss:$16 sps:$4 sm:$0xff]   ;;  %v7351_v49 = vld [vmem:[%s9235_s7 + $0xa0] ss:$16 sps:$4 sm:$0xff]   ;;  %v1452_v16 = vmul.f32 0.5, %v1450_v34 }
 0x26e   :  { %5815 = vtanh.f32 %v7280_v47  ;;  %9552 = vst [vmem:[#allocation20_spill] sm:$0xff] %v7345_v18  ;;  %9553 = vst [vmem:[#allocation3_spill] sm:$0xff] %v7351_v49  ;;  %v7369_v57 = vld [vmem:[%s9235_s7 + $0xcc] ss:$16 sps:$4 sm:$0xff]   ;;  %v7375_v34 = vld [vmem:[%s9235_s7 + $0xc0] ss:$16 sps:$4 sm:$0xff]  }
 0x26f   :  { %5817 = vtanh.f32 %v7294_v1  ;;  %1649 = vmatpush1.bf16.msra.mxu1 %v7303_v62  ;;  %1690 = vmatpush1.bf16.msra.mxu0 %v7309_v14  ;;  %9556 = vst [vmem:[#allocation22_spill] sm:$0xff] %v7369_v57  ;;  %9557 = vst [vmem:[#allocation5_spill] sm:$0xff] %v7375_v34 }
 0x270   :  { %1650 = vmatprep.subr.bf16.mxu1 %v7315_v7  ;;  %1691 = vmatprep.subr.bf16.mxu0 %v7321_v38  ;;  %5819 = vpow2.f32 %v4235_v55  ;;  %v7363_v55 = vld [vmem:[%s9235_s7 + $0xc4] ss:$16 sps:$4 sm:$0xff]  }
 0x271   :  { %9555 = vst [vmem:[#allocation4_spill] sm:$0xff] %v7363_v55 }
 0x273   :  { %1651 = vmatpush1.bf16.msra.mxu1 %v7327_v21  ;;  %1692 = vmatpush1.bf16.msra.mxu0 %v7333_v27 }
 0x274   :  { %1652 = vmatprep.subr.bf16.mxu1 %v7339_v41  ;;  %1693 = vmatprep.subr.bf16.mxu0 %v7345_v18 }
 0x277   :  { %1653 = vmatpush1.bf16.msra.mxu1 %v7351_v49  ;;  %1694 = vmatpush1.bf16.msra.mxu0 %v7357_v15 }
 0x278   :  { %v5816_v50 = vpop.eup %5815  ;;  %1654 = vmatprep.subr.bf16.mxu1 %v7363_v55  ;;  %1695 = vmatprep.subr.bf16.mxu0 %v7369_v57  ;;  %v7381_v55 = vld [vmem:[%s9235_s7 + $0xc8] ss:$16 sps:$4 sm:$0xff]  }
 0x279   :  { %v5818_v49 = vpop.eup %5817  ;;  %v1467_v18 = vmul.f32 %v5816_v50, %v1451_v56  ;;  %9558 = vst [vmem:[#allocation23_spill] sm:$0xff] %v7381_v55 }
 0x27a   :  { %v1468_v41 = vmul.f32 %v5818_v49, %v1452_v16  ;;  %v7393_v49 = vld [vmem:[%s9235_s7 + $0xec] ss:$16 sps:$4 sm:$0xff]  }
 0x27b   :  { %v1631_v15 = vpack.c.bf16 %v1467_v18, %v1467_v18  ;;  %v3510_v27 = vrot.slane %v1467_v18, 2  ;;  %1655 = vmatpush1.bf16.msra.mxu1 %v7375_v34  ;;  %1696 = vmatpush1.bf16.msra.mxu0 %v7381_v55  ;;  %v7387_v18 = vld [vmem:[%s9235_s7 + $0xe4] ss:$16 sps:$4 sm:$0xff]   ;;  %9560 = vst [vmem:[#allocation41_spill] sm:$0xff] %v7393_v49 }
 0x27c   :  { %v1632_v57 = vpack.c.bf16 %v1468_v41, %v1468_v41  ;;  %v3511_v56 = vrot.slane %v1468_v41, 1  ;;  %9559 = vst [vmem:[#allocation29_spill] sm:$0xff] %v7387_v18  ;;  %1656 = vmatprep.subr.bf16.mxu1 %v7387_v18  ;;  %1697 = vmatprep.subr.bf16.mxu0 %v7393_v49  ;;  %v7402_v41 = vld [vmem:[%s9235_s7 + $0xe0] ss:$16 sps:$4 sm:$0xff]   ;;  %v7408_v18 = vld [vmem:[%s9235_s7 + $0xe8] ss:$16 sps:$4 sm:$0xff]  }
 0x27d   :  { %v1635_v50 = vunpack.c.l.b16 %v1631_v15  ;;  %9562 = vst [vmem:[#allocation43_spill] sm:$0xff] %v7402_v41  ;;  %9563 = vst [vmem:[#allocation44_spill] sm:$0xff] %v7408_v18  ;;  %v5820_v15 = vpop.eup %5819 }
 0x27e   :  { %v1636_v16 = vunpack.c.l.b16 %v1632_v57  ;;  %v7397_v55 = vsel %vm3431_vm5, %v3511_v56, %v3510_v27  ;;  %v7415_v27 = vld [vmem:[%s9465_s6 + $0xc] ss:$16 sps:$4 sm:$0xff]  }
 0x27f   :  { %9561 = vst [vmem:[#allocation42_spill] sm:$0xff] %v7397_v55  ;;  %1657 = vmatpush1.bf16.msra.mxu1 %v7402_v41  ;;  %1698 = vmatpush1.bf16.msra.mxu0 %v7408_v18  ;;  %v1637_v49 = vrot.slane %v1635_v50, 6  ;;  %9564 = vst [vmem:[#allocation45_spill] sm:$0xff] %v7415_v27  ;;  %v7423_v50 = vld [vmem:[%s9465_s6 + $0x8] ss:$16 sps:$4 sm:$0xff]  }
 0x280   :  { %v4246_v57 = vpop.permute.xlu0 %4245  ;;  %v1638_v34 = vrot.slane %v1636_v16, 5  ;;  %1805 = vmatprep.subr.bf16.mxu1 %v7070_v59  ;;  %1846 = vmatprep.subr.bf16.mxu0 %v7415_v27  ;;  %9565 = vst [vmem:[#allocation46_spill] sm:$0xff] %v7423_v50  ;;  %v7430_v16 = vld [vmem:[%s9465_s6 + $0x2c] ss:$16 sps:$4 sm:$0xff]  }
 0x281   :  { %v4248_v56 = vadd.f32 %v5820_v15, %v4246_v57  ;;  %9566 = vst [vmem:[#allocation47_spill] sm:$0xff] %v7430_v16  ;;  %v7456_v57 = vld [vmem:[%s9465_s6 + $0x48] ss:$16 sps:$4 sm:$0xff]  }
 0x282   :  { %v1639_v55 = vsel %vm1154_vm1, %v1638_v34, %v1637_v49  ;;  %v7446_v34 = vld [vmem:[%s9465_s6 + $0x4c] ss:$16 sps:$4 sm:$0xff]   ;;  %9570 = vst [vmem:[#allocation51_spill] sm:$0xff] %v7456_v57 }
 0x283   :  { %5821 = vrcp.f32 %v4248_v56  ;;  %v1640_v41 = vpack.c.b16 %v1639_v55, %v1639_v55  ;;  %v7439_v55 = vld [vmem:[%s9465_s6 + $0x28] ss:$16 sps:$4 sm:$0xff]   ;;  %9568 = vst [vmem:[#allocation49_spill] sm:$0xff] %v7446_v34  ;;  %v7463_v56 = vld [vmem:[%s9465_s6 + $0x6c] ss:$16 sps:$4 sm:$0xff]  }
 0x284   :  { %9567 = vst [vmem:[#allocation48_spill] sm:$0xff] %v7439_v55  ;;  %9571 = vst [vmem:[#allocation52_spill] sm:$0xff] %v7463_v56 }
 0x285   :  { %1675 = vmatmul.mubr.bf16.vlgmr.msra.gmra.mrb[28].mxu1 %v1640_v41  ;;  %1716 = vmatmul.mubr.bf16.vlgmr.msra.gmra.mrb[48].mxu0 %v1640_v41 }
 0x286   :  { %1806 = vmatpush1.bf16.msra.mxu1 %v7079_v23  ;;  %1847 = vmatpush1.bf16.msra.mxu0 %v7423_v50 }
 0x287   :  { %1807 = vmatprep.subr.bf16.mxu1 %v7086_v25  ;;  %1848 = vmatprep.subr.bf16.mxu0 %v7430_v16 }
 0x288   :  { %1837 = vmatprep.mubr.bf16.mxu1 %v9504_v42  ;;  %1878 = vmatprep.mubr.bf16.mxu0 %v9504_v42 }
 0x28a   :  { %1808 = vmatpush1.bf16.msra.mxu1 %v7097_v24  ;;  %1849 = vmatpush1.bf16.msra.mxu0 %v7439_v55 }
 0x28b   :  { %1809 = vmatprep.subr.bf16.mxu1 %v7104_v2  ;;  %1850 = vmatprep.subr.bf16.mxu0 %v7446_v34 }
 0x28d   :  { %v5822_v49 = vpop.eup %5821 }
 0x28e   :  { %4336 = vrot.lane.b32.xlu1 %v5822_v49, %s6245_s1  ;;  %1810 = vmatpush1.bf16.msra.mxu1 %v7111_v60  ;;  %v7451_v41 = vmul.f32 %v5822_v49, %v5820_v15  ;;  %v7470_v15 = vld [vmem:[%s9465_s6 + $0x68] ss:$16 sps:$4 sm:$0xff]   ;;  %v7477_v49 = vld [vmem:[%s9465_s6 + $0x8c] ss:$16 sps:$4 sm:$0xff]  }
 0x28f   :  { %1851 = vmatpush1.bf16.msra.mxu0 %v7456_v57  ;;  %1811 = vmatprep.subr.bf16.mxu1 %v7118_v6  ;;  %9572 = vst [vmem:[#allocation53_spill] sm:$0xff] %v7470_v15  ;;  %9573 = vst [vmem:[#allocation54_spill] sm:$0xff] %v7477_v49 }
 0x290   :  { %9569 = vst [vmem:[#allocation50_spill] sm:$0xff] %v7451_v41  ;;  %1852 = vmatprep.subr.bf16.mxu0 %v7463_v56  ;;  %v7484_v41 = vld [vmem:[%s9465_s6 + $0x88] ss:$16 sps:$4 sm:$0xff]  }
 0x291   :  { %9574 = vst [vmem:[#allocation55_spill] sm:$0xff] %v7484_v41 }
 0x292   :  { %1812 = vmatpush1.bf16.msra.mxu1 %v7130_v40 }
 0x293   :  { %1853 = vmatpush1.bf16.msra.mxu0 %v7470_v15  ;;  %1813 = vmatprep.subr.bf16.mxu1 %v7137_v32  ;;  %v7491_v32 = vld [vmem:[%s9465_s6 + $0xac] ss:$16 sps:$4 sm:$0xff]  }
 0x294   :  { %1854 = vmatprep.subr.bf16.mxu0 %v7477_v49  ;;  %9575 = vst [vmem:[#allocation56_spill] sm:$0xff] %v7491_v32 }
 0x296   :  { %1814 = vmatpush1.bf16.msra.mxu1 %v7144_v11  ;;  %v7498_v11 = vld [vmem:[%s9465_s6 + $0xa8] ss:$16 sps:$4 sm:$0xff]  }
 0x297   :  { %1855 = vmatpush1.bf16.msra.mxu0 %v7484_v41  ;;  %1815 = vmatprep.subr.bf16.mxu1 %v7151_v44  ;;  %9576 = vst [vmem:[#allocation57_spill] sm:$0xff] %v7498_v11  ;;  %v7505_v44 = vld [vmem:[%s9465_s6 + $0xcc] ss:$16 sps:$4 sm:$0xff]  }
 0x298   :  { %1856 = vmatprep.subr.bf16.mxu0 %v7491_v32  ;;  %9577 = vst [vmem:[#allocation58_spill] sm:$0xff] %v7505_v44 }
 0x29a   :  { %1816 = vmatpush1.bf16.msra.mxu1 %v7158_v12  ;;  %v7511_v12 = vld [vmem:[%s9465_s6 + $0xc0] ss:$16 sps:$4 sm:$0xff]  }
 0x29b   :  { %1857 = vmatpush1.bf16.msra.mxu0 %v7498_v11  ;;  %1817 = vmatprep.subr.bf16.mxu1 %v7165_v13  ;;  %9578 = vst [vmem:[#allocation59_spill] sm:$0xff] %v7511_v12  ;;  %v7517_v11 = vld [vmem:[%s9465_s6 + $0xc8] ss:$16 sps:$4 sm:$0xff]   ;;  %v7523_v13 = vld [vmem:[%s9465_s6 + $0xe4] ss:$16 sps:$4 sm:$0xff]  }
 0x29c   :  { %1858 = vmatprep.subr.bf16.mxu0 %v7505_v44  ;;  %9579 = vst [vmem:[#allocation60_spill] sm:$0xff] %v7517_v11  ;;  %9580 = vst [vmem:[#allocation61_spill] sm:$0xff] %v7523_v13  ;;  %v7529_v44 = vld [vmem:[%s9465_s6 + $0xec] ss:$16 sps:$4 sm:$0xff]  }
 0x29d   :  { %9581 = vst [vmem:[#allocation62_spill] sm:$0xff] %v7529_v44 }
 0x29e   :  { %1818 = vmatpush1.bf16.msra.mxu1 %v7511_v12  ;;  %v7535_v12 = vld [vmem:[%s9465_s6 + $0xe0] ss:$16 sps:$4 sm:$0xff]  }
 0x29f   :  { %1859 = vmatpush1.bf16.msra.mxu0 %v7517_v11  ;;  %1819 = vmatprep.subr.bf16.mxu1 %v7523_v13  ;;  %9582 = vst [vmem:[#allocation63_spill] sm:$0xff] %v7535_v12  ;;  %v7541_v11 = vld [vmem:[%s9465_s6 + $0xe8] ss:$16 sps:$4 sm:$0xff]   ;;  %v7547_v13 = vld [vmem:[%s9235_s7 + $0x4] ss:$16 sps:$4 sm:$0xff]  }
 0x2a0   :  { %1860 = vmatprep.subr.bf16.mxu0 %v7529_v44  ;;  %9583 = vst [vmem:[#allocation64_spill] sm:$0xff] %v7541_v11  ;;  %9584 = vst [vmem:[#allocation65_spill] sm:$0xff] %v7547_v13  ;;  %v7553_v44 = vld [vmem:[%s9235_s7 + $0xc] ss:$16 sps:$4 sm:$0xff]  }
 0x2a1   :  { %9585 = vst [vmem:[#allocation66_spill] sm:$0xff] %v7553_v44 }
 0x2a2   :  { %1820 = vmatpush1.bf16.msra.mxu1 %v7535_v12 }
 0x2a3   :  { %1861 = vmatpush1.bf16.msra.mxu0 %v7541_v11  ;;  %1968 = vmatprep.subr.bf16.mxu1 %v7547_v13 }
 0x2a4   :  { %2009 = vmatprep.subr.bf16.mxu0 %v7553_v44 }
 0x300   :  { %v4337_v12 = vpop.permute.xlu1 %4336 }
 0x301   :  { %v4339_v32 = vmul.f32 %v7182_v22, %v4337_v12 }
 0x303   :  { %4341 = vrot.lane.b32.xlu0 %v4339_v32, %s6244_s27 }
 0x335   :  { %v1513_v11 = vpop.f32.mrb[24].mxu1  ;;  %v1554_v41 = vpop.f32.mrb[44].mxu0 }
 0x336   :  { %v1565_v49 = vrot.slane %v1513_v11, 6  ;;  %v1569_v15 = vrot.slane %v1513_v11, 7  ;;  %v1515_v40 = vpop.f32.mrb[25].mxu1  ;;  %v1556_v56 = vpop.f32.mrb[45].mxu0  ;;  %v1567_v44 = vrot.slane %v1554_v41, 6  ;;  %v1571_v12 = vrot.slane %v1554_v41, 7 }
 0x337   :  { %v1566_v6 = vrot.slane %v1515_v40, 6  ;;  %v1570_v13 = vrot.slane %v1515_v40, 7  ;;  %v1517_v57 = vpop.f32.mrb[26].mxu1  ;;  %v1558_v60 = vpop.f32.mrb[46].mxu0 }
 0x338   :  { %v1581_v34 = vadd.f32 %v1565_v49, %v9545_v46  ;;  %v1585_v2 = vadd.f32 %v1569_v15, %v6947_v45  ;;  %v1518_v55 = vpop.f32.mrb[27].mxu1  ;;  %v1559_v24 = vpop.f32.mrb[47].mxu0  ;;  %v1583_v40 = vadd.f32 %v1567_v44, %v9547_v20  ;;  %v1587_v60 = vadd.f32 %v1571_v12, %v6962_v5 }
 0x339   :  { %v1582_v32 = vadd.f32 %v1566_v6, %v9546_v51  ;;  %v1586_v22 = vadd.f32 %v1570_v13, %v6940_v39  ;;  %v1568_v57 = vrot.slane %v1556_v56, 6  ;;  %v1572_v15 = vrot.slane %v1556_v56, 7 }
 0x33a   :  { %v1589_v16 = vmul.f32 0.5, %v1581_v34  ;;  %v1590_v11 = vmul.f32 0.5, %v1585_v2 }
 0x33b   :  { %v1597_v25 = vmul.f32 0.5, %v1582_v32  ;;  %v1598_v50 = vmul.f32 0.5, %v1586_v22  ;;  %v1584_v24 = vadd.f32 %v1568_v57, %v9548_v61  ;;  %v1588_v6 = vadd.f32 %v1572_v15, %v9549_v36 }
 0x33c   :  { %5823 = vtanh.f32 %v1589_v16  ;;  %v1618_v15 = vrot.slane %v7198_v33, 7 }
 0x33d   :  { %5825 = vtanh.f32 %v1590_v11  ;;  %v1607_v13 = vmul.f32 0.5, %v1584_v24  ;;  %v1608_v55 = vmul.f32 0.5, %v1588_v6 }
 0x33e   :  { %5827 = vtanh.f32 %v1597_v25 }
 0x33f   :  { %5829 = vtanh.f32 %v1598_v50 }
 0x340   :  { %5831 = vtanh.f32 %v1583_v40  ;;  %v1617_v40 = vrot.slane %v7196_v58, 7 }
 0x341   :  { %5833 = vtanh.f32 %v1587_v60 }
 0x342   :  { %5835 = vtanh.f32 %v1607_v13 }
 0x343   :  { %5837 = vtanh.f32 %v1608_v55 }
 0x346   :  { %v5824_v2 = vpop.eup %5823 }
 0x347   :  { %v5826_v34 = vpop.eup %5825  ;;  %v1593_v16 = vadd.f32 1.0, %v5824_v2 }
 0x348   :  { %v5828_v41 = vpop.eup %5827  ;;  %v1594_v44 = vadd.f32 1.0, %v5826_v34 }
 0x349   :  { %v5830_v49 = vpop.eup %5829  ;;  %v1595_v32 = vmul.f32 0.5, %v1593_v16  ;;  %v1601_v12 = vadd.f32 1.0, %v5828_v41 }
 0x34a   :  { %v5832_v25 = vpop.eup %5831  ;;  %v1596_v56 = vmul.f32 0.5, %v1594_v44  ;;  %v1602_v50 = vadd.f32 1.0, %v5830_v49 }
 0x34b   :  { %v5834_v22 = vpop.eup %5833  ;;  %v1603_v11 = vmul.f32 0.5, %v1601_v12  ;;  %v1623_v60 = vmul.f32 %v5832_v25, %v1595_v32 }
 0x34c   :  { %v1604_v57 = vmul.f32 0.5, %v1602_v50  ;;  %v1624_v24 = vmul.f32 %v5834_v22, %v1596_v56  ;;  %v5836_v13 = vpop.eup %5835 }
 0x34d   :  { %v1621_v6 = vmul.f32 %v1617_v40, %v1603_v11  ;;  %v5838_v55 = vpop.eup %5837  ;;  %v1611_v41 = vadd.f32 1.0, %v5836_v13 }
 0x34e   :  { %v1622_v2 = vmul.f32 %v1618_v15, %v1604_v57  ;;  %v1612_v44 = vadd.f32 1.0, %v5838_v55 }
 0x34f   :  { %v7568_v34 = vadd.f32 %v1623_v60, %v1621_v6  ;;  %v1613_v56 = vmul.f32 0.5, %v1611_v41 }
 0x350   :  { %v7570_v16 = vadd.f32 %v1624_v24, %v1622_v2  ;;  %v1614_v15 = vmul.f32 0.5, %v1612_v44 }
 0x351   :  { %9586 = vst [vmem:[#allocation67_spill] sm:$0xff] %v7568_v34  ;;  %5839 = vtanh.f32 %v7568_v34 }
 0x352   :  { %9587 = vst [vmem:[#allocation68_spill] sm:$0xff] %v7570_v16  ;;  %5841 = vtanh.f32 %v7570_v16 }
 0x358   :  { %v1676_v58 = vpop.f32.mrb[28].mxu1  ;;  %v1717_v49 = vpop.f32.mrb[48].mxu0 }
 0x359   :  { %v1728_v32 = vrot.slane %v1676_v58, 3  ;;  %v1732_v12 = vrot.slane %v1676_v58, 4  ;;  %v1678_v33 = vpop.f32.mrb[29].mxu1  ;;  %v1719_v25 = vpop.f32.mrb[49].mxu0  ;;  %v1730_v50 = vrot.slane %v1717_v49, 3  ;;  %v1734_v34 = vrot.slane %v1717_v49, 4 }
 0x35a   :  { %v1729_v22 = vrot.slane %v1678_v33, 3  ;;  %v1733_v11 = vrot.slane %v1678_v33, 4  ;;  %v1680_v40 = vpop.f32.mrb[30].mxu1  ;;  %v1721_v60 = vpop.f32.mrb[50].mxu0 }
 0x35b   :  { %v5840_v57 = vpop.eup %5839  ;;  %v1744_v24 = vadd.f32 %v1728_v32, %v6991_v63  ;;  %v1748_v6 = vadd.f32 %v1732_v12, %v6995_v9  ;;  %v1681_v2 = vpop.f32.mrb[31].mxu1  ;;  %v1746_v44 = vadd.f32 %v1730_v50, %v7006_v35  ;;  %v1750_v49 = vadd.f32 %v1734_v34, %v7012_v8 }
 0x35c   :  { %v1722_v13 = vpop.f32.mrb[51].mxu0  ;;  %v5842_v55 = vpop.eup %5841  ;;  %v1629_v16 = vmul.f32 %v5840_v57, %v1613_v56  ;;  %v1745_v58 = vadd.f32 %v1729_v22, %v6980_v26  ;;  %v1749_v41 = vadd.f32 %v1733_v11, %v6984_v0  ;;  %v1731_v56 = vrot.slane %v1719_v25, 3 }
 0x35d   :  { %v1630_v36 = vmul.f32 %v5842_v55, %v1614_v15  ;;  %v1752_v61 = vmul.f32 0.5, %v1744_v24  ;;  %v1753_v33 = vmul.f32 0.5, %v1748_v6  ;;  %v1735_v11 = vrot.slane %v1719_v25, 4 }
 0x35e   :  { %v1794_v40 = vpack.c.bf16 %v1629_v16, %v1629_v16  ;;  %v3429_v60 = vrot.slane %v1629_v16, 6  ;;  %v1760_v32 = vmul.f32 0.5, %v1745_v58  ;;  %v1761_v2 = vmul.f32 0.5, %v1749_v41 }
 0x35f   :  { %v1795_v63 = vpack.c.bf16 %v1630_v36, %v1630_v36  ;;  %v3430_v12 = vrot.slane %v1630_v36, 5  ;;  %5843 = vtanh.f32 %v1752_v61  ;;  %v1747_v61 = vadd.f32 %v1731_v56, %v7009_v29 }
 0x360   :  { %v1798_v13 = vunpack.c.l.b16 %v1794_v40  ;;  %5845 = vtanh.f32 %v1753_v33  ;;  %v1751_v50 = vadd.f32 %v1735_v11, %v7015_v28  ;;  %v1781_v11 = vrot.slane %v7294_v1, 1 }
 0x361   :  { %v1799_v22 = vunpack.c.l.b16 %v1795_v63  ;;  %5847 = vtanh.f32 %v1760_v32  ;;  %v3432_v57 = vsel %vm3431_vm5, %v3430_v12, %v3429_v60  ;;  %v1770_v24 = vmul.f32 0.5, %v1747_v61 }
 0x362   :  { %5849 = vtanh.f32 %v1761_v2  ;;  %v1800_v15 = vrot.slane %v1798_v13, 2  ;;  %v7583_v16 = vsel %vm3466_vm6, %v7211_v37, %v3432_v57  ;;  %v1771_v6 = vmul.f32 0.5, %v1751_v50 }
 0x363   :  { %5851 = vtanh.f32 %v1746_v44  ;;  %v1801_v36 = vrot.slane %v1799_v22, 1 }
 0x364   :  { %5853 = vtanh.f32 %v1750_v49  ;;  %v1780_v49 = vrot.slane %v7280_v47, 1 }
 0x365   :  { %v1802_v34 = vsel %vm1154_vm1, %v1801_v36, %v1800_v15  ;;  %5855 = vtanh.f32 %v1770_v24 }
 0x366   :  { %v1803_v63 = vpack.c.b16 %v1802_v34, %v1802_v34  ;;  %5857 = vtanh.f32 %v1771_v6  ;;  %v9590_v6 = vld [vmem:[#allocation20_spill] sm:$0xff] }
 0x368   :  { %1838 = vmatmul.mubr.bf16.vlgmr.msra.gmra.mrb[32].mxu1 %v1803_v63  ;;  %1879 = vmatmul.mubr.bf16.vlgmr.msra.gmra.mrb[52].mxu0 %v1803_v63  ;;  %v9588_v63 = vld [vmem:[#allocation19_spill] sm:$0xff] }
 0x369   :  { %v5844_v25 = vpop.eup %5843  ;;  %1969 = vmatpush1.bf16.msra.mxu1 %v7219_v43  ;;  %2010 = vmatpush1.bf16.msra.mxu0 %v7225_v54 }
 0x36a   :  { %v5846_v37 = vpop.eup %5845  ;;  %v1756_v55 = vadd.f32 1.0, %v5844_v25  ;;  %1970 = vmatprep.subr.bf16.mxu1 %v7231_v31  ;;  %2011 = vmatprep.subr.bf16.mxu0 %v7237_v53  ;;  %v9589_v25 = vld [vmem:[#allocation2_spill] sm:$0xff] }
 0x36b   :  { %v5848_v58 = vpop.eup %5847  ;;  %v1757_v41 = vadd.f32 1.0, %v5846_v37  ;;  %2000 = vmatprep.mubr.bf16.mxu1 %v9504_v42  ;;  %2041 = vmatprep.mubr.bf16.mxu0 %v9504_v42 }
 0x36c   :  { %v5850_v33 = vpop.eup %5849  ;;  %v1758_v40 = vmul.f32 0.5, %v1756_v55  ;;  %v1764_v60 = vadd.f32 1.0, %v5848_v58  ;;  %v9591_v55 = vld [vmem:[#allocation3_spill] sm:$0xff]  ;;  %v9592_v58 = vld [vmem:[#allocation21_spill] sm:$0xff] }
 0x36d   :  { %v5852_v44 = vpop.eup %5851  ;;  %v1759_v32 = vmul.f32 0.5, %v1757_v41  ;;  %v1765_v12 = vadd.f32 1.0, %v5850_v33  ;;  %1971 = vmatpush1.bf16.msra.mxu1 %v7245_v48  ;;  %2012 = vmatpush1.bf16.msra.mxu0 %v7251_v17 }
 0x36e   :  { %v5854_v2 = vpop.eup %5853  ;;  %v1766_v13 = vmul.f32 0.5, %v1764_v60  ;;  %v1786_v56 = vmul.f32 %v5852_v44, %v1758_v40  ;;  %1972 = vmatprep.subr.bf16.mxu1 %v7258_v3  ;;  %2013 = vmatprep.subr.bf16.mxu0 %v7264_v4  ;;  %v9593_v40 = vld [vmem:[#allocation4_spill] sm:$0xff]  ;;  %v9594_v60 = vld [vmem:[#allocation22_spill] sm:$0xff] }
 0x36f   :  { %v1767_v22 = vmul.f32 0.5, %v1765_v12  ;;  %v1787_v57 = vmul.f32 %v5854_v2, %v1759_v32  ;;  %v5856_v1 = vpop.eup %5855 }
 0x370   :  { %v1784_v15 = vmul.f32 %v1780_v49, %v1766_v13  ;;  %v5858_v50 = vpop.eup %5857  ;;  %v1774_v34 = vadd.f32 1.0, %v5856_v1  ;;  %v9595_v49 = vld [vmem:[#allocation5_spill] sm:$0xff] }
 0x371   :  { %v1785_v36 = vmul.f32 %v1781_v11, %v1767_v22  ;;  %1973 = vmatpush1.bf16.msra.mxu1 %v7271_v30  ;;  %2014 = vmatpush1.bf16.msra.mxu0 %v7277_v10  ;;  %v1775_v24 = vadd.f32 1.0, %v5858_v50 }
 0x372   :  { %v7602_v61 = vadd.f32 %v1786_v56, %v1784_v15  ;;  %1974 = vmatprep.subr.bf16.mxu1 %v7285_v52  ;;  %2015 = vmatprep.subr.bf16.mxu0 %v7291_v19  ;;  %v1776_v37 = vmul.f32 0.5, %v1774_v34  ;;  %v9596_v56 = vld [vmem:[#allocation23_spill] sm:$0xff]  ;;  %v9598_v15 = vld [vmem:[#allocation41_spill] sm:$0xff] }
 0x373   :  { %v7606_v47 = vadd.f32 %v1787_v57, %v1785_v36  ;;  %v1777_v33 = vmul.f32 0.5, %v1775_v24  ;;  %v9597_v57 = vld [vmem:[#allocation29_spill] sm:$0xff]  ;;  %v9600_v34 = vld [vmem:[#allocation43_spill] sm:$0xff] }
 0x374   :  { %5859 = vtanh.f32 %v7602_v61 }
 0x375   :  { %5861 = vtanh.f32 %v7606_v47  ;;  %1975 = vmatpush1.bf16.msra.mxu1 %v7303_v62  ;;  %2016 = vmatpush1.bf16.msra.mxu0 %v7309_v14 }
 0x376   :  { %1976 = vmatprep.subr.bf16.mxu1 %v7315_v7  ;;  %2017 = vmatprep.subr.bf16.mxu0 %v7321_v38 }
 0x379   :  { %1977 = vmatpush1.bf16.msra.mxu1 %v7327_v21  ;;  %2018 = vmatpush1.bf16.msra.mxu0 %v9588_v63 }
 0x37a   :  { %1978 = vmatprep.subr.bf16.mxu1 %v9589_v25  ;;  %2019 = vmatprep.subr.bf16.mxu0 %v9590_v6 }
 0x37d   :  { %1979 = vmatpush1.bf16.msra.mxu1 %v9591_v55  ;;  %2020 = vmatpush1.bf16.msra.mxu0 %v9592_v58 }
 0x37e   :  { %v5860_v41 = vpop.eup %5859  ;;  %1980 = vmatprep.subr.bf16.mxu1 %v9593_v40  ;;  %2021 = vmatprep.subr.bf16.mxu0 %v9594_v60 }
 0x37f   :  { %v5862_v44 = vpop.eup %5861  ;;  %v1792_v32 = vmul.f32 %v5860_v41, %v1776_v37 }
 0x380   :  { %v1793_v12 = vmul.f32 %v5862_v44, %v1777_v33  ;;  %v9601_v44 = vld [vmem:[#allocation46_spill] sm:$0xff] }
 0x381   :  { %v1957_v2 = vpack.c.bf16 %v1792_v32, %v1792_v32  ;;  %v3504_v13 = vrot.slane %v1792_v32, 3  ;;  %1981 = vmatpush1.bf16.msra.mxu1 %v9595_v49  ;;  %2022 = vmatpush1.bf16.msra.mxu0 %v9596_v56  ;;  %v9602_v32 = vld [vmem:[#allocation24_spill] sm:$0xff] }
 0x382   :  { %v1958_v22 = vpack.c.bf16 %v1793_v12, %v1793_v12  ;;  %v3505_v11 = vrot.slane %v1793_v12, 2  ;;  %1982 = vmatprep.subr.bf16.mxu1 %v9597_v57  ;;  %2023 = vmatprep.subr.bf16.mxu0 %v9598_v15  ;;  %v9603_v12 = vld [vmem:[#allocation47_spill] sm:$0xff] }
 0x383   :  { %v1961_v36 = vunpack.c.l.b16 %v1957_v2  ;;  %v9605_v2 = vld [vmem:[#allocation48_spill] sm:$0xff] }
 0x384   :  { %v1962_v1 = vunpack.c.l.b16 %v1958_v22  ;;  %v7627_v50 = vsel %vm3424_vm3, %v3505_v11, %v3504_v13  ;;  %v9606_v13 = vld [vmem:[#allocation8_spill] sm:$0xff]  ;;  %v9607_v22 = vld [vmem:[#allocation49_spill] sm:$0xff] }
 0x385   :  { %9599 = vst [vmem:[#allocation19_spill] sm:$0xff] %v7627_v50  ;;  %1983 = vmatpush1.bf16.msra.mxu1 %v9600_v34  ;;  %2024 = vmatpush1.bf16.msra.mxu0 %v7408_v18  ;;  %v1963_v24 = vrot.slane %v1961_v36, 5  ;;  %v9608_v11 = vld [vmem:[#allocation9_spill] sm:$0xff]  ;;  %v9610_v36 = vld [vmem:[#allocation10_spill] sm:$0xff] }
 0x386   :  { %v1964_v37 = vrot.slane %v1962_v1, 4  ;;  %2131 = vmatprep.subr.bf16.mxu1 %v7070_v59  ;;  %2172 = vmatprep.subr.bf16.mxu0 %v7415_v27  ;;  %v9604_v59 = vld [vmem:[#allocation7_spill] sm:$0xff]  ;;  %v9611_v1 = vld [vmem:[#allocation52_spill] sm:$0xff] }
 0x388   :  { %v1965_v41 = vsel %vm1154_vm1, %v1964_v37, %v1963_v24  ;;  %v9612_v24 = vld [vmem:[#allocation11_spill] sm:$0xff]  ;;  %v9613_v37 = vld [vmem:[#allocation53_spill] sm:$0xff] }
 0x389   :  { %v1966_v33 = vpack.c.b16 %v1965_v41, %v1965_v41  ;;  %v9614_v41 = vld [vmem:[#allocation12_spill] sm:$0xff] }
 0x38b   :  { %2001 = vmatmul.mubr.bf16.vlgmr.msra.gmra.mrb[36].mxu1 %v1966_v33  ;;  %2042 = vmatmul.mubr.bf16.vlgmr.msra.gmra.mrb[56].mxu0 %v1966_v33  ;;  %v9615_v33 = vld [vmem:[#allocation54_spill] sm:$0xff] }
 0x38c   :  { %2132 = vmatpush1.bf16.msra.mxu1 %v7079_v23  ;;  %2173 = vmatpush1.bf16.msra.mxu0 %v9601_v44  ;;  %v9609_v23 = vld [vmem:[#allocation51_spill] sm:$0xff] }
 0x38d   :  { %2133 = vmatprep.subr.bf16.mxu1 %v9602_v32  ;;  %2174 = vmatprep.subr.bf16.mxu0 %v9603_v12  ;;  %v9616_v32 = vld [vmem:[#allocation25_spill] sm:$0xff] }
 0x38e   :  { %2163 = vmatprep.mubr.bf16.mxu1 %v9504_v42  ;;  %2204 = vmatprep.mubr.bf16.mxu0 %v9504_v42 }
 0x390   :  { %2134 = vmatpush1.bf16.msra.mxu1 %v9604_v59  ;;  %2175 = vmatpush1.bf16.msra.mxu0 %v9605_v2  ;;  %v9617_v59 = vld [vmem:[#allocation55_spill] sm:$0xff] }
 0x391   :  { %2135 = vmatprep.subr.bf16.mxu1 %v9606_v13  ;;  %2176 = vmatprep.subr.bf16.mxu0 %v9607_v22  ;;  %v9618_v13 = vld [vmem:[#allocation13_spill] sm:$0xff] }
 0x394   :  { %2136 = vmatpush1.bf16.msra.mxu1 %v9608_v11  ;;  %2177 = vmatpush1.bf16.msra.mxu0 %v9609_v23  ;;  %v9619_v11 = vld [vmem:[#allocation56_spill] sm:$0xff]  ;;  %v9620_v23 = vld [vmem:[#allocation15_spill] sm:$0xff] }
 0x395   :  { %2137 = vmatprep.subr.bf16.mxu1 %v9610_v36  ;;  %2178 = vmatprep.subr.bf16.mxu0 %v9611_v1  ;;  %v9621_v36 = vld [vmem:[#allocation57_spill] sm:$0xff]  ;;  %v9622_v1 = vld [vmem:[#allocation16_spill] sm:$0xff] }
 0x398   :  { %2138 = vmatpush1.bf16.msra.mxu1 %v9612_v24  ;;  %2179 = vmatpush1.bf16.msra.mxu0 %v9613_v37  ;;  %v9623_v24 = vld [vmem:[#allocation58_spill] sm:$0xff]  ;;  %v9624_v37 = vld [vmem:[#allocation59_spill] sm:$0xff] }
 0x399   :  { %2139 = vmatprep.subr.bf16.mxu1 %v9614_v41  ;;  %2180 = vmatprep.subr.bf16.mxu0 %v9615_v33  ;;  %v9625_v41 = vld [vmem:[#allocation60_spill] sm:$0xff]  ;;  %v9626_v33 = vld [vmem:[#allocation61_spill] sm:$0xff] }
 0x39c   :  { %2140 = vmatpush1.bf16.msra.mxu1 %v9616_v32  ;;  %2181 = vmatpush1.bf16.msra.mxu0 %v9617_v59  ;;  %v9627_v32 = vld [vmem:[#allocation62_spill] sm:$0xff]  ;;  %v9628_v59 = vld [vmem:[#allocation63_spill] sm:$0xff] }
 0x39d   :  { %2141 = vmatprep.subr.bf16.mxu1 %v9618_v13  ;;  %2182 = vmatprep.subr.bf16.mxu0 %v9619_v11  ;;  %v9629_v13 = vld [vmem:[#allocation64_spill] sm:$0xff]  ;;  %v9630_v11 = vld [vmem:[#allocation65_spill] sm:$0xff] }
 0x3a0   :  { %2142 = vmatpush1.bf16.msra.mxu1 %v9620_v23  ;;  %2183 = vmatpush1.bf16.msra.mxu0 %v9621_v36  ;;  %v9631_v23 = vld [vmem:[#allocation66_spill] sm:$0xff] }
 0x3a1   :  { %2143 = vmatprep.subr.bf16.mxu1 %v9622_v1  ;;  %2184 = vmatprep.subr.bf16.mxu0 %v9623_v24 }
 0x3a4   :  { %2144 = vmatpush1.bf16.msra.mxu1 %v9624_v37  ;;  %2185 = vmatpush1.bf16.msra.mxu0 %v9625_v41 }
 0x3a5   :  { %2145 = vmatprep.subr.bf16.mxu1 %v9626_v33  ;;  %2186 = vmatprep.subr.bf16.mxu0 %v9627_v32 }
 0x3a8   :  { %2146 = vmatpush1.bf16.msra.mxu1 %v9628_v59  ;;  %2187 = vmatpush1.bf16.msra.mxu0 %v9629_v13 }
 0x3a9   :  { %2294 = vmatprep.subr.bf16.mxu1 %v9630_v11  ;;  %2335 = vmatprep.subr.bf16.mxu0 %v9631_v23 }
 0x43b   :  { %v1839_v36 = vpop.f32.mrb[32].mxu1  ;;  %v1880_v1 = vpop.f32.mrb[52].mxu0 }
 0x43c   :  { %v1891_v22 = vrot.slane %v1839_v36, 5  ;;  %v1895_v24 = vrot.slane %v1839_v36, 6  ;;  %v1841_v2 = vpop.f32.mrb[33].mxu1  ;;  %v1882_v37 = vpop.f32.mrb[53].mxu0  ;;  %v1893_v27 = vrot.slane %v1880_v1, 5  ;;  %v1897_v11 = vrot.slane %v1880_v1, 6 }
 0x43d   :  { %v1892_v12 = vrot.slane %v1841_v2, 5  ;;  %v1896_v41 = vrot.slane %v1841_v2, 6  ;;  %v1843_v44 = vpop.f32.mrb[34].mxu1  ;;  %v1884_v33 = vpop.f32.mrb[54].mxu0 }
 0x43e   :  { %v1907_v32 = vadd.f32 %v1891_v22, %v9545_v46  ;;  %v1911_v59 = vadd.f32 %v1895_v24, %v6947_v45  ;;  %v1844_v13 = vpop.f32.mrb[35].mxu1  ;;  %v1885_v50 = vpop.f32.mrb[55].mxu0  ;;  %v1909_v44 = vadd.f32 %v1893_v27, %v9547_v20  ;;  %v1913_v2 = vadd.f32 %v1897_v11, %v6962_v5  ;;  %v9633_v24 = vld [vmem:[#allocation35_spill] sm:$0xff] }
 0x43f   :  { %v1908_v23 = vadd.f32 %v1892_v12, %v9546_v51  ;;  %v1912_v18 = vadd.f32 %v1896_v41, %v6940_v39  ;;  %v1894_v22 = vrot.slane %v1882_v37, 5  ;;  %v1898_v33 = vrot.slane %v1882_v37, 6  ;;  %v9632_v50 = vld [vmem:[#allocation33_spill] sm:$0xff] }
 0x440   :  { %v1915_v34 = vmul.f32 0.5, %v1907_v32  ;;  %v1916_v36 = vmul.f32 0.5, %v1911_v59 }
 0x441   :  { %v1923_v15 = vmul.f32 0.5, %v1908_v23  ;;  %v1924_v57 = vmul.f32 0.5, %v1912_v18  ;;  %v1910_v12 = vadd.f32 %v1894_v22, %v9632_v50  ;;  %v1914_v41 = vadd.f32 %v1898_v33, %v9633_v24  ;;  %v9634_v22 = vld [vmem:[#allocation67_spill] sm:$0xff]  ;;  %v9635_v24 = vld [vmem:[#allocation68_spill] sm:$0xff] }
 0x442   :  { %5863 = vtanh.f32 %v1915_v34  ;;  %v1943_v50 = vrot.slane %v9634_v22, 7 }
 0x443   :  { %5865 = vtanh.f32 %v1916_v36  ;;  %v1933_v32 = vmul.f32 0.5, %v1910_v12  ;;  %v1934_v13 = vmul.f32 0.5, %v1914_v41  ;;  %v1944_v41 = vrot.slane %v9635_v24, 7 }
 0x444   :  { %5867 = vtanh.f32 %v1923_v15 }
 0x445   :  { %5869 = vtanh.f32 %v1924_v57 }
 0x446   :  { %5871 = vtanh.f32 %v1909_v44 }
 0x447   :  { %5873 = vtanh.f32 %v1913_v2 }
 0x448   :  { %5875 = vtanh.f32 %v1933_v32 }
 0x449   :  { %5877 = vtanh.f32 %v1934_v13 }
 0x44c   :  { %v5864_v59 = vpop.eup %5863 }
 0x44d   :  { %v5866_v18 = vpop.eup %5865  ;;  %v1919_v34 = vadd.f32 1.0, %v5864_v59 }
 0x44e   :  { %v5868_v23 = vpop.eup %5867  ;;  %v1920_v27 = vadd.f32 1.0, %v5866_v18 }
 0x44f   :  { %v5870_v1 = vpop.eup %5869  ;;  %v1921_v36 = vmul.f32 0.5, %v1919_v34  ;;  %v1927_v11 = vadd.f32 1.0, %v5868_v23 }
 0x450   :  { %v5872_v15 = vpop.eup %5871  ;;  %v1922_v37 = vmul.f32 0.5, %v1920_v27  ;;  %v1928_v57 = vadd.f32 1.0, %v5870_v1 }
 0x451   :  { %v5874_v44 = vpop.eup %5873  ;;  %v1929_v2 = vmul.f32 0.5, %v1927_v11  ;;  %v1949_v33 = vmul.f32 %v5872_v15, %v1921_v36 }
 0x452   :  { %v1930_v12 = vmul.f32 0.5, %v1928_v57  ;;  %v1950_v5 = vmul.f32 %v5874_v44, %v1922_v37  ;;  %v5876_v32 = vpop.eup %5875 }
 0x453   :  { %v1947_v59 = vmul.f32 %v1943_v50, %v1929_v2  ;;  %v5878_v13 = vpop.eup %5877  ;;  %v1937_v23 = vadd.f32 1.0, %v5876_v32 }
 0x454   :  { %v1948_v20 = vmul.f32 %v1944_v41, %v1930_v12  ;;  %v1938_v27 = vadd.f32 1.0, %v5878_v13  ;;  %v9638_v12 = vld [vmem:[#allocation37_spill] sm:$0xff] }
 0x455   :  { %v7678_v18 = vadd.f32 %v1949_v33, %v1947_v59  ;;  %v1939_v50 = vmul.f32 0.5, %v1937_v23 }
 0x456   :  { %v7680_v34 = vadd.f32 %v1950_v5, %v1948_v20  ;;  %v1940_v33 = vmul.f32 0.5, %v1938_v27 }
 0x457   :  { %9636 = vst [vmem:[#allocation2_spill] sm:$0xff] %v7678_v18  ;;  %5879 = vtanh.f32 %v7678_v18 }
 0x458   :  { %9637 = vst [vmem:[#allocation20_spill] sm:$0xff] %v7680_v34  ;;  %5881 = vtanh.f32 %v7680_v34 }
 0x45e   :  { %v2002_v1 = vpop.f32.mrb[36].mxu1  ;;  %v2043_v36 = vpop.f32.mrb[56].mxu0 }
 0x45f   :  { %v2054_v11 = vrot.slane %v2002_v1, 4  ;;  %v2058_v15 = vrot.slane %v2002_v1, 5  ;;  %v2004_v24 = vpop.f32.mrb[37].mxu1  ;;  %v2045_v37 = vpop.f32.mrb[57].mxu0  ;;  %v2056_v57 = vrot.slane %v2043_v36, 4  ;;  %v2060_v39 = vrot.slane %v2043_v36, 5 }
 0x460   :  { %v2055_v44 = vrot.slane %v2004_v24, 4  ;;  %v2059_v2 = vrot.slane %v2004_v24, 5  ;;  %v2006_v5 = vpop.f32.mrb[38].mxu1  ;;  %v2047_v20 = vpop.f32.mrb[58].mxu0 }
 0x461   :  { %v5880_v22 = vpop.eup %5879  ;;  %v2070_v41 = vadd.f32 %v2054_v11, %v9638_v12  ;;  %v2074_v59 = vadd.f32 %v2058_v15, %v6995_v9  ;;  %v2007_v32 = vpop.f32.mrb[39].mxu1  ;;  %v2072_v27 = vadd.f32 %v2056_v57, %v7006_v35  ;;  %v2076_v36 = vadd.f32 %v2060_v39, %v7012_v8 }
 0x462   :  { %v2048_v13 = vpop.f32.mrb[59].mxu0  ;;  %v5882_v34 = vpop.eup %5881  ;;  %v1955_v18 = vmul.f32 %v5880_v22, %v1939_v50  ;;  %v2071_v1 = vadd.f32 %v2055_v44, %v6980_v26  ;;  %v2075_v23 = vadd.f32 %v2059_v2, %v6984_v0  ;;  %v2057_v50 = vrot.slane %v2045_v37, 4 }
 0x463   :  { %v1956_v51 = vmul.f32 %v5882_v34, %v1940_v33  ;;  %v2078_v45 = vmul.f32 0.5, %v2070_v41  ;;  %v2079_v24 = vmul.f32 0.5, %v2074_v59  ;;  %v2061_v34 = vrot.slane %v2045_v37, 5 }
 0x464   :  { %v2120_v5 = vpack.c.bf16 %v1955_v18, %v1955_v18  ;;  %v3436_v20 = vrot.slane %v1955_v18, 5  ;;  %v2086_v11 = vmul.f32 0.5, %v2071_v1  ;;  %v2087_v32 = vmul.f32 0.5, %v2075_v23 }
 0x465   :  { %v2121_v12 = vpack.c.bf16 %v1956_v51, %v1956_v51  ;;  %v3437_v15 = vrot.slane %v1956_v51, 4  ;;  %5883 = vtanh.f32 %v2078_v45  ;;  %v2073_v45 = vadd.f32 %v2057_v50, %v7009_v29 }
 0x466   :  { %v2124_v13 = vunpack.c.l.b16 %v2120_v5  ;;  %5885 = vtanh.f32 %v2079_v24  ;;  %v2077_v57 = vadd.f32 %v2061_v34, %v7015_v28  ;;  %v9643_v34 = vld [vmem:[#allocation44_spill] sm:$0xff] }
 0x467   :  { %v2125_v44 = vunpack.c.l.b16 %v2121_v12  ;;  %5887 = vtanh.f32 %v2086_v11  ;;  %v3439_v2 = vsel %vm3438_vm2, %v3437_v15, %v3436_v20  ;;  %v2096_v12 = vmul.f32 0.5, %v2073_v45  ;;  %v9646_v45 = vld [vmem:[#allocation45_spill] sm:$0xff] }
 0x468   :  { %5889 = vtanh.f32 %v2087_v32  ;;  %v2126_v22 = vrot.slane %v2124_v13, 3  ;;  %v7693_v18 = vsel %vm3468_vm7, %v7583_v16, %v3439_v2  ;;  %v2097_v41 = vmul.f32 0.5, %v2077_v57  ;;  %v9647_v57 = vld [vmem:[#allocation42_spill] sm:$0xff] }
 0x469   :  { %9639 = vst [vmem:[#allocation3_spill] sm:$0xff] %v7693_v18  ;;  %5891 = vtanh.f32 %v2072_v27  ;;  %v2127_v51 = vrot.slane %v2125_v44, 2  ;;  %v2107_v13 = vrot.slane %v7606_v47, 1  ;;  %v8028_v18 = vld [vmem:[%s9235_s7 + $0xcc] ss:$16 sps:$4 sm:$0xff]  }
 0x46a   :  { %5893 = vtanh.f32 %v2076_v36 }
 0x46b   :  { %v2128_v39 = vsel %vm1154_vm1, %v2127_v51, %v2126_v22  ;;  %5895 = vtanh.f32 %v2096_v12  ;;  %v9644_v22 = vld [vmem:[#allocation19_spill] sm:$0xff] }
 0x46c   :  { %v2129_v33 = vpack.c.b16 %v2128_v39, %v2128_v39  ;;  %5897 = vtanh.f32 %v2097_v41 }
 0x46e   :  { %2164 = vmatmul.mubr.bf16.vlgmr.msra.gmra.mrb[40].mxu1 %v2129_v33  ;;  %2205 = vmatmul.mubr.bf16.vlgmr.msra.gmra.mrb[60].mxu0 %v2129_v33  ;;  %v9648_v33 = vld [vmem:[#allocation40_spill] sm:$0xff] }
 0x46f   :  { %v5884_v37 = vpop.eup %5883  ;;  %2295 = vmatpush1.bf16.msra.mxu1 %v7219_v43  ;;  %2336 = vmatpush1.bf16.msra.mxu0 %v7225_v54 }
 0x470   :  { %v5886_v16 = vpop.eup %5885  ;;  %v2082_v59 = vadd.f32 1.0, %v5884_v37  ;;  %2296 = vmatprep.subr.bf16.mxu1 %v7231_v31  ;;  %2337 = vmatprep.subr.bf16.mxu0 %v7237_v53  ;;  %v2106_v53 = vrot.slane %v7602_v61, 1 }
 0x471   :  { %v5888_v1 = vpop.eup %5887  ;;  %v2083_v23 = vadd.f32 1.0, %v5886_v16  ;;  %2326 = vmatprep.mubr.bf16.mxu1 %v9504_v42  ;;  %2367 = vmatprep.mubr.bf16.mxu0 %v9504_v42  ;;  %v7758_v16 = vld [vmem:[%s9465_s6] ss:$16 sps:$4 sm:$0xff]  }
 0x472   :  { %v5890_v24 = vpop.eup %5889  ;;  %v2084_v5 = vmul.f32 0.5, %v2082_v59  ;;  %v2090_v20 = vadd.f32 1.0, %v5888_v1  ;;  %9650 = vst [vmem:[#allocation22_spill] sm:$0xff] %v7758_v16  ;;  %v9651_v59 = vld [vmem:[#allocation46_spill] sm:$0xff] }
 0x473   :  { %v5892_v27 = vpop.eup %5891  ;;  %v2085_v43 = vmul.f32 0.5, %v2083_v23  ;;  %v2091_v11 = vadd.f32 1.0, %v5890_v24  ;;  %2297 = vmatpush1.bf16.msra.mxu1 %v7245_v48  ;;  %2338 = vmatpush1.bf16.msra.mxu0 %v7251_v17  ;;  %v7765_v1 = vld [vmem:[%s9465_s6 + $0x24] ss:$16 sps:$4 sm:$0xff]   ;;  %v9653_v23 = vld [vmem:[#allocation47_spill] sm:$0xff] }
 0x474   :  { %v5894_v54 = vpop.eup %5893  ;;  %v2092_v31 = vmul.f32 0.5, %v2090_v20  ;;  %v2112_v15 = vmul.f32 %v5892_v27, %v2084_v5  ;;  %2298 = vmatprep.subr.bf16.mxu1 %v7258_v3  ;;  %2339 = vmatprep.subr.bf16.mxu0 %v7264_v4  ;;  %9652 = vst [vmem:[#allocation5_spill] sm:$0xff] %v7765_v1  ;;  %v7774_v24 = vld [vmem:[%s9465_s6 + $0x20] ss:$16 sps:$4 sm:$0xff]   ;;  %v7781_v20 = vld [vmem:[%s9465_s6 + $0x44] ss:$16 sps:$4 sm:$0xff]  }
 0x475   :  { %v2093_v32 = vmul.f32 0.5, %v2091_v11  ;;  %v2113_v36 = vmul.f32 %v5894_v54, %v2085_v43  ;;  %v5896_v3 = vpop.eup %5895  ;;  %9654 = vst [vmem:[#allocation23_spill] sm:$0xff] %v7774_v24  ;;  %v9655_v5 = vld [vmem:[#allocation48_spill] sm:$0xff]  ;;  %9656 = vst [vmem:[#allocation24_spill] sm:$0xff] %v7781_v20  ;;  %v9657_v27 = vld [vmem:[#allocation49_spill] sm:$0xff] }
 0x476   :  { %v2110_v50 = vmul.f32 %v2106_v53, %v2092_v31  ;;  %v5898_v4 = vpop.eup %5897  ;;  %v7788_v43 = vld [vmem:[%s9465_s6 + $0x40] ss:$16 sps:$4 sm:$0xff]   ;;  %v9659_v11 = vld [vmem:[#allocation51_spill] sm:$0xff]  ;;  %v7795_v54 = vld [vmem:[%s9465_s6 + $0x64] ss:$16 sps:$4 sm:$0xff]  }
 0x477   :  { %v2111_v44 = vmul.f32 %v2107_v13, %v2093_v32  ;;  %2299 = vmatpush1.bf16.msra.mxu1 %v7271_v30  ;;  %2340 = vmatpush1.bf16.msra.mxu0 %v7277_v10  ;;  %v2100_v30 = vadd.f32 1.0, %v5896_v3  ;;  %v2101_v10 = vadd.f32 1.0, %v5898_v4  ;;  %9658 = vst [vmem:[#allocation7_spill] sm:$0xff] %v7788_v43  ;;  %9660 = vst [vmem:[#allocation8_spill] sm:$0xff] %v7795_v54  ;;  %v9661_v31 = vld [vmem:[#allocation52_spill] sm:$0xff]  ;;  %v9665_v13 = vld [vmem:[#allocation54_spill] sm:$0xff] }
 0x478   :  { %v7712_v48 = vadd.f32 %v2112_v15, %v2110_v50  ;;  %2300 = vmatprep.subr.bf16.mxu1 %v7285_v52  ;;  %2341 = vmatprep.subr.bf16.mxu0 %v7291_v19  ;;  %v7802_v53 = vld [vmem:[%s9465_s6 + $0x60] ss:$16 sps:$4 sm:$0xff]   ;;  %v9663_v15 = vld [vmem:[#allocation53_spill] sm:$0xff]  ;;  %v7809_v32 = vld [vmem:[%s9465_s6 + $0x84] ss:$16 sps:$4 sm:$0xff]  }
 0x479   :  { %v7716_v17 = vadd.f32 %v2113_v36, %v2111_v44  ;;  %v2102_v52 = vmul.f32 0.5, %v2100_v30  ;;  %9662 = vst [vmem:[#allocation9_spill] sm:$0xff] %v7802_v53  ;;  %9664 = vst [vmem:[#allocation10_spill] sm:$0xff] %v7809_v32  ;;  %v7816_v36 = vld [vmem:[%s9465_s6 + $0x80] ss:$16 sps:$4 sm:$0xff]   ;;  %v9667_v50 = vld [vmem:[#allocation55_spill] sm:$0xff] }
 0x47a   :  { %5899 = vtanh.f32 %v7712_v48  ;;  %9666 = vst [vmem:[#allocation11_spill] sm:$0xff] %v7816_v36  ;;  %v7823_v44 = vld [vmem:[%s9465_s6 + $0xa4] ss:$16 sps:$4 sm:$0xff]   ;;  %v7830_v4 = vld [vmem:[%s9465_s6 + $0xa0] ss:$16 sps:$4 sm:$0xff]   ;;  %v9671_v30 = vld [vmem:[#allocation57_spill] sm:$0xff] }
 0x47b   :  { %5901 = vtanh.f32 %v7716_v17  ;;  %2301 = vmatpush1.bf16.msra.mxu1 %v7303_v62  ;;  %2342 = vmatpush1.bf16.msra.mxu0 %v7309_v14  ;;  %v2103_v62 = vmul.f32 0.5, %v2101_v10  ;;  %9668 = vst [vmem:[#allocation12_spill] sm:$0xff] %v7823_v44  ;;  %v9669_v3 = vld [vmem:[#allocation56_spill] sm:$0xff]  ;;  %9670 = vst [vmem:[#allocation25_spill] sm:$0xff] %v7830_v4 }
 0x47c   :  { %2302 = vmatprep.subr.bf16.mxu1 %v7315_v7  ;;  %2343 = vmatprep.subr.bf16.mxu0 %v7321_v38  ;;  %v7837_v10 = vld [vmem:[%s9465_s6 + $0xc4] ss:$16 sps:$4 sm:$0xff]  }
 0x47d   :  { %9672 = vst [vmem:[#allocation13_spill] sm:$0xff] %v7837_v10 }
 0x47f   :  { %2303 = vmatpush1.bf16.msra.mxu1 %v7327_v21  ;;  %2344 = vmatpush1.bf16.msra.mxu0 %v9588_v63 }
 0x480   :  { %2304 = vmatprep.subr.bf16.mxu1 %v9589_v25  ;;  %2345 = vmatprep.subr.bf16.mxu0 %v9590_v6  ;;  %v9640_v25 = vld [vmem:[#allocation29_spill] sm:$0xff] }
 0x481   :  { %v9641_v6 = vld [vmem:[#allocation41_spill] sm:$0xff] }
 0x482   :  { %9697 = vst [vmem:[#allocation41_spill] sm:$0xff] %v8028_v18 }
 0x483   :  { %2305 = vmatpush1.bf16.msra.mxu1 %v9591_v55  ;;  %2346 = vmatpush1.bf16.msra.mxu0 %v9592_v58 }
 0x484   :  { %v5900_v19 = vpop.eup %5899  ;;  %2306 = vmatprep.subr.bf16.mxu1 %v9593_v40  ;;  %2347 = vmatprep.subr.bf16.mxu0 %v9594_v60  ;;  %v9642_v60 = vld [vmem:[#allocation43_spill] sm:$0xff] }
 0x485   :  { %v5902_v14 = vpop.eup %5901  ;;  %v2118_v7 = vmul.f32 %v5900_v19, %v2102_v52  ;;  %v9673_v52 = vld [vmem:[#allocation58_spill] sm:$0xff]  ;;  %v9674_v19 = vld [vmem:[#allocation59_spill] sm:$0xff] }
 0x486   :  { %v2119_v38 = vmul.f32 %v5902_v14, %v2103_v62  ;;  %v9675_v62 = vld [vmem:[#allocation60_spill] sm:$0xff]  ;;  %v9676_v14 = vld [vmem:[#allocation61_spill] sm:$0xff] }
 0x487   :  { %v2283_v21 = vpack.c.bf16 %v2118_v7, %v2118_v7  ;;  %v3498_v61 = vrot.slane %v2118_v7, 4  ;;  %2307 = vmatpush1.bf16.msra.mxu1 %v9595_v49  ;;  %2348 = vmatpush1.bf16.msra.mxu0 %v9596_v56  ;;  %v7744_v56 = vld [vmem:[%s9465_s6 + $0x4] ss:$16 sps:$4 sm:$0xff]  }
 0x488   :  { %v2284_v47 = vpack.c.bf16 %v2119_v38, %v2119_v38  ;;  %v3499_v63 = vrot.slane %v2119_v38, 3  ;;  %2308 = vmatprep.subr.bf16.mxu1 %v9640_v25  ;;  %2349 = vmatprep.subr.bf16.mxu0 %v9641_v6  ;;  %9645 = vst [vmem:[#allocation21_spill] sm:$0xff] %v7744_v56  ;;  %v9677_v7 = vld [vmem:[#allocation62_spill] sm:$0xff]  ;;  %v9678_v38 = vld [vmem:[#allocation63_spill] sm:$0xff] }
 0x489   :  { %v2287_v55 = vunpack.c.l.b16 %v2283_v21  ;;  %v9679_v21 = vld [vmem:[#allocation64_spill] sm:$0xff] }
 0x48a   :  { %v2288_v58 = vunpack.c.l.b16 %v2284_v47  ;;  %v3500_v40 = vsel %vm1154_vm1, %v3499_v63, %v3498_v61  ;;  %v9680_v61 = vld [vmem:[#allocation65_spill] sm:$0xff]  ;;  %v9681_v47 = vld [vmem:[#allocation66_spill] sm:$0xff] }
 0x48b   :  { %2309 = vmatpush1.bf16.msra.mxu1 %v9642_v60  ;;  %2350 = vmatpush1.bf16.msra.mxu0 %v9643_v34  ;;  %v2289_v2 = vrot.slane %v2287_v55, 4  ;;  %v3522_v49 = vsel %vm3464_vm4, %v3500_v40, %v9644_v22 }
 0x48c   :  { %v2290_v51 = vrot.slane %v2288_v58, 3  ;;  %2457 = vmatprep.subr.bf16.mxu1 %v7744_v56  ;;  %2498 = vmatprep.subr.bf16.mxu0 %v9646_v45  ;;  %v3523_v39 = vsel %vm3466_vm6, %v3522_v49, %v9647_v57 }
 0x48d   :  { %v7752_v12 = vsel %vm3468_vm7, %v3523_v39, %v9648_v33 }
 0x48e   :  { %9649 = vst [vmem:[#allocation4_spill] sm:$0xff] %v7752_v12  ;;  %v2291_v37 = vsel %vm1154_vm1, %v2290_v51, %v2289_v2  ;;  %v9682_v51 = vld [vmem:[#allocation31_spill] sm:$0xff] }
 0x48f   :  { %v2292_v41 = vpack.c.b16 %v2291_v37, %v2291_v37 }
 0x491   :  { %2327 = vmatmul.mubr.bf16.vlgmr.msra.gmra.mrb[44].mxu1 %v2292_v41  ;;  %2368 = vmatmul.mubr.bf16.vlgmr.msra.gmra.mrb[64].mxu0 %v2292_v41  ;;  %v9683_v41 = vld [vmem:[#allocation28_spill] sm:$0xff] }
 0x492   :  { %2458 = vmatpush1.bf16.msra.mxu1 %v7758_v16  ;;  %2499 = vmatpush1.bf16.msra.mxu0 %v9651_v59 }
 0x493   :  { %2459 = vmatprep.subr.bf16.mxu1 %v7765_v1  ;;  %2500 = vmatprep.subr.bf16.mxu0 %v9653_v23  ;;  %v9684_v23 = vld [vmem:[#allocation30_spill] sm:$0xff] }
 0x494   :  { %2489 = vmatprep.mubr.bf16.mxu1 %v9504_v42  ;;  %2530 = vmatprep.mubr.bf16.mxu0 %v9504_v42 }
 0x496   :  { %2460 = vmatpush1.bf16.msra.mxu1 %v7774_v24  ;;  %2501 = vmatpush1.bf16.msra.mxu0 %v9655_v5 }
 0x497   :  { %2461 = vmatprep.subr.bf16.mxu1 %v7781_v20  ;;  %2502 = vmatprep.subr.bf16.mxu0 %v9657_v27 }
 0x49a   :  { %2462 = vmatpush1.bf16.msra.mxu1 %v7788_v43  ;;  %2503 = vmatpush1.bf16.msra.mxu0 %v9659_v11 }
 0x49b   :  { %2463 = vmatprep.subr.bf16.mxu1 %v7795_v54  ;;  %2504 = vmatprep.subr.bf16.mxu0 %v9661_v31 }
 0x49e   :  { %2464 = vmatpush1.bf16.msra.mxu1 %v7802_v53  ;;  %2505 = vmatpush1.bf16.msra.mxu0 %v9663_v15 }
 0x49f   :  { %2465 = vmatprep.subr.bf16.mxu1 %v7809_v32  ;;  %2506 = vmatprep.subr.bf16.mxu0 %v9665_v13  ;;  %v9685_v13 = vld [vmem:[#allocation32_spill] sm:$0xff] }
 0x4a2   :  { %2466 = vmatpush1.bf16.msra.mxu1 %v7816_v36  ;;  %2507 = vmatpush1.bf16.msra.mxu0 %v9667_v50 }
 0x4a3   :  { %2467 = vmatprep.subr.bf16.mxu1 %v7823_v44  ;;  %2508 = vmatprep.subr.bf16.mxu0 %v9669_v3  ;;  %v9686_v3 = vld [vmem:[#allocation34_spill] sm:$0xff] }
 0x4a6   :  { %2468 = vmatpush1.bf16.msra.mxu1 %v7830_v4  ;;  %2509 = vmatpush1.bf16.msra.mxu0 %v9671_v30 }
 0x4a7   :  { %2469 = vmatprep.subr.bf16.mxu1 %v7837_v10  ;;  %2510 = vmatprep.subr.bf16.mxu0 %v9673_v52 }
 0x4aa   :  { %2470 = vmatpush1.bf16.msra.mxu1 %v9674_v19  ;;  %2511 = vmatpush1.bf16.msra.mxu0 %v9675_v62  ;;  %v9687_v62 = vld [vmem:[#allocation33_spill] sm:$0xff] }
 0x4ab   :  { %2471 = vmatprep.subr.bf16.mxu1 %v9676_v14  ;;  %2512 = vmatprep.subr.bf16.mxu0 %v9677_v7  ;;  %v9688_v7 = vld [vmem:[#allocation35_spill] sm:$0xff] }
 0x4ae   :  { %2472 = vmatpush1.bf16.msra.mxu1 %v9678_v38  ;;  %2513 = vmatpush1.bf16.msra.mxu0 %v9679_v21 }
 0x4af   :  { %2620 = vmatprep.subr.bf16.mxu1 %v9680_v61  ;;  %2661 = vmatprep.subr.bf16.mxu0 %v9681_v47 }
 0x541   :  { %v2165_v63 = vpop.f32.mrb[40].mxu1  ;;  %v2206_v25 = vpop.f32.mrb[60].mxu0 }
 0x542   :  { %v2217_v6 = vrot.slane %v2165_v63, 4  ;;  %v2221_v55 = vrot.slane %v2165_v63, 5  ;;  %v2167_v58 = vpop.f32.mrb[41].mxu1  ;;  %v2208_v40 = vpop.f32.mrb[61].mxu0  ;;  %v2219_v57 = vrot.slane %v2206_v25, 4  ;;  %v2223_v37 = vrot.slane %v2206_v25, 5 }
 0x543   :  { %v2218_v60 = vrot.slane %v2167_v58, 4  ;;  %v2222_v34 = vrot.slane %v2167_v58, 5  ;;  %v2169_v2 = vpop.f32.mrb[42].mxu1  ;;  %v2210_v22 = vpop.f32.mrb[62].mxu0  ;;  %v2220_v52 = vrot.slane %v2208_v40, 4  ;;  %v2224_v19 = vrot.slane %v2208_v40, 5 }
 0x544   :  { %v2233_v49 = vadd.f32 %v2217_v6, %v9545_v46  ;;  %v2237_v45 = vadd.f32 %v2221_v55, %v9682_v51  ;;  %v2170_v39 = vpop.f32.mrb[43].mxu1  ;;  %v2211_v33 = vpop.f32.mrb[63].mxu0  ;;  %v2235_v50 = vadd.f32 %v2219_v57, %v9685_v13  ;;  %v2239_v30 = vadd.f32 %v2223_v37, %v9686_v3  ;;  %v9689_v57 = vld [vmem:[#allocation2_spill] sm:$0xff] }
 0x545   :  { %v2234_v59 = vadd.f32 %v2218_v60, %v9683_v41  ;;  %v2238_v5 = vadd.f32 %v2222_v34, %v9684_v23  ;;  %v2236_v14 = vadd.f32 %v2220_v52, %v9687_v62  ;;  %v2240_v38 = vadd.f32 %v2224_v19, %v9688_v7 }
 0x546   :  { %v2241_v27 = vmul.f32 0.5, %v2233_v49  ;;  %v2242_v11 = vmul.f32 0.5, %v2237_v45  ;;  %v2269_v39 = vrot.slane %v9689_v57, 7 }
 0x547   :  { %v2249_v31 = vmul.f32 0.5, %v2234_v59  ;;  %v2250_v15 = vmul.f32 0.5, %v2238_v5  ;;  %v2259_v21 = vmul.f32 0.5, %v2236_v14  ;;  %v2260_v47 = vmul.f32 0.5, %v2240_v38  ;;  %v9690_v59 = vld [vmem:[#allocation20_spill] sm:$0xff] }
 0x548   :  { %5903 = vtanh.f32 %v2241_v27  ;;  %v2270_v5 = vrot.slane %v9690_v59, 7 }
 0x549   :  { %5905 = vtanh.f32 %v2242_v11 }
 0x54a   :  { %5907 = vtanh.f32 %v2249_v31 }
 0x54b   :  { %5909 = vtanh.f32 %v2250_v15 }
 0x54c   :  { %5911 = vtanh.f32 %v2235_v50 }
 0x54d   :  { %5913 = vtanh.f32 %v2239_v30 }
 0x54e   :  { %5915 = vtanh.f32 %v2259_v21 }
 0x54f   :  { %5917 = vtanh.f32 %v2260_v47 }
 0x552   :  { %v5904_v61 = vpop.eup %5903 }
 0x553   :  { %v5906_v63 = vpop.eup %5905  ;;  %v2245_v25 = vadd.f32 1.0, %v5904_v61 }
 0x554   :  { %v5908_v6 = vpop.eup %5907  ;;  %v2246_v55 = vadd.f32 1.0, %v5906_v63 }
 0x555   :  { %v5910_v58 = vpop.eup %5909  ;;  %v2247_v60 = vmul.f32 0.5, %v2245_v25  ;;  %v2253_v34 = vadd.f32 1.0, %v5908_v6 }
 0x556   :  { %v5912_v2 = vpop.eup %5911  ;;  %v2248_v40 = vmul.f32 0.5, %v2246_v55  ;;  %v2254_v22 = vadd.f32 1.0, %v5910_v58 }
 0x557   :  { %v5914_v49 = vpop.eup %5913  ;;  %v2255_v45 = vmul.f32 0.5, %v2253_v34  ;;  %v2275_v33 = vmul.f32 %v5912_v2, %v2247_v60 }
 0x558   :  { %v2256_v37 = vmul.f32 0.5, %v2254_v22  ;;  %v2276_v27 = vmul.f32 %v5914_v49, %v2248_v40  ;;  %v5916_v30 = vpop.eup %5915  ;;  %v9691_v49 = vld [vmem:[#allocation37_spill] sm:$0xff] }
 0x559   :  { %v2273_v11 = vmul.f32 %v2269_v39, %v2255_v45  ;;  %v5918_v52 = vpop.eup %5917  ;;  %v2263_v19 = vadd.f32 1.0, %v5916_v30 }
 0x55a   :  { %v2274_v31 = vmul.f32 %v2270_v5, %v2256_v37  ;;  %v2264_v14 = vadd.f32 1.0, %v5918_v52 }
 0x55b   :  { %v7859_v15 = vadd.f32 %v2275_v33, %v2273_v11  ;;  %v2265_v6 = vmul.f32 0.5, %v2263_v19 }
 0x55c   :  { %v7861_v50 = vadd.f32 %v2276_v27, %v2274_v31  ;;  %v2266_v22 = vmul.f32 0.5, %v2264_v14 }
 0x55d   :  { %5919 = vtanh.f32 %v7859_v15 }
 0x55e   :  { %5921 = vtanh.f32 %v7861_v50 }
 0x564   :  { %v2328_v38 = vpop.f32.mrb[44].mxu1  ;;  %v2369_v21 = vpop.f32.mrb[64].mxu0 }
 0x565   :  { %v2380_v61 = vrot.slane %v2328_v38, 5  ;;  %v2384_v47 = vrot.slane %v2328_v38, 6  ;;  %v2330_v63 = vpop.f32.mrb[45].mxu1  ;;  %v2371_v25 = vpop.f32.mrb[65].mxu0  ;;  %v2382_v55 = vrot.slane %v2369_v21, 5  ;;  %v2386_v5 = vrot.slane %v2369_v21, 6 }
 0x566   :  { %v2381_v58 = vrot.slane %v2330_v63, 5  ;;  %v2385_v60 = vrot.slane %v2330_v63, 6  ;;  %v2332_v34 = vpop.f32.mrb[46].mxu1  ;;  %v2373_v2 = vpop.f32.mrb[66].mxu0 }
 0x567   :  { %v5920_v40 = vpop.eup %5919  ;;  %v2396_v45 = vadd.f32 %v2380_v61, %v9691_v49  ;;  %v2400_v57 = vadd.f32 %v2384_v47, %v6995_v9  ;;  %v2333_v39 = vpop.f32.mrb[47].mxu1  ;;  %v2398_v14 = vadd.f32 %v2382_v55, %v7006_v35  ;;  %v2402_v21 = vadd.f32 %v2386_v5, %v7012_v8  ;;  %v7880_v5 = vld [vmem:[%s9235_s7] ss:$16 sps:$4 sm:$0xff]  }
 0x568   :  { %v2374_v33 = vpop.f32.mrb[67].mxu0  ;;  %v5922_v37 = vpop.eup %5921  ;;  %v2281_v59 = vmul.f32 %v5920_v40, %v2265_v6  ;;  %v2397_v27 = vadd.f32 %v2381_v58, %v6980_v26  ;;  %v2401_v11 = vadd.f32 %v2385_v60, %v6984_v0  ;;  %v2383_v6 = vrot.slane %v2371_v25, 5 }
 0x569   :  { %v2282_v31 = vmul.f32 %v5922_v37, %v2266_v22  ;;  %v2404_v30 = vmul.f32 0.5, %v2396_v45  ;;  %v2405_v52 = vmul.f32 0.5, %v2400_v57  ;;  %v2387_v60 = vrot.slane %v2371_v25, 6 }
 0x56a   :  { %v2446_v19 = vpack.c.bf16 %v2281_v59, %v2281_v59  ;;  %v3443_v38 = vrot.slane %v2281_v59, 4  ;;  %v2412_v63 = vmul.f32 0.5, %v2397_v27  ;;  %v2413_v47 = vmul.f32 0.5, %v2401_v11  ;;  %v7886_v27 = vld [vmem:[%s9235_s7 + $0x8] ss:$16 sps:$4 sm:$0xff]  }
 0x56b   :  { %v2447_v61 = vpack.c.bf16 %v2282_v31, %v2282_v31  ;;  %v3444_v34 = vrot.slane %v2282_v31, 3  ;;  %5923 = vtanh.f32 %v2404_v30  ;;  %v2399_v45 = vadd.f32 %v2383_v6, %v7009_v29  ;;  %v7892_v30 = vld [vmem:[%s9235_s7 + $0x24] ss:$16 sps:$4 sm:$0xff]   ;;  %v7912_v6 = vld [vmem:[%s9235_s7 + $0x28] ss:$16 sps:$4 sm:$0xff]  }
 0x56c   :  { %v2450_v2 = vunpack.c.l.b16 %v2446_v19  ;;  %5925 = vtanh.f32 %v2405_v52  ;;  %v2403_v57 = vadd.f32 %v2387_v60, %v7015_v28  ;;  %v7898_v52 = vld [vmem:[%s9235_s7 + $0x2c] ss:$16 sps:$4 sm:$0xff]  }
 0x56d   :  { %v2451_v58 = vunpack.c.l.b16 %v2447_v61  ;;  %5927 = vtanh.f32 %v2412_v63  ;;  %v7872_v40 = vsel %vm1154_vm1, %v3444_v34, %v3443_v38  ;;  %v2422_v37 = vmul.f32 0.5, %v2399_v45  ;;  %v7919_v45 = vld [vmem:[%s9235_s7 + $0x44] ss:$16 sps:$4 sm:$0xff]  }
 0x56e   :  { %5929 = vtanh.f32 %v2413_v47  ;;  %v2452_v22 = vrot.slane %v2450_v2, 4  ;;  %v2423_v25 = vmul.f32 0.5, %v2403_v57  ;;  %v7925_v57 = vld [vmem:[%s9235_s7 + $0x4c] ss:$16 sps:$4 sm:$0xff]  }
 0x56f   :  { %5931 = vtanh.f32 %v2398_v14  ;;  %v2453_v55 = vrot.slane %v2451_v58, 3 }
 0x570   :  { %5933 = vtanh.f32 %v2402_v21  ;;  %v7906_v21 = vld [vmem:[%s9235_s7 + $0x20] ss:$16 sps:$4 sm:$0xff]  }
 0x571   :  { %v2454_v39 = vsel %vm1154_vm1, %v2453_v55, %v2452_v22  ;;  %5935 = vtanh.f32 %v2422_v37  ;;  %v2432_v22 = vrot.slane %v7712_v48, 1 }
 0x572   :  { %v2455_v33 = vpack.c.b16 %v2454_v39, %v2454_v39  ;;  %5937 = vtanh.f32 %v2423_v25  ;;  %v7932_v25 = vld [vmem:[%s9235_s7 + $0x40] ss:$16 sps:$4 sm:$0xff]  }
 0x574   :  { %2490 = vmatmul.mubr.bf16.vlgmr.msra.gmra.mrb[48].mxu1 %v2455_v33  ;;  %2531 = vmatmul.mubr.bf16.vlgmr.msra.gmra.mrb[68].mxu0 %v2455_v33  ;;  %v2433_v33 = vrot.slane %v7716_v17, 1  ;;  %v7946_v17 = vld [vmem:[%s9235_s7 + $0x64] ss:$16 sps:$4 sm:$0xff]  }
 0x575   :  { %v5924_v59 = vpop.eup %5923  ;;  %2621 = vmatpush1.bf16.msra.mxu1 %v7880_v5  ;;  %2662 = vmatpush1.bf16.msra.mxu0 %v7886_v27 }
 0x576   :  { %v5926_v11 = vpop.eup %5925  ;;  %v2408_v31 = vadd.f32 1.0, %v5924_v59  ;;  %2622 = vmatprep.subr.bf16.mxu1 %v7892_v30  ;;  %2663 = vmatprep.subr.bf16.mxu0 %v7898_v52 }
 0x577   :  { %v5928_v19 = vpop.eup %5927  ;;  %v2409_v38 = vadd.f32 1.0, %v5926_v11  ;;  %2652 = vmatprep.mubr.bf16.mxu1 %v9504_v42  ;;  %2693 = vmatprep.mubr.bf16.mxu0 %v9504_v42  ;;  %v7938_v11 = vld [vmem:[%s9235_s7 + $0x48] ss:$16 sps:$4 sm:$0xff]  }
 0x578   :  { %v5930_v14 = vpop.eup %5929  ;;  %v2410_v63 = vmul.f32 0.5, %v2408_v31  ;;  %v2416_v61 = vadd.f32 1.0, %v5928_v19  ;;  %v7952_v19 = vld [vmem:[%s9235_s7 + $0x6c] ss:$16 sps:$4 sm:$0xff]  }
 0x579   :  { %v5932_v34 = vpop.eup %5931  ;;  %v2411_v47 = vmul.f32 0.5, %v2409_v38  ;;  %v2417_v2 = vadd.f32 1.0, %v5930_v14  ;;  %2623 = vmatpush1.bf16.msra.mxu1 %v7906_v21  ;;  %2664 = vmatpush1.bf16.msra.mxu0 %v7912_v6  ;;  %v7962_v14 = vld [vmem:[%s9235_s7 + $0x60] ss:$16 sps:$4 sm:$0xff]  }
 0x57a   :  { %v5934_v58 = vpop.eup %5933  ;;  %v2418_v60 = vmul.f32 0.5, %v2416_v61  ;;  %v2438_v55 = vmul.f32 %v5932_v34, %v2410_v63  ;;  %2624 = vmatprep.subr.bf16.mxu1 %v7919_v45  ;;  %2665 = vmatprep.subr.bf16.mxu0 %v7925_v57  ;;  %v7968_v63 = vld [vmem:[%s9235_s7 + $0x68] ss:$16 sps:$4 sm:$0xff]   ;;  %v7974_v34 = vld [vmem:[%s9235_s7 + $0x84] ss:$16 sps:$4 sm:$0xff]  }
 0x57b   :  { %v2419_v39 = vmul.f32 0.5, %v2417_v2  ;;  %v2439_v37 = vmul.f32 %v5934_v58, %v2411_v47  ;;  %v5936_v61 = vpop.eup %5935  ;;  %v7980_v47 = vld [vmem:[%s9235_s7 + $0x8c] ss:$16 sps:$4 sm:$0xff]  }
 0x57c   :  { %v2436_v48 = vmul.f32 %v2432_v22, %v2418_v60  ;;  %v5938_v2 = vpop.eup %5937  ;;  %v2426_v58 = vadd.f32 1.0, %v5936_v61  ;;  %v7986_v60 = vld [vmem:[%s9235_s7 + $0x80] ss:$16 sps:$4 sm:$0xff]   ;;  %v7992_v22 = vld [vmem:[%s9235_s7 + $0x88] ss:$16 sps:$4 sm:$0xff]  }
 0x57d   :  { %v2437_v59 = vmul.f32 %v2433_v33, %v2419_v39  ;;  %2625 = vmatpush1.bf16.msra.mxu1 %v7932_v25  ;;  %2666 = vmatpush1.bf16.msra.mxu0 %v7938_v11  ;;  %v7998_v39 = vld [vmem:[%s9235_s7 + $0xa4] ss:$16 sps:$4 sm:$0xff]   ;;  %v8004_v33 = vld [vmem:[%s9235_s7 + $0xac] ss:$16 sps:$4 sm:$0xff]  }
 0x57e   :  { %v7941_v31 = vadd.f32 %v2438_v55, %v2436_v48  ;;  %2626 = vmatprep.subr.bf16.mxu1 %v7946_v17  ;;  %2667 = vmatprep.subr.bf16.mxu0 %v7952_v19  ;;  %v2427_v55 = vadd.f32 1.0, %v5938_v2  ;;  %9692 = vst [vmem:[#allocation15_spill] sm:$0xff] %v7998_v39  ;;  %9693 = vst [vmem:[#allocation16_spill] sm:$0xff] %v8004_v33  ;;  %v8010_v48 = vld [vmem:[%s9235_s7 + $0xa0] ss:$16 sps:$4 sm:$0xff]  }
 0x57f   :  { %v7955_v38 = vadd.f32 %v2439_v37, %v2437_v59  ;;  %v2428_v37 = vmul.f32 0.5, %v2426_v58  ;;  %9694 = vst [vmem:[#allocation67_spill] sm:$0xff] %v8010_v48  ;;  %v8016_v59 = vld [vmem:[%s9235_s7 + $0xa8] ss:$16 sps:$4 sm:$0xff]   ;;  %v8022_v58 = vld [vmem:[%s9235_s7 + $0xc4] ss:$16 sps:$4 sm:$0xff]  }
 0x580   :  { %5939 = vtanh.f32 %v7941_v31  ;;  %9695 = vst [vmem:[#allocation68_spill] sm:$0xff] %v8016_v59  ;;  %v2429_v2 = vmul.f32 0.5, %v2427_v55  ;;  %9696 = vst [vmem:[#allocation29_spill] sm:$0xff] %v8022_v58  ;;  %v8034_v55 = vld [vmem:[%s9235_s7 + $0xc0] ss:$16 sps:$4 sm:$0xff]  }
 0x581   :  { %5941 = vtanh.f32 %v7955_v38  ;;  %2627 = vmatpush1.bf16.msra.mxu1 %v7962_v14  ;;  %2668 = vmatpush1.bf16.msra.mxu0 %v7968_v63  ;;  %9698 = vst [vmem:[#allocation43_spill] sm:$0xff] %v8034_v55 }
 0x582   :  { %2628 = vmatprep.subr.bf16.mxu1 %v7974_v34  ;;  %2669 = vmatprep.subr.bf16.mxu0 %v7980_v47 }
 0x585   :  { %2629 = vmatpush1.bf16.msra.mxu1 %v7986_v60  ;;  %2670 = vmatpush1.bf16.msra.mxu0 %v7992_v22 }
 0x586   :  { %2630 = vmatprep.subr.bf16.mxu1 %v7998_v39  ;;  %2671 = vmatprep.subr.bf16.mxu0 %v8004_v33 }
 0x589   :  { %2631 = vmatpush1.bf16.msra.mxu1 %v8010_v48  ;;  %2672 = vmatpush1.bf16.msra.mxu0 %v8016_v59 }
 0x58a   :  { %v5940_v61 = vpop.eup %5939  ;;  %2632 = vmatprep.subr.bf16.mxu1 %v8022_v58  ;;  %2673 = vmatprep.subr.bf16.mxu0 %v8028_v18  ;;  %v8040_v58 = vld [vmem:[%s9235_s7 + $0xc8] ss:$16 sps:$4 sm:$0xff]  }
 0x58b   :  { %v5942_v12 = vpop.eup %5941  ;;  %v2444_v48 = vmul.f32 %v5940_v61, %v2428_v37  ;;  %9699 = vst [vmem:[#allocation44_spill] sm:$0xff] %v8040_v58  ;;  %v8052_v37 = vld [vmem:[%s9235_s7 + $0xec] ss:$16 sps:$4 sm:$0xff]  }
 0x58c   :  { %v2445_v33 = vmul.f32 %v5942_v12, %v2429_v2  ;;  %v8046_v12 = vld [vmem:[%s9235_s7 + $0xe4] ss:$16 sps:$4 sm:$0xff]   ;;  %9701 = vst [vmem:[#allocation45_spill] sm:$0xff] %v8052_v37 }
 0x58d   :  { %v2609_v59 = vpack.c.bf16 %v2444_v48, %v2444_v48  ;;  %2633 = vmatpush1.bf16.msra.mxu1 %v8034_v55  ;;  %2674 = vmatpush1.bf16.msra.mxu0 %v8040_v58  ;;  %v3492_v39 = vrot.slane %v2444_v48, 5  ;;  %9700 = vst [vmem:[#allocation19_spill] sm:$0xff] %v8046_v12  ;;  %v8061_v58 = vld [vmem:[%s9235_s7 + $0xe0] ss:$16 sps:$4 sm:$0xff]  }
 0x58e   :  { %v2610_v18 = vpack.c.bf16 %v2445_v33, %v2445_v33  ;;  %2634 = vmatprep.subr.bf16.mxu1 %v8046_v12  ;;  %2675 = vmatprep.subr.bf16.mxu0 %v8052_v37  ;;  %v3493_v61 = vrot.slane %v2445_v33, 4  ;;  %9703 = vst [vmem:[#allocation40_spill] sm:$0xff] %v8061_v58  ;;  %v8067_v12 = vld [vmem:[%s9235_s7 + $0xe8] ss:$16 sps:$4 sm:$0xff]  }
 0x58f   :  { %v2613_v2 = vunpack.c.l.b16 %v2609_v59  ;;  %9704 = vst [vmem:[#allocation46_spill] sm:$0xff] %v8067_v12 }
 0x590   :  { %v2614_v55 = vunpack.c.l.b16 %v2610_v18  ;;  %v8056_v48 = vsel %vm3438_vm2, %v3493_v61, %v3492_v39  ;;  %v8074_v18 = vld [vmem:[%s9465_s6 + $0xc] ss:$16 sps:$4 sm:$0xff]  }
 0x591   :  { %9702 = vst [vmem:[#allocation42_spill] sm:$0xff] %v8056_v48  ;;  %2635 = vmatpush1.bf16.msra.mxu1 %v8061_v58  ;;  %2676 = vmatpush1.bf16.msra.mxu0 %v8067_v12  ;;  %v2615_v33 = vrot.slane %v2613_v2, 3  ;;  %9705 = vst [vmem:[#allocation47_spill] sm:$0xff] %v8074_v18  ;;  %v8089_v2 = vld [vmem:[%s9465_s6 + $0x2c] ss:$16 sps:$4 sm:$0xff]  }
 0x592   :  { %v2616_v59 = vrot.slane %v2614_v55, 2  ;;  %2783 = vmatprep.subr.bf16.mxu1 %v7744_v56  ;;  %2824 = vmatprep.subr.bf16.mxu0 %v8074_v18  ;;  %v8082_v55 = vld [vmem:[%s9465_s6 + $0x8] ss:$16 sps:$4 sm:$0xff]   ;;  %9707 = vst [vmem:[#allocation49_spill] sm:$0xff] %v8089_v2 }
 0x593   :  { %9706 = vst [vmem:[#allocation48_spill] sm:$0xff] %v8082_v55  ;;  %v8126_v48 = vld [vmem:[%s9465_s6 + $0x68] ss:$16 sps:$4 sm:$0xff]  }
 0x594   :  { %v2617_v39 = vsel %vm1154_vm1, %v2616_v59, %v2615_v33  ;;  %v8098_v33 = vld [vmem:[%s9465_s6 + $0x28] ss:$16 sps:$4 sm:$0xff]   ;;  %v8105_v59 = vld [vmem:[%s9465_s6 + $0x4c] ss:$16 sps:$4 sm:$0xff]   ;;  %9712 = vst [vmem:[#allocation55_spill] sm:$0xff] %v8126_v48 }
 0x595   :  { %v2618_v61 = vpack.c.b16 %v2617_v39, %v2617_v39  ;;  %9708 = vst [vmem:[#allocation51_spill] sm:$0xff] %v8098_v33  ;;  %9709 = vst [vmem:[#allocation52_spill] sm:$0xff] %v8105_v59  ;;  %v8112_v39 = vld [vmem:[%s9465_s6 + $0x48] ss:$16 sps:$4 sm:$0xff]  }
 0x596   :  { %9710 = vst [vmem:[#allocation53_spill] sm:$0xff] %v8112_v39 }
 0x597   :  { %2653 = vmatmul.mubr.bf16.vlgmr.msra.gmra.mrb[52].mxu1 %v2618_v61  ;;  %2694 = vmatmul.mubr.bf16.vlgmr.msra.gmra.mrb[72].mxu0 %v2618_v61  ;;  %v8119_v61 = vld [vmem:[%s9465_s6 + $0x6c] ss:$16 sps:$4 sm:$0xff]  }
 0x598   :  { %2784 = vmatpush1.bf16.msra.mxu1 %v7758_v16  ;;  %2825 = vmatpush1.bf16.msra.mxu0 %v8082_v55  ;;  %9711 = vst [vmem:[#allocation54_spill] sm:$0xff] %v8119_v61 }
 0x599   :  { %2785 = vmatprep.subr.bf16.mxu1 %v7765_v1  ;;  %2826 = vmatprep.subr.bf16.mxu0 %v8089_v2 }
 0x59a   :  { %2815 = vmatprep.mubr.bf16.mxu1 %v9504_v42  ;;  %2856 = vmatprep.mubr.bf16.mxu0 %v9504_v42 }
 0x59c   :  { %2786 = vmatpush1.bf16.msra.mxu1 %v7774_v24  ;;  %2827 = vmatpush1.bf16.msra.mxu0 %v8098_v33 }
 0x59d   :  { %2787 = vmatprep.subr.bf16.mxu1 %v7781_v20  ;;  %2828 = vmatprep.subr.bf16.mxu0 %v8105_v59 }
 0x5a0   :  { %2788 = vmatpush1.bf16.msra.mxu1 %v7788_v43  ;;  %2829 = vmatpush1.bf16.msra.mxu0 %v8112_v39 }
 0x5a1   :  { %2789 = vmatprep.subr.bf16.mxu1 %v7795_v54  ;;  %2830 = vmatprep.subr.bf16.mxu0 %v8119_v61  ;;  %v8133_v54 = vld [vmem:[%s9465_s6 + $0x8c] ss:$16 sps:$4 sm:$0xff]  }
 0x5a2   :  { %9713 = vst [vmem:[#allocation56_spill] sm:$0xff] %v8133_v54 }
 0x5a4   :  { %2790 = vmatpush1.bf16.msra.mxu1 %v7802_v53  ;;  %2831 = vmatpush1.bf16.msra.mxu0 %v8126_v48  ;;  %v8140_v53 = vld [vmem:[%s9465_s6 + $0x88] ss:$16 sps:$4 sm:$0xff]  }
 0x5a5   :  { %2791 = vmatprep.subr.bf16.mxu1 %v7809_v32  ;;  %2832 = vmatprep.subr.bf16.mxu0 %v8133_v54  ;;  %9714 = vst [vmem:[#allocation57_spill] sm:$0xff] %v8140_v53  ;;  %v8147_v32 = vld [vmem:[%s9465_s6 + $0xac] ss:$16 sps:$4 sm:$0xff]  }
 0x5a6   :  { %9715 = vst [vmem:[#allocation58_spill] sm:$0xff] %v8147_v32 }
 0x5a8   :  { %2792 = vmatpush1.bf16.msra.mxu1 %v7816_v36  ;;  %2833 = vmatpush1.bf16.msra.mxu0 %v8140_v53  ;;  %v8154_v36 = vld [vmem:[%s9465_s6 + $0xa8] ss:$16 sps:$4 sm:$0xff]  }
 0x5a9   :  { %2793 = vmatprep.subr.bf16.mxu1 %v7823_v44  ;;  %2834 = vmatprep.subr.bf16.mxu0 %v8147_v32  ;;  %9716 = vst [vmem:[#allocation59_spill] sm:$0xff] %v8154_v36  ;;  %v8161_v44 = vld [vmem:[%s9465_s6 + $0xcc] ss:$16 sps:$4 sm:$0xff]  }
 0x5aa   :  { %9717 = vst [vmem:[#allocation60_spill] sm:$0xff] %v8161_v44 }
 0x5ac   :  { %2794 = vmatpush1.bf16.msra.mxu1 %v7830_v4  ;;  %2835 = vmatpush1.bf16.msra.mxu0 %v8154_v36  ;;  %v8167_v4 = vld [vmem:[%s9465_s6 + $0xc0] ss:$16 sps:$4 sm:$0xff]   ;;  %v8173_v36 = vld [vmem:[%s9465_s6 + $0xc8] ss:$16 sps:$4 sm:$0xff]  }
 0x5ad   :  { %2795 = vmatprep.subr.bf16.mxu1 %v7837_v10  ;;  %2836 = vmatprep.subr.bf16.mxu0 %v8161_v44  ;;  %9718 = vst [vmem:[#allocation61_spill] sm:$0xff] %v8167_v4  ;;  %9719 = vst [vmem:[#allocation62_spill] sm:$0xff] %v8173_v36  ;;  %v8179_v10 = vld [vmem:[%s9465_s6 + $0xe4] ss:$16 sps:$4 sm:$0xff]   ;;  %v8185_v44 = vld [vmem:[%s9465_s6 + $0xec] ss:$16 sps:$4 sm:$0xff]  }
 0x5ae   :  { %9720 = vst [vmem:[#allocation63_spill] sm:$0xff] %v8179_v10  ;;  %9721 = vst [vmem:[#allocation64_spill] sm:$0xff] %v8185_v44 }
 0x5b0   :  { %2796 = vmatpush1.bf16.msra.mxu1 %v8167_v4  ;;  %2837 = vmatpush1.bf16.msra.mxu0 %v8173_v36  ;;  %v8191_v4 = vld [vmem:[%s9465_s6 + $0xe0] ss:$16 sps:$4 sm:$0xff]   ;;  %v8197_v36 = vld [vmem:[%s9465_s6 + $0xe8] ss:$16 sps:$4 sm:$0xff]  }
 0x5b1   :  { %2797 = vmatprep.subr.bf16.mxu1 %v8179_v10  ;;  %2838 = vmatprep.subr.bf16.mxu0 %v8185_v44  ;;  %9722 = vst [vmem:[#allocation65_spill] sm:$0xff] %v8191_v4  ;;  %9723 = vst [vmem:[#allocation66_spill] sm:$0xff] %v8197_v36  ;;  %v8203_v10 = vld [vmem:[%s9235_s7 + $0x4] ss:$16 sps:$4 sm:$0xff]   ;;  %v8209_v44 = vld [vmem:[%s9235_s7 + $0xc] ss:$16 sps:$4 sm:$0xff]  }
 0x5b2   :  { %9724 = vst [vmem:[#allocation2_spill] sm:$0xff] %v8203_v10  ;;  %9725 = vst [vmem:[#allocation20_spill] sm:$0xff] %v8209_v44 }
 0x5b4   :  { %2798 = vmatpush1.bf16.msra.mxu1 %v8191_v4  ;;  %2839 = vmatpush1.bf16.msra.mxu0 %v8197_v36 }
 0x5b5   :  { %2946 = vmatprep.subr.bf16.mxu1 %v8203_v10  ;;  %2987 = vmatprep.subr.bf16.mxu0 %v8209_v44 }
 0x647   :  { %v2491_v4 = vpop.f32.mrb[48].mxu1  ;;  %v2532_v32 = vpop.f32.mrb[68].mxu0 }
 0x648   :  { %v2543_v53 = vrot.slane %v2491_v4, 3  ;;  %v2547_v54 = vrot.slane %v2491_v4, 4  ;;  %v2493_v48 = vpop.f32.mrb[49].mxu1  ;;  %v2534_v36 = vpop.f32.mrb[69].mxu0  ;;  %v2545_v33 = vrot.slane %v2532_v32, 3  ;;  %v2549_v1 = vrot.slane %v2532_v32, 4 }
 0x649   :  { %v2544_v61 = vrot.slane %v2493_v48, 3  ;;  %v2548_v39 = vrot.slane %v2493_v48, 4  ;;  %v2495_v43 = vpop.f32.mrb[50].mxu1  ;;  %v2536_v59 = vpop.f32.mrb[70].mxu0  ;;  %v2546_v48 = vrot.slane %v2534_v36, 3 }
 0x64a   :  { %v2559_v20 = vadd.f32 %v2543_v53, %v9545_v46  ;;  %v2563_v10 = vadd.f32 %v2547_v54, %v9682_v51  ;;  %v2496_v24 = vpop.f32.mrb[51].mxu1  ;;  %v2537_v2 = vpop.f32.mrb[71].mxu0  ;;  %v2561_v43 = vadd.f32 %v2545_v33, %v9685_v13  ;;  %v2565_v53 = vadd.f32 %v2549_v1, %v9686_v3 }
 0x64b   :  { %v2560_v44 = vadd.f32 %v2544_v61, %v9683_v41  ;;  %v2564_v55 = vadd.f32 %v2548_v39, %v9684_v23  ;;  %v2550_v54 = vrot.slane %v2534_v36, 4  ;;  %v2562_v24 = vadd.f32 %v2546_v48, %v9687_v62 }
 0x64c   :  { %v2567_v16 = vmul.f32 0.5, %v2559_v20  ;;  %v2568_v4 = vmul.f32 0.5, %v2563_v10 }
 0x64d   :  { %v2575_v18 = vmul.f32 0.5, %v2560_v44  ;;  %v2576_v56 = vmul.f32 0.5, %v2564_v55  ;;  %v2566_v32 = vadd.f32 %v2550_v54, %v9688_v7  ;;  %v2585_v20 = vmul.f32 0.5, %v2562_v24 }
 0x64e   :  { %5943 = vtanh.f32 %v2567_v16  ;;  %v2596_v54 = vrot.slane %v7861_v50, 7 }
 0x64f   :  { %5945 = vtanh.f32 %v2568_v4  ;;  %v2586_v44 = vmul.f32 0.5, %v2566_v32 }
 0x650   :  { %5947 = vtanh.f32 %v2575_v18 }
 0x651   :  { %5949 = vtanh.f32 %v2576_v56 }
 0x652   :  { %5951 = vtanh.f32 %v2561_v43  ;;  %v2595_v43 = vrot.slane %v7859_v15, 7 }
 0x653   :  { %5953 = vtanh.f32 %v2565_v53 }
 0x654   :  { %5955 = vtanh.f32 %v2585_v20 }
 0x655   :  { %5957 = vtanh.f32 %v2586_v44 }
 0x658   :  { %v5944_v10 = vpop.eup %5943 }
 0x659   :  { %v5946_v55 = vpop.eup %5945  ;;  %v2571_v16 = vadd.f32 1.0, %v5944_v10 }
 0x65a   :  { %v5948_v2 = vpop.eup %5947  ;;  %v2572_v33 = vadd.f32 1.0, %v5946_v55 }
 0x65b   :  { %v5950_v59 = vpop.eup %5949  ;;  %v2573_v39 = vmul.f32 0.5, %v2571_v16  ;;  %v2579_v1 = vadd.f32 1.0, %v5948_v2 }
 0x65c   :  { %v5952_v18 = vpop.eup %5951  ;;  %v2574_v36 = vmul.f32 0.5, %v2572_v33  ;;  %v2580_v56 = vadd.f32 1.0, %v5950_v59 }
 0x65d   :  { %v5954_v61 = vpop.eup %5953  ;;  %v2581_v4 = vmul.f32 0.5, %v2579_v1  ;;  %v2601_v53 = vmul.f32 %v5952_v18, %v2573_v39 }
 0x65e   :  { %v2582_v48 = vmul.f32 0.5, %v2580_v56  ;;  %v2602_v24 = vmul.f32 %v5954_v61, %v2574_v36  ;;  %v5956_v20 = vpop.eup %5955 }
 0x65f   :  { %v2599_v32 = vmul.f32 %v2595_v43, %v2581_v4  ;;  %v5958_v44 = vpop.eup %5957  ;;  %v2589_v2 = vadd.f32 1.0, %v5956_v20 }
 0x660   :  { %v2600_v10 = vmul.f32 %v2596_v54, %v2582_v48  ;;  %v2590_v33 = vadd.f32 1.0, %v5958_v44 }
 0x661   :  { %v8222_v55 = vadd.f32 %v2601_v53, %v2599_v32  ;;  %v2591_v36 = vmul.f32 0.5, %v2589_v2 }
 0x662   :  { %v8224_v16 = vadd.f32 %v2602_v24, %v2600_v10  ;;  %v2592_v54 = vmul.f32 0.5, %v2590_v33 }
 0x663   :  { %9726 = vst [vmem:[#allocation69_spill] sm:$0xff] %v8222_v55  ;;  %5959 = vtanh.f32 %v8222_v55 }
 0x664   :  { %9727 = vst [vmem:[#allocation70_spill] sm:$0xff] %v8224_v16  ;;  %5961 = vtanh.f32 %v8224_v16 }
 0x66a   :  { %v2654_v15 = vpop.f32.mrb[52].mxu1  ;;  %v2695_v59 = vpop.f32.mrb[72].mxu0 }
 0x66b   :  { %v2706_v39 = vrot.slane %v2654_v15, 6  ;;  %v2710_v1 = vrot.slane %v2654_v15, 7  ;;  %v2656_v50 = vpop.f32.mrb[53].mxu1  ;;  %v2697_v18 = vpop.f32.mrb[73].mxu0  ;;  %v2708_v56 = vrot.slane %v2695_v59, 6  ;;  %v2712_v55 = vrot.slane %v2695_v59, 7 }
 0x66c   :  { %v2707_v61 = vrot.slane %v2656_v50, 6  ;;  %v2711_v4 = vrot.slane %v2656_v50, 7  ;;  %v2658_v43 = vpop.f32.mrb[54].mxu1  ;;  %v2699_v53 = vpop.f32.mrb[74].mxu0 }
 0x66d   :  { %v5960_v48 = vpop.eup %5959  ;;  %v2722_v24 = vadd.f32 %v2706_v39, %v9691_v49  ;;  %v2726_v32 = vadd.f32 %v2710_v1, %v6995_v9  ;;  %v2659_v10 = vpop.f32.mrb[55].mxu1  ;;  %v2724_v33 = vadd.f32 %v2708_v56, %v7006_v35  ;;  %v2728_v59 = vadd.f32 %v2712_v55, %v7012_v8 }
 0x66e   :  { %v2700_v20 = vpop.f32.mrb[75].mxu0  ;;  %v5962_v44 = vpop.eup %5961  ;;  %v2607_v16 = vmul.f32 %v5960_v48, %v2591_v36  ;;  %v2723_v15 = vadd.f32 %v2707_v61, %v6980_v26  ;;  %v2727_v2 = vadd.f32 %v2711_v4, %v6984_v0  ;;  %v2709_v36 = vrot.slane %v2697_v18, 6 }
 0x66f   :  { %v2608_v7 = vmul.f32 %v5962_v44, %v2592_v54  ;;  %v2730_v62 = vmul.f32 0.5, %v2722_v24  ;;  %v2731_v50 = vmul.f32 0.5, %v2726_v32  ;;  %v2713_v4 = vrot.slane %v2697_v18, 7 }
 0x670   :  { %v2772_v43 = vpack.c.bf16 %v2607_v16, %v2607_v16  ;;  %v3449_v53 = vrot.slane %v2607_v16, 3  ;;  %v2738_v3 = vmul.f32 0.5, %v2723_v15  ;;  %v2739_v1 = vmul.f32 0.5, %v2727_v2 }
 0x671   :  { %v2773_v39 = vpack.c.bf16 %v2608_v7, %v2608_v7  ;;  %v3450_v49 = vrot.slane %v2608_v7, 2  ;;  %5963 = vtanh.f32 %v2730_v62  ;;  %v2725_v62 = vadd.f32 %v2709_v36, %v7009_v29 }
 0x672   :  { %v2776_v10 = vunpack.c.l.b16 %v2772_v43  ;;  %5965 = vtanh.f32 %v2731_v50  ;;  %v2729_v56 = vadd.f32 %v2713_v4, %v7015_v28 }
 0x673   :  { %v2777_v61 = vunpack.c.l.b16 %v2773_v39  ;;  %5967 = vtanh.f32 %v2738_v3  ;;  %v3451_v48 = vsel %vm3424_vm3, %v3450_v49, %v3449_v53  ;;  %v2748_v3 = vmul.f32 0.5, %v2725_v62 }
 0x674   :  { %5969 = vtanh.f32 %v2739_v1  ;;  %v2778_v54 = vrot.slane %v2776_v10, 5  ;;  %v8237_v16 = vsel %vm3464_vm4, %v7872_v40, %v3451_v48  ;;  %v2749_v18 = vmul.f32 0.5, %v2729_v56 }
 0x675   :  { %5971 = vtanh.f32 %v2724_v33  ;;  %v2779_v7 = vrot.slane %v2777_v61, 4  ;;  %v2758_v10 = vrot.slane %v7941_v31, 1  ;;  %v2759_v61 = vrot.slane %v7955_v38, 1 }
 0x676   :  { %5973 = vtanh.f32 %v2728_v59 }
 0x677   :  { %v2780_v55 = vsel %vm1154_vm1, %v2779_v7, %v2778_v54  ;;  %5975 = vtanh.f32 %v2748_v3  ;;  %v9729_v3 = vld [vmem:[#allocation16_spill] sm:$0xff] }
 0x678   :  { %v2781_v24 = vpack.c.b16 %v2780_v55, %v2780_v55  ;;  %5977 = vtanh.f32 %v2749_v18  ;;  %v9730_v18 = vld [vmem:[#allocation67_spill] sm:$0xff] }
 0x67a   :  { %2816 = vmatmul.mubr.bf16.vlgmr.msra.gmra.mrb[56].mxu1 %v2781_v24  ;;  %2857 = vmatmul.mubr.bf16.vlgmr.msra.gmra.mrb[76].mxu0 %v2781_v24  ;;  %v9728_v24 = vld [vmem:[#allocation15_spill] sm:$0xff] }
 0x67b   :  { %v5964_v49 = vpop.eup %5963  ;;  %2947 = vmatpush1.bf16.msra.mxu1 %v7880_v5  ;;  %2988 = vmatpush1.bf16.msra.mxu0 %v7886_v27 }
 0x67c   :  { %v5966_v40 = vpop.eup %5965  ;;  %v2734_v32 = vadd.f32 1.0, %v5964_v49  ;;  %2948 = vmatprep.subr.bf16.mxu1 %v7892_v30  ;;  %2989 = vmatprep.subr.bf16.mxu0 %v7898_v52 }
 0x67d   :  { %v5968_v20 = vpop.eup %5967  ;;  %v2735_v44 = vadd.f32 1.0, %v5966_v40  ;;  %2978 = vmatprep.mubr.bf16.mxu1 %v9504_v42  ;;  %3019 = vmatprep.mubr.bf16.mxu0 %v9504_v42  ;;  %v9731_v40 = vld [vmem:[#allocation68_spill] sm:$0xff] }
 0x67e   :  { %v5970_v15 = vpop.eup %5969  ;;  %v2736_v2 = vmul.f32 0.5, %v2734_v32  ;;  %v2742_v50 = vadd.f32 1.0, %v5968_v20 }
 0x67f   :  { %v5972_v43 = vpop.eup %5971  ;;  %v2737_v53 = vmul.f32 0.5, %v2735_v44  ;;  %v2743_v33 = vadd.f32 1.0, %v5970_v15  ;;  %2949 = vmatpush1.bf16.msra.mxu1 %v7906_v21  ;;  %2990 = vmatpush1.bf16.msra.mxu0 %v7912_v6  ;;  %v9732_v44 = vld [vmem:[#allocation29_spill] sm:$0xff] }
 0x680   :  { %v5974_v39 = vpop.eup %5973  ;;  %v2744_v1 = vmul.f32 0.5, %v2742_v50  ;;  %v2764_v59 = vmul.f32 %v5972_v43, %v2736_v2  ;;  %2950 = vmatprep.subr.bf16.mxu1 %v7919_v45  ;;  %2991 = vmatprep.subr.bf16.mxu0 %v7925_v57  ;;  %v9733_v15 = vld [vmem:[#allocation41_spill] sm:$0xff] }
 0x681   :  { %v2745_v36 = vmul.f32 0.5, %v2743_v33  ;;  %v2765_v4 = vmul.f32 %v5974_v39, %v2737_v53  ;;  %v5976_v38 = vpop.eup %5975  ;;  %v9734_v39 = vld [vmem:[#allocation43_spill] sm:$0xff] }
 0x682   :  { %v2762_v48 = vmul.f32 %v2758_v10, %v2744_v1  ;;  %v5978_v62 = vpop.eup %5977  ;;  %v2752_v56 = vadd.f32 1.0, %v5976_v38  ;;  %v9735_v1 = vld [vmem:[#allocation44_spill] sm:$0xff] }
 0x683   :  { %v2763_v54 = vmul.f32 %v2759_v61, %v2745_v36  ;;  %2951 = vmatpush1.bf16.msra.mxu1 %v7932_v25  ;;  %2992 = vmatpush1.bf16.msra.mxu0 %v7938_v11  ;;  %v2753_v55 = vadd.f32 1.0, %v5978_v62  ;;  %v9736_v36 = vld [vmem:[#allocation19_spill] sm:$0xff]  ;;  %v9738_v62 = vld [vmem:[#allocation21_spill] sm:$0xff] }
 0x684   :  { %v8256_v7 = vadd.f32 %v2764_v59, %v2762_v48  ;;  %2952 = vmatprep.subr.bf16.mxu1 %v7946_v17  ;;  %2993 = vmatprep.subr.bf16.mxu0 %v7952_v19  ;;  %v2754_v49 = vmul.f32 0.5, %v2752_v56  ;;  %v9739_v56 = vld [vmem:[#allocation47_spill] sm:$0xff] }
 0x685   :  { %v8260_v31 = vadd.f32 %v2765_v4, %v2763_v54  ;;  %v2755_v20 = vmul.f32 0.5, %v2753_v55 }
 0x686   :  { %5979 = vtanh.f32 %v8256_v7 }
 0x687   :  { %5981 = vtanh.f32 %v8260_v31  ;;  %2953 = vmatpush1.bf16.msra.mxu1 %v7962_v14  ;;  %2994 = vmatpush1.bf16.msra.mxu0 %v7968_v63 }
 0x688   :  { %2954 = vmatprep.subr.bf16.mxu1 %v7974_v34  ;;  %2995 = vmatprep.subr.bf16.mxu0 %v7980_v47 }
 0x68b   :  { %2955 = vmatpush1.bf16.msra.mxu1 %v7986_v60  ;;  %2996 = vmatpush1.bf16.msra.mxu0 %v7992_v22 }
 0x68c   :  { %2956 = vmatprep.subr.bf16.mxu1 %v9728_v24  ;;  %2997 = vmatprep.subr.bf16.mxu0 %v9729_v3 }
 0x68f   :  { %2957 = vmatpush1.bf16.msra.mxu1 %v9730_v18  ;;  %2998 = vmatpush1.bf16.msra.mxu0 %v9731_v40 }
 0x690   :  { %v5980_v32 = vpop.eup %5979  ;;  %2958 = vmatprep.subr.bf16.mxu1 %v9732_v44  ;;  %2999 = vmatprep.subr.bf16.mxu0 %v9733_v15 }
 0x691   :  { %v5982_v2 = vpop.eup %5981  ;;  %v2770_v50 = vmul.f32 %v5980_v32, %v2754_v49  ;;  %v9740_v32 = vld [vmem:[#allocation22_spill] sm:$0xff] }
 0x692   :  { %v2771_v43 = vmul.f32 %v5982_v2, %v2755_v20  ;;  %v9741_v20 = vld [vmem:[#allocation48_spill] sm:$0xff]  ;;  %v9742_v2 = vld [vmem:[#allocation5_spill] sm:$0xff] }
 0x693   :  { %v2935_v53 = vpack.c.bf16 %v2770_v50, %v2770_v50  ;;  %v3486_v33 = vrot.slane %v2770_v50, 6  ;;  %2959 = vmatpush1.bf16.msra.mxu1 %v9734_v39  ;;  %3000 = vmatpush1.bf16.msra.mxu0 %v9735_v1  ;;  %v9743_v50 = vld [vmem:[#allocation49_spill] sm:$0xff] }
 0x694   :  { %v2936_v10 = vpack.c.bf16 %v2771_v43, %v2771_v43  ;;  %v3487_v59 = vrot.slane %v2771_v43, 5  ;;  %2960 = vmatprep.subr.bf16.mxu1 %v9736_v36  ;;  %3001 = vmatprep.subr.bf16.mxu0 %v8052_v37  ;;  %v9744_v43 = vld [vmem:[#allocation23_spill] sm:$0xff] }
 0x695   :  { %v2939_v61 = vunpack.c.l.b16 %v2935_v53  ;;  %v9745_v53 = vld [vmem:[#allocation51_spill] sm:$0xff] }
 0x696   :  { %v2940_v4 = vunpack.c.l.b16 %v2936_v10  ;;  %v8281_v48 = vsel %vm3431_vm5, %v3487_v59, %v3486_v33  ;;  %v9746_v33 = vld [vmem:[#allocation24_spill] sm:$0xff]  ;;  %v9748_v59 = vld [vmem:[#allocation7_spill] sm:$0xff] }
 0x697   :  { %9737 = vst [vmem:[#allocation15_spill] sm:$0xff] %v8281_v48  ;;  %2961 = vmatpush1.bf16.msra.mxu1 %v8061_v58  ;;  %3002 = vmatpush1.bf16.msra.mxu0 %v8067_v12  ;;  %v2941_v54 = vrot.slane %v2939_v61, 2  ;;  %v9747_v10 = vld [vmem:[#allocation52_spill] sm:$0xff]  ;;  %v9749_v61 = vld [vmem:[#allocation53_spill] sm:$0xff] }
 0x698   :  { %v2942_v38 = vrot.slane %v2940_v4, 1  ;;  %3105 = vmatprep.subr.bf16.mxu1 %v9738_v62  ;;  %3146 = vmatprep.subr.bf16.mxu0 %v9739_v56  ;;  %v9750_v4 = vld [vmem:[#allocation8_spill] sm:$0xff]  ;;  %v9753_v62 = vld [vmem:[#allocation55_spill] sm:$0xff]  ;;  %v9754_v56 = vld [vmem:[#allocation10_spill] sm:$0xff] }
 0x69a   :  { %v2943_v55 = vsel %vm1154_vm1, %v2942_v38, %v2941_v54  ;;  %v9751_v54 = vld [vmem:[#allocation54_spill] sm:$0xff]  ;;  %v9752_v38 = vld [vmem:[#allocation9_spill] sm:$0xff] }
 0x69b   :  { %v2944_v49 = vpack.c.b16 %v2943_v55, %v2943_v55  ;;  %v9755_v55 = vld [vmem:[#allocation56_spill] sm:$0xff] }
 0x69d   :  { %2979 = vmatmul.mubr.bf16.vlgmr.msra.gmra.mrb[60].mxu1 %v2944_v49  ;;  %3020 = vmatmul.mubr.bf16.vlgmr.msra.gmra.mrb[80].mxu0 %v2944_v49  ;;  %v9756_v49 = vld [vmem:[#allocation11_spill] sm:$0xff] }
 0x69e   :  { %3106 = vmatpush1.bf16.msra.mxu1 %v9740_v32  ;;  %3147 = vmatpush1.bf16.msra.mxu0 %v9741_v20  ;;  %v9757_v32 = vld [vmem:[#allocation57_spill] sm:$0xff]  ;;  %v9758_v20 = vld [vmem:[#allocation12_spill] sm:$0xff] }
 0x69f   :  { %3107 = vmatprep.subr.bf16.mxu1 %v9742_v2  ;;  %3148 = vmatprep.subr.bf16.mxu0 %v9743_v50  ;;  %v9759_v2 = vld [vmem:[#allocation58_spill] sm:$0xff]  ;;  %v9760_v50 = vld [vmem:[#allocation25_spill] sm:$0xff] }
 0x6a0   :  { %3137 = vmatprep.mubr.bf16.mxu1 %v9504_v42  ;;  %3178 = vmatprep.mubr.bf16.mxu0 %v9504_v42 }
 0x6a2   :  { %3108 = vmatpush1.bf16.msra.mxu1 %v9744_v43  ;;  %3149 = vmatpush1.bf16.msra.mxu0 %v9745_v53  ;;  %v9761_v43 = vld [vmem:[#allocation59_spill] sm:$0xff]  ;;  %v9762_v53 = vld [vmem:[#allocation13_spill] sm:$0xff] }
 0x6a3   :  { %3109 = vmatprep.subr.bf16.mxu1 %v9746_v33  ;;  %3150 = vmatprep.subr.bf16.mxu0 %v9747_v10  ;;  %v9763_v33 = vld [vmem:[#allocation60_spill] sm:$0xff]  ;;  %v9764_v10 = vld [vmem:[#allocation61_spill] sm:$0xff] }
 0x6a6   :  { %3110 = vmatpush1.bf16.msra.mxu1 %v9748_v59  ;;  %3151 = vmatpush1.bf16.msra.mxu0 %v9749_v61  ;;  %v9765_v59 = vld [vmem:[#allocation62_spill] sm:$0xff]  ;;  %v9766_v61 = vld [vmem:[#allocation63_spill] sm:$0xff] }
 0x6a7   :  { %3111 = vmatprep.subr.bf16.mxu1 %v9750_v4  ;;  %3152 = vmatprep.subr.bf16.mxu0 %v9751_v54  ;;  %v9767_v4 = vld [vmem:[#allocation64_spill] sm:$0xff]  ;;  %v9768_v54 = vld [vmem:[#allocation65_spill] sm:$0xff] }
 0x6aa   :  { %3112 = vmatpush1.bf16.msra.mxu1 %v9752_v38  ;;  %3153 = vmatpush1.bf16.msra.mxu0 %v9753_v62  ;;  %v9769_v38 = vld [vmem:[#allocation66_spill] sm:$0xff] }
 0x6ab   :  { %3113 = vmatprep.subr.bf16.mxu1 %v9754_v56  ;;  %3154 = vmatprep.subr.bf16.mxu0 %v9755_v55  ;;  %v9770_v62 = vld [vmem:[#allocation2_spill] sm:$0xff]  ;;  %v9771_v56 = vld [vmem:[#allocation20_spill] sm:$0xff] }
 0x6ae   :  { %3114 = vmatpush1.bf16.msra.mxu1 %v9756_v49  ;;  %3155 = vmatpush1.bf16.msra.mxu0 %v9757_v32 }
 0x6af   :  { %3115 = vmatprep.subr.bf16.mxu1 %v9758_v20  ;;  %3156 = vmatprep.subr.bf16.mxu0 %v9759_v2 }
 0x6b2   :  { %3116 = vmatpush1.bf16.msra.mxu1 %v9760_v50  ;;  %3157 = vmatpush1.bf16.msra.mxu0 %v9761_v43 }
 0x6b3   :  { %3117 = vmatprep.subr.bf16.mxu1 %v9762_v53  ;;  %3158 = vmatprep.subr.bf16.mxu0 %v9763_v33 }
 0x6b6   :  { %3118 = vmatpush1.bf16.msra.mxu1 %v9764_v10  ;;  %3159 = vmatpush1.bf16.msra.mxu0 %v9765_v59 }
 0x6b7   :  { %3119 = vmatprep.subr.bf16.mxu1 %v9766_v61  ;;  %3160 = vmatprep.subr.bf16.mxu0 %v9767_v4 }
 0x6ba   :  { %3120 = vmatpush1.bf16.msra.mxu1 %v9768_v54  ;;  %3161 = vmatpush1.bf16.msra.mxu0 %v9769_v38 }
 0x6bb   :  { %3267 = vmatprep.subr.bf16.mxu1 %v9770_v62  ;;  %3308 = vmatprep.subr.bf16.mxu0 %v9771_v56 }
 0x74d   :  { %v2817_v55 = vpop.f32.mrb[56].mxu1  ;;  %v2858_v49 = vpop.f32.mrb[76].mxu0 }
 0x74e   :  { %v2869_v32 = vrot.slane %v2817_v55, 2  ;;  %v2873_v20 = vrot.slane %v2817_v55, 3  ;;  %v2819_v2 = vpop.f32.mrb[57].mxu1  ;;  %v2860_v50 = vpop.f32.mrb[77].mxu0  ;;  %v2871_v4 = vrot.slane %v2858_v49, 2  ;;  %v2875_v62 = vrot.slane %v2858_v49, 3 }
 0x74f   :  { %v2870_v43 = vrot.slane %v2819_v2, 2  ;;  %v2874_v53 = vrot.slane %v2819_v2, 3  ;;  %v2821_v33 = vpop.f32.mrb[58].mxu1  ;;  %v2862_v10 = vpop.f32.mrb[78].mxu0  ;;  %v9773_v49 = vld [vmem:[#allocation33_spill] sm:$0xff] }
 0x750   :  { %v2885_v59 = vadd.f32 %v2869_v32, %v9545_v46  ;;  %v2889_v61 = vadd.f32 %v2873_v20, %v9682_v51  ;;  %v2822_v54 = vpop.f32.mrb[59].mxu1  ;;  %v2863_v38 = vpop.f32.mrb[79].mxu0  ;;  %v2887_v2 = vadd.f32 %v2871_v4, %v9685_v13  ;;  %v9772_v33 = vld [vmem:[#allocation34_spill] sm:$0xff]  ;;  %v2872_v10 = vrot.slane %v2860_v50, 2 }
 0x751   :  { %v2886_v56 = vadd.f32 %v2870_v43, %v9683_v41  ;;  %v2890_v48 = vadd.f32 %v2874_v53, %v9684_v23  ;;  %v2891_v32 = vadd.f32 %v2875_v62, %v9772_v33  ;;  %v2876_v20 = vrot.slane %v2860_v50, 3  ;;  %v9774_v54 = vld [vmem:[#allocation35_spill] sm:$0xff] }
 0x752   :  { %v2893_v12 = vmul.f32 0.5, %v2885_v59  ;;  %v2894_v55 = vmul.f32 0.5, %v2889_v61  ;;  %v2888_v43 = vadd.f32 %v2872_v10, %v9773_v49  ;;  %v9775_v10 = vld [vmem:[#allocation69_spill] sm:$0xff] }
 0x753   :  { %v2901_v58 = vmul.f32 0.5, %v2886_v56  ;;  %v2902_v37 = vmul.f32 0.5, %v2890_v48  ;;  %v2892_v53 = vadd.f32 %v2876_v20, %v9774_v54  ;;  %v2921_v49 = vrot.slane %v9775_v10, 7  ;;  %v9776_v54 = vld [vmem:[#allocation70_spill] sm:$0xff] }
 0x754   :  { %5983 = vtanh.f32 %v2893_v12  ;;  %v2911_v59 = vmul.f32 0.5, %v2888_v43 }
 0x755   :  { %5985 = vtanh.f32 %v2894_v55  ;;  %v2912_v38 = vmul.f32 0.5, %v2892_v53  ;;  %v2922_v53 = vrot.slane %v9776_v54, 7 }
 0x756   :  { %5987 = vtanh.f32 %v2901_v58 }
 0x757   :  { %5989 = vtanh.f32 %v2902_v37 }
 0x758   :  { %5991 = vtanh.f32 %v2887_v2 }
 0x759   :  { %5993 = vtanh.f32 %v2891_v32 }
 0x75a   :  { %5995 = vtanh.f32 %v2911_v59 }
 0x75b   :  { %5997 = vtanh.f32 %v2912_v38 }
 0x75e   :  { %v5984_v61 = vpop.eup %5983 }
 0x75f   :  { %v5986_v48 = vpop.eup %5985  ;;  %v2897_v12 = vadd.f32 1.0, %v5984_v61 }
 0x760   :  { %v5988_v56 = vpop.eup %5987  ;;  %v2898_v4 = vadd.f32 1.0, %v5986_v48 }
 0x761   :  { %v5990_v55 = vpop.eup %5989  ;;  %v2899_v13 = vmul.f32 0.5, %v2897_v12  ;;  %v2905_v62 = vadd.f32 1.0, %v5988_v56 }
 0x762   :  { %v5992_v58 = vpop.eup %5991  ;;  %v2900_v50 = vmul.f32 0.5, %v2898_v4  ;;  %v2906_v37 = vadd.f32 1.0, %v5990_v55 }
 0x763   :  { %v5994_v2 = vpop.eup %5993  ;;  %v2907_v32 = vmul.f32 0.5, %v2905_v62  ;;  %v2927_v20 = vmul.f32 %v5992_v58, %v2899_v13 }
 0x764   :  { %v2908_v43 = vmul.f32 0.5, %v2906_v37  ;;  %v2928_v33 = vmul.f32 %v5994_v2, %v2900_v50  ;;  %v5996_v59 = vpop.eup %5995 }
 0x765   :  { %v2925_v61 = vmul.f32 %v2921_v49, %v2907_v32  ;;  %v5998_v38 = vpop.eup %5997  ;;  %v2915_v56 = vadd.f32 1.0, %v5996_v59 }
 0x766   :  { %v2926_v23 = vmul.f32 %v2922_v53, %v2908_v43  ;;  %v2916_v4 = vadd.f32 1.0, %v5998_v38  ;;  %v9779_v43 = vld [vmem:[#allocation37_spill] sm:$0xff] }
 0x767   :  { %v8332_v48 = vadd.f32 %v2927_v20, %v2925_v61  ;;  %v2917_v50 = vmul.f32 0.5, %v2915_v56 }
 0x768   :  { %v8334_v12 = vadd.f32 %v2928_v33, %v2926_v23  ;;  %v2918_v20 = vmul.f32 0.5, %v2916_v4 }
 0x769   :  { %9777 = vst [vmem:[#allocation16_spill] sm:$0xff] %v8332_v48  ;;  %5999 = vtanh.f32 %v8332_v48 }
 0x76a   :  { %9778 = vst [vmem:[#allocation67_spill] sm:$0xff] %v8334_v12  ;;  %6001 = vtanh.f32 %v8334_v12 }
 0x770   :  { %v2980_v55 = vpop.f32.mrb[60].mxu1  ;;  %v3021_v13 = vpop.f32.mrb[80].mxu0 }
 0x771   :  { %v3032_v62 = vrot.slane %v2980_v55, 7  ;;  %v3048_v54 = vadd.f32 %v2980_v55, %v6995_v9  ;;  %v2982_v58 = vpop.f32.mrb[61].mxu1  ;;  %v3023_v49 = vpop.f32.mrb[81].mxu0  ;;  %v3050_v37 = vadd.f32 %v3021_v13, %v7012_v8  ;;  %v3034_v59 = vrot.slane %v3021_v13, 7 }
 0x772   :  { %v3033_v23 = vrot.slane %v2982_v58, 7  ;;  %v3049_v33 = vadd.f32 %v2982_v58, %v6984_v0  ;;  %v2984_v2 = vpop.f32.mrb[62].mxu1  ;;  %v3025_v32 = vpop.f32.mrb[82].mxu0  ;;  %v3035_v56 = vrot.slane %v3023_v49, 7 }
 0x773   :  { %v6000_v10 = vpop.eup %5999  ;;  %v3044_v53 = vadd.f32 %v3032_v62, %v9779_v43  ;;  %v3053_v61 = vmul.f32 0.5, %v3048_v54  ;;  %v2985_v38 = vpop.f32.mrb[63].mxu1  ;;  %v3046_v13 = vadd.f32 %v3034_v59, %v7006_v35 }
 0x774   :  { %v3026_v12 = vpop.f32.mrb[83].mxu0  ;;  %v6002_v48 = vpop.eup %6001  ;;  %v2933_v55 = vmul.f32 %v6000_v10, %v2917_v50  ;;  %v3045_v9 = vadd.f32 %v3033_v23, %v6980_v26  ;;  %v3061_v51 = vmul.f32 0.5, %v3049_v33 }
 0x775   :  { %v2934_v41 = vmul.f32 %v6002_v48, %v2918_v20  ;;  %v3052_v8 = vmul.f32 0.5, %v3044_v53  ;;  %6003 = vtanh.f32 %v3053_v61 }
 0x776   :  { %v3094_v58 = vpack.c.bf16 %v2933_v55, %v2933_v55  ;;  %v3455_v2 = vrot.slane %v2933_v55, 2  ;;  %6005 = vtanh.f32 %v3050_v37  ;;  %v3060_v32 = vmul.f32 0.5, %v3045_v9 }
 0x777   :  { %v3095_v4 = vpack.c.bf16 %v2934_v41, %v2934_v41  ;;  %v3456_v0 = vrot.slane %v2934_v41, 1  ;;  %6007 = vtanh.f32 %v3052_v8  ;;  %v3047_v37 = vadd.f32 %v3035_v56, %v7009_v29 }
 0x778   :  { %v3098_v62 = vunpack.c.l.b16 %v3094_v58  ;;  %6009 = vtanh.f32 %v3060_v32  ;;  %v3051_v41 = vadd.f32 %v3023_v49, %v7015_v28 }
 0x779   :  { %v3099_v12 = vunpack.c.l.b16 %v3095_v4  ;;  %6011 = vtanh.f32 %v3061_v51  ;;  %v3457_v54 = vsel %vm3431_vm5, %v3456_v0, %v3455_v2  ;;  %v3070_v10 = vmul.f32 0.5, %v3047_v37  ;;  %v5695_v37 = vld [vmem:[%s9238_s8 + $0x20] ss:$8 sps:$4 sm:$0xff]  }
 0x77a   :  { %v3100_v50 = vrot.slane %v3098_v62, 6  ;;  %v8347_v48 = vsel %vm3466_vm6, %v8237_v16, %v3457_v54  ;;  %6013 = vtanh.f32 %v3046_v13  ;;  %v3071_v53 = vmul.f32 0.5, %v3051_v41  ;;  %v5692_v54 = vld [vmem:[%s9238_s8 + $0x10] ss:$8 sps:$4 sm:$0xff]  }
 0x77b   :  { %v3101_v9 = vrot.slane %v3099_v12, 5  ;;  %6015 = vtanh.f32 %v3070_v10  ;;  %v3080_v2 = vrot.slane %v8256_v7, 1  ;;  %v5698_v41 = vld [vmem:[%s9238_s8 + $0x30] ss:$8 sps:$4 sm:$0xff]   ;;  %vm5133_vm5 = vcmask 97280  }
 0x77c   :  { %6017 = vtanh.f32 %v3071_v53  ;;  %v5704_v10 = vld [vmem:[%s9238_s8 + $0x50] ss:$8 sps:$4 sm:$0xff]   ;;  %v5712_v53 = vld [vmem:[%s9238_s8 + $0x74] ss:$8 sps:$4 sm:$0xff]  }
 0x77d   :  { %v3102_v8 = vsel %vm1154_vm1, %v3101_v9, %v3100_v50  ;;  %v5697_v50 = vld [vmem:[%s9238_s8 + $0x24] ss:$8 sps:$4 sm:$0xff]   ;;  %v5700_v9 = vld [vmem:[%s9238_s8 + $0x34] ss:$8 sps:$4 sm:$0xff]  }
 0x77e   :  { %v3103_v23 = vpack.c.b16 %v3102_v8, %v3102_v8  ;;  %v5703_v8 = vld [vmem:[%s9238_s8 + $0x44] ss:$8 sps:$4 sm:$0xff]  }
 0x77f   :  { %v6004_v33 = vpop.eup %6003 }
 0x780   :  { %v6006_v20 = vpop.eup %6005  ;;  %v3057_v51 = vadd.f32 1.0, %v6004_v33  ;;  %3138 = vmatmul.mubr.bf16.vlgmr.msra.gmra.mrb[64].mxu1 %v3103_v23  ;;  %3179 = vmatmul.mubr.bf16.vlgmr.msra.gmra.mrb[84].mxu0 %v3103_v23  ;;  %v5701_v23 = vld [vmem:[%s9238_s8 + $0x40] ss:$8 sps:$4 sm:$0xff]   ;;  %v5706_v33 = vld [vmem:[%s9238_s8 + $0x54] ss:$8 sps:$4 sm:$0xff]  }
 0x781   :  { %v6008_v0 = vpop.eup %6007  ;;  %3268 = vmatpush1.bf16.msra.mxu1 %v7880_v5  ;;  %3309 = vmatpush1.bf16.msra.mxu0 %v7886_v27 }
 0x782   :  { %v6010_v16 = vpop.eup %6009  ;;  %v3056_v61 = vadd.f32 1.0, %v6008_v0  ;;  %v3059_v59 = vmul.f32 0.5, %v3057_v51  ;;  %3269 = vmatprep.subr.bf16.mxu1 %v7892_v30  ;;  %3310 = vmatprep.subr.bf16.mxu0 %v7898_v52  ;;  %v3081_v52 = vrot.slane %v8260_v31, 1  ;;  %v5707_v51 = vld [vmem:[%s9238_s8 + $0x60] ss:$8 sps:$4 sm:$0xff]  }
 0x783   :  { %v6012_v49 = vpop.eup %6011  ;;  %v3064_v38 = vadd.f32 1.0, %v6010_v16  ;;  %3299 = vmatprep.mubr.bf16.mxu1 %v9504_v42  ;;  %3340 = vmatprep.mubr.bf16.mxu0 %v9504_v42  ;;  %v5710_v0 = vld [vmem:[%s9238_s8 + $0x70] ss:$8 sps:$4 sm:$0xff]   ;;  %v5715_v16 = vld [vmem:[%s9238_s8 + $0x84] ss:$8 sps:$4 sm:$0xff]  }
 0x784   :  { %v3058_v55 = vmul.f32 0.5, %v3056_v61  ;;  %v3065_v56 = vadd.f32 1.0, %v6012_v49  ;;  %v3087_v58 = vmul.f32 %v6006_v20, %v3059_v59  ;;  %v6014_v5 = vpop.eup %6013  ;;  %v5709_v20 = vld [vmem:[%s9238_s8 + $0x64] ss:$8 sps:$4 sm:$0xff]   ;;  %v5713_v61 = vld [vmem:[%s9238_s8 + $0x80] ss:$8 sps:$4 sm:$0xff]  }
 0x785   :  { %v3066_v27 = vmul.f32 0.5, %v3064_v38  ;;  %3270 = vmatpush1.bf16.msra.mxu1 %v7906_v21  ;;  %3311 = vmatpush1.bf16.msra.mxu0 %v7912_v6  ;;  %v6016_v21 = vpop.eup %6015  ;;  %v5718_v59 = vld [vmem:[%s9238_s8 + $0x94] ss:$8 sps:$4 sm:$0xff]   ;;  %v5716_v49 = vld [vmem:[%s9238_s8 + $0x90] ss:$8 sps:$4 sm:$0xff]  }
 0x786   :  { %v3067_v30 = vmul.f32 0.5, %v3065_v56  ;;  %v3086_v32 = vmul.f32 %v6014_v5, %v3058_v55  ;;  %3271 = vmatprep.subr.bf16.mxu1 %v7919_v45  ;;  %3312 = vmatprep.subr.bf16.mxu0 %v7925_v57  ;;  %v6018_v6 = vpop.eup %6017  ;;  %v3074_v45 = vadd.f32 1.0, %v6016_v21  ;;  %v5721_v38 = vld [vmem:[%s9238_s8 + $0xa4] ss:$8 sps:$4 sm:$0xff]   ;;  %v5719_v55 = vld [vmem:[%s9238_s8 + $0xa0] ss:$8 sps:$4 sm:$0xff]  }
 0x787   :  { %v3084_v42 = vmul.f32 %v3080_v2, %v3066_v27  ;;  %v3075_v57 = vadd.f32 1.0, %v6018_v6  ;;  %v5724_v56 = vld [vmem:[%s9238_s8 + $0xb4] ss:$8 sps:$4 sm:$0xff]   ;;  %v5727_v5 = vld [vmem:[%s9238_s8 + $0xc4] ss:$8 sps:$4 sm:$0xff]  }
 0x788   :  { %v3085_v4 = vmul.f32 %v3081_v52, %v3067_v30  ;;  %v5725_v27 = vld [vmem:[%s9238_s8 + $0xc0] ss:$8 sps:$4 sm:$0xff]   ;;  %v5730_v2 = vld [vmem:[%s9238_s8 + $0xd4] ss:$8 sps:$4 sm:$0xff]   ;;  %v5728_v30 = vld [vmem:[%s9238_s8 + $0xd0] ss:$8 sps:$4 sm:$0xff]  }
 0x789   :  { %v8364_v13 = vadd.f32 %v3086_v32, %v3084_v42  ;;  %3272 = vmatpush1.bf16.msra.mxu1 %v7932_v25  ;;  %3313 = vmatpush1.bf16.msra.mxu0 %v7938_v11  ;;  %v3076_v25 = vmul.f32 0.5, %v3074_v45  ;;  %v5733_v52 = vld [vmem:[%s9238_s8 + $0xe4] ss:$8 sps:$4 sm:$0xff]   ;;  %v5731_v32 = vld [vmem:[%s9238_s8 + $0xe0] ss:$8 sps:$4 sm:$0xff]  }
 0x78a   :  { %v8368_v7 = vadd.f32 %v3087_v58, %v3085_v4  ;;  %3273 = vmatprep.subr.bf16.mxu1 %v7946_v17  ;;  %3314 = vmatprep.subr.bf16.mxu0 %v7952_v19  ;;  %v3077_v17 = vmul.f32 0.5, %v3075_v57  ;;  %v5722_v58 = vld [vmem:[%s9238_s8 + $0xb0] ss:$8 sps:$4 sm:$0xff]   ;;  %v5736_v42 = vld [vmem:[%s9238_s8 + $0xf4] ss:$8 sps:$4 sm:$0xff]   ;;  %v3794_v21 = vld [vmem:[%s9239_s10 + $0x80] sm:$0xff] }
 0x78b   :  { %6019 = vtanh.f32 %v8364_v13  ;;  %v5734_v4 = vld [vmem:[%s9238_s8 + $0xf0] ss:$8 sps:$4 sm:$0xff]   ;;  %v3795_v6 = vld [vmem:[%s9239_s10 + $0x88] sm:$0xff]  ;;  %v3778_v45 = vld [vmem:[%s9239_s10] sm:$0xff] }
 0x78c   :  { %6021 = vtanh.f32 %v8368_v7  ;;  %v5349_v57 = vpack.c.bf16 %v3795_v6, %v3794_v21  ;;  %v9788_v21 = vld [vmem:[#allocation33_spill] sm:$0xff] }
 0x78d   :  { %3274 = vmatpush1.bf16.msra.mxu1 %v7962_v14  ;;  %3315 = vmatpush1.bf16.msra.mxu0 %v7968_v63 }
 0x78e   :  { %3275 = vmatprep.subr.bf16.mxu1 %v7974_v34  ;;  %3316 = vmatprep.subr.bf16.mxu0 %v7980_v47 }
 0x791   :  { %3276 = vmatpush1.bf16.msra.mxu1 %v7986_v60  ;;  %3317 = vmatpush1.bf16.msra.mxu0 %v7992_v22 }
 0x792   :  { %3277 = vmatprep.subr.bf16.mxu1 %v9728_v24  ;;  %3318 = vmatprep.subr.bf16.mxu0 %v9729_v3  ;;  %v9780_v24 = vld [vmem:[#allocation45_spill] sm:$0xff] }
 0x795   :  { %v6020_v11 = vpop.eup %6019  ;;  %3278 = vmatpush1.bf16.msra.mxu1 %v9730_v18  ;;  %3319 = vmatpush1.bf16.msra.mxu0 %v9731_v40 }
 0x796   :  { %v6022_v19 = vpop.eup %6021  ;;  %v3092_v14 = vmul.f32 %v6020_v11, %v3076_v25  ;;  %3279 = vmatprep.subr.bf16.mxu1 %v9732_v44  ;;  %3320 = vmatprep.subr.bf16.mxu0 %v9733_v15  ;;  %v9781_v44 = vld [vmem:[#allocation40_spill] sm:$0xff]  ;;  %v9782_v15 = vld [vmem:[#allocation46_spill] sm:$0xff]  ;;  %v3779_v25 = vld [vmem:[%s9239_s10 + $0x8] sm:$0xff] }
 0x797   :  { %v3093_v63 = vmul.f32 %v6022_v19, %v3077_v17  ;;  %v3796_v11 = vld [vmem:[%s9239_s10 + $0x90] sm:$0xff]  ;;  %v3797_v17 = vld [vmem:[%s9239_s10 + $0x98] sm:$0xff]  ;;  %v5351_v19 = vpack.c.bf16 %v3779_v25, %v3778_v45  ;;  %v9789_v45 = vld [vmem:[#allocation35_spill] sm:$0xff] }
 0x798   :  { %v3257_v34 = vpack.c.bf16 %v3092_v14, %v3092_v14  ;;  %v3480_v47 = vrot.slane %v3092_v14, 7  ;;  %v5353_v14 = vpack.c.bf16 %v3797_v17, %v3796_v11 }
 0x799   :  { %v3258_v60 = vpack.c.bf16 %v3093_v63, %v3093_v63  ;;  %v3481_v22 = vrot.slane %v3093_v63, 6  ;;  %3280 = vmatpush1.bf16.msra.mxu1 %v9734_v39  ;;  %3321 = vmatpush1.bf16.msra.mxu0 %v9735_v1  ;;  %v5691_v39 = vld [vmem:[%s9238_s8 + $0x4] ss:$8 sps:$4 sm:$0xff]   ;;  %v5689_v1 = vld [vmem:[%s9238_s8] ss:$8 sps:$4 sm:$0xff]   ;;  %v3780_v63 = vld [vmem:[%s9239_s10 + $0x10] sm:$0xff] }
 0x79a   :  { %v3261_v31 = vunpack.c.l.b16 %v3257_v34  ;;  %3281 = vmatprep.subr.bf16.mxu1 %v9736_v36  ;;  %3322 = vmatprep.subr.bf16.mxu0 %v9780_v24  ;;  %v5694_v36 = vld [vmem:[%s9238_s8 + $0x14] ss:$8 sps:$4 sm:$0xff]   ;;  %v3782_v24 = vld [vmem:[%s9239_s10 + $0x20] sm:$0xff] }
 0x79b   :  { %v8391_v3 = vsel %vm3424_vm3, %v3481_v22, %v3480_v47  ;;  %v3262_v18 = vunpack.c.l.b16 %v3258_v60  ;;  %v3781_v34 = vld [vmem:[%s9239_s10 + $0x18] sm:$0xff]  ;;  %v3798_v47 = vld [vmem:[%s9239_s10 + $0xa0] sm:$0xff]  ;;  %v3799_v60 = vld [vmem:[%s9239_s10 + $0xa8] sm:$0xff]  ;;  %vm5119_vm3 = vcmask 33792  }
 0x79c   :  { %v3263_v40 = vrot.slane %v3261_v31, 1  ;;  %v5355_v22 = vpack.c.bf16 %v3781_v34, %v3780_v63  ;;  %v5357_v31 = vpack.c.bf16 %v3799_v60, %v3798_v47 }
 0x79d   :  { %3282 = vmatpush1.bf16.msra.mxu1 %v9781_v44  ;;  %3323 = vmatpush1.bf16.msra.mxu0 %v9782_v15  ;;  %v3801_v44 = vld [vmem:[%s9239_s10 + $0xb8] sm:$0xff] }
 0x79e   :  { %v3264_v62 = vsel %vm1154_vm1, %v3262_v18, %v3263_v40  ;;  %3731 = vmatprep.subr.bf16.mxu1 %v5691_v39  ;;  %5350 = vmatprep.subr.bf16.mxu0 %v5349_v57  ;;  %v3783_v18 = vld [vmem:[%s9239_s10 + $0x28] sm:$0xff]  ;;  %v3800_v40 = vld [vmem:[%s9239_s10 + $0xb0] sm:$0xff]  ;;  %v3785_v39 = vld [vmem:[%s9239_s10 + $0x38] sm:$0xff] }
 0x79f   :  { %v3265_v12 = vpack.c.b16 %v3264_v62, %v3264_v62  ;;  %v5359_v15 = vpack.c.bf16 %v3783_v18, %v3782_v24  ;;  %v5361_v62 = vpack.c.bf16 %v3801_v44, %v3800_v40 }
 0x7a1   :  { %3300 = vmatmul.mubr.bf16.vlgmr.msra.gmra.mrb[68].mxu1 %v3265_v12  ;;  %3341 = vmatmul.mubr.bf16.vlgmr.msra.gmra.mrb[88].mxu0 %v3265_v12  ;;  %v3784_v12 = vld [vmem:[%s9239_s10 + $0x30] sm:$0xff] }
 0x7a2   :  { %3732 = vmatpush1.bf16.msra.mxu1 %v5689_v1  ;;  %5352 = vmatpush3.bf16.msra.mxu0 %v5351_v19  ;;  %v5363_v1 = vpack.c.bf16 %v3785_v39, %v3784_v12 }
 0x7a3   :  { %3733 = vmatprep.subr.bf16.mxu1 %v5694_v36  ;;  %5354 = vmatprep.subr.bf16.mxu0 %v5353_v14 }
 0x7a6   :  { %3734 = vmatpush1.bf16.msra.mxu1 %v5692_v54  ;;  %5356 = vmatpush3.bf16.msra.mxu0 %v5355_v22 }
 0x7a7   :  { %3735 = vmatprep.subr.bf16.mxu1 %v5697_v50  ;;  %5358 = vmatprep.subr.bf16.mxu0 %v5357_v31 }
 0x7aa   :  { %3736 = vmatpush1.bf16.msra.mxu1 %v5695_v37  ;;  %5360 = vmatpush3.bf16.msra.mxu0 %v5359_v15  ;;  %v9790_v15 = vld [vmem:[#allocation16_spill] sm:$0xff] }
 0x7ab   :  { %3737 = vmatprep.subr.bf16.mxu1 %v5700_v9  ;;  %5362 = vmatprep.subr.bf16.mxu0 %v5361_v62  ;;  %v3243_v62 = vrot.slane %v9790_v15, 7 }
 0x7ae   :  { %3738 = vmatpush1.bf16.msra.mxu1 %v5698_v41  ;;  %5364 = vmatpush3.bf16.msra.mxu0 %v5363_v1  ;;  %v9791_v1 = vld [vmem:[#allocation67_spill] sm:$0xff] }
 0x7af   :  { %3739 = vmatprep.subr.bf16.mxu1 %v5703_v8 }
 0x7b2   :  { %3740 = vmatpush1.bf16.msra.mxu1 %v5701_v23 }
 0x7b3   :  { %3741 = vmatprep.subr.bf16.mxu1 %v5706_v33 }
 0x7b6   :  { %3742 = vmatpush1.bf16.msra.mxu1 %v5704_v10 }
 0x7b7   :  { %3743 = vmatprep.subr.bf16.mxu1 %v5709_v20 }
 0x7ba   :  { %3744 = vmatpush1.bf16.msra.mxu1 %v5707_v51  ;;  %v9783_v51 = vld [vmem:[#allocation31_spill] sm:$0xff] }
 0x7bb   :  { %3745 = vmatprep.subr.bf16.mxu1 %v5712_v53 }
 0x7be   :  { %3746 = vmatpush1.bf16.msra.mxu1 %v5710_v0 }
 0x7bf   :  { %3747 = vmatprep.subr.bf16.mxu1 %v5715_v16 }
 0x7c2   :  { %3748 = vmatpush1.bf16.msra.mxu1 %v5713_v61 }
 0x7c3   :  { %3749 = vmatprep.subr.bf16.mxu1 %v5718_v59 }
 0x7c6   :  { %3750 = vmatpush1.bf16.msra.mxu1 %v5716_v49  ;;  %v9784_v49 = vld [vmem:[#allocation28_spill] sm:$0xff] }
 0x7c7   :  { %3751 = vmatprep.subr.bf16.mxu1 %v5721_v38 }
 0x7ca   :  { %3752 = vmatpush1.bf16.msra.mxu1 %v5719_v55  ;;  %v9785_v55 = vld [vmem:[#allocation30_spill] sm:$0xff] }
 0x7cb   :  { %3753 = vmatprep.subr.bf16.mxu1 %v5724_v56 }
 0x7ce   :  { %3754 = vmatpush1.bf16.msra.mxu1 %v5722_v58 }
 0x7cf   :  { %3755 = vmatprep.subr.bf16.mxu1 %v5727_v5 }
 0x7d2   :  { %3756 = vmatpush1.bf16.msra.mxu1 %v5725_v27 }
 0x7d3   :  { %3757 = vmatprep.subr.bf16.mxu1 %v5730_v2 }
 0x7d6   :  { %3758 = vmatpush1.bf16.msra.mxu1 %v5728_v30  ;;  %v9786_v30 = vld [vmem:[#allocation32_spill] sm:$0xff] }
 0x7d7   :  { %3759 = vmatprep.subr.bf16.mxu1 %v5733_v52 }
 0x7da   :  { %3760 = vmatpush1.bf16.msra.mxu1 %v5731_v32  ;;  %v9787_v32 = vld [vmem:[#allocation34_spill] sm:$0xff] }
 0x7db   :  { %3761 = vmatprep.subr.bf16.mxu1 %v5736_v42 }
 0x7de   :  { %3762 = vmatpush1.bf16.msra.mxu1 %v5734_v4 }
 0x853   :  { %v3139_v36 = vpop.f32.mrb[64].mxu1  ;;  %v3180_v54 = vpop.f32.mrb[84].mxu0 }
 0x854   :  { %v3191_v50 = vrot.slane %v3139_v36, 1  ;;  %v3195_v37 = vrot.slane %v3139_v36, 2  ;;  %v3141_v9 = vpop.f32.mrb[65].mxu1  ;;  %v3182_v41 = vpop.f32.mrb[85].mxu0  ;;  %v3193_v0 = vrot.slane %v3180_v54, 1  ;;  %v3197_v59 = vrot.slane %v3180_v54, 2 }
 0x855   :  { %v3192_v8 = vrot.slane %v3141_v9, 1  ;;  %v3196_v23 = vrot.slane %v3141_v9, 2  ;;  %v3143_v33 = vpop.f32.mrb[66].mxu1  ;;  %v3184_v10 = vpop.f32.mrb[86].mxu0  ;;  %v3194_v42 = vrot.slane %v3182_v41, 1  ;;  %v3198_v4 = vrot.slane %v3182_v41, 2 }
 0x856   :  { %v3207_v20 = vadd.f32 %v3191_v50, %v9545_v46  ;;  %v3211_v53 = vadd.f32 %v3195_v37, %v9783_v51  ;;  %v3144_v16 = vpop.f32.mrb[67].mxu1  ;;  %v3185_v61 = vpop.f32.mrb[87].mxu0  ;;  %v3209_v52 = vadd.f32 %v3193_v0, %v9786_v30  ;;  %v3213_v46 = vadd.f32 %v3197_v59, %v9787_v32 }
 0x857   :  { %v3208_v38 = vadd.f32 %v3192_v8, %v9784_v49  ;;  %v3212_v56 = vadd.f32 %v3196_v23, %v9785_v55  ;;  %v3210_v6 = vadd.f32 %v3194_v42, %v9788_v21  ;;  %v3214_v57 = vadd.f32 %v3198_v4, %v9789_v45 }
 0x858   :  { %v3215_v58 = vmul.f32 0.5, %v3207_v20  ;;  %v3216_v5 = vmul.f32 0.5, %v3211_v53  ;;  %v3244_v36 = vrot.slane %v9791_v1, 7 }
 0x859   :  { %v3223_v27 = vmul.f32 0.5, %v3208_v38  ;;  %v3224_v2 = vmul.f32 0.5, %v3212_v56  ;;  %v3233_v25 = vmul.f32 0.5, %v3210_v6  ;;  %v3234_v17 = vmul.f32 0.5, %v3214_v57 }
 0x85a   :  { %6023 = vtanh.f32 %v3215_v58  ;;  %v9792_v58 = vld [vmem:[#allocation38_spill] sm:$0xff] }
 0x85b   :  { %6025 = vtanh.f32 %v3216_v5 }
 0x85c   :  { %6027 = vtanh.f32 %v3223_v27 }
 0x85d   :  { %6029 = vtanh.f32 %v3224_v2 }
 0x85e   :  { %6031 = vtanh.f32 %v3209_v52 }
 0x85f   :  { %6033 = vtanh.f32 %v3213_v46  ;;  %v9793_v46 = vld [vmem:[#allocation36_spill] sm:$0xff] }
 0x860   :  { %6035 = vtanh.f32 %v3233_v25  ;;  %v9794_v25 = vld [vmem:[#allocation39_spill] sm:$0xff] }
 0x861   :  { %6037 = vtanh.f32 %v3234_v17 }
 0x864   :  { %v6024_v11 = vpop.eup %6023 }
 0x865   :  { %v6026_v19 = vpop.eup %6025  ;;  %v3219_v14 = vadd.f32 1.0, %v6024_v11 }
 0x866   :  { %v6028_v63 = vpop.eup %6027  ;;  %v3220_v34 = vadd.f32 1.0, %v6026_v19 }
 0x867   :  { %v6030_v47 = vpop.eup %6029  ;;  %v3221_v60 = vmul.f32 0.5, %v3219_v14  ;;  %v3227_v22 = vadd.f32 1.0, %v6028_v63 }
 0x868   :  { %v6032_v31 = vpop.eup %6031  ;;  %v3222_v24 = vmul.f32 0.5, %v3220_v34  ;;  %v3228_v18 = vadd.f32 1.0, %v6030_v47 }
 0x869   :  { %v6034_v40 = vpop.eup %6033  ;;  %v3229_v44 = vmul.f32 0.5, %v3227_v22  ;;  %v3249_v12 = vmul.f32 %v6032_v31, %v3221_v60 }
 0x86a   :  { %v3230_v39 = vmul.f32 0.5, %v3228_v18  ;;  %v3250_v54 = vmul.f32 %v6034_v40, %v3222_v24  ;;  %v6036_v8 = vpop.eup %6035 }
 0x86b   :  { %v3247_v50 = vmul.f32 %v3243_v62, %v3229_v44  ;;  %v6038_v23 = vpop.eup %6037  ;;  %v3237_v33 = vadd.f32 1.0, %v6036_v8 }
 0x86c   :  { %v3248_v37 = vmul.f32 %v3244_v36, %v3230_v39  ;;  %v3238_v51 = vadd.f32 1.0, %v6038_v23 }
 0x86d   :  { %v3251_v9 = vadd.f32 %v3249_v12, %v3247_v50  ;;  %v3239_v32 = vmul.f32 0.5, %v3237_v33 }
 0x86e   :  { %v3252_v41 = vadd.f32 %v3250_v54, %v3248_v37  ;;  %v3240_v21 = vmul.f32 0.5, %v3238_v51  ;;  %v3402_v37 = vrot.slane %v8368_v7, 1 }
 0x86f   :  { %6039 = vtanh.f32 %v3251_v9 }
 0x870   :  { %6041 = vtanh.f32 %v3252_v41 }
 0x874   :  { %v3301_v10 = vpop.f32.mrb[68].mxu1  ;;  %v3342_v20 = vpop.f32.mrb[88].mxu0 }
 0x875   :  { %v3353_v53 = vrot.slane %v3301_v10, 1  ;;  %v3365_v0 = vadd.f32 %v3301_v10, %v9779_v43  ;;  %v3303_v16 = vpop.f32.mrb[69].mxu1  ;;  %v3344_v61 = vpop.f32.mrb[89].mxu0  ;;  %v3367_v59 = vadd.f32 %v3342_v20, %v7006_v35  ;;  %v3355_v2 = vrot.slane %v3342_v20, 1 }
 0x876   :  { %v3354_v49 = vrot.slane %v3303_v16, 1  ;;  %v3366_v38 = vadd.f32 %v3303_v16, %v6980_v26  ;;  %v3305_v55 = vpop.f32.mrb[70].mxu1  ;;  %v3346_v56 = vpop.f32.mrb[90].mxu0  ;;  %v3356_v19 = vrot.slane %v3344_v61, 1  ;;  %v3368_v63 = vadd.f32 %v3344_v61, %v7009_v29 }
 0x877   :  { %v3369_v5 = vadd.f32 %v3353_v53, %v9792_v58  ;;  %v3373_v27 = vmul.f32 0.5, %v3365_v0  ;;  %v3306_v30 = vpop.f32.mrb[71].mxu1  ;;  %v3347_v52 = vpop.f32.mrb[91].mxu0  ;;  %v3371_v11 = vadd.f32 %v3355_v2, %v9794_v25  ;;  %v9795_v56 = vld [vmem:[#allocation15_spill] sm:$0xff]  ;;  %v9797_v2 = vld [vmem:[#allocation4_spill] sm:$0xff]  ;;  %v3806_v25 = vld [vmem:[%s9239_s10 + $0xe0] sm:$0xff] }
 0x878   :  { %v3370_v42 = vadd.f32 %v3354_v49, %v9793_v46  ;;  %v3381_v4 = vmul.f32 0.5, %v3366_v38  ;;  %v3372_v47 = vadd.f32 %v3356_v19, %v7015_v28  ;;  %v3391_v22 = vmul.f32 0.5, %v3368_v63  ;;  %v9798_v52 = vld [vmem:[#allocation3_spill] sm:$0xff]  ;;  %v3802_v46 = vld [vmem:[%s9239_s10 + $0xc0] sm:$0xff] }
 0x879   :  { %v6040_v43 = vpop.eup %6039  ;;  %v3374_v6 = vmul.f32 0.5, %v3369_v5  ;;  %6043 = vtanh.f32 %v3373_v27  ;;  %v3401_v28 = vrot.slane %v8364_v13, 1  ;;  %v9796_v5 = vld [vmem:[#allocation42_spill] sm:$0xff] }
 0x87a   :  { %v6042_v35 = vpop.eup %6041  ;;  %v3255_v45 = vmul.f32 %v6040_v43, %v3239_v32  ;;  %6045 = vtanh.f32 %v3367_v59  ;;  %v3382_v26 = vmul.f32 0.5, %v3370_v42  ;;  %v3392_v18 = vmul.f32 0.5, %v3372_v47  ;;  %v3787_v43 = vld [vmem:[%s9239_s10 + $0x48] sm:$0xff]  ;;  %v3790_v19 = vld [vmem:[%s9239_s10 + $0x60] sm:$0xff]  ;;  %v3808_v47 = vld [vmem:[%s9239_s10 + $0xf0] sm:$0xff] }
 0x87b   :  { %v3256_v57 = vmul.f32 %v6042_v35, %v3240_v21  ;;  %6047 = vtanh.f32 %v3374_v6  ;;  %v3804_v6 = vld [vmem:[%s9239_s10 + $0xd0] sm:$0xff]  ;;  %v3805_v35 = vld [vmem:[%s9239_s10 + $0xd8] sm:$0xff] }
 0x87c   :  { %v3461_v17 = vrot.slane %v3255_v45, 1  ;;  %6049 = vtanh.f32 %v3381_v4  ;;  %v3786_v4 = vld [vmem:[%s9239_s10 + $0x40] sm:$0xff]  ;;  %v5369_v45 = vpack.c.bf16 %v3805_v35, %v3804_v6 }
 0x87d   :  { %6051 = vtanh.f32 %v3382_v26  ;;  %v5367_v21 = vpack.c.bf16 %v3787_v43, %v3786_v4  ;;  %v3788_v26 = vld [vmem:[%s9239_s10 + $0x50] sm:$0xff]  ;;  %v9805_v43 = vld [vmem:[#allocation18_spill] sm:$0xff] }
 0x87e   :  { %v3462_v14 = vsel %vm3438_vm2, %v3256_v57, %v3461_v17  ;;  %6053 = vtanh.f32 %v3371_v11  ;;  %v3789_v57 = vld [vmem:[%s9239_s10 + $0x58] sm:$0xff]  ;;  %v3807_v17 = vld [vmem:[%s9239_s10 + $0xe8] sm:$0xff]  ;;  %vm5101_vm2 = vcmask 25600  }
 0x87f   :  { %v8560_v34 = vsel %vm3468_vm7, %v8347_v48, %v3462_v14  ;;  %6055 = vtanh.f32 %v3391_v22  ;;  %v5371_v11 = vpack.c.bf16 %v3789_v57, %v3788_v26  ;;  %v3791_v14 = vld [vmem:[%s9239_s10 + $0x68] sm:$0xff]  ;;  %v5373_v63 = vpack.c.bf16 %v3807_v17, %v3806_v25 }
 0x880   :  { %6057 = vtanh.f32 %v3392_v18  ;;  %v3525_v32 = vpack.c.bf16 %v8560_v34, %v9798_v52  ;;  %v5375_v22 = vpack.c.bf16 %v3791_v14, %v3790_v19  ;;  %v3793_v18 = vld [vmem:[%s9239_s10 + $0x78] sm:$0xff] }
 0x883   :  { %v6044_v60 = vpop.eup %6043 }
 0x884   :  { %v6046_v31 = vpop.eup %6045  ;;  %v3377_v24 = vadd.f32 1.0, %v6044_v60  ;;  %v3809_v60 = vld [vmem:[%s9239_s10 + $0xf8] sm:$0xff] }
 0x885   :  { %v6048_v40 = vpop.eup %6047 }
 0x886   :  { %v6050_v44 = vpop.eup %6049  ;;  %v3378_v15 = vadd.f32 1.0, %v6048_v40  ;;  %v3379_v62 = vmul.f32 0.5, %v3377_v24  ;;  %v3792_v24 = vld [vmem:[%s9239_s10 + $0x70] sm:$0xff] }
 0x887   :  { %v6052_v12 = vpop.eup %6051  ;;  %v3385_v39 = vadd.f32 1.0, %v6050_v44  ;;  %v5379_v40 = vpack.c.bf16 %v3793_v18, %v3792_v24  ;;  %v3559_v44 = vld [vmem:[%s9240_s9] sm:$0x3] }
 0x888   :  { %v3380_v1 = vmul.f32 0.5, %v3378_v15  ;;  %v3386_v29 = vadd.f32 1.0, %v6052_v12  ;;  %v3407_v36 = vmul.f32 %v6046_v31, %v3379_v62  ;;  %v6054_v48 = vpop.eup %6053  ;;  %v5377_v31 = vpack.c.bf16 %v3809_v60, %v3808_v47  ;;  %v9799_v15 = vld [vmem:[#allocation27_spill] sm:$0xff]  ;;  %v9800_v12 = vld [vmem:[#allocation26_spill] sm:$0xff] }
 0x889   :  { %v3387_v54 = vmul.f32 0.5, %v3385_v39  ;;  %v6056_v10 = vpop.eup %6055  ;;  %v3564_v62 = vrot.slane %v3559_v44, %v9799_v15  ;;  %v9801_v39 = vsub.s32 1, %v9800_v12 }
 0x88a   :  { %v3388_v50 = vmul.f32 0.5, %v3386_v29  ;;  %v3408_v9 = vmul.f32 %v6054_v48, %v3380_v1  ;;  %v6058_v20 = vpop.eup %6057  ;;  %v3395_v51 = vadd.f32 1.0, %v6056_v10  ;;  %v4024_v10 = vld [vmem:[%s9241_s11 + $0x8] sm:$0xff] }
 0x88b   :  { %v3405_v41 = vmul.f32 %v3401_v28, %v3387_v54  ;;  %v3396_v53 = vadd.f32 1.0, %v6058_v20  ;;  %v3568_v1 = vrot.slane %v3559_v44, %v9801_v39  ;;  %v4023_v20 = vld [vmem:[%s9241_s11] sm:$0xff] }
 0x88c   :  { %v3406_v8 = vmul.f32 %v3402_v37, %v3388_v50  ;;  %v3397_v0 = vmul.f32 0.5, %v3395_v51  ;;  %v6246_v51 = vmov 0.0  }
 0x88d   :  { %v3409_v23 = vadd.f32 %v3407_v36, %v3405_v41  ;;  %v3398_v61 = vmul.f32 0.5, %v3396_v53  ;;  %v6247_v53 = vmov 1983009808  }
 0x88e   :  { %v3410_v33 = vadd.f32 %v3408_v9, %v3406_v8 }
 0x88f   :  { %6059 = vtanh.f32 %v3409_v23 }
 0x890   :  { %6061 = vtanh.f32 %v3410_v33 }
 0x899   :  { %v6060_v16 = vpop.eup %6059 }
 0x89a   :  { %v6062_v59 = vpop.eup %6061  ;;  %v3413_v49 = vmul.f32 %v6060_v16, %v3397_v0  ;;  %v3919_v0 = vunpack.c.l.s4 %v6247_v53 }
 0x89b   :  { %v3414_v13 = vmul.f32 %v6062_v59, %v3398_v61 }
 0x89c   :  { %v3920_v59 = vunpack.c.0.s8 %v3919_v0 }
 0x89d   :  { %v3475_v38 = vrot.slane %v3414_v13, 7  ;;  %v9802_v13 = vld [vmem:[#allocation14_spill] sm:$0xff] }
 0x89f   :  { %v3476_v7 = vsel %vm1154_vm1, %v3475_v38, %v3413_v49  ;;  %vm5083_vm1 = vcmask 41984  }
 0x8a0   :  { %v3519_v55 = vsel %vm3464_vm4, %v3476_v7, %v8391_v3  ;;  %v3803_v3 = vld [vmem:[%s9239_s10 + $0xc8] sm:$0xff]  ;;  %vm5130_vm4 = vcmask 15360  }
 0x8a1   :  { %v3520_v58 = vsel %vm3466_vm6, %v3519_v55, %v9795_v56  ;;  %v5365_v42 = vpack.c.bf16 %v3803_v3, %v3802_v46  ;;  %v8641_v55 = vsub.s32 %v3920_v59, %v9800_v12  ;;  %v9804_v46 = vld [vmem:[#allocation6_spill] sm:$0xff]  ;;  %vm5135_vm6 = vcmask 138240  }
 0x8a2   :  { %v8572_v27 = vsel %vm3468_vm7, %v3520_v58, %v9796_v5  ;;  %v9803_v58 = vld [vmem:[#allocation17_spill] sm:$0xff] }
 0x8a3   :  { %v3526_v30 = vpack.c.bf16 %v9797_v2, %v8572_v27  ;;  %5366 = vmatprep.subr.bf16.mxu0 %v5365_v42 }
 0x8a4   :  { %5368 = vmatpush3.bf16.msra.mxu0 %v5367_v21 }
 0x8a5   :  { %3763 = vmatprep.mubr.bf16.mxu1 %v3526_v30  ;;  %5370 = vmatprep.subr.bf16.mxu0 %v5369_v45 }
 0x8a6   :  { %3764 = vmatmul.mubr.bf16.vlgmr.msra.gmra.mrb[72].mxu1 %v3525_v32 }
 0x8a8   :  { %5372 = vmatpush3.bf16.msra.mxu0 %v5371_v11 }
 0x8a9   :  { %5374 = vmatprep.subr.bf16.mxu0 %v5373_v63 }
 0x8ac   :  { %5376 = vmatpush3.bf16.msra.mxu0 %v5375_v22 }
 0x8ad   :  { %5378 = vmatprep.subr.bf16.mxu0 %v5377_v31 }
 0x8b0   :  { %5380 = vmatpush3.bf16.msra.mxu0 %v5379_v40 }
 0x8b1   :  { %4072 = vmatprep.subr.mxu0 %v4024_v10 }
 0x979   :  { %v3765_v29 = vpop.f32.mrb[72].mxu1 }
 0x97a   :  { %v3766_v36 = vadd.f32 %v3765_v29, %v3564_v62  ;;  %v3767_v48 = vpop.f32.mrb[73].mxu1 }
 0x97b   :  { %v3768_v54 = vadd.f32 %v3767_v48, %v3568_v1  ;;  %v3769_v28 = vpop.f32.mrb[74].mxu1 }
 0x97c   :  { %v3771_v50 = vpop.f32.mrb[75].mxu1  ;;  %v3770_v9 = vadd.f32 %v3769_v28, %v3564_v62 }
 0x97d   :  { %6063 = vtanh.f32 %v3768_v54  ;;  %v3772_v37 = vadd.f32 %v3771_v50, %v3568_v1 }
 0x97e   :  { %6065 = vtanh.f32 %v3766_v36 }
 0x97f   :  { %6067 = vtanh.f32 %v3772_v37 }
 0x980   :  { %6069 = vtanh.f32 %v3770_v9 }
 0x987   :  { %v6064_v41 = vpop.eup %6063 }
 0x988   :  { %v6066_v8 = vpop.eup %6065  ;;  %3874 = vmatprep.mubr.f32.mxu0 %v6064_v41 }
 0x989   :  { %v6068_v23 = vpop.eup %6067  ;;  %3875 = vmatmul.mubr.f32.vlgmr.msra.gmra.mrb[92].mxu0 %v6066_v8 }
 0x98a   :  { %3879 = vmatprep.mubr.f32.mxu0 %v6068_v23  ;;  %v6070_v33 = vpop.eup %6069  ;;  %4073 = vmatpush1.msra.mxu0 %v4023_v20 }
 0x98d   :  { %3880 = vmatmul.mubr.f32.gmra.mrb[94].mxu0 %v6070_v33 }
 0x98e   :  { %4136 = vmatprep.mubr.f32.mxu0 %v6246_v51 }
 0xa5c   :  { %v5321_v16 = vpop.f32.mrb[92].mxu0 }
 0xa5d   :  { %v5322_v61 = vpop.f32.mrb[93].mxu0 }
 0xa5e   :  { %v5323_v49 = vadd.f32 %v5322_v61, %v5321_v16 }
 0xa60   :  { %v3897_v38 = vmul.f32 %v5323_v49, %v9802_v13  ;;  %v5324_v7 = vpop.f32.mrb[94].mxu0 }
 0xa61   :  { %v5325_v56 = vpop.f32.mrb[95].mxu0 }
 0xa62   :  { %v3913_v5 = vsub.f32 %v3897_v38, %v9803_v58  ;;  %v5326_v30 = vadd.f32 %v5325_v56, %v5324_v7 }
 0xa64   :  { %v3917_v32 = vcombine.high %v3913_v5, %v3913_v5  ;;  %v3898_v3 = vmul.f32 %v5326_v30, %v9804_v46  ;;  %v3924_v42 = vrot.slane %v3913_v5, %v8641_v55 }
 0xa66   :  { %v3931_v4 = vrot.slane %v3917_v32, %v8641_v55  ;;  %v3914_v21 = vsub.f32 %v3898_v3, %v9805_v43  ;;  %v3932_v35 = vcombine.high %v3924_v42, %v3924_v42  ;;  %v3960_v25 = vsel %vm3959_vm8, %v3924_v42, -inf }
 0xa68   :  { %v3934_v6 = vcombine.high %v3914_v21, %v3914_v21  ;;  %v3941_v45 = vrot.slane %v3914_v21, %v8641_v55  ;;  %v3933_v26 = vcombine.high %v3931_v4, %v3931_v4  ;;  %v3962_v19 = vsel %vm3959_vm8, %v3931_v4, -inf }
 0xa69   :  { %v3961_v60 = vsel %vm3959_vm8, %v3932_v35, -inf }
 0xa6a   :  { %v3948_v57 = vrot.slane %v3934_v6, %v8641_v55  ;;  %v3949_v11 = vcombine.high %v3941_v45, %v3941_v45  ;;  %v3964_v17 = vsel %vm3959_vm8, %v3941_v45, -inf  ;;  %v3963_v24 = vsel %vm3959_vm8, %v3933_v26, -inf }
 0xa6b   :  { %v3965_v63 = vmax.f32 %v3960_v25, %v3964_v17 }
 0xa6c   :  { %v3950_v14 = vcombine.high %v3948_v57, %v3948_v57  ;;  %v3968_v47 = vsel %vm3959_vm8, %v3948_v57, -inf  ;;  %v3966_v22 = vsel %vm3959_vm8, %v3949_v11, -inf }
 0xa6d   :  { %v3969_v31 = vmax.f32 %v3962_v19, %v3968_v47  ;;  %v3967_v18 = vmax.f32 %v3961_v60, %v3966_v22 }
 0xa6e   :  { %v3970_v40 = vsel %vm3959_vm8, %v3950_v14, -inf }
 0xa6f   :  { %v3971_v44 = vmax.f32 %v3963_v24, %v3970_v40  ;;  %v3972_v62 = vmax.f32 %v3965_v63, %v3967_v18 }
 0xa71   :  { %v3973_v39 = vmax.f32 %v3969_v31, %v3971_v44 }
 0xa73   :  { %v3974_v1 = vmax.f32 %v3972_v62, %v3973_v39 }
 0xa75   :  { %v3975_v29 = vsub.f32 %v3924_v42, %v3974_v1  ;;  %v3976_v36 = vsub.f32 %v3932_v35, %v3974_v1  ;;  %v3977_v48 = vsub.f32 %v3931_v4, %v3974_v1  ;;  %v3978_v54 = vsub.f32 %v3933_v26, %v3974_v1 }
 0xa76   :  { %v3979_v28 = vsub.f32 %v3941_v45, %v3974_v1  ;;  %v3980_v50 = vsub.f32 %v3949_v11, %v3974_v1  ;;  %v3981_v37 = vsub.f32 %v3948_v57, %v3974_v1  ;;  %v3982_v9 = vsub.f32 %v3950_v14, %v3974_v1 }
 0xa77   :  { %v3983_v41 = vmul.f32 1.442695, %v3975_v29  ;;  %v3985_v8 = vmul.f32 1.442695, %v3976_v36  ;;  %v3987_v23 = vmul.f32 1.442695, %v3977_v48 }
 0xa78   :  { %v3989_v33 = vmul.f32 1.442695, %v3978_v54  ;;  %v3991_v10 = vmul.f32 1.442695, %v3979_v28  ;;  %v3993_v20 = vmul.f32 1.442695, %v3980_v50 }
 0xa79   :  { %6071 = vpow2.f32 %v3983_v41  ;;  %v3995_v53 = vmul.f32 1.442695, %v3981_v37  ;;  %v3997_v0 = vmul.f32 1.442695, %v3982_v9  ;;  %v4417_v48 = vld [vmem:[%s9242_s13 + $0x8] sm:$0xff]  ;;  %v4419_v54 = vld [vmem:[%s9242_s13 + $0x18] sm:$0xff] }
 0xa7a   :  { %6073 = vpow2.f32 %v3985_v8  ;;  %v5385_v28 = vpack.c.bf16 %v4419_v54, %v4417_v48  ;;  %v4418_v50 = vld [vmem:[%s9242_s13 + $0x10] sm:$0xff]  ;;  %v4421_v9 = vld [vmem:[%s9242_s13 + $0x28] sm:$0xff]  ;;  %v4423_v41 = vld [vmem:[%s9242_s13 + $0x38] sm:$0xff] }
 0xa7b   :  { %6075 = vpow2.f32 %v3987_v23  ;;  %v5389_v8 = vpack.c.bf16 %v4423_v41, %v4421_v9  ;;  %v4420_v23 = vld [vmem:[%s9242_s13 + $0x20] sm:$0xff]  ;;  %v4454_v54 = vld [vmem:[%s9242_s13 + $0x130] sm:$0xff] }
 0xa7c   :  { %6077 = vpow2.f32 %v3989_v33  ;;  %5386 = vmatprep.subr.bf16.mxu1 %v5385_v28  ;;  %v4422_v33 = vld [vmem:[%s9242_s13 + $0x30] sm:$0xff]  ;;  %v4452_v48 = vld [vmem:[%s9242_s13 + $0x120] sm:$0xff] }
 0xa7d   :  { %6079 = vpow2.f32 %v3991_v10  ;;  %v5391_v10 = vpack.c.bf16 %v4422_v33, %v4420_v23  ;;  %v5423_v28 = vpack.c.bf16 %v4454_v54, %v4452_v48  ;;  %v4456_v9 = vld [vmem:[%s9242_s13 + $0x140] sm:$0xff]  ;;  %v4458_v41 = vld [vmem:[%s9242_s13 + $0x150] sm:$0xff]  ;;  %v4461_v23 = vld [vmem:[%s9242_s13 + $0x168] sm:$0xff]  ;;  %v4342_v48 = vpop.permute.xlu0 %4341 }
 0xa7e   :  { %6081 = vpow2.f32 %v3993_v20  ;;  %v4425_v20 = vld [vmem:[%s9242_s13 + $0x48] sm:$0xff]  ;;  %v4463_v33 = vld [vmem:[%s9242_s13 + $0x178] sm:$0xff] }
 0xa7f   :  { %6083 = vpow2.f32 %v3995_v53  ;;  %v4427_v53 = vld [vmem:[%s9242_s13 + $0x58] sm:$0xff]  ;;  %v4560_v54 = vld [vmem:[%s9245_s14 + $0x48] sm:$0xff] }
 0xa80   :  { %6085 = vpow2.f32 %v3997_v0  ;;  %v5393_v0 = vpack.c.bf16 %v4427_v53, %v4425_v20  ;;  %v4460_v20 = vld [vmem:[%s9242_s13 + $0x160] sm:$0xff]  ;;  %v4462_v53 = vld [vmem:[%s9242_s13 + $0x170] sm:$0xff] }
 0xa83   :  { %v6072_v16 = vpop.eup %6071 }
 0xa84   :  { %v6074_v61 = vpop.eup %6073  ;;  %v3999_v59 = vsel %vm3959_vm8, %v6072_v16, 0.0 }
 0xa85   :  { %v6076_v49 = vpop.eup %6075  ;;  %v4000_v13 = vsel %vm3959_vm8, %v6074_v61, 0.0 }
 0xa86   :  { %v6078_v38 = vpop.eup %6077  ;;  %v4001_v7 = vadd.f32 %v4000_v13, %v3999_v59  ;;  %v4002_v56 = vsel %vm3959_vm8, %v6076_v49, 0.0  ;;  %v4431_v13 = vld [vmem:[%s9242_s13 + $0x78] sm:$0xff] }
 0xa87   :  { %v6080_v58 = vpop.eup %6079  ;;  %v4004_v30 = vsel %vm3959_vm8, %v6078_v38, 0.0 }
 0xa88   :  { %v4003_v5 = vadd.f32 %v4002_v56, %v4001_v7  ;;  %v6082_v32 = vpop.eup %6081  ;;  %v4006_v3 = vsel %vm3959_vm8, %v6080_v58, 0.0  ;;  %v4428_v7 = vld [vmem:[%s9242_s13 + $0x60] sm:$0xff]  ;;  %v4430_v56 = vld [vmem:[%s9242_s13 + $0x70] sm:$0xff] }
 0xa89   :  { %v6084_v42 = vpop.eup %6083  ;;  %v4008_v43 = vsel %vm3959_vm8, %v6082_v32, 0.0 }
 0xa8a   :  { %v4005_v46 = vadd.f32 %v4004_v30, %v4003_v5  ;;  %v6086_v21 = vpop.eup %6085  ;;  %v4010_v35 = vsel %vm3959_vm8, %v6084_v42, 0.0  ;;  %v4433_v5 = vld [vmem:[%s9242_s13 + $0x88] sm:$0xff]  ;;  %v4435_v30 = vld [vmem:[%s9242_s13 + $0x98] sm:$0xff] }
 0xa8b   :  { %v4012_v26 = vsel %vm3959_vm8, %v6086_v21, 0.0 }
 0xa8c   :  { %v4007_v4 = vadd.f32 %v4006_v3, %v4005_v46  ;;  %v4432_v46 = vld [vmem:[%s9242_s13 + $0x80] sm:$0xff]  ;;  %v4434_v3 = vld [vmem:[%s9242_s13 + $0x90] sm:$0xff] }
 0xa8e   :  { %v4009_v6 = vadd.f32 %v4008_v43, %v4007_v4  ;;  %v4437_v4 = vld [vmem:[%s9242_s13 + $0xa8] sm:$0xff]  ;;  %v4439_v43 = vld [vmem:[%s9242_s13 + $0xb8] sm:$0xff] }
 0xa90   :  { %v4011_v45 = vadd.f32 %v4010_v35, %v4009_v6  ;;  %v4436_v6 = vld [vmem:[%s9242_s13 + $0xa0] sm:$0xff]  ;;  %v4438_v35 = vld [vmem:[%s9242_s13 + $0xb0] sm:$0xff] }
 0xa92   :  { %v4013_v57 = vadd.f32 %v4012_v26, %v4011_v45  ;;  %v5407_v45 = vpack.c.bf16 %v4438_v35, %v4436_v6  ;;  %v4441_v26 = vld [vmem:[%s9242_s13 + $0xc8] sm:$0xff]  ;;  %v4479_v35 = vld [vmem:[%s9242_s13 + $0x1f8] sm:$0xff] }
 0xa93   :  { %v4477_v6 = vld [vmem:[%s9242_s13 + $0x1e8] sm:$0xff] }
 0xa94   :  { %6087 = vrcp.f32 %v4013_v57  ;;  %v4443_v57 = vld [vmem:[%s9242_s13 + $0xd8] sm:$0xff] }
 0xa9e   :  { %v6088_v25 = vpop.eup %6087 }
 0xa9f   :  { %v4015_v11 = vmul.f32 %v6088_v25, %v6072_v16  ;;  %v4016_v17 = vmul.f32 %v6088_v25, %v6074_v61  ;;  %v4017_v19 = vmul.f32 %v6088_v25, %v6076_v49  ;;  %v4018_v14 = vmul.f32 %v6088_v25, %v6078_v38  ;;  %v4424_v16 = vld [vmem:[%s9242_s13 + $0x40] sm:$0xff]  ;;  %v4426_v61 = vld [vmem:[%s9242_s13 + $0x50] sm:$0xff]  ;;  %v4429_v49 = vld [vmem:[%s9242_s13 + $0x68] sm:$0xff] }
 0xaa0   :  { %v4019_v63 = vmul.f32 %v6088_v25, %v6080_v58  ;;  %v4020_v47 = vmul.f32 %v6088_v25, %v6082_v32  ;;  %v4021_v60 = vmul.f32 %v6088_v25, %v6084_v42  ;;  %v4022_v22 = vmul.f32 %v6088_v25, %v6086_v21 }
 0xaa1   :  { %v4033_v31 = vcombine.low %v4015_v11, %v4016_v17  ;;  %v4034_v24 = vcombine.low %v4017_v19, %v4018_v14  ;;  %v5395_v59 = vpack.c.bf16 %v4426_v61, %v4424_v16  ;;  %v5397_v38 = vpack.c.bf16 %v4431_v13, %v4429_v49  ;;  %v4440_v11 = vld [vmem:[%s9242_s13 + $0xc0] sm:$0xff]  ;;  %v4442_v17 = vld [vmem:[%s9242_s13 + $0xd0] sm:$0xff]  ;;  %v4445_v14 = vld [vmem:[%s9242_s13 + $0xe8] sm:$0xff] }
 0xaa2   :  { %v4050_v18 = vcombine.low %v4019_v63, %v4020_v47  ;;  %v4051_v40 = vcombine.low %v4021_v60, %v4022_v22  ;;  %v5399_v58 = vpack.c.bf16 %v4430_v56, %v4428_v7  ;;  %v5401_v32 = vpack.c.bf16 %v4435_v30, %v4433_v5  ;;  %v4447_v63 = vld [vmem:[%s9242_s13 + $0xf8] sm:$0xff]  ;;  %v4444_v60 = vld [vmem:[%s9242_s13 + $0xe0] sm:$0xff]  ;;  %v4446_v22 = vld [vmem:[%s9242_s13 + $0xf0] sm:$0xff] }
 0xaa3   :  { %v4041_v44 = vrot.slane %v4033_v31, %v8641_v55  ;;  %v4048_v62 = vrot.slane %v4034_v24, %v8641_v55  ;;  %v5403_v42 = vpack.c.bf16 %v4434_v3, %v4432_v46  ;;  %v5405_v21 = vpack.c.bf16 %v4439_v43, %v4437_v4  ;;  %v4449_v24 = vld [vmem:[%s9242_s13 + $0x108] sm:$0xff]  ;;  %v4467_v61 = vld [vmem:[%s9242_s13 + $0x198] sm:$0xff]  ;;  %v4464_v49 = vld [vmem:[%s9242_s13 + $0x180] sm:$0xff] }
 0xaa4   :  { %v4058_v39 = vrot.slane %v4050_v18, %v8641_v55  ;;  %v4065_v1 = vrot.slane %v4051_v40, %v8641_v55  ;;  %v4416_v55 = vld [vmem:[%s9242_s13] sm:$0xff]  ;;  %v5409_v25 = vpack.c.bf16 %v4443_v57, %v4441_v26  ;;  %v5411_v19 = vpack.c.bf16 %v4442_v17, %v4440_v11  ;;  %v4451_v18 = vld [vmem:[%s9242_s13 + $0x118] sm:$0xff]  ;;  %v4465_v16 = vld [vmem:[%s9242_s13 + $0x188] sm:$0xff] }
 0xaa5   :  { %v4049_v29 = vcombine.low %v4041_v44, %v4048_v62  ;;  %v5387_v37 = vpack.c.bf16 %v4418_v50, %v4416_v55  ;;  %v5413_v47 = vpack.c.bf16 %v4447_v63, %v4445_v14  ;;  %v5415_v31 = vpack.c.bf16 %v4446_v22, %v4444_v60  ;;  %v4448_v44 = vld [vmem:[%s9242_s13 + $0x100] sm:$0xff]  ;;  %v4450_v62 = vld [vmem:[%s9242_s13 + $0x110] sm:$0xff]  ;;  %v4457_v55 = vld [vmem:[%s9242_s13 + $0x148] sm:$0xff] }
 0xaa6   :  { %v4066_v36 = vcombine.low %v4058_v39, %v4065_v1  ;;  %v5417_v40 = vpack.c.bf16 %v4451_v18, %v4449_v24  ;;  %v5419_v39 = vpack.c.bf16 %v4450_v62, %v4448_v44  ;;  %v4453_v1 = vld [vmem:[%s9242_s13 + $0x128] sm:$0xff]  ;;  %v4459_v50 = vld [vmem:[%s9242_s13 + $0x158] sm:$0xff]  ;;  %v4466_v13 = vld [vmem:[%s9242_s13 + $0x190] sm:$0xff] }
 0xaa7   :  { %5269 = vmatmul.mubr.msk.f32.vlgmr.msra.gmra.mrb[96].mxu0 %vm4067_vm9, %v4049_v29  ;;  %5388 = vmatpush1.bf16.msra.mxu1 %v5387_v37  ;;  %v4455_v29 = vld [vmem:[%s9242_s13 + $0x138] sm:$0xff]  ;;  %v5425_v37 = vpack.c.bf16 %v4459_v50, %v4457_v55  ;;  %v4469_v7 = vld [vmem:[%s9242_s13 + $0x1a8] sm:$0xff]  ;;  %v4468_v5 = vld [vmem:[%s9242_s13 + $0x1a0] sm:$0xff] }
 0xaa8   :  { %4142 = vmatprep.mubr.f32.mxu0 %v6246_v51  ;;  %5390 = vmatprep.subr.bf16.mxu1 %v5389_v8  ;;  %v5427_v8 = vpack.c.bf16 %v4458_v41, %v4456_v9  ;;  %v4471_v56 = vld [vmem:[%s9242_s13 + $0x1b8] sm:$0xff]  ;;  %v4470_v30 = vld [vmem:[%s9242_s13 + $0x1b0] sm:$0xff]  ;;  %v4473_v46 = vld [vmem:[%s9242_s13 + $0x1c8] sm:$0xff] }
 0xaa9   :  { %v4475_v3 = vld [vmem:[%s9242_s13 + $0x1d8] sm:$0xff]  ;;  %v4472_v4 = vld [vmem:[%s9242_s13 + $0x1c0] sm:$0xff]  ;;  %v4474_v43 = vld [vmem:[%s9242_s13 + $0x1d0] sm:$0xff] }
 0xaaa   :  { %v4253_v22 = vld [vmem:[%s9243_s15 + $0x8] sm:$0x3f]  ;;  %v4551_v24 = vld [vmem:[%s9245_s14] sm:$0xff]  ;;  %v4553_v18 = vld [vmem:[%s9245_s14 + $0x10] sm:$0xff] }
 0xaab   :  { %5270 = vmatmul.mubr.msk.f32.gmra.mrb[98].mxu0 %vm4067_vm9, %v4066_v36  ;;  %5392 = vmatpush1.bf16.msra.mxu1 %v5391_v10  ;;  %v5421_v36 = vpack.c.bf16 %v4455_v29, %v4453_v1  ;;  %v5429_v10 = vpack.c.bf16 %v4463_v33, %v4461_v23  ;;  %v4558_v44 = vld [vmem:[%s9245_s14 + $0x38] sm:$0xff]  ;;  %v9806_v62 = vld [vmem:[#allocation50_spill] sm:$0xff]  ;;  %v4561_v9 = vld [vmem:[%s9245_s14 + $0x50] sm:$0xff] }
 0xaac   :  { %4222 = vmatprep.mubr.f32.mxu0 %v6246_v51  ;;  %5394 = vmatprep.subr.bf16.mxu1 %v5393_v0  ;;  %v5431_v0 = vpack.c.bf16 %v4462_v53, %v4460_v20  ;;  %v4555_v29 = vld [vmem:[%s9245_s14 + $0x20] sm:$0xff]  ;;  %v4564_v41 = vld [vmem:[%s9245_s14 + $0x68] sm:$0xff]  ;;  %v4565_v20 = vld [vmem:[%s9245_s14 + $0x70] sm:$0xff] }
 0xaad   :  { %v4568_v53 = vld [vmem:[%s9245_s14 + $0x88] sm:$0xff] }
 0xaaf   :  { %5396 = vmatpush1.bf16.msra.mxu1 %v5395_v59  ;;  %v5433_v59 = vpack.c.bf16 %v4467_v61, %v4465_v16 }
 0xab0   :  { %5398 = vmatprep.subr.bf16.mxu1 %v5397_v38  ;;  %v5435_v38 = vpack.c.bf16 %v4466_v13, %v4464_v49  ;;  %v4569_v49 = vld [vmem:[%s9245_s14 + $0x90] sm:$0xff]  ;;  %v4572_v13 = vld [vmem:[%s9245_s14 + $0xa8] sm:$0xff] }
 0xab3   :  { %5400 = vmatpush1.bf16.msra.mxu1 %v5399_v58  ;;  %v5437_v58 = vpack.c.bf16 %v4471_v56, %v4469_v7 }
 0xab4   :  { %5402 = vmatprep.subr.bf16.mxu1 %v5401_v32  ;;  %v5439_v32 = vpack.c.bf16 %v4470_v30, %v4468_v5  ;;  %v4573_v5 = vld [vmem:[%s9245_s14 + $0xb0] sm:$0xff]  ;;  %v4576_v30 = vld [vmem:[%s9245_s14 + $0xc8] sm:$0xff] }
 0xab7   :  { %5404 = vmatpush1.bf16.msra.mxu1 %v5403_v42  ;;  %v5441_v42 = vpack.c.bf16 %v4475_v3, %v4473_v46 }
 0xab8   :  { %5406 = vmatprep.subr.bf16.mxu1 %v5405_v21  ;;  %v5443_v21 = vpack.c.bf16 %v4474_v43, %v4472_v4  ;;  %v4577_v4 = vld [vmem:[%s9245_s14 + $0xd0] sm:$0xff]  ;;  %v4580_v43 = vld [vmem:[%s9245_s14 + $0xe8] sm:$0xff] }
 0xabb   :  { %5408 = vmatpush1.bf16.msra.mxu1 %v5407_v45  ;;  %v5445_v45 = vpack.c.bf16 %v4479_v35, %v4477_v6 }
 0xabc   :  { %5410 = vmatprep.subr.bf16.mxu1 %v5409_v25 }
 0xabf   :  { %5412 = vmatpush1.bf16.msra.mxu1 %v5411_v19 }
 0xac0   :  { %5414 = vmatprep.subr.bf16.mxu1 %v5413_v47 }
 0xac3   :  { %5416 = vmatpush1.bf16.msra.mxu1 %v5415_v31  ;;  %v4149_v31 = vld [vmem:[%s9244_s12] sm:$0x3] }
 0xac4   :  { %5418 = vmatprep.subr.bf16.mxu1 %v5417_v40  ;;  %v4556_v40 = vld [vmem:[%s9245_s14 + $0x28] sm:$0xff] }
 0xac5   :  { %v5453_v1 = vpack.c.bf16 %v4558_v44, %v4556_v40  ;;  %v4593_v40 = vld [vmem:[%s9245_s14 + $0x150] sm:$0xff]  ;;  %v4596_v44 = vld [vmem:[%s9245_s14 + $0x168] sm:$0xff] }
 0xac7   :  { %5420 = vmatpush1.bf16.msra.mxu1 %v5419_v39  ;;  %v5451_v39 = vpack.c.bf16 %v4553_v18, %v4551_v24  ;;  %v4591_v18 = vld [vmem:[%s9245_s14 + $0x140] sm:$0xff] }
 0xac8   :  { %5422 = vmatprep.subr.bf16.mxu1 %v5421_v36  ;;  %v4557_v36 = vld [vmem:[%s9245_s14 + $0x30] sm:$0xff] }
 0xac9   :  { %v5455_v55 = vpack.c.bf16 %v4557_v36, %v4555_v29  ;;  %v4595_v29 = vld [vmem:[%s9245_s14 + $0x160] sm:$0xff]  ;;  %v4597_v36 = vld [vmem:[%s9245_s14 + $0x170] sm:$0xff] }
 0xacb   :  { %5424 = vmatpush1.bf16.msra.mxu1 %v5423_v28  ;;  %v4562_v28 = vld [vmem:[%s9245_s14 + $0x58] sm:$0xff] }
 0xacc   :  { %5426 = vmatprep.subr.bf16.mxu1 %v5425_v37  ;;  %v5457_v50 = vpack.c.bf16 %v4562_v28, %v4560_v54  ;;  %v4559_v37 = vld [vmem:[%s9245_s14 + $0x40] sm:$0xff]  ;;  %v4602_v54 = vld [vmem:[%s9245_s14 + $0x198] sm:$0xff]  ;;  %v5495_v28 = vpack.c.bf16 %v4597_v36, %v4595_v29 }
 0xacd   :  { %v5459_v23 = vpack.c.bf16 %v4561_v9, %v4559_v37  ;;  %v4601_v37 = vld [vmem:[%s9245_s14 + $0x190] sm:$0xff]  ;;  %v4604_v9 = vld [vmem:[%s9245_s14 + $0x1a8] sm:$0xff]  ;;  %v4708_v36 = vld [vmem:[%s9246_s16 + $0x80] sm:$0xff] }
 0xacf   :  { %5428 = vmatpush1.bf16.msra.mxu1 %v5427_v8  ;;  %v4566_v8 = vld [vmem:[%s9245_s14 + $0x78] sm:$0xff] }
 0xad0   :  { %5430 = vmatprep.subr.bf16.mxu1 %v5429_v10  ;;  %v5461_v33 = vpack.c.bf16 %v4566_v8, %v4564_v41  ;;  %v4563_v10 = vld [vmem:[%s9245_s14 + $0x60] sm:$0xff]  ;;  %v4606_v41 = vld [vmem:[%s9245_s14 + $0x1b8] sm:$0xff] }
 0xad1   :  { %v5463_v16 = vpack.c.bf16 %v4565_v20, %v4563_v10  ;;  %v4605_v10 = vld [vmem:[%s9245_s14 + $0x1b0] sm:$0xff]  ;;  %v4608_v20 = vld [vmem:[%s9245_s14 + $0x1c8] sm:$0xff] }
 0xad3   :  { %5432 = vmatpush1.bf16.msra.mxu1 %v5431_v0  ;;  %v4570_v0 = vld [vmem:[%s9245_s14 + $0x98] sm:$0xff] }
 0xad4   :  { %5434 = vmatprep.subr.bf16.mxu1 %v5433_v59  ;;  %v5465_v61 = vpack.c.bf16 %v4570_v0, %v4568_v53  ;;  %v4567_v59 = vld [vmem:[%s9245_s14 + $0x80] sm:$0xff]  ;;  %v4610_v53 = vld [vmem:[%s9245_s14 + $0x1d8] sm:$0xff] }
 0xad5   :  { %v5467_v7 = vpack.c.bf16 %v4569_v49, %v4567_v59  ;;  %v4609_v59 = vld [vmem:[%s9245_s14 + $0x1d0] sm:$0xff]  ;;  %v4612_v49 = vld [vmem:[%s9245_s14 + $0x1e8] sm:$0xff] }
 0xad7   :  { %5436 = vmatpush1.bf16.msra.mxu1 %v5435_v38  ;;  %v4574_v38 = vld [vmem:[%s9245_s14 + $0xb8] sm:$0xff] }
 0xad8   :  { %5438 = vmatprep.subr.bf16.mxu1 %v5437_v58  ;;  %v5469_v56 = vpack.c.bf16 %v4574_v38, %v4572_v13  ;;  %v4571_v58 = vld [vmem:[%s9245_s14 + $0xa0] sm:$0xff]  ;;  %v4614_v13 = vld [vmem:[%s9245_s14 + $0x1f8] sm:$0xff] }
 0xad9   :  { %v5471_v46 = vpack.c.bf16 %v4573_v5, %v4571_v58  ;;  %v4478_v58 = vld [vmem:[%s9242_s13 + $0x1f0] sm:$0xff]  ;;  %v4611_v5 = vld [vmem:[%s9245_s14 + $0x1e0] sm:$0xff] }
 0xadb   :  { %5440 = vmatpush1.bf16.msra.mxu1 %v5439_v32  ;;  %v4578_v32 = vld [vmem:[%s9245_s14 + $0xd8] sm:$0xff] }
 0xadc   :  { %5442 = vmatprep.subr.bf16.mxu1 %v5441_v42  ;;  %v5473_v3 = vpack.c.bf16 %v4578_v32, %v4576_v30  ;;  %v4575_v42 = vld [vmem:[%s9245_s14 + $0xc0] sm:$0xff]  ;;  %v4613_v32 = vld [vmem:[%s9245_s14 + $0x1f0] sm:$0xff] }
 0xadd   :  { %v5475_v6 = vpack.c.bf16 %v4577_v4, %v4575_v42  ;;  %v4692_v42 = vld [vmem:[%s9246_s16] sm:$0xff]  ;;  %v4693_v4 = vld [vmem:[%s9246_s16 + $0x8] sm:$0xff] }
 0xadf   :  { %5444 = vmatpush1.bf16.msra.mxu1 %v5443_v21  ;;  %v4582_v21 = vld [vmem:[%s9245_s14 + $0xf8] sm:$0xff] }
 0xae0   :  { %5446 = vmatprep.subr.bf16.mxu1 %v5445_v45  ;;  %v5477_v35 = vpack.c.bf16 %v4582_v21, %v4580_v43  ;;  %v4579_v45 = vld [vmem:[%s9245_s14 + $0xe0] sm:$0xff]  ;;  %v5514_v21 = vpack.c.bf16 %v4693_v4, %v4692_v42 }
 0xb7a   :  { %v4138_v26 = vpop.f32.mrb[96].mxu0 }
 0xb7b   :  { %v4140_v57 = vpop.f32.mrb[97].mxu0  ;;  %v4150_v11 = vmul.f32 %v4138_v26, %v9798_v52  ;;  %v4581_v26 = vld [vmem:[%s9245_s14 + $0xf0] sm:$0xff] }
 0xb7c   :  { %v4151_v14 = vmul.f32 %v4140_v57, %v8572_v27  ;;  %v4552_v27 = vld [vmem:[%s9245_s14 + $0x8] sm:$0xff] }
 0xb7d   :  { %v4584_v57 = vld [vmem:[%s9245_s14 + $0x108] sm:$0xff] }
 0xb7e   :  { %v4144_v25 = vpop.f32.mrb[98].mxu0 }
 0xb7f   :  { %v4152_v17 = vmul.f32 %v4144_v25, %v8560_v34  ;;  %v4146_v19 = vpop.f32.mrb[99].mxu0  ;;  %v4252_v34 = vld [vmem:[%s9243_s15] sm:$0x3f]  ;;  %v4586_v25 = vld [vmem:[%s9245_s14 + $0x118] sm:$0xff] }
 0xb80   :  { %v4153_v63 = vmul.f32 %v4146_v19, %v9797_v2  ;;  %v4554_v2 = vld [vmem:[%s9245_s14 + $0x18] sm:$0xff]  ;;  %v4583_v19 = vld [vmem:[%s9245_s14 + $0x100] sm:$0xff] }
 0xb81   :  { %v5383_v47 = vpack.c.bf16 %v4152_v17, %v4150_v11  ;;  %v5449_v52 = vpack.c.bf16 %v4554_v2, %v4552_v27  ;;  %v5479_v11 = vpack.c.bf16 %v4581_v26, %v4579_v45  ;;  %v5481_v17 = vpack.c.bf16 %v4586_v25, %v4584_v57  ;;  %v4592_v27 = vld [vmem:[%s9245_s14 + $0x148] sm:$0xff]  ;;  %v4594_v2 = vld [vmem:[%s9245_s14 + $0x158] sm:$0xff]  ;;  %v6241_v25 = vld [vmem:[%s9464_s19] sm:$0xff] }
 0xb82   :  { %v5381_v60 = vpack.c.bf16 %v4153_v63, %v4151_v14  ;;  %v4585_v14 = vld [vmem:[%s9245_s14 + $0x110] sm:$0xff]  ;;  %v4588_v63 = vld [vmem:[%s9245_s14 + $0x128] sm:$0xff]  ;;  %v5489_v24 = vpack.c.bf16 %v4594_v2, %v4592_v27  ;;  %v4695_v45 = vld [vmem:[%s9246_s16 + $0x18] sm:$0xff] }
 0xb83   :  { %v4701_v27 = vld [vmem:[%s9246_s16 + $0x48] sm:$0xff] }
 0xb84   :  { %5382 = vmatprep.subr.bf16.mxu0 %v5381_v60  ;;  %v5483_v60 = vpack.c.bf16 %v4585_v14, %v4583_v19  ;;  %v4697_v19 = vld [vmem:[%s9246_s16 + $0x28] sm:$0xff] }
 0xb85   :  { %5384 = vmatpush1.bf16.msra.mxu0 %v5383_v47  ;;  %v4590_v47 = vld [vmem:[%s9245_s14 + $0x138] sm:$0xff] }
 0xb86   :  { %5272 = vmatprep.subr.msk.mxu0 %vm3468_vm7, %v4253_v22 }
 0xb88   :  { %5271 = vmatmul.mubr.msk.f32.vlgmr.msra.gmra.mrb[100].mxu0 %vm4154_vm10, %v4149_v31  ;;  %v4587_v31 = vld [vmem:[%s9245_s14 + $0x120] sm:$0xff] }
 0xb89   :  { %5273 = vmatpush1.msk.msra.mxu0 %vm3468_vm7, %v4252_v34  ;;  %4328 = vmatprep.mubr.f32.mxu0 %v6246_v51 }
 0xb8a   :  { %5275 = vmatprep.subr.msk.mxu0 %vm3468_vm7, %v4253_v22  ;;  %v5485_v22 = vpack.c.bf16 %v4590_v47, %v4588_v63 }
 0xb8c   :  { %5274 = vmatmul.mubr.msk.f32.vlgmr.msra.gmra.mrb[102].mxu0 %vm4254_vm11, %v9806_v62  ;;  %v4598_v62 = vld [vmem:[%s9245_s14 + $0x178] sm:$0xff] }
 0xb8d   :  { %5276 = vmatpush1.msk.msra.mxu0 %vm3468_vm7, %v4252_v34  ;;  %4409 = vmatprep.mubr.f32.mxu0 %v6246_v51  ;;  %v4589_v34 = vld [vmem:[%s9245_s14 + $0x130] sm:$0xff]  ;;  %vm5137_vm7 = vcmask 269312  }
 0xb8e   :  { %5450 = vmatprep.subr.bf16.mxu0 %v5449_v52  ;;  %v5487_v52 = vpack.c.bf16 %v4589_v34, %v4587_v31  ;;  %v4700_v34 = vld [vmem:[%s9246_s16 + $0x40] sm:$0xff] }
 0xb8f   :  { %v5526_v2 = vpack.c.bf16 %v4701_v27, %v4700_v34 }
 0xb90   :  { %5277 = vmatmul.mubr.msk.f32.vlgmr.msra.gmra.mrb[104].mxu0 %vm4254_vm11, %v4342_v48  ;;  %v4600_v48 = vld [vmem:[%s9245_s14 + $0x188] sm:$0xff] }
 0xb91   :  { %5452 = vmatpush1.bf16.msra.mxu0 %v5451_v39  ;;  %v5491_v39 = vpack.c.bf16 %v4593_v40, %v4591_v18  ;;  %v4704_v40 = vld [vmem:[%s9246_s16 + $0x60] sm:$0xff] }
 0xb92   :  { %5454 = vmatprep.subr.bf16.mxu0 %v5453_v1  ;;  %v5493_v1 = vpack.c.bf16 %v4598_v62, %v4596_v44  ;;  %v4705_v44 = vld [vmem:[%s9246_s16 + $0x68] sm:$0xff] }
 0xb93   :  { %v5532_v62 = vpack.c.bf16 %v4705_v44, %v4704_v40 }
 0xb95   :  { %5456 = vmatpush1.bf16.msra.mxu0 %v5455_v55  ;;  %v5497_v55 = vpack.c.bf16 %v4602_v54, %v4600_v48  ;;  %v4709_v48 = vld [vmem:[%s9246_s16 + $0x88] sm:$0xff] }
 0xb96   :  { %5458 = vmatprep.subr.bf16.mxu0 %v5457_v50  ;;  %v4599_v50 = vld [vmem:[%s9245_s14 + $0x180] sm:$0xff]  ;;  %v5538_v54 = vpack.c.bf16 %v4709_v48, %v4708_v36 }
 0xb97   :  { %v5499_v8 = vpack.c.bf16 %v4601_v37, %v4599_v50  ;;  %v4712_v37 = vld [vmem:[%s9246_s16 + $0xa0] sm:$0xff] }
 0xb99   :  { %5460 = vmatpush1.bf16.msra.mxu0 %v5459_v23  ;;  %v5501_v23 = vpack.c.bf16 %v4606_v41, %v4604_v9  ;;  %v4713_v9 = vld [vmem:[%s9246_s16 + $0xa8] sm:$0xff] }
 0xb9a   :  { %5462 = vmatprep.subr.bf16.mxu0 %v5461_v33  ;;  %v4603_v33 = vld [vmem:[%s9245_s14 + $0x1a0] sm:$0xff]  ;;  %v5544_v41 = vpack.c.bf16 %v4713_v9, %v4712_v37 }
 0xb9b   :  { %v5503_v0 = vpack.c.bf16 %v4605_v10, %v4603_v33 }
 0xb9d   :  { %5464 = vmatpush1.bf16.msra.mxu0 %v5463_v16  ;;  %v5505_v16 = vpack.c.bf16 %v4610_v53, %v4608_v20 }
 0xb9e   :  { %5466 = vmatprep.subr.bf16.mxu0 %v5465_v61  ;;  %v4607_v61 = vld [vmem:[%s9245_s14 + $0x1c0] sm:$0xff]  ;;  %s6256_s14 = smov 116  }
 0xb9f   :  { %v5507_v38 = vpack.c.bf16 %v4609_v59, %v4607_v61 }
 0xba1   :  { %5468 = vmatpush1.bf16.msra.mxu0 %v5467_v7  ;;  %v5509_v7 = vpack.c.bf16 %v4614_v13, %v4612_v49 }
 0xba2   :  { %5470 = vmatprep.subr.bf16.mxu0 %v5469_v56  ;;  %v4476_v56 = vld [vmem:[%s9242_s13 + $0x1e0] sm:$0xff] }
 0xba3   :  { %v5447_v30 = vpack.c.bf16 %v4478_v58, %v4476_v56 }
 0xba5   :  { %5472 = vmatpush1.bf16.msra.mxu0 %v5471_v46  ;;  %v5511_v46 = vpack.c.bf16 %v4613_v32, %v4611_v5  ;;  %5448 = vmatpush1.bf16.msra.mxu1 %v5447_v30  ;;  %v6252_v32 = vmov 1934713408  }
 0xba6   :  { %5474 = vmatprep.subr.bf16.mxu0 %v5473_v3  ;;  %v6248_v3 = vmov 0.0|0.0  }
 0xba7   :  { %5513 = vmatprep.subr.bf16.mxu1 %v6248_v3 }
 0xba9   :  { %5476 = vmatpush1.bf16.msra.mxu0 %v5475_v6 }
 0xbaa   :  { %5478 = vmatprep.subr.bf16.mxu0 %v5477_v35  ;;  %v4694_v35 = vld [vmem:[%s9246_s16 + $0x10] sm:$0xff] }
 0xbab   :  { %v5517_v57 = vpack.c.bf16 %v4695_v45, %v4694_v35  ;;  %v6242_v35 = vld [vmem:[%s9464_s19 + $0x8] sm:$0xff]  ;;  %s6255_s19 = smov 126  }
 0xbad   :  { %5480 = vmatpush1.bf16.msra.mxu0 %v5479_v11 }
 0xbae   :  { %5482 = vmatprep.subr.bf16.mxu0 %v5481_v17  ;;  %v4696_v17 = vld [vmem:[%s9246_s16 + $0x20] sm:$0xff] }
 0xbaf   :  { %v5520_v63 = vpack.c.bf16 %v4697_v19, %v4696_v17  ;;  %v5280_v17 = vld.sshfl [vmem:[%s9248_s3] sm:$0x11 pattern:$0x75316420]  ;;  %s6254_s3 = smov 120  }
 0xbb1   :  { %5484 = vmatpush1.bf16.msra.mxu0 %v5483_v60  ;;  %v4698_v60 = vld [vmem:[%s9246_s16 + $0x30] sm:$0xff] }
 0xbb2   :  { %5486 = vmatprep.subr.bf16.mxu0 %v5485_v22  ;;  %v4699_v22 = vld [vmem:[%s9246_s16 + $0x38] sm:$0xff] }
 0xbb3   :  { %v5523_v31 = vpack.c.bf16 %v4699_v22, %v4698_v60 }
 0xbb5   :  { %5488 = vmatpush1.bf16.msra.mxu0 %v5487_v52  ;;  %v4702_v52 = vld [vmem:[%s9246_s16 + $0x50] sm:$0xff] }
 0xbb6   :  { %5490 = vmatprep.subr.bf16.mxu0 %v5489_v24  ;;  %v4703_v24 = vld [vmem:[%s9246_s16 + $0x58] sm:$0xff] }
 0xbb7   :  { %v5529_v18 = vpack.c.bf16 %v4703_v24, %v4702_v52 }
 0xbb9   :  { %5492 = vmatpush1.bf16.msra.mxu0 %v5491_v39  ;;  %v4706_v39 = vld [vmem:[%s9246_s16 + $0x70] sm:$0xff] }
 0xbba   :  { %5494 = vmatprep.subr.bf16.mxu0 %v5493_v1  ;;  %v4707_v1 = vld [vmem:[%s9246_s16 + $0x78] sm:$0xff] }
 0xbbb   :  { %v5535_v29 = vpack.c.bf16 %v4707_v1, %v4706_v39 }
 0xbbd   :  { %5496 = vmatpush1.bf16.msra.mxu0 %v5495_v28  ;;  %v4710_v28 = vld [vmem:[%s9246_s16 + $0x90] sm:$0xff] }
 0xbbe   :  { %5498 = vmatprep.subr.bf16.mxu0 %v5497_v55  ;;  %v4711_v55 = vld [vmem:[%s9246_s16 + $0x98] sm:$0xff] }
 0xbbf   :  { %v5541_v50 = vpack.c.bf16 %v4711_v55, %v4710_v28 }
 0xbc1   :  { %5500 = vmatpush1.bf16.msra.mxu0 %v5499_v8  ;;  %v4714_v8 = vld [vmem:[%s9246_s16 + $0xb0] sm:$0xff] }
 0xbc2   :  { %5502 = vmatprep.subr.bf16.mxu0 %v5501_v23  ;;  %v4715_v23 = vld [vmem:[%s9246_s16 + $0xb8] sm:$0xff] }
 0xbc3   :  { %v5547_v33 = vpack.c.bf16 %v4715_v23, %v4714_v8 }
 0xbc5   :  { %5504 = vmatpush1.bf16.msra.mxu0 %v5503_v0 }
 0xbc6   :  { %5506 = vmatprep.subr.bf16.mxu0 %v5505_v16 }
 0xbc9   :  { %5508 = vmatpush1.bf16.msra.mxu0 %v5507_v38 }
 0xbca   :  { %5510 = vmatprep.subr.bf16.mxu0 %v5509_v7  ;;  %v5278_v7 = vld [vmem:[%s9247_s17] ss:$0 sm:$0xff] }
 0xbcd   :  { %5512 = vmatpush1.bf16.msra.mxu0 %v5511_v46  ;;  %v4808_v46 = vunpack.c.l.s4 %v6252_v32 }
 0xbce   :  { %5339 = vmatprep.subr.mxu0 %v6246_v51 }
 0xc5b   :  { %v4224_v43 = vpop.f32.mrb[100].mxu0 }
 0xc5c   :  { %v4226_v6 = vpop.f32.mrb[101].mxu0 }
 0xc5d   :  { %4544 = vmatprep.mubr.f32.mxu1 %v4226_v6  ;;  %4679 = vmatprep.mubr.f32.mxu0 %v4226_v6 }
 0xc5e   :  { %4545 = vmatmul.mubr.f32.vlgmr.msra.gmra.mrb[76].mxu1 %v4224_v43  ;;  %4680 = vmatmul.mubr.f32.vlgmr.msra.gmra.mrb[106].mxu0 %v4224_v43 }
 0xc5f   :  { %v9094_v26 = vpop.f32.mrb[102].mxu0  ;;  %5515 = vmatpush1.bf16.msra.mxu1 %v5514_v21  ;;  %5340 = vmatpush3.xpose.msk.msra.mxu0 %vm226_vm0, %v6241_v25 }
 0xc60   :  { %v4332_v11 = vpop.f32.mrb[103].mxu0  ;;  %5516 = vmatprep.subr.bf16.mxu1 %v6248_v3  ;;  %5344 = vmatprep.subr.mxu0 %v6246_v51 }
 0xc61   :  { %5341 = vmatprep.mubr.msk.f32.mxu0 %vm6251_vm13, %v6246_v51 }
 0xc63   :  { %v4411_v14 = vpop.f32.mrb[104].mxu0  ;;  %5518 = vmatpush1.bf16.msra.mxu1 %v5517_v57 }
 0xc64   :  { %v4413_v47 = vpop.f32.mrb[105].mxu0  ;;  %5519 = vmatprep.subr.bf16.mxu1 %v6248_v3 }
 0xc67   :  { %5521 = vmatpush1.bf16.msra.mxu1 %v5520_v63 }
 0xc68   :  { %5522 = vmatprep.subr.bf16.mxu1 %v6248_v3 }
 0xc6b   :  { %5524 = vmatpush1.bf16.msra.mxu1 %v5523_v31 }
 0xc6c   :  { %5525 = vmatprep.subr.bf16.mxu1 %v6248_v3 }
 0xc6f   :  { %5527 = vmatpush1.bf16.msra.mxu1 %v5526_v2 }
 0xc70   :  { %5528 = vmatprep.subr.bf16.mxu1 %v6248_v3 }
 0xc73   :  { %5530 = vmatpush1.bf16.msra.mxu1 %v5529_v18 }
 0xc74   :  { %5531 = vmatprep.subr.bf16.mxu1 %v6248_v3 }
 0xc77   :  { %5533 = vmatpush1.bf16.msra.mxu1 %v5532_v62 }
 0xc78   :  { %5534 = vmatprep.subr.bf16.mxu1 %v6248_v3 }
 0xc7b   :  { %5536 = vmatpush1.bf16.msra.mxu1 %v5535_v29 }
 0xc7c   :  { %5537 = vmatprep.subr.bf16.mxu1 %v6248_v3 }
 0xc7f   :  { %5539 = vmatpush1.bf16.msra.mxu1 %v5538_v54 }
 0xc80   :  { %5540 = vmatprep.subr.bf16.mxu1 %v6248_v3 }
 0xc83   :  { %5542 = vmatpush1.bf16.msra.mxu1 %v5541_v50 }
 0xc84   :  { %5543 = vmatprep.subr.bf16.mxu1 %v6248_v3 }
 0xc87   :  { %5545 = vmatpush1.bf16.msra.mxu1 %v5544_v41 }
 0xc88   :  { %5546 = vmatprep.subr.bf16.mxu1 %v6248_v3  ;;  %v4809_v3 = vunpack.c.0.s8 %v4808_v46 }
 0xc8a   :  { %v9182_v42 = vsub.s32 %v4809_v3, %v9800_v12 }
 0xc8b   :  { %5548 = vmatpush1.bf16.msra.mxu1 %v5547_v33 }
 0xd31   :  { %v4546_v10 = vpop.f32.mrb[76].mxu1  ;;  %v4681_v20 = vpop.f32.mrb[106].mxu0 }
 0xd32   :  { %v4686_v53 = vmul.f32 %v4546_v10, %v9094_v26  ;;  %v4688_v0 = vmul.f32 %v4681_v20, %v4411_v14  ;;  %v4548_v16 = vpop.f32.mrb[77].mxu1  ;;  %v4683_v61 = vpop.f32.mrb[107].mxu0  ;;  %v6253_v26 = vmov 1966171168   ;;  %v4824_v14 = vcombine.high %v5280_v17, %v5280_v17 }
 0xd33   :  { %v4687_v59 = vmul.f32 %v4548_v16, %v4332_v11  ;;  %v4689_v49 = vmul.f32 %v4683_v61, %v4413_v47  ;;  %v4826_v57 = vunpack.c.l.s4 %v6253_v26 }
 0xd34   :  { %v4690_v13 = vadd.f32 %v4688_v0, %v4686_v53 }
 0xd35   :  { %v4691_v38 = vadd.f32 %v4689_v49, %v4687_v59  ;;  %v4827_v25 = vunpack.c.0.s8 %v4826_v57 }
 0xd37   :  { %5279 = vmatprep.mubr.msk.f32.mxu1 %vm4723_vm12, %v4691_v38  ;;  %v4830_v11 = vsub.s32 %v4827_v25, %v9800_v12 }
 0xd38   :  { %4792 = vmatmul.mubr.f32.vlgmr.msra.gmra.mrb[78].mxu1 %v4690_v13 }
 0xd39   :  { %v4831_v19 = vrot.slane %v5280_v17, %v4830_v11  ;;  %v4838_v47 = vrot.slane %v4824_v14, %v4830_v11 }
 0xd3b   :  { %v5005_v63 = vsub.f32 1.0, %v4831_v19  ;;  %v5006_v60 = vsub.f32 1.0, %v4838_v47  ;;  %v4996_v31 = vrot.slane %v4831_v19, %v9799_v15  ;;  %v5000_v12 = vrot.slane %v4838_v47, %v9799_v15 }
 0xd3d   :  { %v5007_v22 = vmul.f32 1000000.0, %v5005_v63  ;;  %v5008_v27 = vmul.f32 1000000.0, %v5006_v60 }
 0xd3f   :  { %v5014_v34 = vrot.slane %v5007_v22, %v9799_v15  ;;  %v5018_v40 = vrot.slane %v5008_v27, %v9799_v15 }
 0xe0b   :  { %v4793_v56 = vpop.f32.mrb[78].mxu1 }
 0xe0c   :  { %v9176_v58 = vadd.f32 %v5278_v7, %v4793_v56  ;;  %v4795_v5 = vpop.f32.mrb[79].mxu1 }
 0xe0e   :  { %4800 = vrot.lane.b32.xlu0 %v9176_v58, %s6249_s20  ;;  %4798 = vrot.lane.b32.xlu1 %v9176_v58, %s6250_s29  ;;  %v5073_v48 = vsel %vm5072_vm14, %v9176_v58, -inf  ;;  %v5109_v54 = vsel %vm5108_vm15, %v9176_v58, -inf  ;;  %v5061_v60 = vsub.f32 0.0, %v9176_v58 }
 0xe80   :  { %v4799_v30 = vpop.permute.xlu1 %4798  ;;  %v4801_v4 = vpop.permute.xlu0 %4800 }
 0xe81   :  { %4802 = vrot.lane.b32.xlu1 %v4799_v30, %s6249_s20 }
 0xef3   :  { %v4803_v43 = vpop.permute.xlu1 %4802 }
 0xef4   :  { %v4806_v21 = vcombine.low %v4801_v4, %v4803_v43 }
 0xef6   :  { %v4813_v6 = vrot.slane %v4806_v21, %v9182_v42 }
 0xef8   :  { %5342 = vmatmul.mubr.msk.f32.vlgmr.msra.gmra.mrb[108].mxu0 %vm226_vm0, %v4813_v6  ;;  %v4814_v45 = vcombine.high %v4813_v6, %v6246_v51 }
 0xef9   :  { %5345 = vmatpush3.xpose.msk.msra.mxu0 %vm226_vm0, %v6242_v35  ;;  %5346 = vmatprep.mubr.msk.f32.mxu0 %vm6251_vm13, %v6246_v51 }
 0xefc   :  { %5347 = vmatmul.mubr.msk.f32.vlgmr.msra.gmra.mrb[110].mxu0 %vm226_vm0, %v4814_v45  ;;  %vm5090_vm0 = vcmask 91200  }
 0xefd   :  { %v5091_v15 = vsel %vm5090_vm0, %v9176_v58, -inf }
 0xfcb   :  { %v4913_v2 = vpop.f32.mrb[108].mxu0 }
 0xfcc   :  { %v5003_v52 = vmul.f32 %v4996_v31, %v4913_v2  ;;  %v5343_v24 = vpop.f32.mrb[109].mxu0 }
 0xfce   :  { %v5021_v18 = vsub.f32 %v5003_v52, %v5014_v34 }
 0xfcf   :  { %v4989_v44 = vpop.f32.mrb[110].mxu0 }
 0xfd0   :  { %v5004_v62 = vmul.f32 %v5000_v12, %v4989_v44  ;;  %v5348_v39 = vpop.f32.mrb[111].mxu0  ;;  %v5023_v1 = vsel %vm3959_vm8, %v5021_v18, -inf }
 0xfd1   :  { %5024 = vmax.xlane.f32.xlu0 %v5023_v1 }
 0xfd2   :  { %v5022_v29 = vsub.f32 %v5004_v62, %v5018_v40 }
 0xfd4   :  { %v5026_v36 = vsel %vm3959_vm8, %v5022_v29, -inf }
 0xfd5   :  { %5027 = vmax.xlane.f32.xlu1 %v5026_v36  ;;  %5074 = vmax.xlane.f32.xlu0 %v5073_v48 }
 0xfd9   :  { %5110 = vmax.xlane.f32.xlu1 %v5109_v54  ;;  %5092 = vmax.xlane.f32.xlu0 %v5091_v15 }
0x105e   :  { %v5025_v28 = vpop.xlane.xlu0 %5024 }
0x105f   :  { %v5029_v55 = vsub.f32 %v5021_v18, %v5025_v28 }
0x1061   :  { %v5031_v50 = vmul.f32 1.442695, %v5029_v55 }
0x1062   :  { %v5028_v37 = vpop.xlane.xlu1 %5027  ;;  %v5075_v8 = vpop.xlane.xlu0 %5074 }
0x1063   :  { %6089 = vpow2.f32 %v5031_v50  ;;  %v5030_v9 = vsub.f32 %v5022_v29, %v5028_v37  ;;  %v9211_v0 = vsub.f32 %v9176_v58, %v5075_v8 }
0x1065   :  { %v5033_v41 = vmul.f32 1.442695, %v5030_v9  ;;  %v5077_v13 = vmul.f32 1.442695, %v9211_v0 }
0x1066   :  { %v5093_v33 = vpop.xlane.xlu0 %5092  ;;  %v5111_v16 = vpop.xlane.xlu1 %5110 }
0x1067   :  { %6091 = vpow2.f32 %v5033_v41  ;;  %v9208_v53 = vsub.f32 %v9176_v58, %v5093_v33  ;;  %v9215_v59 = vsub.f32 %v9176_v58, %v5111_v16  ;;  %v5062_v58 = vmax.f32 %v5061_v60, 0.0 }
0x1069   :  { %v5095_v49 = vmul.f32 1.442695, %v9208_v53  ;;  %v5113_v38 = vmul.f32 1.442695, %v9215_v59 }
0x106b   :  { %6093 = vpow2.f32 %v5095_v49 }
0x106c   :  { %6095 = vpow2.f32 %v5077_v13 }
0x106d   :  { %v6090_v23 = vpop.eup %6089  ;;  %6097 = vpow2.f32 %v5113_v38 }
0x106e   :  { %v5035_v10 = vsel %vm3959_vm8, %v6090_v23, 0.0 }
0x106f   :  { %5036 = vadd.xlane.f32.xlu0 %v5035_v10 }
0x1071   :  { %v6092_v20 = vpop.eup %6091 }
0x1072   :  { %v5038_v61 = vsel %vm3959_vm8, %v6092_v20, 0.0 }
0x1073   :  { %5039 = vadd.xlane.f32.xlu1 %v5038_v61 }
0x1075   :  { %v6094_v7 = vpop.eup %6093 }
0x1076   :  { %v6096_v56 = vpop.eup %6095 }
0x1077   :  { %v6098_v5 = vpop.eup %6097 }
0x1084   :  { %5098 = vrot.lane.b32.xlu1 %v6094_v7, %s6254_s3 }
0x1085   :  { %5080 = vrot.lane.b32.xlu0 %v6096_v56, %s6255_s19 }
0x1088   :  { %5116 = vrot.lane.b32.xlu1 %v6098_v5, %s6256_s14 }
0x10fc   :  { %v5037_v30 = vpop.xlane.xlu0 %5036 }
0x10fd   :  { %6099 = vlog2.f32 %v5037_v30 }
0x1100   :  { %v5040_v32 = vpop.xlane.xlu1 %5039  ;;  %v5081_v46 = vpop.permute.xlu0 %5080 }
0x1101   :  { %6101 = vlog2.f32 %v5040_v32  ;;  %v5084_v3 = vsel %vm5083_vm1, %v5081_v46, 0.0 }
0x1102   :  { %5085 = vadd.xlane.f32.xlu1 %v5084_v3 }
0x1104   :  { %v5099_v11 = vpop.permute.xlu1 %5098 }
0x1105   :  { %v5102_v17 = vsel %vm5101_vm2, %v5099_v11, 0.0 }
0x1107   :  { %v6100_v4 = vpop.eup %6099 }
0x1108   :  { %v5042_v43 = vmul.f32 0.6931472, %v6100_v4  ;;  %v5117_v19 = vpop.permute.xlu1 %5116 }
0x1109   :  { %v5120_v14 = vsel %vm5119_vm3, %v5117_v19, 0.0 }
0x110a   :  { %v5045_v35 = vsub.f32 %v5029_v55, %v5042_v43 }
0x110b   :  { %v6102_v21 = vpop.eup %6101 }
0x110c   :  { %v5044_v6 = vmul.f32 0.6931472, %v6102_v21 }
0x110e   :  { %v5046_v45 = vsub.f32 %v5030_v9, %v5044_v6 }
0x1110   :  { %v5047_v26 = vcombine.low %v5045_v35, %v5046_v45 }
0x1112   :  { %v5054_v57 = vrot.slane %v5047_v26, %v9182_v42  ;;  %v5063_v42 = vand.u32 2147483647, %v5061_v60 }
0x1114   :  { %v5055_v25 = vcombine.high %v5054_v57, %v6246_v51  ;;  %v5064_v22 = vsub.f32 0.0, %v5063_v42 }
0x1116   :  { %5057 = vrot.lane.b32.xlu0 %v5055_v25, %s6257_s23  ;;  %v5065_v51 = vmul.f32 1.442695, %v5064_v22 }
0x1118   :  { %6103 = vpow2.f32 %v5065_v51 }
0x1122   :  { %v6104_v31 = vpop.eup %6103 }
0x1123   :  { %v5067_v27 = vadd.f32 1.0, %v6104_v31 }
0x1125   :  { %6105 = vlog2.f32 %v5067_v27 }
0x112f   :  { %v6106_v24 = vpop.eup %6105 }
0x1130   :  { %v5069_v40 = vmul.f32 0.6931472, %v6106_v24 }
0x1132   :  { %v5070_v29 = vadd.f32 %v5069_v40, %v5062_v58 }
0x1134   :  { %v5071_v15 = vsub.f32 0.0, %v5070_v29 }
0x1135   :  { %5103 = vadd.xlane.f32.xlu0 %v5102_v17 }
0x1139   :  { %5121 = vadd.xlane.f32.xlu0 %v5120_v14 }
0x1188   :  { %v5058_v63 = vpop.permute.xlu0 %5057 }
0x1189   :  { %v5060_v47 = vsel %vm4067_vm9, %v5054_v57, %v5058_v63 }
0x118a   :  { %5127 = vrot.lane.b32.xlu1 %v5060_v47, %s6258_s24 }
0x118f   :  { %v5086_v2 = vpop.xlane.xlu1 %5085 }
0x1190   :  { %6107 = vlog2.f32 %v5086_v2 }
0x119a   :  { %v6108_v12 = vpop.eup %6107 }
0x119b   :  { %v5088_v62 = vmul.f32 0.6931472, %v6108_v12 }
0x119d   :  { %v5089_v36 = vsub.f32 %v9211_v0, %v5088_v62 }
0x119f   :  { %v5131_v28 = vsel %vm5130_vm4, %v5071_v15, %v5089_v36 }
0x11c2   :  { %v5104_v34 = vpop.xlane.xlu0 %5103 }
0x11c3   :  { %6109 = vlog2.f32 %v5104_v34 }
0x11c6   :  { %v5122_v52 = vpop.xlane.xlu0 %5121 }
0x11c7   :  { %6111 = vlog2.f32 %v5122_v52 }
0x11cd   :  { %v6110_v18 = vpop.eup %6109 }
0x11ce   :  { %v5106_v39 = vmul.f32 0.6931472, %v6110_v18 }
0x11d0   :  { %v5107_v48 = vsub.f32 %v9208_v53, %v5106_v39 }
0x11d1   :  { %v6112_v44 = vpop.eup %6111 }
0x11d2   :  { %v5124_v1 = vmul.f32 0.6931472, %v6112_v44  ;;  %v5132_v55 = vsel %vm4067_vm9, %v5131_v28, %v5107_v48 }
0x11d4   :  { %v5125_v54 = vsub.f32 %v9215_v59, %v5124_v1 }
0x11d6   :  { %v5134_v37 = vsel %vm5133_vm5, %v5132_v55, %v5125_v54 }
0x11fc   :  { %v5128_v50 = vpop.permute.xlu1 %5127 }
0x11fd   :  { %v5136_v9 = vsel %vm5135_vm6, %v5134_v37, %v5128_v50 }
0x11fe   :  { %v5138_v41 = vsel %vm5137_vm7, %v5136_v9, 0.0 }
0x11ff   :  { %5139 = vst [vmem:[%s9249_s18] sm:$0x3] %v5138_v41 }

</bundles_post_ra>
